<compile_context>
chip_gen: v7x
topology: tpu7x:2x2x1
jax: 0.10.0
libtpu: 0.0.40
codegen_flags: <defaults>
</compile_context>

<pallas_src>
import jax
import jax.numpy as jnp
from jax import lax
from jax.experimental import pallas as pl
from jax.experimental.pallas import tpu as pltpu

SEQ = 384
HID = 768
OUT = 3072
EPS = 1e-5


def _fused_kernel(a_ref, b_ref, gamma_ref, beta_ref, w_ref, bias_ref, o_ref):
    # a_ref, b_ref : (tm, HID)  f32   residual-add inputs (one row tile)
    # gamma/beta   : (1, HID)   f32   layernorm affine params
    # w_ref        : (HID, OUT) bf16  full linear weight (already transposed)
    # bias_ref     : (1, OUT)   f32   full linear bias
    # o_ref        : (tm, OUT)  f32
    #
    # Add + LayerNorm once per row tile, in f32 (VPU/XLU/EUP work).
    x = a_ref[...] + b_ref[...]
    mean = jnp.mean(x, axis=-1, keepdims=True)
    xc = x - mean
    var = jnp.mean(xc * xc, axis=-1, keepdims=True)
    inv = lax.rsqrt(var + EPS)
    y = (xc * inv * gamma_ref[...] + beta_ref[...]).astype(jnp.bfloat16)

    # Linear: bf16 x bf16 on the MXU with f32 accumulation, bias in f32.
    o_ref[...] = (
        jnp.dot(y, w_ref[...], preferred_element_type=jnp.float32)
        + bias_ref[...]
    ).astype(o_ref.dtype)


def fused_add_layernorm_linear(x230, x196, gamma, beta, w_t, bias, *, tm=128):
    # x230, x196: [1, SEQ, HID] f32;  w_t: [HID, OUT] (any float dtype);
    # bias: [OUT] f32.
    a = x230.reshape(SEQ, HID)
    b = x196.reshape(SEQ, HID)
    gamma2 = gamma.reshape(1, HID).astype(jnp.float32)
    beta2 = beta.reshape(1, HID).astype(jnp.float32)
    bias2 = bias.reshape(1, OUT).astype(jnp.float32)
    w_bf16 = w_t if w_t.dtype == jnp.bfloat16 else w_t.astype(jnp.bfloat16)

    grid = (SEQ // tm,)  # rows-only grid: 3 steps at tm=128

    out = pl.pallas_call(
        _fused_kernel,
        out_shape=jax.ShapeDtypeStruct((SEQ, OUT), jnp.float32),
        grid_spec=pltpu.PrefetchScalarGridSpec(
            num_scalar_prefetch=0,
            grid=grid,
            in_specs=[
                pl.BlockSpec((tm, HID), lambda i: (i, 0)),    # x230 row tile
                pl.BlockSpec((tm, HID), lambda i: (i, 0)),    # x196 row tile
                pl.BlockSpec((1, HID), lambda i: (0, 0)),     # gamma (resident)
                pl.BlockSpec((1, HID), lambda i: (0, 0)),     # beta  (resident)
                pl.BlockSpec((HID, OUT), lambda i: (0, 0)),   # full W, DMA'd once
                pl.BlockSpec((1, OUT), lambda i: (0, 0)),     # full bias
            ],
            out_specs=pl.BlockSpec((tm, OUT), lambda i: (i, 0)),
        ),
        compiler_params=pltpu.CompilerParams(
            dimension_semantics=("parallel",),   # v7x: rows split across 2 TCs
            vmem_limit_bytes=32 * 1024 * 1024,   # ~15 MB used; > v5e 16 MiB default
        ),
    )(a, b, gamma2, beta2, w_bf16, bias2)

    return out.reshape(1, SEQ, OUT)


def _reference(x230, x196, gamma, beta, w_t, bias):
    x = x230 + x196
    mean = jnp.mean(x, axis=-1, keepdims=True)
    var = jnp.mean((x - mean) ** 2, axis=-1, keepdims=True)
    y = (x - mean) * lax.rsqrt(var + EPS) * gamma + beta
    return jnp.einsum("bsh,hn->bsn", y, w_t) + bias


if __name__ == "__main__":
    key = jax.random.PRNGKey(0)
    k1, k2, k3, k4, k5, k6 = jax.random.split(key, 6)

    # Inputs (same shapes as the PyTorch module's globals).
    x230 = jax.random.normal(k1, (1, SEQ, HID), dtype=jnp.float32)
    x196 = jax.random.normal(k2, (1, SEQ, HID), dtype=jnp.float32)

    # Deterministic synthetic parameters.
    gamma = 1.0 + 0.02 * jax.random.normal(k3, (HID,), dtype=jnp.float32)
    beta = 0.02 * jax.random.normal(k4, (HID,), dtype=jnp.float32)
    # PyTorch Linear weight is (OUT, HID); pre-transpose to (HID, OUT) and
    # pre-cast to bf16 so the kernel-side HBM read / MXU path is bf16-native.
    w = 0.02 * jax.random.normal(k5, (OUT, HID), dtype=jnp.float32)
    w_t = w.T
    w_t_bf16 = w_t.astype(jnp.bfloat16)
    bias = 0.02 * jax.random.normal(k6, (OUT,), dtype=jnp.float32)

    out = fused_add_layernorm_linear(x230, x196, gamma, beta, w_t_bf16, bias)
    out = jax.block_until_ready(out)

    # Reference in full f32. The kernel runs the matmul with bf16 operands and
    # f32 accumulation (K=768), so allow a bf16-level tolerance.
    ref = _reference(x230, x196, gamma, beta, w_t, bias)
    assert out.shape == (1, SEQ, OUT), out.shape
    assert jnp.allclose(out, ref, atol=2e-2, rtol=2e-2), "mismatch vs reference"

    print("KERNEL_OK")
</pallas_src>

<mosaic_0001>
module attributes {stable_mosaic.version = 11 : i64} {
  func.func @_fused_kernel(%arg0: i32, %arg1: memref<128x768xf32, #tpu.memory_space<vmem>>, %arg2: memref<128x768xf32, #tpu.memory_space<vmem>>, %arg3: memref<1x768xf32, #tpu.memory_space<vmem>>, %arg4: memref<1x768xf32, #tpu.memory_space<vmem>>, %arg5: memref<768x3072xbf16, #tpu.memory_space<vmem>>, %arg6: memref<1x3072xf32, #tpu.memory_space<vmem>>, %arg7: memref<128x3072xf32, #tpu.memory_space<vmem>>) attributes {dimension_semantics = [#tpu.dimension_semantics<parallel>], iteration_bounds = array<i64: 3>, scalar_prefetch = 0 : i64, scratch_operands = 0 : i64, tpu.core_type = #tpu.core_type<tc>, window_params = [{transform_indices = @transform_0, window_bounds = array<i64: 128, 768>}, {transform_indices = @transform_1, window_bounds = array<i64: 128, 768>}, {pipeline_mode = #tpu.pipeline_mode<synchronous>, transform_indices = @transform_2, window_bounds = array<i64: 1, 768>}, {pipeline_mode = #tpu.pipeline_mode<synchronous>, transform_indices = @transform_3, window_bounds = array<i64: 1, 768>}, {pipeline_mode = #tpu.pipeline_mode<synchronous>, transform_indices = @transform_4, window_bounds = array<i64: 768, 3072>}, {pipeline_mode = #tpu.pipeline_mode<synchronous>, transform_indices = @transform_5, window_bounds = array<i64: 1, 3072>}, {transform_indices = @transform_6, window_bounds = array<i64: 128, 3072>}]} {
    %c0 = arith.constant 0 : index
    %c0_0 = arith.constant 0 : index
    %0 = vector.load %arg1[%c0, %c0_0] : memref<128x768xf32, #tpu.memory_space<vmem>>, vector<128x768xf32>
    %c0_1 = arith.constant 0 : index
    %c0_2 = arith.constant 0 : index
    %1 = vector.load %arg2[%c0_1, %c0_2] : memref<128x768xf32, #tpu.memory_space<vmem>>, vector<128x768xf32>
    %2 = arith.addf %0, %1 : vector<128x768xf32>
    %cst = arith.constant dense<0.000000e+00> : vector<128xf32>
    %3 = vector.multi_reduction <add>, %2, %cst [1] : vector<128x768xf32> to vector<128xf32>
    %4 = vector.shape_cast %3 : vector<128xf32> to vector<128x1xf32>
    %cst_3 = arith.constant 7.680000e+02 : f32
    %5 = vector.broadcast %cst_3 : f32 to vector<128x1xf32>
    %6 = arith.divf %4, %5 : vector<128x1xf32>
    %7 = vector.broadcast %6 : vector<128x1xf32> to vector<128x768xf32>
    %8 = arith.subf %2, %7 : vector<128x768xf32>
    %9 = arith.mulf %8, %8 : vector<128x768xf32>
    %cst_4 = arith.constant dense<0.000000e+00> : vector<128xf32>
    %10 = vector.multi_reduction <add>, %9, %cst_4 [1] : vector<128x768xf32> to vector<128xf32>
    %11 = vector.shape_cast %10 : vector<128xf32> to vector<128x1xf32>
    %cst_5 = arith.constant 7.680000e+02 : f32
    %12 = vector.broadcast %cst_5 : f32 to vector<128x1xf32>
    %13 = arith.divf %11, %12 : vector<128x1xf32>
    %cst_6 = arith.constant 9.99999974E-6 : f32
    %14 = vector.broadcast %cst_6 : f32 to vector<128x1xf32>
    %15 = arith.addf %13, %14 : vector<128x1xf32>
    %16 = math.rsqrt %15 : vector<128x1xf32>
    %17 = vector.broadcast %16 : vector<128x1xf32> to vector<128x768xf32>
    %18 = arith.mulf %8, %17 : vector<128x768xf32>
    %c0_7 = arith.constant 0 : index
    %c0_8 = arith.constant 0 : index
    %19 = vector.load %arg3[%c0_7, %c0_8] : memref<1x768xf32, #tpu.memory_space<vmem>>, vector<1x768xf32>
    %20 = vector.broadcast %19 : vector<1x768xf32> to vector<128x768xf32>
    %21 = arith.mulf %18, %20 : vector<128x768xf32>
    %c0_9 = arith.constant 0 : index
    %c0_10 = arith.constant 0 : index
    %22 = vector.load %arg4[%c0_9, %c0_10] : memref<1x768xf32, #tpu.memory_space<vmem>>, vector<1x768xf32>
    %23 = vector.broadcast %22 : vector<1x768xf32> to vector<128x768xf32>
    %24 = arith.addf %21, %23 : vector<128x768xf32>
    %25 = arith.truncf %24 : vector<128x768xf32> to vector<128x768xbf16>
    %c0_11 = arith.constant 0 : index
    %c0_12 = arith.constant 0 : index
    %26 = vector.load %arg5[%c0_11, %c0_12] : memref<768x3072xbf16, #tpu.memory_space<vmem>>, vector<768x3072xbf16>
    %cst_13 = arith.constant dense<0.000000e+00> : vector<128x3072xf32>
    %27 = tpu.matmul %25, %26, %cst_13 {dimension_numbers = #tpu.dot_dimension_numbers<[1], [0], [0], [1], [0, 0, 1, 1], [], []>} : vector<128x768xbf16>, vector<768x3072xbf16>, vector<128x3072xf32> -> vector<128x3072xf32>
    %c0_14 = arith.constant 0 : index
    %c0_15 = arith.constant 0 : index
    %28 = vector.load %arg6[%c0_14, %c0_15] : memref<1x3072xf32, #tpu.memory_space<vmem>>, vector<1x3072xf32>
    %29 = vector.broadcast %28 : vector<1x3072xf32> to vector<128x3072xf32>
    %30 = arith.addf %27, %29 : vector<128x3072xf32>
    %c0_16 = arith.constant 0 : index
    %c0_17 = arith.constant 0 : index
    %31 = vector.load %arg7[%c0_16, %c0_17] : memref<128x3072xf32, #tpu.memory_space<vmem>>, vector<128x3072xf32>
    tpu.vector_store %arg7[%c0_16, %c0_17], %30 {strides = array<i32>} : memref<128x3072xf32, #tpu.memory_space<vmem>>, vector<128x3072xf32>,
    return
  }
  func.func @transform_0(%arg0: i32) -> (i32, i32) {
    %c0_i32 = arith.constant 0 : i32
    %c0_i32_0 = arith.constant 0 : i32
    return %arg0, %c0_i32 : i32, i32
  }
  func.func @transform_1(%arg0: i32) -> (i32, i32) {
    %c0_i32 = arith.constant 0 : i32
    %c0_i32_0 = arith.constant 0 : i32
    return %arg0, %c0_i32 : i32, i32
  }
  func.func @transform_2(%arg0: i32) -> (i32, i32) {
    %c0_i32 = arith.constant 0 : i32
    %c0_i32_0 = arith.constant 0 : i32
    %c0_i32_1 = arith.constant 0 : i32
    return %c0_i32, %c0_i32_0 : i32, i32
  }
  func.func @transform_3(%arg0: i32) -> (i32, i32) {
    %c0_i32 = arith.constant 0 : i32
    %c0_i32_0 = arith.constant 0 : i32
    %c0_i32_1 = arith.constant 0 : i32
    return %c0_i32, %c0_i32_0 : i32, i32
  }
  func.func @transform_4(%arg0: i32) -> (i32, i32) {
    %c0_i32 = arith.constant 0 : i32
    %c0_i32_0 = arith.constant 0 : i32
    %c0_i32_1 = arith.constant 0 : i32
    return %c0_i32, %c0_i32_0 : i32, i32
  }
  func.func @transform_5(%arg0: i32) -> (i32, i32) {
    %c0_i32 = arith.constant 0 : i32
    %c0_i32_0 = arith.constant 0 : i32
    %c0_i32_1 = arith.constant 0 : i32
    return %c0_i32, %c0_i32_0 : i32, i32
  }
  func.func @transform_6(%arg0: i32) -> (i32, i32) {
    %c0_i32 = arith.constant 0 : i32
    %c0_i32_0 = arith.constant 0 : i32
    return %arg0, %c0_i32 : i32, i32
  }
}

</mosaic_0001>

<bundles_post_ra>
// kernel: tpu_custom_call.1
= control target key start
LH: loop header
LB: loop body
LE: loop exit
PB: predicated region body
PF: predicated region fallthrough
CT: control target
= control target key end

     0   :  { %s20287_s0 = inlined_call_operand.hbm [shape: f32[384,768], index: 0, kind: input, shape index: {}]   ;;  %s20288_s1 = inlined_call_operand.hbm [shape: f32[384,768], index: 1, kind: input, shape index: {}]   ;;  %s20289_s2 = inlined_call_operand.hbm [shape: f32[1,768], index: 2, kind: input, shape index: {}]   ;;  %s20290_s3 = inlined_call_operand.hbm [shape: f32[1,768], index: 3, kind: input, shape index: {}]   ;;  %s20291_s4 = inlined_call_operand.hbm [shape: bf16[768,3072], index: 4, kind: input, shape index: {}]   ;;  %s20292_s5 = inlined_call_operand.hbm [shape: f32[1,3072], index: 5, kind: input, shape index: {}]   ;;  %s20293_s6 = inlined_call_operand.hbm [shape: f32[384,3072], index: 6, kind: output, shape index: {}]  }
   0x1   :  { %20681 = sst [smem:[#allocation157_spill]] %s20287_s0 }
   0x2   :  { %20682 = sst [smem:[#allocation158_spill]] %s20289_s2 }
   0x3   :  { %20683 = sst [smem:[#allocation159_spill]] %s20290_s3 }
   0x4   :  { %11 = vsyncpa [#allocation3], 0 }
   0x5   :  { %13 = vsyncpa [#allocation3 + $0x1], 0 }
   0x6   :  { %14 = vsyncpa [#allocation6], 0 }
   0x7   :  { %16 = vsyncpa [#allocation6 + $0x1], 0 }
   0x8   :  { %17 = vsyncpa [#allocation9], 0 }
   0x9   :  { %18 = vsyncpa [#allocation12], 0 }
   0xa   :  { %19 = vsyncpa [#allocation4], 0 }
   0xb   :  { %21 = vsyncpa [#allocation4 + $0x1], 0  ;;  %s15945_s21 = smov 0   ;;  %s15947_s22 = smov 0  }
   0xc   :  { %s15949_s23 = smov 0   ;;  %s15951_s24 = smov 0  }
   0xd LB: > { %s15966_s25 = sadd.s32 4294967295, %s15895_s24   ;;  %s13175_s26 = sadd.s32 4294967294, %s15895_s24   ;;  %s15895_s24 = sphi %s15951_s24, %s21350_s24   ;;  %s15891_s23 = sphi %s15949_s23, %s21349_s23   ;;  %s15887_s22 = sphi %s15947_s22, %s21348_s22   ;;  %s15883_s21 = sphi %s15945_s21, %s21347_s21  }
   0xe   : > { %p47_p0 = scmp.ne.s32.totalorder %s15887_s22, %s15883_s21  ;;  %p20294_p1 = scmp.eq.s32.totalorder %s15966_s25, 0 }
   0xf   : > { %p187_p3 = scmp.eq.s32.totalorder %s13175_s26, 2  ;;  %p13176_p5 = scmp.ge.s32.totalorder %s15895_s24, 1 }
  0x10   : > { %p15975_p4 = por %p20294_p1, %p47_p0  ;;  %p194_p7 = scmp.lt.s32.totalorder %s15895_s24, 4 }
  0x11   : > { %p15980_p6 = por %p187_p3, %p47_p0  ;;  %s15897_s30 = smov [#allocation7]  }
  0x12   : > { %s20684_s27 = scalar_select %p15975_p4, 1, 0 }
  0x13   : > { %s20685_s28 = scalar_select %p15980_p6, 1, 0 }
  0x14   : > { %p15985_p8 = pnand %p13176_p5, %p194_p7  ;;  %s207_s7 = sshll.u32 %s15897_s30, 4  ;;  %s208_s7 = int_to_ptr.vmem [resolvable:$true] %s207_s7 }
  0x15   : > { %s15898_s8 = smov [#allocation8]   ;;  %s15899_s11 = smov [#allocation10]  }
  0x16   : > { %s20686_s29 = scalar_select %p15985_p8, 1, 0 }
  0x17   : > { %p15531_p9 = pneg %p15985_p8  ;;  %s218_s9 = sshll.u32 %s15898_s8, 4  ;;  %s15997_s9 = int_to_ptr.vmem [resolvable:$true] %s218_s9 }
  0x18   : > { %s228_s12 = sshll.u32 %s15899_s11, 4  ;;  %s20688_s2 = sld [smem:[#allocation158_spill]]  ;;  %s15999_s12 = int_to_ptr.vmem [resolvable:$true] %s228_s12 }
  0x19   : > { %p15993_p10 = pnand %p15531_p9, %p20294_p1 }
  0x1b   : > { %p16009_p12 = pneg %p15993_p10 }
  0x1e   : > { %s15641_s15 = scalar_lea.hbm %s20688_s2, 96 }
  0x1f   : > { %p15642_p11 = scmp.ne.s32.totalorder %s20688_s2, %s15641_s15  ;;  %p15648_p3 = scmp.lt.u32.totalorder %s15641_s15, %s20688_s2 }
  0x21   : > { %p15644_p13 = pnand %p16009_p12, %p15642_p11 }
  0x23   : > { %p15645_p0 = pneg %p15644_p13 }
  0x25   : > { %p15650_p5 = pnand %p15648_p3, %p15645_p0 }
  0x27   : > { %15653 = shalt.err (!%p15650_p5)
}
  0x28   : > { %s15654_s26 = scalar_lea.vmem %s208_s7, 96  ;;  %p15662_p2 = scmp.lt.s32.totalorder %s208_s7, %s208_s7 }
  0x29   : > { %p15655_p7 = scmp.ne.s32.totalorder %s208_s7, %s15654_s26  ;;  %p15663_p6 = scmp.lt.s32.totalorder %s15654_s26, %s15654_s26 }
  0x2b   : > { %p15657_p9 = pnand %p15655_p7, %p16009_p12  ;;  %p15664_p4 = por %p15663_p6, %p15662_p2 }
  0x2d   : > { %p15658_p1 = pneg %p15657_p9 }
  0x2f   : > { %p15665_p8 = pnand %p15664_p4, %p15658_p1 }
  0x31   : > { %15668 = shalt.err (!%p15665_p8)
}
  0x32   : > { %15534 = dma.hbm_to_vmem [thread:$0]  (!%p15993_p10), %s20688_s2, 96, %s208_s7, [#allocation6]  }
  0x33   : > { %s20690_s3 = sld [smem:[#allocation159_spill]] }
  0x39   : > { %s15669_s14 = scalar_lea.hbm %s20690_s3, 96 }
  0x3a   : > { %p15670_p11 = scmp.ne.s32.totalorder %s20690_s3, %s15669_s14  ;;  %p15676_p1 = scmp.lt.u32.totalorder %s15669_s14, %s20690_s3 }
  0x3c   : > { %p15672_p13 = pnand %p15670_p11, %p16009_p12 }
  0x3e   : > { %p15673_p2 = pneg %p15672_p13 }
  0x40   : > { %p15678_p4 = pnand %p15676_p1, %p15673_p2 }
  0x42   : > { %15681 = shalt.err (!%p15678_p4)
}
  0x43   : > { %s15682_s7 = scalar_lea.vmem %s15997_s9, 96  ;;  %p15690_p3 = scmp.lt.s32.totalorder %s15997_s9, %s15997_s9 }
  0x44   : > { %p15683_p6 = scmp.ne.s32.totalorder %s15997_s9, %s15682_s7  ;;  %p15691_p5 = scmp.lt.s32.totalorder %s15682_s7, %s15682_s7 }
  0x46   : > { %p15685_p8 = pnand %p15683_p6, %p16009_p12  ;;  %p15692_p7 = por %p15691_p5, %p15690_p3 }
  0x48   : > { %p15686_p0 = pneg %p15685_p8 }
  0x4a   : > { %p15693_p9 = pnand %p15692_p7, %p15686_p0 }
  0x4c   : > { %15696 = shalt.err (!%p15693_p9)
}
  0x4d   : > { %15537 = dma.hbm_to_vmem [thread:$0]  (!%p15993_p10), %s20690_s3, 96, %s15997_s9, [#allocation9]  }
  0x4e   : > { %s15697_s11 = scalar_lea.hbm %s20291_s4, 147456 }
  0x4f   : > { %p15698_p11 = scmp.ne.s32.totalorder %s20291_s4, %s15697_s11  ;;  %p15704_p1 = scmp.lt.u32.totalorder %s15697_s11, %s20291_s4 }
  0x51   : > { %p15700_p13 = pnand %p15698_p11, %p16009_p12 }
  0x53   : > { %p15701_p2 = pneg %p15700_p13 }
  0x55   : > { %p15706_p4 = pnand %p15704_p1, %p15701_p2 }
  0x57   : > { %15709 = shalt.err (!%p15706_p4)
}
  0x58   : > { %s15710_s9 = scalar_lea.vmem %s15999_s12, 147456  ;;  %p15718_p3 = scmp.lt.s32.totalorder %s15999_s12, %s15999_s12 }
  0x59   : > { %p15711_p6 = scmp.ne.s32.totalorder %s15999_s12, %s15710_s9  ;;  %p15719_p5 = scmp.lt.s32.totalorder %s15710_s9, %s15710_s9 }
  0x5b   : > { %p15713_p8 = pnand %p15711_p6, %p16009_p12  ;;  %p15720_p7 = por %p15719_p5, %p15718_p3 }
  0x5d   : > { %p15714_p0 = pneg %p15713_p8 }
  0x5f   : > { %p15721_p9 = pnand %p15720_p7, %p15714_p0 }
  0x61   : > { %15724 = shalt.err (!%p15721_p9)
}
  0x62   : > { %s15900_s17 = smov 1536   ;;  %s15901_s19 = smov 96  }
  0x63   : > { %15540 = dma.hbm_to_vmem [thread:$0]  (!%p15993_p10), %s20291_s4, 147456, %s15999_s12, [#allocation9], %s15900_s17, %s15900_s17, %s15901_s19  }
  0x64   : > { %s15902_s26 = smov [#allocation11]   ;;  %s15725_s13 = scalar_lea.hbm %s20292_s5, 384 }
  0x65   : > { %s242_s30 = sshll.u32 %s15902_s26, 4  ;;  %p15726_p11 = scmp.ne.s32.totalorder %s20292_s5, %s15725_s13  ;;  %s243_s30 = int_to_ptr.vmem [resolvable:$true] %s242_s30 }
  0x66   : > { %p15732_p1 = scmp.lt.u32.totalorder %s15725_s13, %s20292_s5 }
  0x67   : > { %p15728_p13 = pnand %p15726_p11, %p16009_p12 }
  0x69   : > { %p15729_p2 = pneg %p15728_p13 }
  0x6b   : > { %p15734_p4 = pnand %p15732_p1, %p15729_p2 }
  0x6d   : > { %15737 = shalt.err (!%p15734_p4)
}
  0x6e   : > { %s15738_s12 = scalar_lea.vmem %s243_s30, 384  ;;  %p15746_p3 = scmp.lt.s32.totalorder %s243_s30, %s243_s30 }
  0x6f   : > { %p15739_p6 = scmp.ne.s32.totalorder %s243_s30, %s15738_s12  ;;  %p15747_p5 = scmp.lt.s32.totalorder %s15738_s12, %s15738_s12 }
  0x71   : > { %p15741_p8 = pnand %p15739_p6, %p16009_p12  ;;  %p15748_p7 = por %p15747_p5, %p15746_p3 }
  0x73   : > { %p15742_p0 = pneg %p15741_p8 }
  0x75   : > { %p15749_p9 = pnand %p15748_p7, %p15742_p0 }
  0x77   : > { %15752 = shalt.err (!%p15749_p9)
}
  0x78   : > { %15543 = dma.hbm_to_vmem [thread:$0]  (!%p15993_p10), %s20292_s5, 384, %s243_s30, [#allocation12]  }
  0x79   : > { %s16090_s18 = sadd.s32 1, %s15895_s24   ;;  %s34_s10 = sadd.s32 1, %s15891_s23 }
  0x7a   : > { %s31_s7 = ssub.s32 %s15895_s24, %s16090_s18  ;;  %p41_p12 = scmp.ne.s32.totalorder %s15891_s23, %s15887_s22 }
  0x7b   : > { %p32_p11 = scmp.eq.s32.totalorder %s31_s7, 0  ;;  %p42_p13 = scmp.eq.s32.totalorder %s15895_s24, 0 }
  0x7c   : > { %p20691_p2 = scmp.eq.s32.totalorder %s15966_s25, 2  ;;  %p15559_p4 = scmp.lt.s32.totalorder %s15895_s24, 3 }
  0x7d   : > { %s16106_s26 = scalar_select %p32_p11, %s15891_s23, %s34_s10  }
  0x7e   : > { %p16100_p1 = por %p20691_p2, %p41_p12  ;;  %p43_p6 = por %p42_p13, %p41_p12 }
  0x7f   : > { %s253_s8 = sand.u32 1, %s15891_s23   ;;  %s20297_s11 = smul.u32 12288, %s15895_s24 }
  0x80   : > { %s16109_s30 = smul.u32 768, %s253_s8  ;;  %p16112_p10 = pnand %p15559_p4, %p43_p6 }
  0x81   : > { %s20694_s0 = sld [smem:[#allocation157_spill]]  ;;  %s275_s17 = sand.u32 1, %s15895_s24  }
  0x82   : > { %s257_s9 = scalar_lea.vmem [#allocation2], %s16109_s30  ;;  %s16127_s19 = scalar_lea.sflag [#allocation3], %s253_s8 }
  0x83   : > { %s265_s12 = sshll.u32 %s257_s9, 4  ;;  %p15755_p0 = pneg %p16112_p10  ;;  %s16124_s12 = int_to_ptr.vmem [resolvable:$true] %s265_s12 }
  0x87   : > { %s16121_s16 = scalar_lea.hbm %s20694_s0, %s20297_s11  ;;  %s15758_s15 = scalar_lea.hbm %s20694_s0, 36864 }
  0x88   : > { %s15753_s10 = scalar_lea.hbm %s16121_s16, 12288  ;;  %p15759_p7 = scmp.lt.u32.totalorder %s16121_s16, %s20694_s0 }
  0x89   : > { %p15754_p8 = scmp.ne.s32.totalorder %s16121_s16, %s15753_s10  ;;  %p15760_p9 = scmp.lt.u32.totalorder %s15758_s15, %s15753_s10 }
  0x8a   : > { %p15762_p11 = scmp.lt.u32.totalorder %s15753_s10, %s16121_s16 }
  0x8b   : > { %p15756_p3 = pnand %p15755_p0, %p15754_p8  ;;  %p15761_p12 = por %p15760_p9, %p15759_p7 }
  0x8d   : > { %p15757_p5 = pneg %p15756_p3  ;;  %p15763_p13 = por %p15762_p11, %p15761_p12 }
  0x8f   : > { %p15764_p2 = pnand %p15763_p13, %p15757_p5 }
  0x91   : > { %15767 = shalt.err (!%p15764_p2)
}
  0x92   : > { %s15768_s8 = scalar_lea.vmem %s16124_s12, 12288  ;;  %s15903_s9 = smov [#allocation2]  }
  0x93   : > { %p15769_p4 = scmp.ne.s32.totalorder %s16124_s12, %s15768_s8  ;;  %s15773_s7 = sshll.u32 %s15903_s9, 4  ;;  %s15774_s7 = int_to_ptr.vmem [resolvable:$false] %s15773_s7 }
  0x94   : > { %s15775_s2 = scalar_lea.vmem %s15774_s7, 24576  ;;  %p15776_p3 = scmp.lt.s32.totalorder %s16124_s12, %s15774_s7 }
  0x95   : > { %p15771_p6 = pnand %p15769_p4, %p15755_p0  ;;  %p15777_p7 = scmp.lt.s32.totalorder %s15775_s2, %s15768_s8 }
  0x97   : > { %p15772_p8 = pneg %p15771_p6  ;;  %p15778_p9 = por %p15777_p7, %p15776_p3 }
  0x99   : > { %p15779_p12 = pnand %p15778_p9, %p15772_p8 }
  0x9b   : > { %15782 = shalt.err (!%p15779_p12)
}
  0x9c   : > { %s15904_s11 = smov 768   ;;  %s15905_s10 = smov 48  }
  0x9d   : > { %15547 = dma.hbm_to_vmem [thread:$0]  (!%p16112_p10), %s16121_s16, 12288, %s16124_s12, %s16127_s19, %s15904_s11, %s15904_s11, %s15905_s10  }
  0x9e   : > { %s20695_s14 = smul.u32 12288, %s15895_s24  ;;  %s279_s7 = scalar_lea.vmem [#allocation5], %s16109_s30 }
  0x9f   : > { %s287_s2 = sshll.u32 %s279_s7, 4  ;;  %s16170_s0 = scalar_lea.sflag [#allocation6], %s275_s17  ;;  %s16166_s2 = int_to_ptr.vmem [resolvable:$true] %s287_s2 }
  0xa0   : > { %s16163_s9 = scalar_lea.hbm %s20288_s1, %s20695_s14  ;;  %s15788_s19 = scalar_lea.hbm %s20288_s1, 36864 }
  0xa1   : > { %s15783_s3 = scalar_lea.hbm %s16163_s9, 12288  ;;  %p15789_p2 = scmp.lt.u32.totalorder %s16163_s9, %s20288_s1 }
  0xa2   : > { %p15784_p5 = scmp.ne.s32.totalorder %s16163_s9, %s15783_s3  ;;  %p15790_p4 = scmp.lt.u32.totalorder %s15788_s19, %s15783_s3 }
  0xa3   : > { %p15792_p8 = scmp.lt.u32.totalorder %s15783_s3, %s16163_s9 }
  0xa4   : > { %p15786_p11 = pnand %p15784_p5, %p15755_p0  ;;  %p15791_p6 = por %p15790_p4, %p15789_p2 }
  0xa6   : > { %p15787_p13 = pneg %p15786_p11  ;;  %p15793_p3 = por %p15792_p8, %p15791_p6 }
  0xa8   : > { %p15794_p7 = pnand %p15793_p3, %p15787_p13 }
  0xaa   : > { %15797 = shalt.err (!%p15794_p7)
}
  0xab   : > { %s15798_s30 = scalar_lea.vmem %s16166_s2, 12288  ;;  %s15906_s17 = smov [#allocation5]  }
  0xac   : > { %p15799_p9 = scmp.ne.s32.totalorder %s16166_s2, %s15798_s30  ;;  %s15803_s8 = sshll.u32 %s15906_s17, 4  ;;  %s15804_s8 = int_to_ptr.vmem [resolvable:$false] %s15803_s8 }
  0xad   : > { %s15805_s7 = scalar_lea.vmem %s15804_s8, 24576  ;;  %p15806_p11 = scmp.lt.s32.totalorder %s16166_s2, %s15804_s8 }
  0xae   : > { %p15801_p12 = pnand %p15799_p9, %p15755_p0  ;;  %p15807_p2 = scmp.lt.s32.totalorder %s15805_s7, %s15798_s30 }
  0xb0   : > { %p15802_p5 = pneg %p15801_p12  ;;  %p15808_p4 = por %p15807_p2, %p15806_p11 }
  0xb2   : > { %p15809_p6 = pnand %p15808_p4, %p15802_p5 }
  0xb4   : > { %15812 = shalt.err (!%p15809_p6)
}
  0xb5   : > { %15550 = dma.hbm_to_vmem [thread:$0]  (!%p16112_p10), %s16163_s9, 12288, %s16166_s2, %s16170_s0, %s15904_s11, %s15904_s11, %s15905_s10  }
  0xb6   : > { %p20696_p0 = scmp.ne.s32.totalorder %s20686_s29, 0 }
  0xb8   : > { %299 = sbr.rel (%p20696_p0) target bundleno = 1961 (0x7a9), region = 44 }
  0xbf   : > { %s16202_s3 = sand.u32 1, %s15887_s22   ;;  %p20697_p13 = scmp.ne.s32.totalorder %s20684_s27, 0 }
  0xc0   : > { %s15506_s16 = smul.u32 768, %s16202_s3  ;;  %s302_s12 = scalar_lea.sflag [#allocation3], %s16202_s3 }
  0xc2   : > { %s16206_s19 = scalar_lea.vmem [#allocation2], %s15506_s16 }
  0xc3   : > { %15858 = dma.done.wait (%p20697_p13), %s302_s12, 12288  }
  0xc4   : > { %15860 = vsyncadd (%p20697_p13), %s302_s12, 4294955008  ;;  %s310_s0 = sand.u32 1, %s15966_s25   ;;  %s16213_s13 = scalar_lea.vmem [#allocation5], %s15506_s16 }
  0xc5   : > { %s311_s29 = scalar_lea.sflag [#allocation6], %s310_s0 }
  0xc6   : > { %15862 = dma.done.wait (%p20697_p13), %s311_s29, 12288  }
  0xc7   : > { %15864 = vsyncadd (%p20697_p13), %s311_s29, 4294955008  ;;  %p20698_p10 = scmp.eq.s32.totalorder %s15966_s25, 0 }
  0xc9   : > { %15866 = dma.done.wait (%p20698_p10), [#allocation6], 96   ;;  %p20699_p8 = pmov %p20698_p10 }
  0xcb   : > { %15868 = vsyncadd (%p20699_p8), [#allocation6], 4294967200  ;;  %p20700_p3 = pmov %p20699_p8 }
  0xcd   : > { %15870 = dma.done.wait (%p20700_p3), [#allocation9], 147552   ;;  %p20701_p7 = pmov %p20700_p3 }
  0xce   : > { %p20702_p9 = pmov %p20700_p3 }
  0xcf   : > { %15872 = vsyncadd (%p20701_p7), [#allocation9], 4294819744 }
  0xd0   : > { %15874 = dma.done.wait (%p20702_p9), [#allocation12], 384   ;;  %p20703_p12 = pmov %p20700_p3 }
  0xd1   : > { %v379_v0 = vld [vmem:[%s16206_s19 + $0x60] sm:$0xff]  ;;  %v380_v1 = vld [vmem:[%s16206_s19 + $0x68] sm:$0xff]  ;;  %v381_v2 = vld [vmem:[%s16206_s19 + $0x70] sm:$0xff]  ;;  %s15507_s27 = smul.u32 3072, %s16202_s3  ;;  %s13027_s15 = scalar_lea.sflag [#allocation4], %s16202_s3 }
  0xd2   : > { %15876 = vsyncadd (%p20703_p12), [#allocation12], 4294966912  ;;  %v382_v3 = vld [vmem:[%s16206_s19 + $0x78] sm:$0xff]  ;;  %v475_v4 = vld [vmem:[%s16213_s13 + $0x60] sm:$0xff]  ;;  %s15508_s10 = smul.u32 49152, %s15966_s25  ;;  %s15907_s17 = smov [#allocation13]  }
  0xd3   : > { %v476_v5 = vld [vmem:[%s16213_s13 + $0x68] sm:$0xff]  ;;  %v477_v6 = vld [vmem:[%s16213_s13 + $0x70] sm:$0xff]  ;;  %v383_v7 = vld [vmem:[%s16206_s19 + $0x80] sm:$0xff]  ;;  %v16241_v10 = vadd.f32 %v475_v4, %v379_v0  ;;  %s18759_s11 = scalar_lea.vmem [#allocation13], %s15507_s27  ;;  %s15817_s8 = sshll.u32 %s15907_s17, 4  ;;  %s15818_s8 = int_to_ptr.vmem [resolvable:$false] %s15817_s8 }
  0xd4   : > { %v478_v8 = vld [vmem:[%s16213_s13 + $0x78] sm:$0xff]  ;;  %v479_v9 = vld [vmem:[%s16213_s13 + $0x80] sm:$0xff]  ;;  %v16243_v11 = vadd.f32 %v476_v5, %v380_v1  ;;  %v16245_v12 = vadd.f32 %v477_v6, %v381_v2  ;;  %v368_v14 = vld [vmem:[%s16206_s19 + $0x8] sm:$0xff]  ;;  %s13041_s9 = sshll.u32 %s18759_s11, 4  ;;  %s20234_s14 = scalar_lea.hbm %s20293_s6, %s15508_s10  ;;  %s20240_s9 = int_to_ptr.vmem [resolvable:$true] %s13041_s9 }
  0xd5   : > { %v367_v13 = vld [vmem:[%s16206_s19] sm:$0xff]  ;;  %v369_v15 = vld [vmem:[%s16206_s19 + $0x10] sm:$0xff]  ;;  %v384_v16 = vld [vmem:[%s16206_s19 + $0x88] sm:$0xff]  ;;  %v16252_v18 = vadd.f32 %v478_v8, %v382_v3  ;;  %v16257_v21 = vadd.f32 %v479_v9, %v383_v7  ;;  %s15813_s30 = scalar_lea.vmem %s20240_s9, 49152  ;;  %s15819_s7 = scalar_lea.vmem %s15818_s8, 98304 }
  0xd6   : > { %v480_v17 = vld [vmem:[%s16213_s13 + $0x88] sm:$0xff]  ;;  %v669_v19 = vadd.f32 %v16243_v11, %v16241_v10  ;;  %v370_v20 = vld [vmem:[%s16206_s19 + $0x18] sm:$0xff]  ;;  %v463_v22 = vld [vmem:[%s16213_s13] sm:$0xff]  ;;  %p15814_p5 = scmp.ne.s32.totalorder %s20240_s9, %s15813_s30  ;;  %p15820_p4 = scmp.lt.s32.totalorder %s20240_s9, %s15818_s8 }
  0xd7   : > { %v464_v23 = vld [vmem:[%s16213_s13 + $0x8] sm:$0xff]  ;;  %v465_v24 = vld [vmem:[%s16213_s13 + $0x10] sm:$0xff]  ;;  %v371_v26 = vld [vmem:[%s16206_s19 + $0x20] sm:$0xff]  ;;  %v16266_v29 = vadd.f32 %v463_v22, %v367_v13  ;;  %v16275_v35 = vadd.f32 %v480_v17, %v384_v16  ;;  %p15821_p6 = scmp.lt.s32.totalorder %s15819_s7, %s15813_s30 }
  0xd8   : > { %v670_v25 = vadd.f32 %v669_v19, %v16245_v12  ;;  %v466_v27 = vld [vmem:[%s16213_s13 + $0x18] sm:$0xff]  ;;  %v467_v28 = vld [vmem:[%s16213_s13 + $0x20] sm:$0xff]  ;;  %v16268_v30 = vadd.f32 %v464_v23, %v368_v14  ;;  %v16270_v31 = vadd.f32 %v465_v24, %v369_v15  ;;  %v372_v32 = vld [vmem:[%s16206_s19 + $0x28] sm:$0xff]  ;;  %p15815_p11 = pnand %p15814_p5, %p16100_p1 }
  0xd9   : > { %v385_v33 = vld [vmem:[%s16206_s19 + $0x90] sm:$0xff]  ;;  %v386_v34 = vld [vmem:[%s16206_s19 + $0x98] sm:$0xff]  ;;  %v468_v37 = vld [vmem:[%s16213_s13 + $0x28] sm:$0xff]  ;;  %v16279_v38 = vadd.f32 %v466_v27, %v370_v20  ;;  %v16285_v42 = vadd.f32 %v467_v28, %v371_v26  ;;  %p15822_p0 = por %p15821_p6, %p15820_p4 }
  0xda   : > { %v671_v36 = vadd.f32 %v670_v25, %v16252_v18  ;;  %v655_v39 = vadd.f32 %v16268_v30, %v16266_v29  ;;  %v387_v40 = vld [vmem:[%s16206_s19 + $0xa0] sm:$0xff]  ;;  %v388_v41 = vld [vmem:[%s16206_s19 + $0xa8] sm:$0xff]  ;;  %v481_v43 = vld [vmem:[%s16213_s13 + $0x90] sm:$0xff]  ;;  %v16299_v53 = vadd.f32 %v468_v37, %v372_v32  ;;  %p15816_p2 = pneg %p15815_p11 }
  0xdb   : > { %v482_v44 = vld [vmem:[%s16213_s13 + $0x98] sm:$0xff]  ;;  %v483_v45 = vld [vmem:[%s16213_s13 + $0xa0] sm:$0xff]  ;;  %v389_v48 = vld [vmem:[%s16206_s19 + $0xb0] sm:$0xff]  ;;  %v16295_v51 = vadd.f32 %v481_v43, %v385_v33 }
  0xdc   : > { %v672_v46 = vadd.f32 %v671_v36, %v16257_v21  ;;  %v656_v47 = vadd.f32 %v655_v39, %v16270_v31  ;;  %v484_v49 = vld [vmem:[%s16213_s13 + $0xa8] sm:$0xff]  ;;  %v485_v50 = vld [vmem:[%s16213_s13 + $0xb0] sm:$0xff]  ;;  %v16297_v52 = vadd.f32 %v482_v44, %v386_v34  ;;  %v390_v54 = vld [vmem:[%s16206_s19 + $0xb8] sm:$0xff]  ;;  %v16302_v55 = vadd.f32 %v483_v45, %v387_v40  ;;  %p15823_p13 = pnand %p15822_p0, %p15816_p2 }
  0xdd   : > { %v373_v56 = vld [vmem:[%s16206_s19 + $0x30] sm:$0xff]  ;;  %v374_v57 = vld [vmem:[%s16206_s19 + $0x38] sm:$0xff]  ;;  %v16309_v61 = vadd.f32 %v484_v49, %v388_v41  ;;  %v375_v63 = vld [vmem:[%s16206_s19 + $0x40] sm:$0xff]  ;;  %v16315_v1 = vadd.f32 %v485_v50, %v389_v48 }
  0xde   : > { %v673_v58 = vadd.f32 %v672_v46, %v16275_v35  ;;  %v657_v59 = vadd.f32 %v656_v47, %v16279_v38  ;;  %v486_v60 = vld [vmem:[%s16213_s13 + $0xb8] sm:$0xff]  ;;  %v676_v62 = vadd.f32 %v16297_v52, %v16295_v51  ;;  %v376_v0 = vld [vmem:[%s16206_s19 + $0x48] sm:$0xff]  ;;  %v469_v2 = vld [vmem:[%s16213_s13 + $0x30] sm:$0xff] }
  0xdf   : > { %v470_v3 = vld [vmem:[%s16213_s13 + $0x38] sm:$0xff]  ;;  %v471_v4 = vld [vmem:[%s16213_s13 + $0x40] sm:$0xff]  ;;  %v377_v7 = vld [vmem:[%s16206_s19 + $0x50] sm:$0xff]  ;;  %v16325_v13 = vadd.f32 %v469_v2, %v373_v56  ;;  %v16329_v15 = vadd.f32 %v486_v60, %v390_v54 }
  0xe0   : > { %674 = vadd.xlane.f32.xlu1 %v673_v58  ;;  %v658_v5 = vadd.f32 %v657_v59, %v16285_v42  ;;  %v677_v6 = vadd.f32 %v676_v62, %v16302_v55  ;;  %v472_v8 = vld [vmem:[%s16213_s13 + $0x48] sm:$0xff]  ;;  %v473_v9 = vld [vmem:[%s16213_s13 + $0x50] sm:$0xff]  ;;  %v16327_v14 = vadd.f32 %v470_v3, %v374_v57  ;;  %v378_v16 = vld [vmem:[%s16206_s19 + $0x58] sm:$0xff]  ;;  %v16332_v17 = vadd.f32 %v471_v4, %v375_v63 }
  0xe1   : > { %v391_v19 = vld [vmem:[%s16206_s19 + $0xc0] sm:$0xff]  ;;  %v392_v20 = vld [vmem:[%s16206_s19 + $0xc8] sm:$0xff]  ;;  %v474_v24 = vld [vmem:[%s16213_s13 + $0x58] sm:$0xff]  ;;  %v16339_v25 = vadd.f32 %v472_v8, %v376_v0  ;;  %v16345_v32 = vadd.f32 %v473_v9, %v377_v7 }
  0xe2   : > { %v659_v22 = vadd.f32 %v658_v5, %v16299_v53  ;;  %v678_v23 = vadd.f32 %v677_v6, %v16309_v61  ;;  %v662_v26 = vadd.f32 %v16327_v14, %v16325_v13  ;;  %v393_v27 = vld [vmem:[%s16206_s19 + $0xd0] sm:$0xff]  ;;  %v394_v28 = vld [vmem:[%s16206_s19 + $0xd8] sm:$0xff]  ;;  %v487_v33 = vld [vmem:[%s16213_s13 + $0xc0] sm:$0xff]  ;;  %v16359_v46 = vadd.f32 %v474_v24, %v378_v16 }
  0xe3   : > { %v488_v34 = vld [vmem:[%s16213_s13 + $0xc8] sm:$0xff]  ;;  %v489_v36 = vld [vmem:[%s16213_s13 + $0xd0] sm:$0xff]  ;;  %v395_v40 = vld [vmem:[%s16206_s19 + $0xe0] sm:$0xff]  ;;  %v16355_v44 = vadd.f32 %v487_v33, %v391_v19 }
  0xe4   : > { %660 = vadd.xlane.f32.xlu0 %v659_v22  ;;  %v679_v37 = vadd.f32 %v678_v23, %v16315_v1  ;;  %v663_v39 = vadd.f32 %v662_v26, %v16332_v17  ;;  %v490_v41 = vld [vmem:[%s16213_s13 + $0xd8] sm:$0xff]  ;;  %v491_v43 = vld [vmem:[%s16213_s13 + $0xe0] sm:$0xff]  ;;  %v16357_v45 = vadd.f32 %v488_v34, %v392_v20  ;;  %v396_v47 = vld [vmem:[%s16206_s19 + $0xe8] sm:$0xff]  ;;  %v16362_v48 = vadd.f32 %v489_v36, %v393_v27 }
  0xe5   : > { %v397_v49 = vld [vmem:[%s16206_s19 + $0xf0] sm:$0xff]  ;;  %v398_v50 = vld [vmem:[%s16206_s19 + $0xf8] sm:$0xff]  ;;  %v492_v57 = vld [vmem:[%s16213_s13 + $0xe8] sm:$0xff]  ;;  %v16369_v58 = vadd.f32 %v490_v41, %v394_v28  ;;  %v16375_v63 = vadd.f32 %v491_v43, %v395_v40 }
  0xe6   : > { %v680_v54 = vadd.f32 %v679_v37, %v16329_v15  ;;  %v664_v56 = vadd.f32 %v663_v39, %v16339_v25  ;;  %v683_v59 = vadd.f32 %v16357_v45, %v16355_v44  ;;  %v399_v60 = vld [vmem:[%s16206_s19 + $0x100] sm:$0xff]  ;;  %v400_v62 = vld [vmem:[%s16206_s19 + $0x108] sm:$0xff]  ;;  %v493_v0 = vld [vmem:[%s16213_s13 + $0xf0] sm:$0xff]  ;;  %v16389_v19 = vadd.f32 %v492_v57, %v396_v47 }
  0xe7   : > { %v494_v2 = vld [vmem:[%s16213_s13 + $0xf8] sm:$0xff]  ;;  %v495_v3 = vld [vmem:[%s16213_s13 + $0x100] sm:$0xff]  ;;  %v401_v6 = vld [vmem:[%s16206_s19 + $0x110] sm:$0xff]  ;;  %v16385_v9 = vadd.f32 %v493_v0, %v397_v49 }
  0xe8   : > { %681 = vadd.xlane.f32.xlu1 %v680_v54  ;;  %v665_v4 = vadd.f32 %v664_v56, %v16345_v32  ;;  %v684_v5 = vadd.f32 %v683_v59, %v16362_v48  ;;  %v496_v7 = vld [vmem:[%s16213_s13 + $0x108] sm:$0xff]  ;;  %v497_v8 = vld [vmem:[%s16213_s13 + $0x110] sm:$0xff]  ;;  %v16387_v16 = vadd.f32 %v494_v2, %v398_v50  ;;  %v402_v20 = vld [vmem:[%s16206_s19 + $0x118] sm:$0xff]  ;;  %v16392_v22 = vadd.f32 %v495_v3, %v399_v60 }
  0xe9   : > { %v403_v23 = vld [vmem:[%s16206_s19 + $0x120] sm:$0xff]  ;;  %v404_v24 = vld [vmem:[%s16206_s19 + $0x128] sm:$0xff]  ;;  %v498_v28 = vld [vmem:[%s16213_s13 + $0x118] sm:$0xff]  ;;  %v16399_v33 = vadd.f32 %v496_v7, %v400_v62  ;;  %v16405_v39 = vadd.f32 %v497_v8, %v401_v6 }
  0xea   : > { %v666_v26 = vadd.f32 %v665_v4, %v16359_v46  ;;  %v685_v27 = vadd.f32 %v684_v5, %v16369_v58  ;;  %v690_v34 = vadd.f32 %v16387_v16, %v16385_v9  ;;  %v405_v36 = vld [vmem:[%s16206_s19 + $0x130] sm:$0xff]  ;;  %v406_v37 = vld [vmem:[%s16206_s19 + $0x138] sm:$0xff]  ;;  %v499_v40 = vld [vmem:[%s16213_s13 + $0x120] sm:$0xff]  ;;  %v16419_v60 = vadd.f32 %v498_v28, %v402_v20 }
  0xeb   : > { %v500_v41 = vld [vmem:[%s16213_s13 + $0x128] sm:$0xff]  ;;  %v501_v43 = vld [vmem:[%s16213_s13 + $0x130] sm:$0xff]  ;;  %v407_v50 = vld [vmem:[%s16206_s19 + $0x140] sm:$0xff]  ;;  %v16415_v57 = vadd.f32 %v499_v40, %v403_v23 }
  0xec   : > { %667 = vadd.xlane.f32.xlu0 %v666_v26  ;;  %v686_v47 = vadd.f32 %v685_v27, %v16375_v63  ;;  %v691_v49 = vadd.f32 %v690_v34, %v16392_v22  ;;  %v502_v54 = vld [vmem:[%s16213_s13 + $0x138] sm:$0xff]  ;;  %v503_v56 = vld [vmem:[%s16213_s13 + $0x140] sm:$0xff]  ;;  %v16417_v59 = vadd.f32 %v500_v41, %v404_v24  ;;  %v408_v62 = vld [vmem:[%s16206_s19 + $0x148] sm:$0xff]  ;;  %v16422_v0 = vadd.f32 %v501_v43, %v405_v36 }
  0xed   : > { %20704 = vst [vmem:[#allocation20_spill] sm:$0xff] %v16415_v57  ;;  %v409_v2 = vld [vmem:[%s16206_s19 + $0x150] sm:$0xff]  ;;  %v410_v3 = vld [vmem:[%s16206_s19 + $0x158] sm:$0xff]  ;;  %v504_v6 = vld [vmem:[%s16213_s13 + $0x148] sm:$0xff]  ;;  %v16429_v7 = vadd.f32 %v502_v54, %v406_v37  ;;  %v16435_v24 = vadd.f32 %v503_v56, %v407_v50 }
  0xee   : > { %20705 = vst [vmem:[#allocation21_spill] sm:$0xff] %v16417_v59  ;;  %20706 = vst [vmem:[#allocation22_spill] sm:$0xff] %v16422_v0  ;;  %v687_v4 = vadd.f32 %v686_v47, %v16389_v19  ;;  %v692_v5 = vadd.f32 %v691_v49, %v16399_v33  ;;  %v697_v8 = vadd.f32 %v16417_v59, %v16415_v57  ;;  %v411_v20 = vld [vmem:[%s16206_s19 + $0x160] sm:$0xff]  ;;  %v412_v23 = vld [vmem:[%s16206_s19 + $0x168] sm:$0xff] }
  0xef   : > { %20707 = vst [vmem:[#allocation23_spill] sm:$0xff] %v16429_v7  ;;  %20708 = vst [vmem:[#allocation24_spill] sm:$0xff] %v16435_v24  ;;  %v505_v26 = vld [vmem:[%s16213_s13 + $0x150] sm:$0xff]  ;;  %v506_v27 = vld [vmem:[%s16213_s13 + $0x158] sm:$0xff]  ;;  %v16449_v49 = vadd.f32 %v504_v6, %v408_v62 }
  0xf0   : > { %v507_v28 = vld [vmem:[%s16213_s13 + $0x160] sm:$0xff]  ;;  %688 = vadd.xlane.f32.xlu0 %v687_v4  ;;  %v693_v34 = vadd.f32 %v692_v5, %v16405_v39  ;;  %v698_v36 = vadd.f32 %v697_v8, %v16422_v0  ;;  %v413_v37 = vld [vmem:[%s16206_s19 + $0x170] sm:$0xff]  ;;  %v508_v40 = vld [vmem:[%s16213_s13 + $0x168] sm:$0xff]  ;;  %v16445_v43 = vadd.f32 %v505_v26, %v409_v2  ;;  %v16447_v47 = vadd.f32 %v506_v27, %v410_v3 }
  0xf1   : > { %v509_v41 = vld [vmem:[%s16213_s13 + $0x170] sm:$0xff]  ;;  %20711 = vst [vmem:[#allocation27_spill] sm:$0xff] %v16449_v49  ;;  %v414_v50 = vld [vmem:[%s16206_s19 + $0x178] sm:$0xff]  ;;  %v16452_v54 = vadd.f32 %v507_v28, %v411_v20  ;;  %v415_v56 = vld [vmem:[%s16206_s19 + $0x180] sm:$0xff]  ;;  %v16459_v26 = vadd.f32 %v508_v40, %v412_v23 }
  0xf2   : > { %20709 = vst [vmem:[#allocation25_spill] sm:$0xff] %v16445_v43  ;;  %20710 = vst [vmem:[#allocation26_spill] sm:$0xff] %v16447_v47  ;;  %v416_v4 = vld [vmem:[%s16206_s19 + $0x188] sm:$0xff]  ;;  %v694_v5 = vadd.f32 %v693_v34, %v16419_v60  ;;  %v699_v8 = vadd.f32 %v698_v36, %v16429_v7  ;;  %v510_v2 = vld [vmem:[%s16213_s13 + $0x178] sm:$0xff]  ;;  %v704_v3 = vadd.f32 %v16447_v47, %v16445_v43 }
  0xf3   : > { %20712 = vst [vmem:[#allocation28_spill] sm:$0xff] %v16452_v54  ;;  %20713 = vst [vmem:[#allocation29_spill] sm:$0xff] %v16459_v26  ;;  %v417_v62 = vld [vmem:[%s16206_s19 + $0x190] sm:$0xff]  ;;  %v418_v6 = vld [vmem:[%s16206_s19 + $0x198] sm:$0xff]  ;;  %v16465_v20 = vadd.f32 %v509_v41, %v413_v37  ;;  %v16479_v41 = vadd.f32 %v510_v2, %v414_v50 }
  0xf4   : > { %v511_v27 = vld [vmem:[%s16213_s13 + $0x180] sm:$0xff]  ;;  %v512_v28 = vld [vmem:[%s16213_s13 + $0x188] sm:$0xff]  ;;  %v513_v0 = vld [vmem:[%s16213_s13 + $0x190] sm:$0xff]  ;;  %695 = vadd.xlane.f32.xlu1 %v694_v5  ;;  %v700_v34 = vadd.f32 %v699_v8, %v16435_v24  ;;  %v705_v23 = vadd.f32 %v704_v3, %v16452_v54 }
  0xf5   : > { %20714 = vst [vmem:[#allocation30_spill] sm:$0xff] %v16465_v20  ;;  %v419_v36 = vld [vmem:[%s16206_s19 + $0x1a0] sm:$0xff]  ;;  %v514_v40 = vld [vmem:[%s16213_s13 + $0x198] sm:$0xff]  ;;  %v16475_v43 = vadd.f32 %v511_v27, %v415_v56  ;;  %v16477_v37 = vadd.f32 %v512_v28, %v416_v4  ;;  %20717 = vst [vmem:[#allocation33_spill] sm:$0xff] %v16479_v41  ;;  %v16482_v5 = vadd.f32 %v513_v0, %v417_v62 }
  0xf6   : > { %v515_v47 = vld [vmem:[%s16213_s13 + $0x1a0] sm:$0xff]  ;;  %v420_v7 = vld [vmem:[%s16206_s19 + $0x1a8] sm:$0xff]  ;;  %v421_v8 = vld [vmem:[%s16206_s19 + $0x1b0] sm:$0xff]  ;;  %v701_v54 = vadd.f32 %v700_v34, %v16449_v49  ;;  %v706_v24 = vadd.f32 %v705_v23, %v16459_v26  ;;  %v16489_v27 = vadd.f32 %v514_v40, %v418_v6 }
  0xf7   : > { %20715 = vst [vmem:[#allocation31_spill] sm:$0xff] %v16475_v43  ;;  %20716 = vst [vmem:[#allocation32_spill] sm:$0xff] %v16477_v37  ;;  %v422_v3 = vld [vmem:[%s16206_s19 + $0x1b8] sm:$0xff]  ;;  %v516_v56 = vld [vmem:[%s16213_s13 + $0x1a8] sm:$0xff]  ;;  %v711_v4 = vadd.f32 %v16477_v37, %v16475_v43  ;;  %v16495_v0 = vadd.f32 %v515_v47, %v419_v36 }
  0xf8   : > { %20718 = vst [vmem:[#allocation34_spill] sm:$0xff] %v16482_v5  ;;  %20719 = vst [vmem:[#allocation35_spill] sm:$0xff] %v16489_v27  ;;  %v423_v50 = vld [vmem:[%s16206_s19 + $0x1c0] sm:$0xff]  ;;  %v424_v2 = vld [vmem:[%s16206_s19 + $0x1c8] sm:$0xff]  ;;  %702 = vadd.xlane.f32.xlu0 %v701_v54  ;;  %v707_v34 = vadd.f32 %v706_v24, %v16465_v20  ;;  %v16509_v36 = vadd.f32 %v516_v56, %v420_v7 }
  0xf9   : > { %20720 = vst [vmem:[#allocation36_spill] sm:$0xff] %v16495_v0  ;;  %v517_v62 = vld [vmem:[%s16213_s13 + $0x1b0] sm:$0xff]  ;;  %v518_v28 = vld [vmem:[%s16213_s13 + $0x1b8] sm:$0xff]  ;;  %v519_v59 = vld [vmem:[%s16213_s13 + $0x1c0] sm:$0xff]  ;;  %v712_v6 = vadd.f32 %v711_v4, %v16482_v5 }
  0xfa   : > { %v425_v23 = vld [vmem:[%s16206_s19 + $0x1d0] sm:$0xff]  ;;  %v520_v40 = vld [vmem:[%s16213_s13 + $0x1c8] sm:$0xff]  ;;  %v16505_v43 = vadd.f32 %v517_v62, %v421_v8  ;;  %v16507_v47 = vadd.f32 %v518_v28, %v422_v3  ;;  %20723 = vst [vmem:[#allocation39_spill] sm:$0xff] %v16509_v36  ;;  %v426_v26 = vld [vmem:[%s16206_s19 + $0x1d8] sm:$0xff]  ;;  %v16512_v54 = vadd.f32 %v519_v59, %v423_v50  ;;  %v708_v5 = vadd.f32 %v707_v34, %v16479_v41 }
  0xfb   : > { %v521_v37 = vld [vmem:[%s16213_s13 + $0x1d0] sm:$0xff]  ;;  %v427_v24 = vld [vmem:[%s16206_s19 + $0x1e0] sm:$0xff]  ;;  %v428_v4 = vld [vmem:[%s16206_s19 + $0x1e8] sm:$0xff]  ;;  %v713_v20 = vadd.f32 %v712_v6, %v16489_v27  ;;  %v16519_v62 = vadd.f32 %v520_v40, %v424_v2 }
  0xfc   : > { %20721 = vst [vmem:[#allocation37_spill] sm:$0xff] %v16505_v43  ;;  %20722 = vst [vmem:[#allocation38_spill] sm:$0xff] %v16507_v47  ;;  %v522_v8 = vld [vmem:[%s16213_s13 + $0x1d8] sm:$0xff]  ;;  %v718_v3 = vadd.f32 %v16507_v47, %v16505_v43  ;;  %v429_v7 = vld [vmem:[%s16206_s19 + $0x1f0] sm:$0xff]  ;;  %v16525_v59 = vadd.f32 %v521_v37, %v425_v23  ;;  %709 = vadd.xlane.f32.xlu1 %v708_v5 }
  0xfd   : > { %20724 = vst [vmem:[#allocation40_spill] sm:$0xff] %v16512_v54  ;;  %20725 = vst [vmem:[#allocation41_spill] sm:$0xff] %v16519_v62  ;;  %v430_v56 = vld [vmem:[%s16206_s19 + $0x1f8] sm:$0xff]  ;;  %v523_v50 = vld [vmem:[%s16213_s13 + $0x1e0] sm:$0xff]  ;;  %v714_v34 = vadd.f32 %v713_v20, %v16495_v0  ;;  %v16539_v23 = vadd.f32 %v522_v8, %v426_v26 }
  0xfe   : > { %20726 = vst [vmem:[#allocation42_spill] sm:$0xff] %v16525_v59  ;;  %v524_v28 = vld [vmem:[%s16213_s13 + $0x1e8] sm:$0xff]  ;;  %v525_v49 = vld [vmem:[%s16213_s13 + $0x1f0] sm:$0xff]  ;;  %v719_v2 = vadd.f32 %v718_v3, %v16512_v54  ;;  %v431_v6 = vld [vmem:[%s16206_s19 + $0x200] sm:$0xff]  ;;  %v16535_v43 = vadd.f32 %v523_v50, %v427_v24 }
  0xff   : > { %v526_v40 = vld [vmem:[%s16213_s13 + $0x1f8] sm:$0xff]  ;;  %v527_v47 = vld [vmem:[%s16213_s13 + $0x200] sm:$0xff]  ;;  %v16537_v37 = vadd.f32 %v524_v28, %v428_v4  ;;  %20729 = vst [vmem:[#allocation45_spill] sm:$0xff] %v16539_v23  ;;  %v432_v27 = vld [vmem:[%s16206_s19 + $0x208] sm:$0xff]  ;;  %v16542_v5 = vadd.f32 %v525_v49, %v429_v7  ;;  %v715_v54 = vadd.f32 %v714_v34, %v16509_v36 }
 0x100   : > { %20727 = vst [vmem:[#allocation43_spill] sm:$0xff] %v16535_v43  ;;  %v433_v20 = vld [vmem:[%s16206_s19 + $0x210] sm:$0xff]  ;;  %v434_v3 = vld [vmem:[%s16206_s19 + $0x218] sm:$0xff]  ;;  %v720_v0 = vadd.f32 %v719_v2, %v16519_v62  ;;  %v528_v24 = vld [vmem:[%s16213_s13 + $0x208] sm:$0xff]  ;;  %v16549_v50 = vadd.f32 %v526_v40, %v430_v56  ;;  %v16555_v49 = vadd.f32 %v527_v47, %v431_v6 }
 0x101   : > { %20728 = vst [vmem:[#allocation44_spill] sm:$0xff] %v16537_v37  ;;  %20730 = vst [vmem:[#allocation46_spill] sm:$0xff] %v16542_v5  ;;  %v725_v4 = vadd.f32 %v16537_v37, %v16535_v43  ;;  %v435_v26 = vld [vmem:[%s16206_s19 + $0x220] sm:$0xff]  ;;  %v436_v8 = vld [vmem:[%s16206_s19 + $0x228] sm:$0xff]  ;;  %716 = vadd.xlane.f32.xlu0 %v715_v54  ;;  %v16569_v6 = vadd.f32 %v528_v24, %v432_v27 }
 0x102   : > { %20731 = vst [vmem:[#allocation47_spill] sm:$0xff] %v16549_v50  ;;  %20732 = vst [vmem:[#allocation48_spill] sm:$0xff] %v16555_v49  ;;  %v529_v7 = vld [vmem:[%s16213_s13 + $0x210] sm:$0xff]  ;;  %v530_v28 = vld [vmem:[%s16213_s13 + $0x218] sm:$0xff]  ;;  %v721_v34 = vadd.f32 %v720_v0, %v16525_v59 }
 0x103   : > { %v531_v41 = vld [vmem:[%s16213_s13 + $0x220] sm:$0xff]  ;;  %v726_v56 = vadd.f32 %v725_v4, %v16542_v5  ;;  %v437_v2 = vld [vmem:[%s16206_s19 + $0x230] sm:$0xff]  ;;  %v532_v40 = vld [vmem:[%s16213_s13 + $0x228] sm:$0xff]  ;;  %v16565_v43 = vadd.f32 %v529_v7, %v433_v20  ;;  %v16567_v47 = vadd.f32 %v530_v28, %v434_v3  ;;  %20735 = vst [vmem:[#allocation51_spill] sm:$0xff] %v16569_v6 }
 0x104   : > { %v533_v37 = vld [vmem:[%s16213_s13 + $0x230] sm:$0xff]  ;;  %v438_v62 = vld [vmem:[%s16206_s19 + $0x238] sm:$0xff]  ;;  %v16572_v54 = vadd.f32 %v531_v41, %v435_v26  ;;  %v439_v0 = vld [vmem:[%s16206_s19 + $0x240] sm:$0xff]  ;;  %v722_v5 = vadd.f32 %v721_v34, %v16539_v23  ;;  %v16579_v7 = vadd.f32 %v532_v40, %v436_v8 }
 0x105   : > { %20733 = vst [vmem:[#allocation49_spill] sm:$0xff] %v16565_v43  ;;  %20734 = vst [vmem:[#allocation50_spill] sm:$0xff] %v16567_v47  ;;  %v440_v4 = vld [vmem:[%s16206_s19 + $0x248] sm:$0xff]  ;;  %v727_v59 = vadd.f32 %v726_v56, %v16549_v50  ;;  %v534_v20 = vld [vmem:[%s16213_s13 + $0x238] sm:$0xff]  ;;  %v732_v3 = vadd.f32 %v16567_v47, %v16565_v43  ;;  %v16585_v41 = vadd.f32 %v533_v37, %v437_v2 }
 0x106   : > { %20736 = vst [vmem:[#allocation52_spill] sm:$0xff] %v16572_v54  ;;  %20737 = vst [vmem:[#allocation53_spill] sm:$0xff] %v16579_v7  ;;  %v441_v27 = vld [vmem:[%s16206_s19 + $0x250] sm:$0xff]  ;;  %v442_v24 = vld [vmem:[%s16206_s19 + $0x258] sm:$0xff]  ;;  %723 = vadd.xlane.f32.xlu1 %v722_v5  ;;  %v16599_v2 = vadd.f32 %v534_v20, %v438_v62 }
 0x107   : > { %20738 = vst [vmem:[#allocation54_spill] sm:$0xff] %v16585_v41  ;;  %v535_v26 = vld [vmem:[%s16213_s13 + $0x240] sm:$0xff]  ;;  %v536_v28 = vld [vmem:[%s16213_s13 + $0x248] sm:$0xff]  ;;  %v537_v36 = vld [vmem:[%s16213_s13 + $0x250] sm:$0xff]  ;;  %v728_v34 = vadd.f32 %v727_v59, %v16555_v49  ;;  %v733_v8 = vadd.f32 %v732_v3, %v16572_v54 }
 0x108   : > { %v443_v56 = vld [vmem:[%s16206_s19 + $0x260] sm:$0xff]  ;;  %v538_v40 = vld [vmem:[%s16213_s13 + $0x258] sm:$0xff]  ;;  %v16595_v43 = vadd.f32 %v535_v26, %v439_v0  ;;  %v16597_v37 = vadd.f32 %v536_v28, %v440_v4  ;;  %20741 = vst [vmem:[#allocation57_spill] sm:$0xff] %v16599_v2  ;;  %v444_v50 = vld [vmem:[%s16206_s19 + $0x268] sm:$0xff]  ;;  %v16602_v5 = vadd.f32 %v537_v36, %v441_v27 }
 0x109   : > { %v539_v47 = vld [vmem:[%s16213_s13 + $0x260] sm:$0xff]  ;;  %v445_v59 = vld [vmem:[%s16206_s19 + $0x270] sm:$0xff]  ;;  %v446_v3 = vld [vmem:[%s16206_s19 + $0x278] sm:$0xff]  ;;  %v729_v54 = vadd.f32 %v728_v34, %v16569_v6  ;;  %v734_v49 = vadd.f32 %v733_v8, %v16579_v7  ;;  %v16609_v26 = vadd.f32 %v538_v40, %v442_v24 }
 0x10a   : > { %20739 = vst [vmem:[#allocation55_spill] sm:$0xff] %v16595_v43  ;;  %20740 = vst [vmem:[#allocation56_spill] sm:$0xff] %v16597_v37  ;;  %v540_v0 = vld [vmem:[%s16213_s13 + $0x268] sm:$0xff]  ;;  %v739_v4 = vadd.f32 %v16597_v37, %v16595_v43  ;;  %v447_v62 = vld [vmem:[%s16206_s19 + $0x280] sm:$0xff]  ;;  %v16615_v36 = vadd.f32 %v539_v47, %v443_v56 }
 0x10b   : > { %20742 = vst [vmem:[#allocation58_spill] sm:$0xff] %v16602_v5  ;;  %20743 = vst [vmem:[#allocation59_spill] sm:$0xff] %v16609_v26  ;;  %v448_v20 = vld [vmem:[%s16206_s19 + $0x288] sm:$0xff]  ;;  %v541_v27 = vld [vmem:[%s16213_s13 + $0x270] sm:$0xff]  ;;  %730 = vadd.xlane.f32.xlu0 %v729_v54  ;;  %v735_v34 = vadd.f32 %v734_v49, %v16585_v41  ;;  %v16629_v56 = vadd.f32 %v540_v0, %v444_v50 }
 0x10c   : > { %20744 = vst [vmem:[#allocation60_spill] sm:$0xff] %v16615_v36  ;;  %v542_v28 = vld [vmem:[%s16213_s13 + $0x278] sm:$0xff]  ;;  %v543_v23 = vld [vmem:[%s16213_s13 + $0x280] sm:$0xff]  ;;  %v740_v24 = vadd.f32 %v739_v4, %v16602_v5  ;;  %v449_v8 = vld [vmem:[%s16206_s19 + $0x290] sm:$0xff]  ;;  %v16625_v43 = vadd.f32 %v541_v27, %v445_v59 }
 0x10d   : > { %v544_v40 = vld [vmem:[%s16213_s13 + $0x288] sm:$0xff]  ;;  %v545_v37 = vld [vmem:[%s16213_s13 + $0x290] sm:$0xff]  ;;  %v16627_v47 = vadd.f32 %v542_v28, %v446_v3  ;;  %20747 = vst [vmem:[#allocation63_spill] sm:$0xff] %v16629_v56  ;;  %v450_v7 = vld [vmem:[%s16206_s19 + $0x298] sm:$0xff]  ;;  %v16632_v54 = vadd.f32 %v543_v23, %v447_v62  ;;  %v736_v5 = vadd.f32 %v735_v34, %v16599_v2 }
 0x10e   : > { %20745 = vst [vmem:[#allocation61_spill] sm:$0xff] %v16625_v43  ;;  %v451_v49 = vld [vmem:[%s16206_s19 + $0x2a0] sm:$0xff]  ;;  %v452_v4 = vld [vmem:[%s16206_s19 + $0x2a8] sm:$0xff]  ;;  %v741_v41 = vadd.f32 %v740_v24, %v16609_v26  ;;  %v546_v59 = vld [vmem:[%s16213_s13 + $0x298] sm:$0xff]  ;;  %v16639_v27 = vadd.f32 %v544_v40, %v448_v20  ;;  %v16645_v23 = vadd.f32 %v545_v37, %v449_v8 }
 0x10f   : > { %20746 = vst [vmem:[#allocation62_spill] sm:$0xff] %v16627_v47  ;;  %20748 = vst [vmem:[#allocation64_spill] sm:$0xff] %v16632_v54  ;;  %v746_v3 = vadd.f32 %v16627_v47, %v16625_v43  ;;  %v453_v50 = vld [vmem:[%s16206_s19 + $0x2b0] sm:$0xff]  ;;  %v454_v0 = vld [vmem:[%s16206_s19 + $0x2b8] sm:$0xff]  ;;  %737 = vadd.xlane.f32.xlu1 %v736_v5  ;;  %v16659_v8 = vadd.f32 %v546_v59, %v450_v7 }
 0x110   : > { %20749 = vst [vmem:[#allocation65_spill] sm:$0xff] %v16639_v27  ;;  %v547_v62 = vld [vmem:[%s16213_s13 + $0x2a0] sm:$0xff]  ;;  %v548_v28 = vld [vmem:[%s16213_s13 + $0x2a8] sm:$0xff]  ;;  %v549_v6 = vld [vmem:[%s16213_s13 + $0x2b0] sm:$0xff]  ;;  %v742_v34 = vadd.f32 %v741_v41, %v16615_v36 }
 0x111   : > { %v747_v20 = vadd.f32 %v746_v3, %v16632_v54  ;;  %v455_v24 = vld [vmem:[%s16206_s19 + $0x2c0] sm:$0xff]  ;;  %v550_v40 = vld [vmem:[%s16213_s13 + $0x2b8] sm:$0xff]  ;;  %v16655_v43 = vadd.f32 %v547_v62, %v451_v49  ;;  %v16657_v37 = vadd.f32 %v548_v28, %v452_v4  ;;  %v456_v26 = vld [vmem:[%s16206_s19 + $0x2c8] sm:$0xff]  ;;  %v16662_v5 = vadd.f32 %v549_v6, %v453_v50 }
 0x112   : > { %v551_v47 = vld [vmem:[%s16213_s13 + $0x2c0] sm:$0xff]  ;;  %v457_v41 = vld [vmem:[%s16206_s19 + $0x2d0] sm:$0xff]  ;;  %v458_v3 = vld [vmem:[%s16206_s19 + $0x2d8] sm:$0xff]  ;;  %v743_v54 = vadd.f32 %v742_v34, %v16629_v56  ;;  %v16669_v49 = vadd.f32 %v550_v40, %v454_v0 }
 0x113   : > { %20750 = vst [vmem:[#allocation66_spill] sm:$0xff] %v16655_v43  ;;  %20751 = vst [vmem:[#allocation67_spill] sm:$0xff] %v16657_v37  ;;  %v748_v36 = vadd.f32 %v747_v20, %v16639_v27  ;;  %v552_v2 = vld [vmem:[%s16213_s13 + $0x2c8] sm:$0xff]  ;;  %v753_v4 = vadd.f32 %v16657_v37, %v16655_v43  ;;  %v459_v7 = vld [vmem:[%s16206_s19 + $0x2e0] sm:$0xff]  ;;  %v16675_v62 = vadd.f32 %v551_v47, %v455_v24 }
 0x114   : > { %v460_v59 = vld [vmem:[%s16206_s19 + $0x2e8] sm:$0xff]  ;;  %v553_v6 = vld [vmem:[%s16213_s13 + $0x2d0] sm:$0xff]  ;;  %v554_v50 = vld [vmem:[%s16213_s13 + $0x2d8] sm:$0xff]  ;;  %744 = vadd.xlane.f32.xlu0 %v743_v54  ;;  %v16687_v37 = vadd.f32 %v552_v2, %v456_v26 }
 0x115   : > { %20752 = vst [vmem:[#allocation68_spill] sm:$0xff] %v16675_v62  ;;  %v555_v28 = vld [vmem:[%s16213_s13 + $0x2e0] sm:$0xff]  ;;  %v749_v34 = vadd.f32 %v748_v36, %v16645_v23  ;;  %v754_v20 = vadd.f32 %v753_v4, %v16662_v5  ;;  %v556_v0 = vld [vmem:[%s16213_s13 + $0x2e8] sm:$0xff]  ;;  %v16683_v40 = vadd.f32 %v553_v6, %v457_v41  ;;  %v16685_v27 = vadd.f32 %v554_v50, %v458_v3  ;;  %v461_v43 = vld [vmem:[%s16206_s19 + $0x2f0] sm:$0xff] }
 0x116   : > { %20755 = vst [vmem:[#allocation71_spill] sm:$0xff] %v16687_v37  ;;  %v557_v47 = vld [vmem:[%s16213_s13 + $0x2f0] sm:$0xff]  ;;  %v16691_v24 = vadd.f32 %v555_v28, %v459_v7  ;;  %v16695_v54 = vadd.f32 %v556_v0, %v460_v59  ;;  %v462_v4 = vld [vmem:[%s16206_s19 + $0x2f8] sm:$0xff] }
 0x117   : > { %20753 = vst [vmem:[#allocation69_spill] sm:$0xff] %v16683_v40  ;;  %20754 = vst [vmem:[#allocation70_spill] sm:$0xff] %v16685_v27  ;;  %v750_v56 = vadd.f32 %v749_v34, %v16659_v8  ;;  %v755_v57 = vadd.f32 %v754_v20, %v16669_v49  ;;  %v760_v36 = vadd.f32 %v16685_v27, %v16683_v40  ;;  %v558_v41 = vld [vmem:[%s16213_s13 + $0x2f8] sm:$0xff]  ;;  %v1536_v34 = vld [vmem:[#allocation10] sm:$0xff] }
 0x118   : > { %20756 = vst [vmem:[#allocation72_spill] sm:$0xff] %v16691_v24  ;;  %20757 = vst [vmem:[#allocation73_spill] sm:$0xff] %v16695_v54  ;;  %v16702_v2 = vadd.f32 %v557_v47, %v461_v43  ;;  %v16706_v6 = vadd.f32 %v558_v41, %v462_v4  ;;  %v1537_v20 = vld [vmem:[#allocation10 + $0x8] sm:$0xff]  ;;  %v1560_v47 = vld [vmem:[#allocation10 + $0xc0] sm:$0xff] }
 0x119   : > { %751 = vadd.xlane.f32.xlu1 %v750_v56  ;;  %v756_v3 = vadd.f32 %v755_v57, %v16675_v62  ;;  %v761_v26 = vadd.f32 %v760_v36, %v16691_v24  ;;  %v1548_v56 = vld [vmem:[#allocation10 + $0x60] sm:$0xff]  ;;  %v1549_v43 = vld [vmem:[#allocation10 + $0x68] sm:$0xff] }
 0x11a   : > { %20758 = vst [vmem:[#allocation74_spill] sm:$0xff] %v16702_v2  ;;  %20759 = vst [vmem:[#allocation75_spill] sm:$0xff] %v16706_v6  ;;  %v13194_v57 = vcombine.high %v1536_v34, %v1548_v56  ;;  %v13193_v0 = vcombine.low %v1536_v34, %v1548_v56  ;;  %v1572_v36 = vld [vmem:[#allocation10 + $0x120] sm:$0xff]  ;;  %v13196_v24 = vcombine.high %v1537_v20, %v1549_v43  ;;  %v1561_v41 = vld [vmem:[#allocation10 + $0xc8] sm:$0xff] }
 0x11b   : > { %v757_v7 = vadd.f32 %v756_v3, %v16687_v37  ;;  %v762_v50 = vadd.f32 %v761_v26, %v16695_v54  ;;  %v13195_v3 = vcombine.low %v1537_v20, %v1549_v43  ;;  %v13218_v4 = vcombine.high %v1560_v47, %v1572_v36  ;;  %v1573_v27 = vld [vmem:[#allocation10 + $0x128] sm:$0xff]  ;;  %v1584_v26 = vld [vmem:[#allocation10 + $0x180] sm:$0xff] }
 0x11c   : > { %8574 = vmatprep.subr.bf16.mxu0 %v13194_v57  ;;  %8913 = vmatprep.subr.bf16.mxu1 %v13196_v24  ;;  %v1608_v54 = vld [vmem:[#allocation10 + $0x240] sm:$0xff]  ;;  %v1609_v43 = vld [vmem:[#allocation10 + $0x248] sm:$0xff] }
 0x11d   : > { %758 = vadd.xlane.f32.xlu0 %v757_v7  ;;  %v763_v59 = vadd.f32 %v762_v50, %v16702_v2  ;;  %v13220_v7 = vcombine.high %v1561_v41, %v1573_v27  ;;  %v1596_v50 = vld [vmem:[#allocation10 + $0x1e0] sm:$0xff]  ;;  %v1585_v2 = vld [vmem:[#allocation10 + $0x188] sm:$0xff]  ;;  %8575 = vmatpush1.bf16.msra.mxu0 %v13193_v0 }
 0x11e   : > { %8914 = vmatpush1.bf16.msra.mxu1 %v13195_v3  ;;  %8576 = vmatprep.subr.bf16.mxu0 %v13218_v4  ;;  %v13242_v34 = vcombine.high %v1584_v26, %v1596_v50  ;;  %v1620_v20 = vld [vmem:[#allocation10 + $0x2a0] sm:$0xff]  ;;  %v1621_v40 = vld [vmem:[#allocation10 + $0x2a8] sm:$0xff]  ;;  %v13241_v37 = vcombine.low %v1584_v26, %v1596_v50 }
 0x11f   : > { %v764_v28 = vadd.f32 %v763_v59, %v16706_v6  ;;  %v1597_v59 = vld [vmem:[#allocation10 + $0x1e8] sm:$0xff]  ;;  %v13219_v6 = vcombine.low %v1561_v41, %v1573_v27  ;;  %8915 = vmatprep.subr.bf16.mxu1 %v13220_v7  ;;  %v13266_v62 = vcombine.high %v1608_v54, %v1620_v20  ;;  %v13268_v24 = vcombine.high %v1609_v43, %v1621_v40  ;;  %v1632_v0 = vld [vmem:[#allocation10 + $0x300] sm:$0xff] }
 0x120   : > { %v13244_v56 = vcombine.high %v1585_v2, %v1597_v59  ;;  %v13243_v57 = vcombine.low %v1585_v2, %v1597_v59  ;;  %v1645_v3 = vld [vmem:[#allocation10 + $0x368] sm:$0xff]  ;;  %v13265_v27 = vcombine.low %v1608_v54, %v1620_v20  ;;  %v13267_v4 = vcombine.low %v1609_v43, %v1621_v40  ;;  %v1668_v26 = vld [vmem:[#allocation10 + $0x420] sm:$0xff] }
 0x121   : > { %765 = vadd.xlane.f32.xlu1 %v764_v28  ;;  %v13217_v28 = vcombine.low %v1560_v47, %v1572_v36  ;;  %v1644_v47 = vld [vmem:[#allocation10 + $0x360] sm:$0xff]  ;;  %v1633_v36 = vld [vmem:[#allocation10 + $0x308] sm:$0xff] }
 0x122   : > { %8916 = vmatpush1.bf16.msra.mxu1 %v13219_v6  ;;  %v13290_v41 = vcombine.high %v1632_v0, %v1644_v47  ;;  %v13292_v7 = vcombine.high %v1633_v36, %v1645_v3  ;;  %v1657_v6 = vld [vmem:[#allocation10 + $0x3c8] sm:$0xff]  ;;  %v13289_v2 = vcombine.low %v1632_v0, %v1644_v47  ;;  %v13291_v59 = vcombine.low %v1633_v36, %v1645_v3  ;;  %v1692_v54 = vld [vmem:[#allocation10 + $0x4e0] sm:$0xff] }
 0x123   : > { %8577 = vmatpush1.bf16.msra.mxu0 %v13217_v28  ;;  %8917 = vmatprep.subr.bf16.mxu1 %v13244_v56  ;;  %v1656_v28 = vld [vmem:[#allocation10 + $0x3c0] sm:$0xff]  ;;  %v1669_v50 = vld [vmem:[#allocation10 + $0x428] sm:$0xff] }
 0x124   : > { %8578 = vmatprep.subr.bf16.mxu0 %v13242_v34  ;;  %v13314_v34 = vcombine.high %v1656_v28, %v1668_v26  ;;  %v13316_v56 = vcombine.high %v1657_v6, %v1669_v50  ;;  %v1681_v20 = vld [vmem:[#allocation10 + $0x488] sm:$0xff]  ;;  %v13313_v40 = vcombine.low %v1656_v28, %v1668_v26  ;;  %v13315_v43 = vcombine.low %v1657_v6, %v1669_v50  ;;  %v1716_v0 = vld [vmem:[#allocation10 + $0x5a0] sm:$0xff] }
 0x125   : > { %v1705_v47 = vld [vmem:[#allocation10 + $0x548] sm:$0xff]  ;;  %v1740_v28 = vld [vmem:[#allocation10 + $0x660] sm:$0xff] }
 0x126   : > { %8918 = vmatpush1.bf16.msra.mxu1 %v13243_v57  ;;  %v1729_v26 = vld [vmem:[#allocation10 + $0x608] sm:$0xff] }
 0x127   : > { %8579 = vmatpush1.bf16.msra.mxu0 %v13241_v37  ;;  %8919 = vmatprep.subr.bf16.mxu1 %v13268_v24  ;;  %v1680_v37 = vld [vmem:[#allocation10 + $0x480] sm:$0xff] }
 0x128   : > { %8580 = vmatprep.subr.bf16.mxu0 %v13266_v62  ;;  %v1693_v62 = vld [vmem:[#allocation10 + $0x4e8] sm:$0xff]  ;;  %v13338_v57 = vcombine.high %v1680_v37, %v1692_v54  ;;  %v13337_v36 = vcombine.low %v1680_v37, %v1692_v54  ;;  %v16713_v37 = vld [vmem:[#allocation10 + $0x720] sm:$0xff] }
 0x129   : > { %v13340_v24 = vcombine.high %v1681_v20, %v1693_v62  ;;  %v13339_v3 = vcombine.low %v1681_v20, %v1693_v62  ;;  %v16715_v54 = vld [vmem:[#allocation10 + $0x6c8] sm:$0xff] }
 0x12a   : > { %8920 = vmatpush1.bf16.msra.mxu1 %v13267_v4  ;;  %v1717_v4 = vld [vmem:[#allocation10 + $0x5a8] sm:$0xff] }
 0x12b   : > { %8581 = vmatpush1.bf16.msra.mxu0 %v13265_v27  ;;  %8921 = vmatprep.subr.bf16.mxu1 %v13292_v7  ;;  %v1704_v27 = vld [vmem:[#allocation10 + $0x540] sm:$0xff]  ;;  %v13364_v7 = vcombine.high %v1705_v47, %v1717_v4  ;;  %v13363_v50 = vcombine.low %v1705_v47, %v1717_v4  ;;  %v16717_v20 = vld [vmem:[#allocation10 + $0x728] sm:$0xff] }
 0x12c   : > { %8582 = vmatprep.subr.bf16.mxu0 %v13290_v41  ;;  %v13362_v41 = vcombine.high %v1704_v27, %v1716_v0  ;;  %v13361_v6 = vcombine.low %v1704_v27, %v1716_v0 }
 0x12e   : > { %8922 = vmatpush1.bf16.msra.mxu1 %v13291_v59  ;;  %v1741_v59 = vld [vmem:[#allocation10 + $0x668] sm:$0xff] }
 0x12f   : > { %8583 = vmatpush1.bf16.msra.mxu0 %v13289_v2  ;;  %8923 = vmatprep.subr.bf16.mxu1 %v13316_v56  ;;  %v1728_v2 = vld [vmem:[#allocation10 + $0x600] sm:$0xff]  ;;  %v13388_v56 = vcombine.high %v1729_v26, %v1741_v59 }
 0x130   : > { %8584 = vmatprep.subr.bf16.mxu0 %v13314_v34  ;;  %v13386_v34 = vcombine.high %v1728_v2, %v1740_v28  ;;  %v13385_v62 = vcombine.low %v1728_v2, %v1740_v28 }
 0x132   : > { %8924 = vmatpush1.bf16.msra.mxu1 %v13315_v43  ;;  %v13387_v43 = vcombine.low %v1729_v26, %v1741_v59 }
 0x133   : > { %8585 = vmatpush1.bf16.msra.mxu0 %v13313_v40  ;;  %8925 = vmatprep.subr.bf16.mxu1 %v13340_v24  ;;  %v16711_v40 = vld [vmem:[#allocation10 + $0x6c0] sm:$0xff]  ;;  %v13412_v24 = vcombine.high %v16715_v54, %v16717_v20 }
 0x134   : > { %8586 = vmatprep.subr.bf16.mxu0 %v13338_v57  ;;  %v13410_v57 = vcombine.high %v16711_v40, %v16713_v37 }
 0x136   : > { %8926 = vmatpush1.bf16.msra.mxu1 %v13339_v3 }
 0x137   : > { %8587 = vmatpush1.bf16.msra.mxu0 %v13337_v36  ;;  %8927 = vmatprep.subr.bf16.mxu1 %v13364_v7 }
 0x138   : > { %8588 = vmatprep.subr.bf16.mxu0 %v13362_v41 }
 0x13a   : > { %8928 = vmatpush1.bf16.msra.mxu1 %v13363_v50 }
 0x13b   : > { %8589 = vmatpush1.bf16.msra.mxu0 %v13361_v6  ;;  %8929 = vmatprep.subr.bf16.mxu1 %v13388_v56 }
 0x13c   : > { %8590 = vmatprep.subr.bf16.mxu0 %v13386_v34 }
 0x13e   : > { %8930 = vmatpush1.bf16.msra.mxu1 %v13387_v43 }
 0x13f   : > { %8591 = vmatpush1.bf16.msra.mxu0 %v13385_v62  ;;  %8931 = vmatprep.subr.bf16.mxu1 %v13412_v24 }
 0x140   : > { %8592 = vmatprep.subr.bf16.mxu0 %v13410_v57 }
 0x16d   : > { %v675_v27 = vpop.xlane.xlu1 %674 }
 0x16e   : > { %v770_v0 = vmul.f32 0.0013020834, %v675_v27 }
 0x170   : > { %v16724_v47 = vsub.f32 %v16241_v10, %v770_v0  ;;  %v16727_v4 = vsub.f32 %v16243_v11, %v770_v0  ;;  %v16730_v36 = vsub.f32 %v16245_v12, %v770_v0  ;;  %v16733_v41 = vsub.f32 %v16252_v18, %v770_v0 }
 0x171   : > { %v661_v3 = vpop.xlane.xlu0 %660  ;;  %v16736_v7 = vsub.f32 %v16257_v21, %v770_v0  ;;  %v16743_v11 = vsub.f32 %v16275_v35, %v770_v0 }
 0x172   : > { %20760 = vst [vmem:[#allocation76_spill] sm:$0xff] %v16733_v41  ;;  %v768_v2 = vmul.f32 0.0013020834, %v661_v3  ;;  %v892_v28 = vmul.f32 %v16724_v47, %v16724_v47  ;;  %v893_v10 = vmul.f32 %v16727_v4, %v16727_v4  ;;  %v894_v12 = vmul.f32 %v16730_v36, %v16730_v36 }
 0x173   : > { %20761 = vst [vmem:[#allocation77_spill] sm:$0xff] %v16736_v7  ;;  %20762 = vst [vmem:[#allocation78_spill] sm:$0xff] %v16743_v11  ;;  %v895_v35 = vmul.f32 %v16733_v41, %v16733_v41  ;;  %v897_v43 = vmul.f32 %v16743_v11, %v16743_v11 }
 0x174   : > { %v16748_v26 = vsub.f32 %v16266_v29, %v768_v2  ;;  %v16751_v18 = vsub.f32 %v16268_v30, %v768_v2  ;;  %v16754_v21 = vsub.f32 %v16270_v31, %v768_v2  ;;  %v16757_v59 = vsub.f32 %v16279_v38, %v768_v2 }
 0x175   : > { %v682_v6 = vpop.xlane.xlu1 %681  ;;  %v16760_v50 = vsub.f32 %v16285_v42, %v768_v2  ;;  %v896_v29 = vmul.f32 %v16736_v7, %v16736_v7  ;;  %v990_v34 = vadd.f32 %v893_v10, %v892_v28  ;;  %v16767_v30 = vsub.f32 %v16299_v53, %v768_v2 }
 0x176   : > { %20763 = vst [vmem:[#allocation79_spill] sm:$0xff] %v16757_v59  ;;  %v771_v56 = vmul.f32 0.0013020834, %v682_v6  ;;  %v880_v31 = vmul.f32 %v16748_v26, %v16748_v26  ;;  %v881_v38 = vmul.f32 %v16751_v18, %v16751_v18  ;;  %v882_v42 = vmul.f32 %v16754_v21, %v16754_v21 }
 0x177   : > { %20764 = vst [vmem:[#allocation80_spill] sm:$0xff] %v16760_v50  ;;  %20765 = vst [vmem:[#allocation81_spill] sm:$0xff] %v16767_v30  ;;  %v883_v62 = vmul.f32 %v16757_v59, %v16757_v59  ;;  %v991_v57 = vadd.f32 %v990_v34, %v894_v12  ;;  %v884_v2 = vmul.f32 %v16760_v50, %v16760_v50  ;;  %v20830_v59 = vld [vmem:[#allocation47_spill] sm:$0xff] }
 0x178   : > { %v976_v24 = vadd.f32 %v881_v38, %v880_v31  ;;  %v16780_v53 = vsub.f32 %v16295_v51, %v771_v56  ;;  %v16783_v27 = vsub.f32 %v16297_v52, %v771_v56  ;;  %v16786_v0 = vsub.f32 %v16302_v55, %v771_v56 }
 0x179   : > { %v668_v3 = vpop.xlane.xlu0 %667  ;;  %v992_v28 = vadd.f32 %v991_v57, %v895_v35  ;;  %v16791_v10 = vsub.f32 %v16309_v61, %v771_v56  ;;  %v16794_v12 = vsub.f32 %v16315_v1, %v771_v56  ;;  %v885_v51 = vmul.f32 %v16767_v30, %v16767_v30 }
 0x17a   : > { %v769_v6 = vmul.f32 0.0013020834, %v668_v3  ;;  %v977_v52 = vadd.f32 %v976_v24, %v882_v42  ;;  %v16799_v34 = vsub.f32 %v16329_v15, %v771_v56  ;;  %v898_v31 = vmul.f32 %v16780_v53, %v16780_v53 }
 0x17b   : > { %20766 = vst [vmem:[#allocation82_spill] sm:$0xff] %v16791_v10  ;;  %20767 = vst [vmem:[#allocation83_spill] sm:$0xff] %v16794_v12  ;;  %v993_v55 = vadd.f32 %v992_v28, %v896_v29  ;;  %v899_v35 = vmul.f32 %v16783_v27, %v16783_v27  ;;  %v900_v61 = vmul.f32 %v16786_v0, %v16786_v0 }
 0x17c   : > { %20768 = vst [vmem:[#allocation84_spill] sm:$0xff] %v16799_v34  ;;  %v978_v1 = vadd.f32 %v977_v52, %v883_v62  ;;  %v16808_v38 = vsub.f32 %v16325_v13, %v769_v6  ;;  %v16811_v57 = vsub.f32 %v16327_v14, %v769_v6  ;;  %v16814_v15 = vsub.f32 %v16332_v17, %v769_v6 }
 0x17d   : > { %v689_v29 = vpop.xlane.xlu0 %688  ;;  %v16817_v56 = vsub.f32 %v16339_v25, %v769_v6  ;;  %v16820_v42 = vsub.f32 %v16345_v32, %v769_v6  ;;  %v901_v24 = vmul.f32 %v16791_v10, %v16791_v10  ;;  %v902_v13 = vmul.f32 %v16794_v12, %v16794_v12 }
 0x17e   : > { %v772_v62 = vmul.f32 0.0013020834, %v689_v29  ;;  %v979_v3 = vadd.f32 %v978_v1, %v884_v2  ;;  %v886_v14 = vmul.f32 %v16808_v38, %v16808_v38  ;;  %v887_v17 = vmul.f32 %v16811_v57, %v16811_v57 }
 0x17f   : > { %20769 = vst [vmem:[#allocation85_spill] sm:$0xff] %v16817_v56  ;;  %20770 = vst [vmem:[#allocation86_spill] sm:$0xff] %v16820_v42  ;;  %v994_v28 = vadd.f32 %v993_v55, %v897_v43  ;;  %v16831_v25 = vsub.f32 %v16359_v46, %v769_v6  ;;  %v888_v32 = vmul.f32 %v16814_v15, %v16814_v15 }
 0x180   : > { %v889_v52 = vmul.f32 %v16817_v56, %v16817_v56  ;;  %v980_v7 = vadd.f32 %v979_v3, %v885_v51  ;;  %v890_v2 = vmul.f32 %v16820_v42, %v16820_v42  ;;  %v983_v1 = vadd.f32 %v887_v17, %v886_v14 }
 0x181   : > { %20771 = vst [vmem:[#allocation87_spill] sm:$0xff] %v16831_v25  ;;  %v997_v29 = vadd.f32 %v899_v35, %v898_v31  ;;  %v696_v12 = vpop.xlane.xlu1 %695  ;;  %v16840_v11 = vsub.f32 %v16355_v44, %v772_v62  ;;  %v16843_v43 = vsub.f32 %v16357_v45, %v772_v62  ;;  %v16846_v46 = vsub.f32 %v16362_v48, %v772_v62 }
 0x182   : > { %v16849_v6 = vsub.f32 %v16369_v58, %v772_v62  ;;  %v773_v55 = vmul.f32 0.0013020834, %v696_v12  ;;  %981 = vadd.xlane.f32.xlu0 %v980_v7  ;;  %v984_v51 = vadd.f32 %v983_v1, %v888_v32  ;;  %v16852_v14 = vsub.f32 %v16375_v63, %v772_v62 }
 0x183   : > { %v998_v3 = vadd.f32 %v997_v29, %v900_v61  ;;  %v16855_v31 = vsub.f32 %v16389_v19, %v772_v62  ;;  %v904_v44 = vmul.f32 %v16840_v11, %v16840_v11  ;;  %v905_v45 = vmul.f32 %v16843_v43, %v16843_v43 }
 0x184   : > { %20772 = vst [vmem:[#allocation88_spill] sm:$0xff] %v16849_v6  ;;  %20773 = vst [vmem:[#allocation89_spill] sm:$0xff] %v16852_v14  ;;  %v906_v48 = vmul.f32 %v16846_v46, %v16846_v46  ;;  %v891_v58 = vmul.f32 %v16831_v25, %v16831_v25  ;;  %v985_v7 = vadd.f32 %v984_v51, %v889_v52 }
 0x185   : > { %20774 = vst [vmem:[#allocation90_spill] sm:$0xff] %v16855_v31  ;;  %v903_v63 = vmul.f32 %v16799_v34, %v16799_v34  ;;  %v999_v12 = vadd.f32 %v998_v3, %v901_v24  ;;  %v703_v35 = vpop.xlane.xlu0 %702  ;;  %v907_v19 = vmul.f32 %v16849_v6, %v16849_v6  ;;  %v1004_v61 = vadd.f32 %v905_v45, %v904_v44  ;;  %v20792_v34 = vld [vmem:[#allocation28_spill] sm:$0xff] }
 0x186   : > { %v16870_v62 = vsub.f32 %v16385_v9, %v773_v55  ;;  %v16873_v17 = vsub.f32 %v16387_v16, %v773_v55  ;;  %v774_v32 = vmul.f32 0.0013020834, %v703_v35  ;;  %995 = vadd.xlane.f32.xlu0 %v994_v28  ;;  %v986_v1 = vadd.f32 %v985_v7, %v890_v2 }
 0x187   : > { %v1000_v29 = vadd.f32 %v999_v12, %v902_v13  ;;  %v16876_v52 = vsub.f32 %v16392_v22, %v773_v55  ;;  %v908_v24 = vmul.f32 %v16852_v14, %v16852_v14  ;;  %v909_v51 = vmul.f32 %v16855_v31, %v16855_v31  ;;  %v20779_v12 = vld [vmem:[#allocation20_spill] sm:$0xff] }
 0x188   : > { %v1005_v3 = vadd.f32 %v1004_v61, %v906_v48  ;;  %v16883_v9 = vsub.f32 %v16399_v33, %v773_v55  ;;  %v987_v44 = vadd.f32 %v986_v1, %v891_v58  ;;  %v16886_v16 = vsub.f32 %v16405_v39, %v773_v55  ;;  %v20781_v1 = vld [vmem:[#allocation21_spill] sm:$0xff] }
 0x189   : > { %20775 = vst [vmem:[#allocation91_spill] sm:$0xff] %v16876_v52  ;;  %v910_v13 = vmul.f32 %v16870_v62, %v16870_v62  ;;  %v911_v22 = vmul.f32 %v16873_v17, %v16873_v17  ;;  %v710_v28 = vpop.xlane.xlu1 %709  ;;  %v1001_v2 = vadd.f32 %v1000_v29, %v903_v63  ;;  %v16893_v7 = vsub.f32 %v16419_v60, %v773_v55  ;;  %v20782_v63 = vld [vmem:[#allocation22_spill] sm:$0xff]  ;;  %v20784_v60 = vld [vmem:[#allocation23_spill] sm:$0xff] }
 0x18a   : > { %20776 = vst [vmem:[#allocation92_spill] sm:$0xff] %v16883_v9  ;;  %20777 = vst [vmem:[#allocation93_spill] sm:$0xff] %v16886_v16  ;;  %v1006_v45 = vadd.f32 %v1005_v3, %v907_v19  ;;  %v912_v33 = vmul.f32 %v16876_v52, %v16876_v52  ;;  %v775_v48 = vmul.f32 0.0013020834, %v710_v28  ;;  %988 = vadd.xlane.f32.xlu1 %v987_v44  ;;  %v20786_v44 = vld [vmem:[#allocation24_spill] sm:$0xff]  ;;  %v17349_v52 = vld [vmem:[#allocation10 + $0x1140] sm:$0xff] }
 0x18b   : > { %20778 = vst [vmem:[#allocation94_spill] sm:$0xff] %v16893_v7  ;;  %v913_v39 = vmul.f32 %v16883_v9, %v16883_v9  ;;  %v1011_v58 = vadd.f32 %v911_v22, %v910_v13  ;;  %v16900_v35 = vsub.f32 %v20779_v12, %v774_v32  ;;  %v16903_v14 = vsub.f32 %v20781_v1, %v774_v32  ;;  %v20812_v9 = vld [vmem:[#allocation37_spill] sm:$0xff] }
 0x18c   : > { %v1007_v61 = vadd.f32 %v1006_v45, %v908_v24  ;;  %v16906_v19 = vsub.f32 %v20782_v63, %v774_v32  ;;  %v16909_v55 = vsub.f32 %v20784_v60, %v774_v32  ;;  %v914_v29 = vmul.f32 %v16886_v16, %v16886_v16  ;;  %20913 = vst [vmem:[#allocation117_spill] sm:$0xff] %v17349_v52  ;;  %v17409_v52 = vld [vmem:[#allocation10 + $0x1388] sm:$0xff] }
 0x18d   : > { %20780 = vst [vmem:[#allocation20_spill] sm:$0xff] %v16900_v35  ;;  %v1012_v3 = vadd.f32 %v1011_v58, %v912_v33  ;;  %v16914_v28 = vsub.f32 %v20786_v44, %v774_v32  ;;  %v916_v13 = vmul.f32 %v16900_v35, %v16900_v35  ;;  %v915_v45 = vmul.f32 %v16893_v7, %v16893_v7  ;;  %v20788_v58 = vld [vmem:[#allocation27_spill] sm:$0xff]  ;;  %v20791_v7 = vld [vmem:[#allocation26_spill] sm:$0xff] }
 0x18e   : > { %20783 = vst [vmem:[#allocation21_spill] sm:$0xff] %v16906_v19  ;;  %20785 = vst [vmem:[#allocation22_spill] sm:$0xff] %v16909_v55  ;;  %v717_v24 = vpop.xlane.xlu0 %716  ;;  %v1008_v22 = vadd.f32 %v1007_v61, %v909_v51  ;;  %v917_v12 = vmul.f32 %v16903_v14, %v16903_v14  ;;  %v918_v1 = vmul.f32 %v16906_v19, %v16906_v19  ;;  %1002 = vadd.xlane.f32.xlu1 %v1001_v2  ;;  %v20790_v61 = vld [vmem:[#allocation25_spill] sm:$0xff]  ;;  %v17321_v19 = vld [vmem:[#allocation10 + $0xfc8] sm:$0xff] }
 0x18f   : > { %20787 = vst [vmem:[#allocation23_spill] sm:$0xff] %v16914_v28  ;;  %v776_v63 = vmul.f32 0.0013020834, %v717_v24  ;;  %v1013_v33 = vadd.f32 %v1012_v3, %v913_v39  ;;  %v16925_v60 = vsub.f32 %v20788_v58, %v774_v32  ;;  %v919_v44 = vmul.f32 %v16909_v55, %v16909_v55  ;;  %v20794_v32 = vld [vmem:[#allocation29_spill] sm:$0xff]  ;;  %v20796_v3 = vld [vmem:[#allocation30_spill] sm:$0xff]  ;;  %v20800_v55 = vld [vmem:[#allocation31_spill] sm:$0xff] }
 0x190   : > { %1009 = vadd.xlane.f32.xlu0 %v1008_v22  ;;  %v1018_v51 = vadd.f32 %v917_v12, %v916_v13  ;;  %v16930_v16 = vsub.f32 %v20790_v61, %v775_v48  ;;  %v16933_v31 = vsub.f32 %v20791_v7, %v775_v48  ;;  %v16936_v6 = vsub.f32 %v20792_v34, %v775_v48 }
 0x191   : > { %20789 = vst [vmem:[#allocation24_spill] sm:$0xff] %v16925_v60  ;;  %v1014_v24 = vadd.f32 %v1013_v33, %v914_v29  ;;  %v920_v2 = vmul.f32 %v16914_v28, %v16914_v28  ;;  %v16941_v39 = vsub.f32 %v20794_v32, %v775_v48  ;;  %v16944_v58 = vsub.f32 %v20796_v3, %v775_v48  ;;  %v20798_v32 = vld [vmem:[#allocation33_spill] sm:$0xff] }
 0x192   : > { %20793 = vst [vmem:[#allocation27_spill] sm:$0xff] %v16936_v6  ;;  %v1019_v22 = vadd.f32 %v1018_v51, %v918_v1  ;;  %v922_v12 = vmul.f32 %v16930_v16, %v16930_v16  ;;  %v923_v7 = vmul.f32 %v16933_v31, %v16933_v31  ;;  %v924_v34 = vmul.f32 %v16936_v6, %v16936_v6  ;;  %v17317_v6 = vld [vmem:[#allocation10 + $0xfc0] sm:$0xff] }
 0x193   : > { %20795 = vst [vmem:[#allocation25_spill] sm:$0xff] %v16941_v39  ;;  %20797 = vst [vmem:[#allocation26_spill] sm:$0xff] %v16944_v58  ;;  %v724_v13 = vpop.xlane.xlu1 %723  ;;  %v1015_v33 = vadd.f32 %v1014_v24, %v915_v45  ;;  %v921_v61 = vmul.f32 %v16925_v60, %v16925_v60  ;;  %v16955_v28 = vsub.f32 %v20798_v32, %v775_v48  ;;  %v20804_v24 = vld [vmem:[#allocation34_spill] sm:$0xff]  ;;  %v20806_v48 = vld [vmem:[#allocation35_spill] sm:$0xff] }
 0x194   : > { %v777_v29 = vmul.f32 0.0013020834, %v724_v13  ;;  %v1020_v3 = vadd.f32 %v1019_v22, %v919_v44  ;;  %v925_v1 = vmul.f32 %v16941_v39, %v16941_v39  ;;  %v1025_v51 = vadd.f32 %v923_v7, %v922_v12  ;;  %v20802_v13 = vld [vmem:[#allocation32_spill] sm:$0xff]  ;;  %20907 = vst [vmem:[#allocation111_spill] sm:$0xff] %v17321_v19  ;;  %20927 = vst [vmem:[#allocation131_spill] sm:$0xff] %v17409_v52  ;;  %v17417_v19 = vld [vmem:[#allocation10 + $0x1440] sm:$0xff] }
 0x195   : > { %20799 = vst [vmem:[#allocation28_spill] sm:$0xff] %v16955_v28  ;;  %v16960_v42 = vsub.f32 %v20800_v55, %v776_v63  ;;  %1016 = vadd.xlane.f32.xlu1 %v1015_v33  ;;  %v926_v50 = vmul.f32 %v16944_v58, %v16944_v58  ;;  %v16965_v45 = vsub.f32 %v20802_v13, %v776_v63  ;;  %v20808_v12 = vld [vmem:[#allocation36_spill] sm:$0xff]  ;;  %v20810_v13 = vld [vmem:[#allocation39_spill] sm:$0xff]  ;;  %20929 = vst [vmem:[#allocation133_spill] sm:$0xff] %v17417_v19 }
 0x196   : > { %v16968_v60 = vsub.f32 %v20804_v24, %v776_v63  ;;  %v16971_v32 = vsub.f32 %v20806_v48, %v776_v63  ;;  %v1021_v22 = vadd.f32 %v1020_v3, %v920_v2  ;;  %v1026_v39 = vadd.f32 %v1025_v51, %v924_v34  ;;  %v17470_v19 = vld [vmem:[#allocation10 + $0x15c8] sm:$0xff] }
 0x197   : > { %20801 = vst [vmem:[#allocation29_spill] sm:$0xff] %v16960_v42  ;;  %20803 = vst [vmem:[#allocation30_spill] sm:$0xff] %v16965_v45  ;;  %v16974_v7 = vsub.f32 %v20808_v12, %v776_v63  ;;  %v928_v55 = vmul.f32 %v16960_v42, %v16960_v42  ;;  %v927_v33 = vmul.f32 %v16955_v28, %v16955_v28  ;;  %v20814_v28 = vld [vmem:[#allocation38_spill] sm:$0xff]  ;;  %v17385_v42 = vld [vmem:[#allocation10 + $0x12c0] sm:$0xff] }
 0x198   : > { %20805 = vst [vmem:[#allocation33_spill] sm:$0xff] %v16968_v60  ;;  %20807 = vst [vmem:[#allocation31_spill] sm:$0xff] %v16971_v32  ;;  %v731_v44 = vpop.xlane.xlu0 %730  ;;  %v16981_v58 = vsub.f32 %v20810_v13, %v776_v63  ;;  %v929_v24 = vmul.f32 %v16965_v45, %v16965_v45  ;;  %v930_v48 = vmul.f32 %v16968_v60, %v16968_v60  ;;  %v20816_v63 = vld [vmem:[#allocation40_spill] sm:$0xff]  ;;  %v17345_v45 = vld [vmem:[#allocation10 + $0x1088] sm:$0xff] }
 0x199   : > { %20809 = vst [vmem:[#allocation32_spill] sm:$0xff] %v16974_v7  ;;  %v778_v2 = vmul.f32 0.0013020834, %v731_v44  ;;  %v1022_v34 = vadd.f32 %v1021_v22, %v921_v61  ;;  %v1027_v3 = vadd.f32 %v1026_v39, %v925_v1  ;;  %v931_v51 = vmul.f32 %v16971_v32, %v16971_v32  ;;  %v20818_v39 = vld [vmem:[#allocation41_spill] sm:$0xff]  ;;  %v20820_v44 = vld [vmem:[#allocation42_spill] sm:$0xff]  ;;  %20911 = vst [vmem:[#allocation115_spill] sm:$0xff] %v17345_v45 }
 0x19a   : > { %20811 = vst [vmem:[#allocation34_spill] sm:$0xff] %v16981_v58  ;;  %v1032_v12 = vadd.f32 %v929_v24, %v928_v55  ;;  %v16990_v25 = vsub.f32 %v20812_v9, %v777_v29  ;;  %v16993_v30 = vsub.f32 %v20814_v28, %v777_v29  ;;  %v16996_v13 = vsub.f32 %v20816_v63, %v777_v29  ;;  %v20822_v55 = vld [vmem:[#allocation45_spill] sm:$0xff] }
 0x19b   : > { %1023 = vadd.xlane.f32.xlu0 %v1022_v34  ;;  %v1028_v41 = vadd.f32 %v1027_v3, %v926_v50  ;;  %v932_v61 = vmul.f32 %v16974_v7, %v16974_v7  ;;  %v17001_v1 = vsub.f32 %v20818_v39, %v777_v29  ;;  %v17004_v22 = vsub.f32 %v20820_v44, %v777_v29 }
 0x19c   : > { %20813 = vst [vmem:[#allocation35_spill] sm:$0xff] %v16990_v25  ;;  %20815 = vst [vmem:[#allocation36_spill] sm:$0xff] %v16993_v30  ;;  %v738_v10 = vpop.xlane.xlu1 %737  ;;  %v1033_v9 = vadd.f32 %v1032_v12, %v930_v48  ;;  %v17007_v24 = vsub.f32 %v20822_v55, %v777_v29  ;;  %v934_v28 = vmul.f32 %v16990_v25, %v16990_v25  ;;  %v20824_v12 = vld [vmem:[#allocation43_spill] sm:$0xff]  ;;  %v17419_v25 = vld [vmem:[#allocation10 + $0x14a0] sm:$0xff] }
 0x19d   : > { %20817 = vst [vmem:[#allocation39_spill] sm:$0xff] %v16996_v13  ;;  %20819 = vst [vmem:[#allocation37_spill] sm:$0xff] %v17001_v1  ;;  %v935_v34 = vmul.f32 %v16993_v30, %v16993_v30  ;;  %v779_v50 = vmul.f32 0.0013020834, %v738_v10  ;;  %v1029_v3 = vadd.f32 %v1028_v41, %v927_v33  ;;  %v933_v63 = vmul.f32 %v16981_v58, %v16981_v58  ;;  %v20826_v41 = vld [vmem:[#allocation44_spill] sm:$0xff]  ;;  %v20828_v58 = vld [vmem:[#allocation46_spill] sm:$0xff] }
 0x19e   : > { %20821 = vst [vmem:[#allocation38_spill] sm:$0xff] %v17004_v22  ;;  %20823 = vst [vmem:[#allocation40_spill] sm:$0xff] %v17007_v24  ;;  %v936_v39 = vmul.f32 %v16996_v13, %v16996_v13  ;;  %v1034_v44 = vadd.f32 %v1033_v9, %v931_v51  ;;  %v937_v48 = vmul.f32 %v17001_v1, %v17001_v1  ;;  %v20838_v13 = vld [vmem:[#allocation50_spill] sm:$0xff]  ;;  %v17335_v30 = vld [vmem:[#allocation10 + $0x10e0] sm:$0xff] }
 0x19f   : > { %v1039_v29 = vadd.f32 %v935_v34, %v934_v28  ;;  %v17020_v55 = vsub.f32 %v20824_v12, %v778_v2  ;;  %1030 = vadd.xlane.f32.xlu1 %v1029_v3  ;;  %v938_v10 = vmul.f32 %v17004_v22, %v17004_v22  ;;  %v17025_v33 = vsub.f32 %v20826_v41, %v778_v2  ;;  %v20832_v12 = vld [vmem:[#allocation48_spill] sm:$0xff] }
 0x1a0   : > { %v17028_v32 = vsub.f32 %v20828_v58, %v778_v2  ;;  %v17031_v51 = vsub.f32 %v20830_v59, %v778_v2  ;;  %v1035_v9 = vadd.f32 %v1034_v44, %v932_v61  ;;  %v939_v28 = vmul.f32 %v17007_v24, %v17007_v24  ;;  %v20834_v61 = vld [vmem:[#allocation51_spill] sm:$0xff]  ;;  %20910 = vst [vmem:[#allocation114_spill] sm:$0xff] %v17335_v30  ;;  %v17395_v30 = vld [vmem:[#allocation10 + $0x12c8] sm:$0xff] }
 0x1a1   : > { %20825 = vst [vmem:[#allocation41_spill] sm:$0xff] %v17020_v55  ;;  %v745_v7 = vpop.xlane.xlu0 %744  ;;  %20827 = vst [vmem:[#allocation42_spill] sm:$0xff] %v17025_v33  ;;  %v1040_v34 = vadd.f32 %v1039_v29, %v936_v39  ;;  %v17036_v1 = vsub.f32 %v20832_v12, %v778_v2  ;;  %v940_v22 = vmul.f32 %v17020_v55, %v17020_v55  ;;  %v20840_v55 = vld [vmem:[#allocation52_spill] sm:$0xff] }
 0x1a2   : > { %20829 = vst [vmem:[#allocation45_spill] sm:$0xff] %v17028_v32  ;;  %20831 = vst [vmem:[#allocation43_spill] sm:$0xff] %v17031_v51  ;;  %v780_v3 = vmul.f32 0.0013020834, %v745_v7  ;;  %v941_v41 = vmul.f32 %v17025_v33, %v17025_v33  ;;  %v942_v58 = vmul.f32 %v17028_v32, %v17028_v32  ;;  %v1036_v59 = vadd.f32 %v1035_v9, %v933_v63  ;;  %v20836_v7 = vld [vmem:[#allocation49_spill] sm:$0xff] }
 0x1a3   : > { %20833 = vst [vmem:[#allocation44_spill] sm:$0xff] %v17036_v1  ;;  %v1041_v56 = vadd.f32 %v1040_v34, %v937_v48  ;;  %v17045_v44 = vsub.f32 %v20834_v61, %v778_v2  ;;  %v943_v39 = vmul.f32 %v17031_v51, %v17031_v51  ;;  %v17050_v24 = vsub.f32 %v20836_v7, %v779_v50  ;;  %v20842_v48 = vld [vmem:[#allocation53_spill] sm:$0xff]  ;;  %v20844_v34 = vld [vmem:[#allocation54_spill] sm:$0xff] }
 0x1a4   : > { %v1046_v12 = vadd.f32 %v941_v41, %v940_v22  ;;  %v17053_v60 = vsub.f32 %v20838_v13, %v779_v50  ;;  %v17056_v33 = vsub.f32 %v20840_v55, %v779_v50  ;;  %1037 = vadd.xlane.f32.xlu0 %v1036_v59  ;;  %v944_v2 = vmul.f32 %v17036_v1, %v17036_v1  ;;  %v20846_v41 = vld [vmem:[#allocation57_spill] sm:$0xff] }
 0x1a5   : > { %20835 = vst [vmem:[#allocation46_spill] sm:$0xff] %v17045_v44  ;;  %20837 = vst [vmem:[#allocation47_spill] sm:$0xff] %v17050_v24  ;;  %v1042_v63 = vadd.f32 %v1041_v56, %v938_v10  ;;  %v17061_v9 = vsub.f32 %v20842_v48, %v779_v50  ;;  %v17064_v61 = vsub.f32 %v20844_v34, %v779_v50 }
 0x1a6   : > { %v752_v29 = vpop.xlane.xlu1 %751  ;;  %20839 = vst [vmem:[#allocation48_spill] sm:$0xff] %v17053_v60  ;;  %20841 = vst [vmem:[#allocation51_spill] sm:$0xff] %v17056_v33  ;;  %v1047_v22 = vadd.f32 %v1046_v12, %v942_v58  ;;  %v17067_v7 = vsub.f32 %v20846_v41, %v779_v50  ;;  %v946_v13 = vmul.f32 %v17050_v24, %v17050_v24  ;;  %v20848_v12 = vld [vmem:[#allocation55_spill] sm:$0xff] }
 0x1a7   : > { %20843 = vst [vmem:[#allocation49_spill] sm:$0xff] %v17061_v9  ;;  %20845 = vst [vmem:[#allocation50_spill] sm:$0xff] %v17064_v61  ;;  %v947_v55 = vmul.f32 %v17053_v60, %v17053_v60  ;;  %v781_v56 = vmul.f32 0.0013020834, %v752_v29  ;;  %v1043_v10 = vadd.f32 %v1042_v63, %v939_v28  ;;  %v945_v59 = vmul.f32 %v17045_v44, %v17045_v44  ;;  %v20850_v28 = vld [vmem:[#allocation56_spill] sm:$0xff]  ;;  %v20852_v44 = vld [vmem:[#allocation58_spill] sm:$0xff] }
 0x1a8   : > { %20847 = vst [vmem:[#allocation52_spill] sm:$0xff] %v17067_v7  ;;  %v948_v48 = vmul.f32 %v17056_v33, %v17056_v33  ;;  %v1048_v34 = vadd.f32 %v1047_v22, %v943_v39  ;;  %v949_v58 = vmul.f32 %v17061_v9, %v17061_v9  ;;  %v17080_v41 = vsub.f32 %v20848_v12, %v780_v3  ;;  %v20854_v33 = vld [vmem:[#allocation59_spill] sm:$0xff]  ;;  %v20856_v12 = vld [vmem:[#allocation60_spill] sm:$0xff]  ;;  %v17311_v60 = vld [vmem:[#allocation10 + $0xf68] sm:$0xff] }
 0x1a9   : > { %v1053_v50 = vadd.f32 %v947_v55, %v946_v13  ;;  %1044 = vadd.xlane.f32.xlu1 %v1043_v10  ;;  %v950_v29 = vmul.f32 %v17064_v61, %v17064_v61  ;;  %v17085_v63 = vsub.f32 %v20850_v28, %v780_v3  ;;  %v17088_v51 = vsub.f32 %v20852_v44, %v780_v3  ;;  %v20858_v10 = vld [vmem:[#allocation63_spill] sm:$0xff] }
 0x1aa   : > { %20849 = vst [vmem:[#allocation53_spill] sm:$0xff] %v17080_v41  ;;  %v759_v1 = vpop.xlane.xlu0 %758  ;;  %v17091_v39 = vsub.f32 %v20854_v33, %v780_v3  ;;  %v1049_v22 = vadd.f32 %v1048_v34, %v944_v2  ;;  %v951_v13 = vmul.f32 %v17067_v7, %v17067_v7  ;;  %v17096_v9 = vsub.f32 %v20856_v12, %v780_v3 }
 0x1ab   : > { %20851 = vst [vmem:[#allocation54_spill] sm:$0xff] %v17085_v63  ;;  %20853 = vst [vmem:[#allocation57_spill] sm:$0xff] %v17088_v51  ;;  %v1054_v55 = vadd.f32 %v1053_v50, %v948_v48  ;;  %v17099_v32 = vsub.f32 %v20858_v10, %v780_v3  ;;  %v952_v28 = vmul.f32 %v17080_v41, %v17080_v41  ;;  %v782_v2 = vmul.f32 0.0013020834, %v759_v1  ;;  %v20860_v10 = vld [vmem:[#allocation61_spill] sm:$0xff]  ;;  %v20862_v41 = vld [vmem:[#allocation62_spill] sm:$0xff] }
 0x1ac   : > { %20855 = vst [vmem:[#allocation55_spill] sm:$0xff] %v17091_v39  ;;  %20857 = vst [vmem:[#allocation56_spill] sm:$0xff] %v17096_v9  ;;  %v953_v44 = vmul.f32 %v17085_v63, %v17085_v63  ;;  %v954_v33 = vmul.f32 %v17088_v51, %v17088_v51  ;;  %v1050_v34 = vadd.f32 %v1049_v22, %v945_v59  ;;  %v20864_v51 = vld [vmem:[#allocation64_spill] sm:$0xff]  ;;  %v20866_v59 = vld [vmem:[#allocation65_spill] sm:$0xff] }
 0x1ad   : > { %20859 = vst [vmem:[#allocation58_spill] sm:$0xff] %v17099_v32  ;;  %v1055_v61 = vadd.f32 %v1054_v55, %v949_v58  ;;  %v955_v48 = vmul.f32 %v17091_v39, %v17091_v39  ;;  %v956_v3 = vmul.f32 %v17096_v9, %v17096_v9  ;;  %v17112_v7 = vsub.f32 %v20860_v10, %v781_v56 }
 0x1ae   : > { %v766_v50 = vpop.xlane.xlu1 %765  ;;  %v1060_v12 = vadd.f32 %v953_v44, %v952_v28  ;;  %v17115_v24 = vsub.f32 %v20862_v41, %v781_v56  ;;  %1051 = vadd.xlane.f32.xlu0 %v1050_v34  ;;  %v17118_v1 = vsub.f32 %v20864_v51, %v781_v56  ;;  %v17121_v58 = vsub.f32 %v20866_v59, %v781_v56 }
 0x1af   : > { %20861 = vst [vmem:[#allocation59_spill] sm:$0xff] %v17112_v7  ;;  %v1056_v63 = vadd.f32 %v1055_v61, %v950_v29  ;;  %v17124_v22 = vsub.f32 %v16645_v23, %v781_v56  ;;  %v957_v55 = vmul.f32 %v17099_v32, %v17099_v32  ;;  %v958_v44 = vmul.f32 %v17112_v7, %v17112_v7  ;;  %v20882_v32 = vld [vmem:[#allocation70_spill] sm:$0xff]  ;;  %v17319_v7 = vld [vmem:[#allocation10 + $0x1020] sm:$0xff] }
 0x1b0   : > { %20863 = vst [vmem:[#allocation60_spill] sm:$0xff] %v17115_v24  ;;  %20865 = vst [vmem:[#allocation63_spill] sm:$0xff] %v17118_v1  ;;  %v1061_v28 = vadd.f32 %v1060_v12, %v954_v33  ;;  %v959_v41 = vmul.f32 %v17115_v24, %v17115_v24  ;;  %v783_v61 = vmul.f32 0.0013020834, %v766_v50  ;;  %v17133_v51 = vsub.f32 %v16659_v8, %v781_v56  ;;  %v20870_v33 = vld [vmem:[#allocation66_spill] sm:$0xff]  ;;  %v20872_v50 = vld [vmem:[#allocation67_spill] sm:$0xff] }
 0x1b1   : > { %20867 = vst [vmem:[#allocation61_spill] sm:$0xff] %v17121_v58  ;;  %20868 = vst [vmem:[#allocation62_spill] sm:$0xff] %v17124_v22  ;;  %v1057_v29 = vadd.f32 %v1056_v63, %v951_v13  ;;  %v960_v34 = vmul.f32 %v17118_v1, %v17118_v1  ;;  %v961_v10 = vmul.f32 %v17121_v58, %v17121_v58  ;;  %v20886_v58 = vld [vmem:[#allocation73_spill] sm:$0xff]  ;;  %v17309_v24 = vld [vmem:[#allocation10 + $0xf08] sm:$0xff] }
 0x1b2   : > { %20869 = vst [vmem:[#allocation64_spill] sm:$0xff] %v17133_v51  ;;  %v1062_v23 = vadd.f32 %v1061_v28, %v955_v48  ;;  %v1067_v59 = vadd.f32 %v959_v41, %v958_v44  ;;  %v17140_v12 = vsub.f32 %v20870_v33, %v782_v2  ;;  %v962_v9 = vmul.f32 %v17124_v22, %v17124_v22  ;;  %v20876_v28 = vld [vmem:[#allocation68_spill] sm:$0xff]  ;;  %v20878_v33 = vld [vmem:[#allocation71_spill] sm:$0xff] }
 0x1b3   : > { %1058 = vadd.xlane.f32.xlu1 %v1057_v29  ;;  %v17145_v63 = vsub.f32 %v20872_v50, %v782_v2  ;;  %v17148_v8 = vsub.f32 %v16662_v5, %v782_v2  ;;  %v17151_v56 = vsub.f32 %v16669_v49, %v782_v2  ;;  %v17154_v44 = vsub.f32 %v20876_v28, %v782_v2 }
 0x1b4   : > { %20871 = vst [vmem:[#allocation65_spill] sm:$0xff] %v17140_v12  ;;  %v1063_v13 = vadd.f32 %v1062_v23, %v956_v3  ;;  %v1068_v48 = vadd.f32 %v1067_v59, %v960_v34  ;;  %v964_v41 = vmul.f32 %v17140_v12, %v17140_v12  ;;  %v963_v29 = vmul.f32 %v17133_v51, %v17133_v51  ;;  %v20880_v59 = vld [vmem:[#allocation69_spill] sm:$0xff]  ;;  %v1801_v12 = vld [vmem:[#allocation10 + $0x848] sm:$0xff] }
 0x1b5   : > { %20873 = vst [vmem:[#allocation66_spill] sm:$0xff] %v17145_v63  ;;  %20874 = vst [vmem:[#allocation67_spill] sm:$0xff] %v17148_v8  ;;  %v17161_v50 = vsub.f32 %v20878_v33, %v782_v2  ;;  %v965_v5 = vmul.f32 %v17145_v63, %v17145_v63  ;;  %v966_v49 = vmul.f32 %v17148_v8, %v17148_v8  ;;  %v20884_v2 = vld [vmem:[#allocation72_spill] sm:$0xff]  ;;  %v1813_v63 = vld [vmem:[#allocation10 + $0x8a8] sm:$0xff] }
 0x1b6   : > { %20875 = vst [vmem:[#allocation95_spill] sm:$0xff] %v17151_v56  ;;  %20877 = vst [vmem:[#allocation68_spill] sm:$0xff] %v17154_v44  ;;  %v1064_v3 = vadd.f32 %v1063_v13, %v957_v55  ;;  %v1069_v34 = vadd.f32 %v1068_v48, %v961_v10  ;;  %v967_v23 = vmul.f32 %v17151_v56, %v17151_v56  ;;  %v20888_v10 = vld [vmem:[#allocation74_spill] sm:$0xff] }
 0x1b7   : > { %20879 = vst [vmem:[#allocation71_spill] sm:$0xff] %v17161_v50  ;;  %v17170_v28 = vsub.f32 %v20880_v59, %v783_v61  ;;  %v1074_v22 = vadd.f32 %v965_v5, %v964_v41  ;;  %v17173_v51 = vsub.f32 %v20882_v32, %v783_v61  ;;  %v17176_v33 = vsub.f32 %v20884_v2, %v783_v61  ;;  %v1776_v41 = vld [vmem:[#allocation10 + $0x780] sm:$0xff] }
 0x1b8   : > { %v17179_v39 = vsub.f32 %v20886_v58, %v783_v61  ;;  %1065 = vadd.xlane.f32.xlu0 %v1064_v3  ;;  %v1070_v8 = vadd.f32 %v1069_v34, %v962_v9  ;;  %v968_v55 = vmul.f32 %v17154_v44, %v17154_v44  ;;  %v17184_v13 = vsub.f32 %v20888_v10, %v783_v61  ;;  %v1788_v32 = vld [vmem:[#allocation10 + $0x7e0] sm:$0xff]  ;;  %v1777_v3 = vld [vmem:[#allocation10 + $0x788] sm:$0xff]  ;;  %v20890_v10 = vld [vmem:[#allocation75_spill] sm:$0xff] }
 0x1b9   : > { %20881 = vst [vmem:[#allocation69_spill] sm:$0xff] %v17170_v28  ;;  %20883 = vst [vmem:[#allocation70_spill] sm:$0xff] %v17173_v51  ;;  %v970_v48 = vmul.f32 %v17170_v28, %v17170_v28  ;;  %v969_v5 = vmul.f32 %v17161_v50, %v17161_v50  ;;  %v1075_v59 = vadd.f32 %v1074_v22, %v966_v49  ;;  %v1789_v34 = vld [vmem:[#allocation10 + $0x7e8] sm:$0xff]  ;;  %v1800_v50 = vld [vmem:[#allocation10 + $0x840] sm:$0xff] }
 0x1ba   : > { %20885 = vst [vmem:[#allocation72_spill] sm:$0xff] %v17176_v33  ;;  %20887 = vst [vmem:[#allocation73_spill] sm:$0xff] %v17179_v39  ;;  %v971_v58 = vmul.f32 %v17173_v51, %v17173_v51  ;;  %v972_v9 = vmul.f32 %v17176_v33, %v17176_v33  ;;  %v1071_v2 = vadd.f32 %v1070_v8, %v963_v29  ;;  %v1812_v33 = vld [vmem:[#allocation10 + $0x8a0] sm:$0xff] }
 0x1bb   : > { %20889 = vst [vmem:[#allocation74_spill] sm:$0xff] %v17184_v13  ;;  %v17195_v44 = vsub.f32 %v20890_v10, %v783_v61  ;;  %v973_v56 = vmul.f32 %v17179_v39, %v17179_v39  ;;  %v13409_v1 = vcombine.low %v16711_v40, %v16713_v37  ;;  %v1076_v22 = vadd.f32 %v1075_v59, %v967_v23 }
 0x1bc   : > { %v1081_v49 = vadd.f32 %v971_v58, %v970_v48  ;;  %v13411_v28 = vcombine.low %v16715_v54, %v16717_v20  ;;  %v13434_v51 = vcombine.high %v1776_v41, %v1788_v32  ;;  %1072 = vadd.xlane.f32.xlu1 %v1071_v2  ;;  %v974_v61 = vmul.f32 %v17184_v13, %v17184_v13  ;;  %v1824_v54 = vld [vmem:[#allocation10 + $0x900] sm:$0xff]  ;;  %v1825_v2 = vld [vmem:[#allocation10 + $0x908] sm:$0xff] }
 0x1bd   : > { %20891 = vst [vmem:[#allocation75_spill] sm:$0xff] %v17195_v44  ;;  %8593 = vmatpush1.bf16.msra.mxu0 %v13409_v1  ;;  %v13436_v8 = vcombine.high %v1777_v3, %v1789_v34  ;;  %v13433_v29 = vcombine.low %v1776_v41, %v1788_v32  ;;  %v1077_v10 = vadd.f32 %v1076_v22, %v968_v55  ;;  %v1836_v58 = vld [vmem:[#allocation10 + $0x960] sm:$0xff]  ;;  %v1837_v13 = vld [vmem:[#allocation10 + $0x968] sm:$0xff]  ;;  %20904 = vst [vmem:[#allocation108_spill] sm:$0xff] %v17309_v24 }
 0x1be   : > { %v1082_v39 = vadd.f32 %v1081_v49, %v972_v9  ;;  %8932 = vmatpush1.bf16.msra.mxu1 %v13411_v28  ;;  %8594 = vmatprep.subr.bf16.mxu0 %v13434_v51  ;;  %v13435_v40 = vcombine.low %v1777_v3, %v1789_v34  ;;  %v13458_v37 = vcombine.high %v1800_v50, %v1812_v33  ;;  %v1848_v32 = vld [vmem:[#allocation10 + $0x9c0] sm:$0xff]  ;;  %v1849_v3 = vld [vmem:[#allocation10 + $0x9c8] sm:$0xff] }
 0x1bf   : > { %8933 = vmatprep.subr.bf16.mxu1 %v13436_v8  ;;  %v13460_v23 = vcombine.high %v1801_v12, %v1813_v63  ;;  %v1078_v20 = vadd.f32 %v1077_v10, %v969_v5  ;;  %v975_v48 = vmul.f32 %v17195_v44, %v17195_v44  ;;  %v13457_v1 = vcombine.low %v1800_v50, %v1812_v33  ;;  %v1860_v9 = vld [vmem:[#allocation10 + $0xa20] sm:$0xff]  ;;  %v1861_v34 = vld [vmem:[#allocation10 + $0xa28] sm:$0xff] }
 0x1c0   : > { %v1083_v59 = vadd.f32 %v1082_v39, %v973_v56  ;;  %v13459_v28 = vcombine.low %v1801_v12, %v1813_v63  ;;  %v13482_v51 = vcombine.high %v1824_v54, %v1836_v58  ;;  %v13484_v41 = vcombine.high %v1825_v2, %v1837_v13  ;;  %v1872_v33 = vld [vmem:[#allocation10 + $0xa80] sm:$0xff]  ;;  %v1873_v63 = vld [vmem:[#allocation10 + $0xa88] sm:$0xff]  ;;  %20905 = vst [vmem:[#allocation109_spill] sm:$0xff] %v17311_v60 }
 0x1c1   : > { %8595 = vmatpush1.bf16.msra.mxu0 %v13433_v29  ;;  %1079 = vadd.xlane.f32.xlu0 %v1078_v20  ;;  %v13481_v39 = vcombine.low %v1824_v54, %v1836_v58  ;;  %v13483_v56 = vcombine.low %v1825_v2, %v1837_v13  ;;  %v13506_v22 = vcombine.high %v1848_v32, %v1860_v9  ;;  %v1884_v12 = vld [vmem:[#allocation10 + $0xae0] sm:$0xff]  ;;  %v1885_v49 = vld [vmem:[#allocation10 + $0xae8] sm:$0xff] }
 0x1c2   : > { %v1084_v55 = vadd.f32 %v1083_v59, %v974_v61  ;;  %8934 = vmatpush1.bf16.msra.mxu1 %v13435_v40  ;;  %8596 = vmatprep.subr.bf16.mxu0 %v13458_v37  ;;  %v13508_v50 = vcombine.high %v1849_v3, %v1861_v34  ;;  %v13505_v61 = vcombine.low %v1848_v32, %v1860_v9  ;;  %v1896_v10 = vld [vmem:[#allocation10 + $0xb40] sm:$0xff]  ;;  %v17211_v54 = vld [vmem:[#allocation10 + $0xc08] sm:$0xff] }
 0x1c3   : > { %8935 = vmatprep.subr.bf16.mxu1 %v13460_v23  ;;  %v13507_v8 = vcombine.low %v1849_v3, %v1861_v34  ;;  %v13530_v29 = vcombine.high %v1872_v33, %v1884_v12  ;;  %v1908_v40 = vld [vmem:[#allocation10 + $0xba0] sm:$0xff]  ;;  %v13532_v37 = vcombine.high %v1873_v63, %v1885_v49  ;;  %v1897_v20 = vld [vmem:[#allocation10 + $0xb48] sm:$0xff]  ;;  %v13529_v2 = vcombine.low %v1872_v33, %v1884_v12  ;;  %v17236_v33 = vld [vmem:[#allocation8] sm:$0x3f] }
 0x1c4   : > { %v1085_v5 = vadd.f32 %v1084_v55, %v975_v48  ;;  %v17207_v23 = vld [vmem:[#allocation10 + $0xc00] sm:$0xff]  ;;  %v1909_v48 = vld [vmem:[#allocation10 + $0xba8] sm:$0xff]  ;;  %v13531_v55 = vcombine.low %v1873_v63, %v1885_v49  ;;  %v1234_v3 = vlaneseq  ;;  %20906 = vst [vmem:[#allocation110_spill] sm:$0xff] %v17319_v7  ;;  %20921 = vst [vmem:[#allocation125_spill] sm:$0xff] %v17385_v42 }
 0x1c5   : > { %8597 = vmatpush1.bf16.msra.mxu0 %v13457_v1  ;;  %v17209_v13 = vld [vmem:[#allocation10 + $0xc60] sm:$0xff]  ;;  %v17215_v58 = vld [vmem:[#allocation10 + $0xc68] sm:$0xff]  ;;  %v13555_v32 = vcombine.low %v1897_v20, %v1909_v48  ;;  %20923 = vst [vmem:[#allocation127_spill] sm:$0xff] %v17395_v30  ;;  %20930 = vst [vmem:[#allocation134_spill] sm:$0xff] %v17419_v25 }
 0x1c6   : > { %1086 = vadd.xlane.f32.xlu1 %v1085_v5  ;;  %8936 = vmatpush1.bf16.msra.mxu1 %v13459_v28  ;;  %v13554_v28 = vcombine.high %v1896_v10, %v1908_v40  ;;  %v13578_v9 = vcombine.high %v17207_v23, %v17209_v13  ;;  %v13580_v5 = vcombine.high %v17211_v54, %v17215_v58  ;;  %v17223_v34 = vshrl.u32 %v1234_v3, 7  ;;  %v17238_v12 = vld [vmem:[#allocation10 + $0xcc0] sm:$0xff]  ;;  %v17281_v3 = vld [vmem:[#allocation10 + $0xe48] sm:$0xff] }
 0x1c7   : > { %8598 = vmatprep.subr.bf16.mxu0 %v13482_v51  ;;  %8937 = vmatprep.subr.bf16.mxu1 %v13484_v41  ;;  %v13556_v51 = vcombine.high %v1897_v20, %v1909_v48  ;;  %v13553_v41 = vcombine.low %v1896_v10, %v1908_v40  ;;  %v17255_v20 = vld [vmem:[#allocation10 + $0xde0] sm:$0xff]  ;;  %v17257_v48 = vld [vmem:[#allocation10 + $0xd88] sm:$0xff]  ;;  %20899 = vst [vmem:[#allocation103_spill] sm:$0xff] %v17281_v3 }
 0x1c8   : > { %20892 = vst [vmem:[#allocation96_spill] sm:$0xff] %v17223_v34  ;;  %v17241_v63 = vsub.s32 2, %v17223_v34  ;;  %v17285_v1 = vld [vmem:[#allocation10 + $0xf00] sm:$0xff]  ;;  %v17383_v7 = vld [vmem:[#allocation10 + $0x1268] sm:$0xff] }
 0x1c9   : > { %8599 = vmatpush1.bf16.msra.mxu0 %v13481_v39  ;;  %v17226_v39 = vsub.s32 1, %v17223_v34  ;;  %20901 = vst [vmem:[#allocation105_spill] sm:$0xff] %v17285_v1  ;;  %v17371_v60 = vld [vmem:[#allocation10 + $0x1260] sm:$0xff]  ;;  %20920 = vst [vmem:[#allocation124_spill] sm:$0xff] %v17383_v7  ;;  %v17397_v3 = vld [vmem:[#allocation10 + $0x1328] sm:$0xff] }
 0x1ca   : > { %8938 = vmatpush1.bf16.msra.mxu1 %v13483_v56  ;;  %8600 = vmatprep.subr.bf16.mxu0 %v13506_v22  ;;  %v17228_v56 = vld [vmem:[#allocation7] sm:$0x3f]  ;;  %v17231_v22 = vsub.s32 0, %v17223_v34  ;;  %20896 = vst [vmem:[#allocation100_spill] sm:$0xff] %v17241_v63  ;;  %20918 = vst [vmem:[#allocation122_spill] sm:$0xff] %v17371_v60  ;;  %v17407_v24 = vld [vmem:[#allocation10 + $0x13e0] sm:$0xff] }
 0x1cb   : > { %8939 = vmatprep.subr.bf16.mxu1 %v13508_v50  ;;  %20893 = vst [vmem:[#allocation97_spill] sm:$0xff] %v17226_v39  ;;  %v17234_v50 = vsub.s32 3, %v17223_v34  ;;  %v17251_v40 = vrot.slane %v17228_v56, %v17226_v39  ;;  %20924 = vst [vmem:[#allocation128_spill] sm:$0xff] %v17397_v3  ;;  %v17478_v3 = vld [vmem:[#allocation10 + $0x1680] sm:$0xff] }
 0x1cc   : > { %20894 = vst [vmem:[#allocation98_spill] sm:$0xff] %v17231_v22  ;;  %20926 = vst [vmem:[#allocation130_spill] sm:$0xff] %v17407_v24  ;;  %v17453_v24 = vld [vmem:[#allocation10 + $0x1568] sm:$0xff] }
 0x1cd   : > { %8601 = vmatpush1.bf16.msra.mxu0 %v13505_v61  ;;  %20895 = vst [vmem:[#allocation99_spill] sm:$0xff] %v17234_v50  ;;  %v17243_v61 = vld [vmem:[#allocation10 + $0xd20] sm:$0xff]  ;;  %v17289_v59 = vrot.slane %v17236_v33, %v17234_v50  ;;  %20934 = vst [vmem:[#allocation138_spill] sm:$0xff] %v17453_v24 }
 0x1ce   : > { %8940 = vmatpush1.bf16.msra.mxu1 %v13507_v8  ;;  %8602 = vmatprep.subr.bf16.mxu0 %v13530_v29  ;;  %v17245_v8 = vld [vmem:[#allocation10 + $0xcc8] sm:$0xff] }
 0x1cf   : > { %8941 = vmatprep.subr.bf16.mxu1 %v13532_v37  ;;  %v17247_v29 = vld [vmem:[#allocation10 + $0xd28] sm:$0xff]  ;;  %v17253_v37 = vld [vmem:[#allocation10 + $0xd80] sm:$0xff]  ;;  %20902 = vst [vmem:[#allocation106_spill] sm:$0xff] %v17289_v59 }
 0x1d0   : > { %v17307_v59 = vld [vmem:[#allocation10 + $0xf60] sm:$0xff] }
 0x1d1   : > { %8603 = vmatpush1.bf16.msra.mxu0 %v13529_v2  ;;  %v17261_v2 = vrot.slane %v17236_v33, %v17226_v39  ;;  %v17293_v39 = vrot.slane %v17228_v56, %v17241_v63  ;;  %20903 = vst [vmem:[#allocation107_spill] sm:$0xff] %v17307_v59  ;;  %v17361_v59 = vld [vmem:[#allocation10 + $0x11a8] sm:$0xff] }
 0x1d2   : > { %8942 = vmatpush1.bf16.msra.mxu1 %v13531_v55  ;;  %8604 = vmatprep.subr.bf16.mxu0 %v13554_v28  ;;  %v17265_v55 = vrot.slane %v17228_v56, %v17231_v22  ;;  %v17269_v28 = vrot.slane %v17236_v33, %v17231_v22  ;;  %v17297_v22 = vrot.slane %v17236_v33, %v17241_v63 }
 0x1d3   : > { %8943 = vmatprep.subr.bf16.mxu1 %v13556_v51  ;;  %v17271_v51 = vld [vmem:[#allocation10 + $0xde8] sm:$0xff]  ;;  %20916 = vst [vmem:[#allocation120_spill] sm:$0xff] %v17361_v59 }
 0x1d4   : > { %v17415_v59 = vld [vmem:[#allocation10 + $0x13e8] sm:$0xff] }
 0x1d5   : > { %8605 = vmatpush1.bf16.msra.mxu0 %v13553_v41  ;;  %v17273_v41 = vld [vmem:[#allocation10 + $0xe40] sm:$0xff]  ;;  %20928 = vst [vmem:[#allocation132_spill] sm:$0xff] %v17415_v59 }
 0x1d6   : > { %8944 = vmatpush1.bf16.msra.mxu1 %v13555_v32  ;;  %8687 = vmatprep.subr.bf16.mxu0 %v13578_v9  ;;  %v17275_v32 = vld [vmem:[#allocation10 + $0xea0] sm:$0xff]  ;;  %v17279_v9 = vrot.slane %v17228_v56, %v17234_v50 }
 0x1d7   : > { %9026 = vmatprep.subr.bf16.mxu1 %v13580_v5  ;;  %20897 = vst [vmem:[#allocation101_spill] sm:$0xff] %v17275_v32  ;;  %v17369_v50 = vld [vmem:[#allocation10 + $0x1200] sm:$0xff] }
 0x1d8   : > { %20898 = vst [vmem:[#allocation102_spill] sm:$0xff] %v17279_v9  ;;  %v17333_v9 = vld [vmem:[#allocation10 + $0x1080] sm:$0xff]  ;;  %20917 = vst [vmem:[#allocation121_spill] sm:$0xff] %v17369_v50 }
 0x1d9   : > { %20909 = vst [vmem:[#allocation113_spill] sm:$0xff] %v17333_v9 }
 0x20f   : > { %v982_v49 = vpop.xlane.xlu0 %981 }
 0x210   : > { %v1088_v10 = vmul.f32 0.0013020834, %v982_v49  ;;  %v17283_v49 = vld [vmem:[#allocation10 + $0xea8] sm:$0xff] }
 0x211   : > { %20900 = vst [vmem:[#allocation104_spill] sm:$0xff] %v17283_v49  ;;  %v17357_v49 = vld [vmem:[#allocation10 + $0x11a0] sm:$0xff] }
 0x212   : > { %v1104_v5 = vadd.f32 1e-05, %v1088_v10  ;;  %v17331_v10 = vld [vmem:[#allocation10 + $0x1028] sm:$0xff]  ;;  %20914 = vst [vmem:[#allocation118_spill] sm:$0xff] %v17357_v49  ;;  %v17405_v49 = vld [vmem:[#allocation10 + $0x1380] sm:$0xff] }
 0x213   : > { %v996_v44 = vpop.xlane.xlu0 %995  ;;  %20908 = vst [vmem:[#allocation112_spill] sm:$0xff] %v17331_v10  ;;  %20925 = vst [vmem:[#allocation129_spill] sm:$0xff] %v17405_v49  ;;  %v17455_v49 = vld [vmem:[#allocation10 + $0x15c0] sm:$0xff] }
 0x214   : > { %15607 = vrsqrt.f32 %v1104_v5  ;;  %v1090_v63 = vmul.f32 0.0013020834, %v996_v44  ;;  %v17347_v5 = vld [vmem:[#allocation10 + $0x10e8] sm:$0xff]  ;;  %20935 = vst [vmem:[#allocation139_spill] sm:$0xff] %v17455_v49 }
 0x215   : > { %20912 = vst [vmem:[#allocation116_spill] sm:$0xff] %v17347_v5  ;;  %v17359_v44 = vld [vmem:[#allocation10 + $0x1148] sm:$0xff] }
 0x216   : > { %v1106_v32 = vadd.f32 1e-05, %v1090_v63  ;;  %20915 = vst [vmem:[#allocation119_spill] sm:$0xff] %v17359_v44  ;;  %v17381_v63 = vld [vmem:[#allocation10 + $0x1208] sm:$0xff] }
 0x217   : > { %v989_v35 = vpop.xlane.xlu1 %988  ;;  %20919 = vst [vmem:[#allocation123_spill] sm:$0xff] %v17381_v63  ;;  %v17437_v63 = vld [vmem:[#allocation10 + $0x14a8] sm:$0xff] }
 0x218   : > { %v1089_v1 = vmul.f32 0.0013020834, %v989_v35  ;;  %v17393_v35 = vld [vmem:[#allocation10 + $0x1320] sm:$0xff]  ;;  %15609 = vrsqrt.f32 %v1106_v32  ;;  %v17427_v32 = vld [vmem:[#allocation10 + $0x1448] sm:$0xff]  ;;  %20933 = vst [vmem:[#allocation137_spill] sm:$0xff] %v17437_v63 }
 0x219   : > { %20922 = vst [vmem:[#allocation126_spill] sm:$0xff] %v17393_v35  ;;  %20931 = vst [vmem:[#allocation135_spill] sm:$0xff] %v17427_v32  ;;  %v17441_v35 = vld [vmem:[#allocation10 + $0x1560] sm:$0xff]  ;;  %v17493_v63 = vld [vmem:[#allocation10 + $0x16e8] sm:$0xff] }
 0x21a   : > { %v1105_v10 = vadd.f32 1e-05, %v1089_v1  ;;  %20941 = vst [vmem:[#allocation145_spill] sm:$0xff] %v17493_v63 }
 0x21b   : > { %v1003_v5 = vpop.xlane.xlu1 %1002 }
 0x21c   : > { %15611 = vrsqrt.f32 %v1105_v10  ;;  %v1091_v45 = vmul.f32 0.0013020834, %v1003_v5  ;;  %v17439_v10 = vld [vmem:[#allocation10 + $0x1500] sm:$0xff] }
 0x21d   : > { %v1010_v9 = vpop.xlane.xlu0 %1009 }
 0x21e   : > { %v1092_v60 = vmul.f32 0.0013020834, %v1010_v9  ;;  %v17429_v44 = vpop.eup %15607  ;;  %v1107_v1 = vadd.f32 1e-05, %v1091_v45  ;;  %v17449_v9 = vld [vmem:[#allocation10 + $0x1508] sm:$0xff]  ;;  %v17462_v45 = vsub.s32 5, %v17223_v34 }
 0x21f   : > { %20932 = vst [vmem:[#allocation136_spill] sm:$0xff] %v17429_v44  ;;  %v1138_v42 = vmul.f32 %v17429_v44, %v16754_v21  ;;  %v1137_v21 = vmul.f32 %v17429_v44, %v16751_v18  ;;  %v1136_v52 = vmul.f32 %v17429_v44, %v16748_v26  ;;  %v17491_v44 = vld [vmem:[#allocation10 + $0x1688] sm:$0xff] }
 0x220   : > { %v1108_v5 = vadd.f32 1e-05, %v1092_v60  ;;  %15613 = vrsqrt.f32 %v1107_v1  ;;  %v17457_v60 = vld [vmem:[#allocation10 + $0x1620] sm:$0xff]  ;;  %20937 = vst [vmem:[#allocation141_spill] sm:$0xff] %v17462_v45  ;;  %20940 = vst [vmem:[#allocation144_spill] sm:$0xff] %v17491_v44 }
 0x221   : > { %20936 = vst [vmem:[#allocation140_spill] sm:$0xff] %v17457_v60  ;;  %v17480_v1 = vld [vmem:[#allocation10 + $0x16e0] sm:$0xff]  ;;  %v1266_v50 = vmul.f32 %v17293_v39, %v1138_v42  ;;  %v1265_v24 = vmul.f32 %v17251_v40, %v1137_v21  ;;  %v1264_v26 = vmul.f32 %v17265_v55, %v1136_v52 }
 0x222   : > { %15615 = vrsqrt.f32 %v1108_v5  ;;  %v1017_v7 = vpop.xlane.xlu1 %1016  ;;  %v17476_v5 = vld [vmem:[#allocation10 + $0x1628] sm:$0xff]  ;;  %20939 = vst [vmem:[#allocation143_spill] sm:$0xff] %v17480_v1  ;;  %v17504_v25 = vpop.eup %15609  ;;  %v17516_v60 = vld [vmem:[#allocation10 + $0x17a0] sm:$0xff] }
 0x223   : > { %v1093_v59 = vmul.f32 0.0013020834, %v1017_v7  ;;  %20938 = vst [vmem:[#allocation142_spill] sm:$0xff] %v17476_v5  ;;  %v17498_v30 = vadd.f32 %v17297_v22, %v1266_v50  ;;  %v17502_v7 = vrot.slane %v17228_v56, %v17462_v45  ;;  %v17514_v50 = vld [vmem:[#allocation10 + $0x1740] sm:$0xff]  ;;  %20944 = vst [vmem:[#allocation148_spill] sm:$0xff] %v17516_v60  ;;  %v1393_v21 = vadd.f32 %v17261_v2, %v1265_v24  ;;  %v17555_v60 = vld [vmem:[#allocation10 + $0x1748] sm:$0xff] }
 0x224   : > { %20943 = vst [vmem:[#allocation147_spill] sm:$0xff] %v17514_v50  ;;  %v1392_v44 = vadd.f32 %v17269_v28, %v1264_v26  ;;  %v17557_v50 = vld [vmem:[#allocation10 + $0x17a8] sm:$0xff] }
 0x225   : > { %v1109_v32 = vadd.f32 1e-05, %v1093_v59  ;;  %20942 = vst [vmem:[#allocation146_spill] sm:$0xff] %v17502_v7 }
 0x226   : > { %v17518_v49 = vpop.eup %15611 }
 0x227   : > { %15617 = vrsqrt.f32 %v1109_v32  ;;  %v1143_v59 = vmul.f32 %v17518_v49, %v16811_v57  ;;  %v1142_v42 = vmul.f32 %v17518_v49, %v16808_v38  ;;  %v1149_v32 = vmul.f32 %v17504_v25, %v16727_v4 }
 0x228   : > { %v1024_v7 = vpop.xlane.xlu0 %1023  ;;  %v1144_v52 = vmul.f32 %v17518_v49, %v16814_v15  ;;  %v1148_v15 = vmul.f32 %v17504_v25, %v16724_v47 }
 0x229   : > { %v1094_v5 = vmul.f32 0.0013020834, %v1024_v7  ;;  %v17538_v7 = vrot.slane %v17236_v33, %v17462_v45  ;;  %v1271_v18 = vmul.f32 %v17251_v40, %v1143_v59  ;;  %v1270_v38 = vmul.f32 %v17265_v55, %v1142_v42 }
 0x22a   : > { %v17544_v63 = vpop.eup %15613  ;;  %v1272_v45 = vmul.f32 %v17293_v39, %v1144_v52  ;;  %v1277_v26 = vmul.f32 %v17251_v40, %v1149_v32  ;;  %v1150_v52 = vmul.f32 %v17504_v25, %v16730_v36 }
 0x22b   : > { %20945 = vst [vmem:[#allocation149_spill] sm:$0xff] %v17538_v7  ;;  %v1110_v57 = vadd.f32 1e-05, %v1094_v5  ;;  %v1399_v42 = vadd.f32 %v17261_v2, %v1271_v18  ;;  %v1398_v1 = vadd.f32 %v17269_v28, %v1270_v38  ;;  %v1155_v24 = vmul.f32 %v17544_v63, %v16783_v27 }
 0x22c   : > { %v1031_v4 = vpop.xlane.xlu1 %1030  ;;  %v17551_v5 = vpop.eup %15615  ;;  %v1154_v47 = vmul.f32 %v17544_v63, %v16780_v53  ;;  %v17577_v53 = vsub.s32 4, %v17223_v34  ;;  %v20995_v34 = vld [vmem:[#allocation21_spill] sm:$0xff] }
 0x22d   : > { %15619 = vrsqrt.f32 %v1110_v57  ;;  %v1095_v59 = vmul.f32 0.0013020834, %v1031_v4  ;;  %v17566_v4 = vpack.c.bf16 %v1399_v42, %v1393_v21  ;;  %v17568_v18 = vpack.c.bf16 %v1398_v1, %v1392_v44 }
 0x22e   : > { %v1161_v38 = vmul.f32 %v17551_v5, %v16843_v43  ;;  %v1283_v7 = vmul.f32 %v17251_v40, %v1155_v24  ;;  %v1282_v27 = vmul.f32 %v17265_v55, %v1154_v47  ;;  %20948 = vst [vmem:[#allocation152_spill] sm:$0xff] %v17577_v53  ;;  %v1276_v44 = vmul.f32 %v17265_v55, %v1148_v15 }
 0x22f   : > { %v1111_v57 = vadd.f32 1e-05, %v1095_v59  ;;  %20946 = vst [vmem:[#allocation150_spill] sm:$0xff] %v17566_v4  ;;  %20947 = vst [vmem:[#allocation151_spill] sm:$0xff] %v17568_v18  ;;  %8606 = vmatprep.mubr.bf16.mxu0 %v17566_v4  ;;  %8945 = vmatprep.mubr.bf16.mxu1 %v17566_v4  ;;  %v1400_v1 = vadd.f32 %v17297_v22, %v1272_v45  ;;  %v1405_v42 = vadd.f32 %v17261_v2, %v1277_v26 }
 0x230   : > { %8607 = vmatmul.mubr.bf16.vlgmr.msra.gmra.mrb[0].mxu0 %v17568_v18  ;;  %8946 = vmatmul.mubr.bf16.vlgmr.msra.gmra.mrb[0].mxu1 %v17568_v18  ;;  %v1411_v24 = vadd.f32 %v17261_v2, %v1283_v7  ;;  %v1278_v47 = vmul.f32 %v17293_v39, %v1150_v52  ;;  %v20949_v15 = vcombine.low %v17207_v23, %v17209_v13  ;;  %v17824_v18 = vld [vmem:[#allocation10 + $0x1a48] sm:$0xff] }
 0x231   : > { %15621 = vrsqrt.f32 %v1111_v57  ;;  %v1038_v36 = vpop.xlane.xlu0 %1037  ;;  %v17585_v21 = vpop.eup %15617  ;;  %v20950_v45 = vcombine.low %v17211_v54, %v17215_v58  ;;  %v20952_v52 = vcombine.high %v17238_v12, %v17243_v61  ;;  %v20953_v23 = vcombine.high %v17245_v8, %v17247_v29 }
 0x232   : > { %v1096_v59 = vmul.f32 0.0013020834, %v1038_v36  ;;  %8688 = vmatpush1.bf16.msra.mxu0 %v20949_v15  ;;  %v1167_v57 = vmul.f32 %v17585_v21, %v16873_v17  ;;  %v1289_v36 = vmul.f32 %v17251_v40, %v1161_v38  ;;  %v1166_v26 = vmul.f32 %v17585_v21, %v16870_v62 }
 0x233   : > { %9027 = vmatpush1.bf16.msra.mxu1 %v20950_v45  ;;  %v17603_v7 = vpack.c.bf16 %v1411_v24, %v1405_v42  ;;  %8689 = vmatprep.subr.bf16.mxu0 %v20952_v52  ;;  %v1410_v13 = vadd.f32 %v17269_v28, %v1282_v27  ;;  %v17613_v17 = vpack.c.bf16 %v1400_v1, %v17498_v30  ;;  %v17627_v27 = vld [vmem:[#allocation10 + $0x1800] sm:$0xff]  ;;  %v17643_v45 = vld [vmem:[#allocation10 + $0x1808] sm:$0xff] }
 0x234   : > { %v1112_v32 = vadd.f32 1e-05, %v1096_v59  ;;  %9028 = vmatprep.subr.bf16.mxu1 %v20953_v23  ;;  %v1295_v58 = vmul.f32 %v17251_v40, %v1167_v57  ;;  %v1160_v62 = vmul.f32 %v17551_v5, %v16840_v11  ;;  %v1156_v38 = vmul.f32 %v17544_v63, %v16786_v0  ;;  %v17629_v1 = vld [vmem:[#allocation10 + $0x1860] sm:$0xff]  ;;  %v17645_v57 = vld [vmem:[#allocation10 + $0x1868] sm:$0xff]  ;;  %v20976_v23 = vld [vmem:[#allocation107_spill] sm:$0xff] }
 0x235   : > { %20951 = vst [vmem:[#allocation153_spill] sm:$0xff] %v17603_v7  ;;  %20954 = vst [vmem:[#allocation154_spill] sm:$0xff] %v17613_v17  ;;  %v17622_v59 = vrot.slane %v17228_v56, %v17577_v53  ;;  %8616 = vmatprep.mubr.bf16.mxu0 %v17603_v7  ;;  %8955 = vmatprep.mubr.bf16.mxu1 %v17603_v7  ;;  %v1404_v30 = vadd.f32 %v17269_v28, %v1276_v44 }
 0x236   : > { %v1045_v54 = vpop.xlane.xlu1 %1044  ;;  %15623 = vrsqrt.f32 %v1112_v32  ;;  %v1406_v11 = vadd.f32 %v17297_v22, %v1278_v47  ;;  %v20955_v0 = vcombine.low %v17238_v12, %v17243_v61  ;;  %v20956_v56 = vcombine.low %v17245_v8, %v17247_v29 }
 0x237   : > { %v1097_v42 = vmul.f32 0.0013020834, %v1045_v54  ;;  %v17632_v24 = vpop.eup %15619  ;;  %v1417_v32 = vadd.f32 %v17261_v2, %v1289_v36  ;;  %v1423_v44 = vadd.f32 %v17261_v2, %v1295_v58  ;;  %v1294_v15 = vmul.f32 %v17265_v55, %v1166_v26  ;;  %v17714_v58 = vld [vmem:[#allocation10 + $0x18c8] sm:$0xff] }
 0x238   : > { %8690 = vmatpush1.bf16.msra.mxu0 %v20955_v0  ;;  %9029 = vmatpush1.bf16.msra.mxu1 %v20956_v56  ;;  %v20957_v52 = vcombine.high %v17253_v37, %v17255_v20  ;;  %v20958_v12 = vcombine.high %v17257_v48, %v17271_v51  ;;  %v17653_v61 = vpack.c.bf16 %v1410_v13, %v1404_v30  ;;  %v17716_v26 = vld [vmem:[#allocation10 + $0x1928] sm:$0xff] }
 0x239   : > { %v1113_v47 = vadd.f32 1e-05, %v1097_v42  ;;  %v1173_v8 = vmul.f32 %v17632_v24, %v16903_v14  ;;  %v1284_v29 = vmul.f32 %v17293_v39, %v1156_v38  ;;  %v1288_v36 = vmul.f32 %v17265_v55, %v1160_v62  ;;  %v17673_v62 = vld [vmem:[#allocation10 + $0x18c0] sm:$0xff] }
 0x23a   : > { %8691 = vmatprep.subr.bf16.mxu0 %v20957_v52  ;;  %9030 = vmatprep.subr.bf16.mxu1 %v20958_v12  ;;  %20959 = vst [vmem:[#allocation155_spill] sm:$0xff] %v17653_v61  ;;  %v17665_v54 = vrot.slane %v17236_v33, %v17577_v53  ;;  %v17669_v14 = vpack.c.bf16 %v1423_v44, %v1417_v32  ;;  %v17675_v38 = vld [vmem:[#allocation10 + $0x1920] sm:$0xff]  ;;  %v20965_v12 = vld [vmem:[#allocation103_spill] sm:$0xff] }
 0x23b   : > { %15625 = vrsqrt.f32 %v1113_v47  ;;  %v1052_v13 = vpop.xlane.xlu0 %1051  ;;  %8617 = vmatmul.mubr.bf16.gmra.mrb[4].mxu0 %v17653_v61  ;;  %8956 = vmatmul.mubr.bf16.gmra.mrb[4].mxu1 %v17653_v61  ;;  %v1412_v42 = vadd.f32 %v17297_v22, %v1284_v29  ;;  %v17678_v30 = vpop.eup %15621  ;;  %v20961_v0 = vcombine.low %v17253_v37, %v17255_v20  ;;  %v20962_v56 = vcombine.low %v17257_v48, %v17271_v51  ;;  %v20966_v29 = vld [vmem:[#allocation104_spill] sm:$0xff]  ;;  %v20975_v44 = vld [vmem:[#allocation105_spill] sm:$0xff]  ;;  %v20994_v53 = vld [vmem:[#allocation35_spill] sm:$0xff] }
 0x23c   : > { %20960 = vst [vmem:[#allocation156_spill] sm:$0xff] %v17669_v14  ;;  %v1098_v33 = vmul.f32 0.0013020834, %v1052_v13  ;;  %v1422_v32 = vadd.f32 %v17269_v28, %v1294_v15  ;;  %v1162_v47 = vmul.f32 %v17551_v5, %v16846_v46  ;;  %8626 = vmatprep.mubr.bf16.mxu0 %v17669_v14  ;;  %8965 = vmatprep.mubr.bf16.mxu1 %v17669_v14  ;;  %v20963_v15 = vld [vmem:[#allocation101_spill] sm:$0xff] }
 0x23d   : > { %8692 = vmatpush1.bf16.msra.mxu0 %v20961_v0  ;;  %9031 = vmatpush1.bf16.msra.mxu1 %v20962_v56  ;;  %v1179_v37 = vmul.f32 %v17678_v30, %v16933_v31  ;;  %v1301_v20 = vmul.f32 %v17251_v40, %v1173_v8  ;;  %v1178_v48 = vmul.f32 %v17678_v30, %v16930_v16  ;;  %v20969_v16 = vld [vmem:[#allocation20_spill] sm:$0xff]  ;;  %v21001_v14 = vld [vmem:[#allocation113_spill] sm:$0xff] }
 0x23e   : > { %v1114_v51 = vadd.f32 1e-05, %v1098_v33  ;;  %v20964_v52 = vcombine.high %v17273_v41, %v20963_v15  ;;  %v20967_v46 = vcombine.high %v20965_v12, %v20966_v29  ;;  %v1416_v13 = vadd.f32 %v17269_v28, %v1288_v36 }
 0x23f   : > { %v17707_v31 = vpack.c.bf16 %v1412_v42, %v1406_v11  ;;  %v1307_v56 = vmul.f32 %v17251_v40, %v1179_v37  ;;  %v1172_v33 = vmul.f32 %v17632_v24, %v20969_v16  ;;  %v20971_v11 = vcombine.low %v17273_v41, %v20963_v15 }
 0x240   : > { %8693 = vmatprep.subr.bf16.mxu0 %v20964_v52  ;;  %9032 = vmatprep.subr.bf16.mxu1 %v20967_v46  ;;  %v1059_v8 = vpop.xlane.xlu1 %1058  ;;  %v20970_v46 = vld [vmem:[#allocation91_spill] sm:$0xff]  ;;  %15627 = vrsqrt.f32 %v1114_v51  ;;  %v20972_v42 = vcombine.low %v20965_v12, %v20966_v29  ;;  %v17726_v37 = vpack.c.bf16 %v1422_v32, %v1416_v13  ;;  %v1290_v16 = vmul.f32 %v17293_v39, %v1162_v47  ;;  %v17729_v52 = vpop.eup %15623  ;;  %v20978_v51 = vld [vmem:[#allocation108_spill] sm:$0xff]  ;;  %v17740_v32 = vld [vmem:[#allocation10 + $0x1980] sm:$0xff] }
 0x241   : > { %20968 = vst [vmem:[#allocation101_spill] sm:$0xff] %v17707_v31  ;;  %v1168_v36 = vmul.f32 %v17585_v21, %v20970_v46  ;;  %v1099_v0 = vmul.f32 0.0013020834, %v1059_v8  ;;  %8694 = vmatpush1.bf16.msra.mxu0 %v20971_v11  ;;  %20974 = vst [vmem:[#allocation104_spill] sm:$0xff] %v17729_v52  ;;  %v20977_v43 = vcombine.high %v20975_v44, %v20976_v23  ;;  %v20979_v8 = vld [vmem:[#allocation109_spill] sm:$0xff]  ;;  %v20981_v13 = vld [vmem:[#allocation30_spill] sm:$0xff] }
 0x242   : > { %9033 = vmatpush1.bf16.msra.mxu1 %v20972_v42  ;;  %20973 = vst [vmem:[#allocation103_spill] sm:$0xff] %v17726_v37  ;;  %v20980_v46 = vcombine.high %v20978_v51, %v20979_v8  ;;  %v1429_v41 = vadd.f32 %v17261_v2, %v1301_v20  ;;  %v1435_v15 = vadd.f32 %v17261_v2, %v1307_v56  ;;  %v17742_v29 = vld [vmem:[#allocation10 + $0x19e0] sm:$0xff] }
 0x243   : > { %8695 = vmatprep.subr.bf16.mxu0 %v20977_v43  ;;  %v1306_v12 = vmul.f32 %v17265_v55, %v1178_v48  ;;  %v1115_v47 = vadd.f32 1e-05, %v1099_v0  ;;  %v1185_v11 = vmul.f32 %v17729_v52, %v20981_v13  ;;  %v1296_v42 = vmul.f32 %v17293_v39, %v1168_v36  ;;  %8627 = vmatmul.mubr.bf16.gmra.mrb[8].mxu0 %v17726_v37  ;;  %v20993_v36 = vld [vmem:[#allocation36_spill] sm:$0xff] }
 0x244   : > { %9034 = vmatprep.subr.bf16.mxu1 %v20980_v46  ;;  %8966 = vmatmul.mubr.bf16.gmra.mrb[8].mxu1 %v17726_v37  ;;  %v17751_v20 = vpack.c.bf16 %v1435_v15, %v1429_v41  ;;  %v1300_v48 = vmul.f32 %v17265_v55, %v1172_v33  ;;  %v1418_v56 = vadd.f32 %v17297_v22, %v1290_v16  ;;  %v20991_v41 = vld [vmem:[#allocation112_spill] sm:$0xff] }
 0x245   : > { %15629 = vrsqrt.f32 %v1115_v47  ;;  %v1066_v0 = vpop.xlane.xlu0 %1065  ;;  %v20983_v46 = vcombine.low %v20975_v44, %v20976_v23  ;;  %v20984_v13 = vcombine.low %v20978_v51, %v20979_v8  ;;  %v1424_v33 = vadd.f32 %v17297_v22, %v1296_v42  ;;  %v17766_v15 = vpop.eup %15625  ;;  %v20985_v51 = vld [vmem:[#allocation29_spill] sm:$0xff]  ;;  %v17774_v47 = vld [vmem:[#allocation10 + $0x1988] sm:$0xff] }
 0x246   : > { %20982 = vst [vmem:[#allocation20_spill] sm:$0xff] %v17751_v20  ;;  %v1100_v16 = vmul.f32 0.0013020834, %v1066_v0  ;;  %8636 = vmatprep.mubr.bf16.mxu0 %v17751_v20  ;;  %8975 = vmatprep.mubr.bf16.mxu1 %v17751_v20  ;;  %v1434_v23 = vadd.f32 %v17269_v28, %v1306_v12  ;;  %v1313_v44 = vmul.f32 %v17251_v40, %v1185_v11  ;;  %20986 = vst [vmem:[#allocation91_spill] sm:$0xff] %v17774_v47  ;;  %v20988_v42 = vld [vmem:[#allocation110_spill] sm:$0xff]  ;;  %v20990_v0 = vld [vmem:[#allocation111_spill] sm:$0xff] }
 0x247   : > { %8696 = vmatpush1.bf16.msra.mxu0 %v20983_v46  ;;  %9035 = vmatpush1.bf16.msra.mxu1 %v20984_v13  ;;  %v1184_v8 = vmul.f32 %v17729_v52, %v20985_v51  ;;  %v17776_v46 = vld [vmem:[#allocation10 + $0x19e8] sm:$0xff]  ;;  %v20989_v13 = vcombine.high %v17317_v6, %v20988_v42  ;;  %v20992_v43 = vcombine.high %v20990_v0, %v20991_v41 }
 0x248   : > { %20987 = vst [vmem:[#allocation105_spill] sm:$0xff] %v17776_v46  ;;  %v1191_v12 = vmul.f32 %v17766_v15, %v20993_v36  ;;  %v1190_v11 = vmul.f32 %v17766_v15, %v20994_v53  ;;  %v1174_v51 = vmul.f32 %v17632_v24, %v20995_v34  ;;  %v1116_v20 = vadd.f32 1e-05, %v1100_v16  ;;  %v17805_v16 = vld [vmem:[#allocation10 + $0x1a40] sm:$0xff]  ;;  %21010 = vst [vmem:[#allocation110_spill] sm:$0xff] %v17824_v18  ;;  %v21020_v46 = vld [vmem:[#allocation120_spill] sm:$0xff] }
 0x249   : > { %8697 = vmatprep.subr.bf16.mxu0 %v20989_v13  ;;  %9036 = vmatprep.subr.bf16.mxu1 %v20992_v43  ;;  %v1428_v37 = vadd.f32 %v17269_v28, %v1300_v48  ;;  %v17793_v13 = vpack.c.bf16 %v1424_v33, %v1418_v56  ;;  %v1073_v61 = vpop.xlane.xlu1 %1072  ;;  %v20997_v43 = vcombine.low %v17317_v6, %v20988_v42  ;;  %v17807_v56 = vld [vmem:[#allocation10 + $0x1aa0] sm:$0xff]  ;;  %v21002_v6 = vld [vmem:[#allocation114_spill] sm:$0xff] }
 0x24a   : > { %v20998_v36 = vcombine.low %v20990_v0, %v20991_v41  ;;  %v1319_v53 = vmul.f32 %v17251_v40, %v1191_v12  ;;  %v1318_v34 = vmul.f32 %v17265_v55, %v1190_v11  ;;  %20999 = vst [vmem:[#allocation108_spill] sm:$0xff] %v17805_v16  ;;  %21000 = vst [vmem:[#allocation109_spill] sm:$0xff] %v17807_v56  ;;  %15631 = vrsqrt.f32 %v1116_v20  ;;  %v21005_v41 = vld [vmem:[#allocation116_spill] sm:$0xff]  ;;  %v21008_v11 = vld [vmem:[#allocation27_spill] sm:$0xff]  ;;  %v17819_v48 = vpop.eup %15627 }
 0x24b   : > { %20996 = vst [vmem:[#allocation107_spill] sm:$0xff] %v17793_v13  ;;  %8698 = vmatpush1.bf16.msra.mxu0 %v20997_v43  ;;  %v1101_v33 = vmul.f32 0.0013020834, %v1073_v61  ;;  %v21003_v42 = vcombine.high %v21001_v14, %v21002_v6  ;;  %v21004_v43 = vld [vmem:[#allocation115_spill] sm:$0xff]  ;;  %v17815_v12 = vpack.c.bf16 %v1434_v23, %v1428_v37  ;;  %21009 = vst [vmem:[#allocation29_spill] sm:$0xff] %v17819_v48  ;;  %v21012_v37 = vld [vmem:[#allocation42_spill] sm:$0xff] }
 0x24c   : > { %9037 = vmatpush1.bf16.msra.mxu1 %v20998_v36  ;;  %v21006_v0 = vcombine.high %v21004_v43, %v21005_v41  ;;  %v1180_v36 = vmul.f32 %v17678_v30, %v21008_v11  ;;  %v1441_v7 = vadd.f32 %v17261_v2, %v1313_v44  ;;  %v1447_v20 = vadd.f32 %v17261_v2, %v1319_v53  ;;  %v21016_v44 = vld [vmem:[#allocation117_spill] sm:$0xff]  ;;  %v21017_v13 = vld [vmem:[#allocation118_spill] sm:$0xff] }
 0x24d   : > { %8699 = vmatprep.subr.bf16.mxu0 %v21003_v42  ;;  %21007 = vst [vmem:[#allocation30_spill] sm:$0xff] %v17815_v12  ;;  %v1312_v61 = vmul.f32 %v17265_v55, %v1184_v8  ;;  %v17826_v42 = vld [vmem:[#allocation10 + $0x1aa8] sm:$0xff]  ;;  %v1302_v4 = vmul.f32 %v17293_v39, %v1174_v51  ;;  %8637 = vmatmul.mubr.bf16.gmra.mrb[12].mxu0 %v17815_v12  ;;  %v21019_v8 = vld [vmem:[#allocation119_spill] sm:$0xff]  ;;  %v21069_v18 = vld [vmem:[#allocation45_spill] sm:$0xff] }
 0x24e   : > { %9038 = vmatprep.subr.bf16.mxu1 %v21006_v0  ;;  %21011 = vst [vmem:[#allocation111_spill] sm:$0xff] %v17826_v42  ;;  %v1117_v0 = vadd.f32 1e-05, %v1101_v33  ;;  %8976 = vmatmul.mubr.bf16.gmra.mrb[12].mxu1 %v17815_v12  ;;  %v1197_v23 = vmul.f32 %v17819_v48, %v21012_v37  ;;  %v21013_v53 = vcombine.low %v21001_v14, %v21002_v6  ;;  %v1080_v12 = vpop.xlane.xlu0 %1079  ;;  %v21033_v47 = vld [vmem:[#allocation122_spill] sm:$0xff]  ;;  %v21036_v42 = vld [vmem:[#allocation124_spill] sm:$0xff] }
 0x24f   : > { %v21014_v51 = vcombine.low %v21004_v43, %v21005_v41  ;;  %v17843_v33 = vpack.c.bf16 %v1447_v20, %v1441_v7  ;;  %v1446_v11 = vadd.f32 %v17269_v28, %v1318_v34  ;;  %v1308_v37 = vmul.f32 %v17293_v39, %v1180_v36  ;;  %v17857_v43 = vld [vmem:[#allocation10 + $0x1b00] sm:$0xff]  ;;  %v17862_v36 = vpop.eup %15629 }
 0x250   : > { %8700 = vmatpush1.bf16.msra.mxu0 %v21013_v53  ;;  %15633 = vrsqrt.f32 %v1117_v0  ;;  %v21018_v31 = vcombine.high %v21016_v44, %v21017_v13  ;;  %v21021_v14 = vcombine.high %v21019_v8, %v21020_v46  ;;  %21022 = vst [vmem:[#allocation36_spill] sm:$0xff] %v17857_v43  ;;  %v17859_v34 = vld [vmem:[#allocation10 + $0x1b60] sm:$0xff]  ;;  %v1430_v41 = vadd.f32 %v17297_v22, %v1302_v4  ;;  %v21027_v4 = vld [vmem:[#allocation47_spill] sm:$0xff] }
 0x251   : > { %9039 = vmatpush1.bf16.msra.mxu1 %v21014_v51  ;;  %21015 = vst [vmem:[#allocation112_spill] sm:$0xff] %v17843_v33  ;;  %21023 = vst [vmem:[#allocation35_spill] sm:$0xff] %v17859_v34  ;;  %v1102_v20 = vmul.f32 0.0013020834, %v1080_v12  ;;  %8646 = vmatprep.mubr.bf16.mxu0 %v17843_v33  ;;  %v21025_v0 = vld [vmem:[#allocation41_spill] sm:$0xff]  ;;  %v1436_v51 = vadd.f32 %v17297_v22, %v1308_v37  ;;  %v1325_v6 = vmul.f32 %v17251_v40, %v1197_v23 }
 0x252   : > { %8701 = vmatprep.subr.bf16.mxu0 %v21018_v31  ;;  %9040 = vmatprep.subr.bf16.mxu1 %v21021_v14  ;;  %21024 = vst [vmem:[#allocation21_spill] sm:$0xff] %v17862_v36  ;;  %v1440_v31 = vadd.f32 %v17269_v28, %v1312_v61  ;;  %v1196_v53 = vmul.f32 %v17819_v48, %v21025_v0  ;;  %v21026_v14 = vld [vmem:[#allocation48_spill] sm:$0xff] }
 0x253   : > { %8985 = vmatprep.mubr.bf16.mxu1 %v17843_v33  ;;  %v1203_v7 = vmul.f32 %v17862_v36, %v21026_v14  ;;  %v1202_v56 = vmul.f32 %v17862_v36, %v21027_v4  ;;  %v1118_v16 = vadd.f32 1e-05, %v1102_v20  ;;  %v21028_v61 = vcombine.low %v21016_v44, %v21017_v13  ;;  %v1087_v4 = vpop.xlane.xlu1 %1086  ;;  %v21032_v33 = vld [vmem:[#allocation121_spill] sm:$0xff]  ;;  %v21035_v20 = vld [vmem:[#allocation123_spill] sm:$0xff] }
 0x254   : > { %v21029_v0 = vcombine.low %v21019_v8, %v21020_v46  ;;  %v17883_v37 = vpack.c.bf16 %v1446_v11, %v1440_v31  ;;  %v17887_v14 = vpack.c.bf16 %v1436_v51, %v1430_v41  ;;  %v21034_v12 = vcombine.high %v21032_v33, %v21033_v47  ;;  %v17897_v8 = vld [vmem:[#allocation10 + $0x1b08] sm:$0xff]  ;;  %v21040_v31 = vld [vmem:[#allocation33_spill] sm:$0xff]  ;;  %v17906_v23 = vpop.eup %15631 }
 0x255   : > { %8702 = vmatpush1.bf16.msra.mxu0 %v21028_v61  ;;  %v21037_v13 = vcombine.high %v21035_v20, %v21036_v42  ;;  %v1331_v44 = vmul.f32 %v17251_v40, %v1203_v7  ;;  %v1330_v46 = vmul.f32 %v17265_v55, %v1202_v56  ;;  %21038 = vst [vmem:[#allocation115_spill] sm:$0xff] %v17897_v8  ;;  %v17899_v11 = vld [vmem:[#allocation10 + $0x1b68] sm:$0xff]  ;;  %15635 = vrsqrt.f32 %v1118_v16 }
 0x256   : > { %9041 = vmatpush1.bf16.msra.mxu1 %v21029_v0  ;;  %21030 = vst [vmem:[#allocation113_spill] sm:$0xff] %v17883_v37  ;;  %21031 = vst [vmem:[#allocation114_spill] sm:$0xff] %v17887_v14  ;;  %8703 = vmatprep.subr.bf16.mxu0 %v21034_v12  ;;  %v1186_v41 = vmul.f32 %v17729_v52, %v21040_v31  ;;  %v1103_v51 = vmul.f32 0.0013020834, %v1087_v4  ;;  %v1324_v61 = vmul.f32 %v17265_v55, %v1196_v53  ;;  %v21041_v12 = vld [vmem:[#allocation39_spill] sm:$0xff]  ;;  %v21044_v4 = vld [vmem:[#allocation54_spill] sm:$0xff] }
 0x257   : > { %9042 = vmatprep.subr.bf16.mxu1 %v21037_v13  ;;  %21039 = vst [vmem:[#allocation116_spill] sm:$0xff] %v17899_v11  ;;  %v1192_v0 = vmul.f32 %v17766_v15, %v21041_v12  ;;  %8647 = vmatmul.mubr.bf16.gmra.mrb[16].mxu0 %v17883_v37  ;;  %v1453_v56 = vadd.f32 %v17261_v2, %v1325_v6  ;;  %v21053_v6 = vld [vmem:[#allocation53_spill] sm:$0xff]  ;;  %v17963_v11 = vld [vmem:[#allocation10 + $0x1bc8] sm:$0xff] }
 0x258   : > { %8986 = vmatmul.mubr.bf16.gmra.mrb[16].mxu1 %v17883_v37  ;;  %v1459_v7 = vadd.f32 %v17261_v2, %v1331_v44  ;;  %v1314_v13 = vmul.f32 %v17293_v39, %v1186_v41  ;;  %v1119_v31 = vadd.f32 1e-05, %v1103_v51  ;;  %v21042_v16 = vcombine.low %v21032_v33, %v21033_v47  ;;  %v17925_v44 = vld [vmem:[#allocation10 + $0x1bc0] sm:$0xff]  ;;  %v21048_v33 = vld [vmem:[#allocation126_spill] sm:$0xff]  ;;  %21058 = vst [vmem:[#allocation117_spill] sm:$0xff] %v17963_v11  ;;  %v21084_v11 = vld [vmem:[#allocation136_spill] sm:$0xff] }
 0x259   : > { %v21043_v53 = vcombine.low %v21035_v20, %v21036_v42  ;;  %v1209_v12 = vmul.f32 %v17906_v23, %v21044_v4  ;;  %v17927_v41 = vld [vmem:[#allocation10 + $0x1c20] sm:$0xff]  ;;  %v21050_v42 = vld [vmem:[#allocation127_spill] sm:$0xff]  ;;  %v21051_v20 = vld [vmem:[#allocation128_spill] sm:$0xff]  ;;  %v1458_v4 = vadd.f32 %v17269_v28, %v1330_v46  ;;  %v1320_v37 = vmul.f32 %v17293_v39, %v1192_v0 }
 0x25a   : > { %8704 = vmatpush1.bf16.msra.mxu0 %v21042_v16  ;;  %21045 = vst [vmem:[#allocation27_spill] sm:$0xff] %v17927_v41  ;;  %v17929_v51 = vpack.c.bf16 %v1459_v7, %v1453_v56  ;;  %v21047_v47 = vld [vmem:[#allocation125_spill] sm:$0xff]  ;;  %15637 = vrsqrt.f32 %v1119_v31  ;;  %v1208_v14 = vmul.f32 %v17906_v23, %v21053_v6  ;;  %v1442_v7 = vadd.f32 %v17297_v22, %v1314_v13  ;;  %v17944_v34 = vpop.eup %15633  ;;  %v21056_v6 = vld [vmem:[#allocation60_spill] sm:$0xff]  ;;  %v17965_v46 = vld [vmem:[#allocation10 + $0x1c28] sm:$0xff] }
 0x25b   : > { %9043 = vmatpush1.bf16.msra.mxu1 %v21043_v53  ;;  %v21049_v16 = vcombine.high %v21047_v47, %v21048_v33  ;;  %v21052_v53 = vcombine.high %v21050_v42, %v21051_v20  ;;  %v1448_v0 = vadd.f32 %v17297_v22, %v1320_v37  ;;  %v21054_v31 = vcombine.low %v21047_v47, %v21048_v33  ;;  %v21060_v37 = vld [vmem:[#allocation129_spill] sm:$0xff]  ;;  %v21061_v8 = vld [vmem:[#allocation130_spill] sm:$0xff]  ;;  %v21063_v33 = vld [vmem:[#allocation131_spill] sm:$0xff] }
 0x25c   : > { %21046 = vst [vmem:[#allocation42_spill] sm:$0xff] %v17929_v51  ;;  %8656 = vmatprep.mubr.bf16.mxu0 %v17929_v51  ;;  %8995 = vmatprep.mubr.bf16.mxu1 %v17929_v51  ;;  %v21055_v13 = vcombine.low %v21050_v42, %v21051_v20  ;;  %v1337_v56 = vmul.f32 %v17251_v40, %v1209_v12  ;;  %v21057_v51 = vld [vmem:[#allocation59_spill] sm:$0xff]  ;;  %21059 = vst [vmem:[#allocation118_spill] sm:$0xff] %v17965_v46  ;;  %v17982_v52 = vld [vmem:[#allocation10 + $0x1c80] sm:$0xff] }
 0x25d   : > { %8705 = vmatprep.subr.bf16.mxu0 %v21049_v16  ;;  %9044 = vmatprep.subr.bf16.mxu1 %v21052_v53  ;;  %v1452_v16 = vadd.f32 %v17269_v28, %v1324_v61  ;;  %v1215_v53 = vmul.f32 %v17944_v34, %v21056_v6  ;;  %v1214_v61 = vmul.f32 %v17944_v34, %v21057_v51  ;;  %v21083_v46 = vld [vmem:[#allocation79_spill] sm:$0xff]  ;;  %v18030_v41 = vld [vmem:[#allocation10 + $0x1c88] sm:$0xff] }
 0x25e   : > { %8706 = vmatpush1.bf16.msra.mxu0 %v21054_v31  ;;  %v21062_v47 = vcombine.high %v21060_v37, %v21061_v8  ;;  %v21064_v31 = vld [vmem:[#allocation132_spill] sm:$0xff]  ;;  %v1336_v6 = vmul.f32 %v17265_v55, %v1208_v14  ;;  %v21070_v14 = vld [vmem:[#allocation51_spill] sm:$0xff] }
 0x25f   : > { %9045 = vmatpush1.bf16.msra.mxu1 %v21055_v13  ;;  %v21065_v42 = vcombine.high %v21063_v33, %v21064_v31  ;;  %v17973_v20 = vpack.c.bf16 %v1458_v4, %v1452_v16  ;;  %v17977_v13 = vpack.c.bf16 %v1448_v0, %v1442_v7  ;;  %v1343_v51 = vmul.f32 %v17251_v40, %v1215_v53  ;;  %v17996_v0 = vpop.eup %15635  ;;  %v21073_v7 = vld [vmem:[#allocation133_spill] sm:$0xff] }
 0x260   : > { %8707 = vmatprep.subr.bf16.mxu0 %v21062_v47  ;;  %v1342_v43 = vmul.f32 %v17265_v55, %v1214_v61  ;;  %v17984_v47 = vld [vmem:[#allocation10 + $0x1ce0] sm:$0xff]  ;;  %v1204_v16 = vmul.f32 %v17862_v36, %v21070_v14  ;;  %v21071_v53 = vcombine.low %v21060_v37, %v21061_v8  ;;  %v1465_v61 = vadd.f32 %v17261_v2, %v1337_v56  ;;  %v21076_v14 = vld [vmem:[#allocation135_spill] sm:$0xff]  ;;  %v21079_v8 = vld [vmem:[#allocation66_spill] sm:$0xff] }
 0x261   : > { %9046 = vmatprep.subr.bf16.mxu1 %v21065_v42  ;;  %21066 = vst [vmem:[#allocation119_spill] sm:$0xff] %v17973_v20  ;;  %21067 = vst [vmem:[#allocation120_spill] sm:$0xff] %v17977_v13  ;;  %v1198_v42 = vmul.f32 %v17819_v48, %v21069_v18  ;;  %8657 = vmatmul.mubr.bf16.gmra.mrb[20].mxu0 %v17973_v20  ;;  %v21072_v18 = vcombine.low %v21063_v33, %v21064_v31  ;;  %v21077_v36 = vld [vmem:[#allocation137_spill] sm:$0xff]  ;;  %v21089_v33 = vld [vmem:[#allocation70_spill] sm:$0xff] }
 0x262   : > { %21068 = vst [vmem:[#allocation41_spill] sm:$0xff] %v17984_v47  ;;  %8996 = vmatmul.mubr.bf16.gmra.mrb[20].mxu1 %v17973_v20  ;;  %8708 = vmatpush1.bf16.msra.mxu0 %v21071_v53  ;;  %v1471_v4 = vadd.f32 %v17261_v2, %v1343_v51  ;;  %v1470_v12 = vadd.f32 %v17269_v28, %v1342_v43  ;;  %v21074_v20 = vld [vmem:[#allocation134_spill] sm:$0xff]  ;;  %v21081_v51 = vld [vmem:[#allocation85_spill] sm:$0xff] }
 0x263   : > { %9047 = vmatpush1.bf16.msra.mxu1 %v21072_v18  ;;  %v21075_v13 = vcombine.high %v21073_v7, %v21074_v20  ;;  %v21078_v48 = vcombine.high %v21076_v14, %v21077_v36  ;;  %v1221_v37 = vmul.f32 %v17996_v0, %v21079_v8  ;;  %v1326_v56 = vmul.f32 %v17293_v39, %v1198_v42  ;;  %v21082_v18 = vld [vmem:[#allocation65_spill] sm:$0xff]  ;;  %v18032_v42 = vld [vmem:[#allocation10 + $0x1ce8] sm:$0xff] }
 0x264   : > { %v18018_v31 = vpack.c.bf16 %v1471_v4, %v1465_v61  ;;  %v1464_v43 = vadd.f32 %v17269_v28, %v1336_v6  ;;  %v1145_v53 = vmul.f32 %v17518_v49, %v21081_v51  ;;  %v1139_v8 = vmul.f32 %v21084_v11, %v21083_v46  ;;  %v18035_v4 = vpop.eup %15637  ;;  %v21086_v46 = vld [vmem:[#allocation57_spill] sm:$0xff] }
 0x265   : > { %8709 = vmatprep.subr.bf16.mxu0 %v21075_v13  ;;  %9048 = vmatprep.subr.bf16.mxu1 %v21078_v48  ;;  %v1332_v13 = vmul.f32 %v17293_v39, %v1204_v16  ;;  %v1220_v48 = vmul.f32 %v17996_v0, %v21082_v18  ;;  %v1454_v6 = vadd.f32 %v17297_v22, %v1326_v56 }
 0x266   : > { %21080 = vst [vmem:[#allocation48_spill] sm:$0xff] %v18018_v31  ;;  %8666 = vmatprep.mubr.bf16.mxu0 %v18018_v31  ;;  %9005 = vmatprep.mubr.bf16.mxu1 %v18018_v31  ;;  %v18039_v16 = vpack.c.bf16 %v1470_v12, %v1464_v43  ;;  %v1210_v51 = vmul.f32 %v17906_v23, %v21086_v46  ;;  %v21090_v12 = vld [vmem:[#allocation69_spill] sm:$0xff]  ;;  %v21092_v46 = vld [vmem:[#allocation138_spill] sm:$0xff] }
 0x267   : > { %v1460_v61 = vadd.f32 %v17297_v22, %v1332_v13  ;;  %v21087_v18 = vcombine.low %v21073_v7, %v21074_v20  ;;  %v21088_v56 = vcombine.low %v21076_v14, %v21077_v36  ;;  %v1227_v47 = vmul.f32 %v18035_v4, %v21089_v33  ;;  %v21094_v7 = vld [vmem:[#allocation102_spill] sm:$0xff]  ;;  %v18076_v36 = vld [vmem:[#allocation10 + $0x1da0] sm:$0xff] }
 0x268   : > { %21085 = vst [vmem:[#allocation47_spill] sm:$0xff] %v18039_v16  ;;  %v1349_v31 = vmul.f32 %v17251_v40, %v1221_v37  ;;  %v1226_v43 = vmul.f32 %v18035_v4, %v21090_v12  ;;  %v21091_v13 = vcombine.high %v17439_v10, %v17441_v35  ;;  %v21093_v20 = vcombine.high %v17449_v9, %v21092_v46 }
 0x269   : > { %8710 = vmatpush1.bf16.msra.mxu0 %v21087_v18  ;;  %9049 = vmatpush1.bf16.msra.mxu1 %v21088_v56  ;;  %v1273_v18 = vmul.f32 %v21094_v7, %v1145_v53  ;;  %v18064_v14 = vpack.c.bf16 %v1460_v61, %v1454_v6  ;;  %v1355_v37 = vmul.f32 %v17251_v40, %v1227_v47  ;;  %v21097_v6 = vld [vmem:[#allocation63_spill] sm:$0xff] }
 0x26a   : > { %8711 = vmatprep.subr.bf16.mxu0 %v21091_v13  ;;  %9050 = vmatprep.subr.bf16.mxu1 %v21093_v20  ;;  %v1348_v33 = vmul.f32 %v17265_v55, %v1220_v48  ;;  %v1354_v56 = vmul.f32 %v17265_v55, %v1226_v43  ;;  %v1267_v12 = vmul.f32 %v21094_v7, %v1139_v8  ;;  %v21096_v13 = vld [vmem:[#allocation76_spill] sm:$0xff]  ;;  %v18074_v20 = vld [vmem:[#allocation10 + $0x1d40] sm:$0xff]  ;;  %v21100_v43 = vld [vmem:[#allocation139_spill] sm:$0xff] }
 0x26b   : > { %21095 = vst [vmem:[#allocation121_spill] sm:$0xff] %v18064_v14  ;;  %8667 = vmatmul.mubr.bf16.gmra.mrb[24].mxu0 %v18039_v16  ;;  %9006 = vmatmul.mubr.bf16.gmra.mrb[24].mxu1 %v18039_v16  ;;  %v1151_v53 = vmul.f32 %v17504_v25, %v21096_v13  ;;  %v1216_v61 = vmul.f32 %v17944_v34, %v21097_v6  ;;  %v21101_v13 = vld [vmem:[#allocation140_spill] sm:$0xff] }
 0x26c   : > { %v1338_v16 = vmul.f32 %v17293_v39, %v1210_v51  ;;  %v21098_v40 = vcombine.low %v17439_v10, %v17441_v35  ;;  %v21099_v55 = vcombine.low %v17449_v9, %v21092_v46  ;;  %v1477_v47 = vadd.f32 %v17261_v2, %v1349_v31  ;;  %v21103_v51 = vld [vmem:[#allocation142_spill] sm:$0xff] }
 0x26d   : > { %v1483_v48 = vadd.f32 %v17261_v2, %v1355_v37  ;;  %v1482_v8 = vadd.f32 %v17269_v28, %v1354_v56  ;;  %v21102_v14 = vcombine.high %v21100_v43, %v21101_v13  ;;  %v21104_v6 = vcombine.high %v17470_v19, %v21103_v51  ;;  %v21106_v46 = vld [vmem:[#allocation106_spill] sm:$0xff] }
 0x26e   : > { %8712 = vmatpush1.bf16.msra.mxu0 %v21098_v40  ;;  %9051 = vmatpush1.bf16.msra.mxu1 %v21099_v55  ;;  %v1344_v10 = vmul.f32 %v17293_v39, %v1216_v61  ;;  %v1466_v9 = vadd.f32 %v17297_v22, %v1338_v16  ;;  %v1476_v2 = vadd.f32 %v17269_v28, %v1348_v33  ;;  %v21107_v40 = vld [vmem:[#allocation82_spill] sm:$0xff] }
 0x26f   : > { %8713 = vmatprep.subr.bf16.mxu0 %v21102_v14  ;;  %9052 = vmatprep.subr.bf16.mxu1 %v21104_v6  ;;  %v18100_v31 = vpack.c.bf16 %v1483_v48, %v1477_v47  ;;  %v1401_v37 = vadd.f32 %v21106_v46, %v1273_v18  ;;  %v1395_v56 = vadd.f32 %v21106_v46, %v1267_v12  ;;  %v21109_v18 = vld [vmem:[#allocation67_spill] sm:$0xff]  ;;  %v18125_v48 = vld [vmem:[#allocation10 + $0x1d48] sm:$0xff] }
 0x270   : > { %v1157_v55 = vmul.f32 %v17544_v63, %v21107_v40  ;;  %v1472_v61 = vadd.f32 %v17297_v22, %v1344_v10  ;;  %v18114_v28 = vpack.c.bf16 %v1482_v8, %v1476_v2  ;;  %v1279_v16 = vmul.f32 %v21094_v7, %v1151_v53  ;;  %v18127_v10 = vld [vmem:[#allocation10 + $0x1da8] sm:$0xff]  ;;  %v21113_v8 = vld [vmem:[#allocation72_spill] sm:$0xff]  ;;  %v21114_v2 = vld [vmem:[#allocation81_spill] sm:$0xff] }
 0x271   : > { %21105 = vst [vmem:[#allocation122_spill] sm:$0xff] %v18100_v31  ;;  %8676 = vmatprep.mubr.bf16.mxu0 %v18100_v31  ;;  %9015 = vmatprep.mubr.bf16.mxu1 %v18100_v31  ;;  %v1222_v33 = vmul.f32 %v17996_v0, %v21109_v18  ;;  %v21110_v12 = vcombine.low %v21100_v43, %v21101_v13  ;;  %v21115_v14 = vld [vmem:[#allocation143_spill] sm:$0xff]  ;;  %v21117_v13 = vld [vmem:[#allocation144_spill] sm:$0xff] }
 0x272   : > { %21108 = vst [vmem:[#allocation123_spill] sm:$0xff] %v18114_v28  ;;  %v21111_v47 = vcombine.low %v17470_v19, %v21103_v51  ;;  %v18129_v40 = vpack.c.bf16 %v1472_v61, %v1466_v9  ;;  %v1228_v53 = vmul.f32 %v18035_v4, %v21113_v8  ;;  %v1141_v18 = vmul.f32 %v21084_v11, %v21114_v2  ;;  %v21121_v9 = vld [vmem:[#allocation87_spill] sm:$0xff]  ;;  %v18149_v2 = vld [vmem:[#allocation10 + $0x1e00] sm:$0xff]  ;;  %v21128_v31 = vld [vmem:[#allocation148_spill] sm:$0xff] }
 0x273   : > { %8714 = vmatpush1.bf16.msra.mxu0 %v21110_v12  ;;  %v21116_v43 = vcombine.high %v17478_v3, %v21115_v14  ;;  %v21118_v12 = vld [vmem:[#allocation145_spill] sm:$0xff]  ;;  %v18141_v51 = vpack.c.bf16 %v1401_v37, %v1395_v56  ;;  %v1147_v61 = vmul.f32 %v17518_v49, %v21121_v9  ;;  %9016 = vmatmul.mubr.bf16.gmra.mrb[28].mxu1 %v18114_v28  ;;  %v21127_v56 = vld [vmem:[#allocation147_spill] sm:$0xff] }
 0x274   : > { %9053 = vmatpush1.bf16.msra.mxu1 %v21111_v47  ;;  %21112 = vst [vmem:[#allocation124_spill] sm:$0xff] %v18129_v40  ;;  %v21119_v19 = vcombine.high %v21117_v13, %v21118_v12  ;;  %v1350_v47 = vmul.f32 %v17293_v39, %v1222_v33  ;;  %8677 = vmatmul.mubr.bf16.gmra.mrb[28].mxu0 %v18114_v28 }
 0x275   : > { %8715 = vmatprep.subr.bf16.mxu0 %v21116_v43  ;;  %21120 = vst [vmem:[#allocation33_spill] sm:$0xff] %v18141_v51  ;;  %v1285_v8 = vmul.f32 %v21094_v7, %v1157_v55  ;;  %v18151_v43 = vld [vmem:[#allocation10 + $0x1e60] sm:$0xff]  ;;  %v1356_v6 = vmul.f32 %v17293_v39, %v1228_v53  ;;  %8719 = vmatprep.mubr.bf16.mxu0 %v18141_v51  ;;  %v21125_v53 = vld [vmem:[#allocation92_spill] sm:$0xff] }
 0x276   : > { %9054 = vmatprep.subr.bf16.mxu1 %v21119_v19  ;;  %v21122_v19 = vld [vmem:[#allocation146_spill] sm:$0xff]  ;;  %9058 = vmatprep.mubr.bf16.mxu1 %v18141_v51  ;;  %v1478_v33 = vadd.f32 %v17297_v22, %v1350_v47  ;;  %v21123_v55 = vcombine.low %v17478_v3, %v21115_v14  ;;  %v21124_v39 = vcombine.low %v21117_v13, %v21118_v12  ;;  %v21126_v51 = vld [vmem:[#allocation149_spill] sm:$0xff] }
 0x277   : > { %v1269_v37 = vmul.f32 %v21122_v19, %v1141_v18  ;;  %v1275_v9 = vmul.f32 %v21122_v19, %v1147_v61  ;;  %v1169_v18 = vmul.f32 %v17585_v21, %v21125_v53  ;;  %v1484_v35 = vadd.f32 %v17297_v22, %v1356_v6  ;;  %v21134_v14 = vld [vmem:[#allocation86_spill] sm:$0xff] }
 0x278   : > { %8716 = vmatpush1.bf16.msra.mxu0 %v21123_v55  ;;  %9055 = vmatpush1.bf16.msra.mxu1 %v21124_v39  ;;  %v21129_v47 = vcombine.high %v21127_v56, %v21128_v31  ;;  %v21130_v61 = vcombine.high %v17555_v60, %v17557_v50  ;;  %v1407_v22 = vadd.f32 %v21106_v46, %v1279_v16  ;;  %v18188_v55 = vld [vmem:[#allocation10 + $0x1e08] sm:$0xff] }
 0x279   : > { %v1397_v28 = vadd.f32 %v21126_v51, %v1269_v37  ;;  %v1403_v13 = vadd.f32 %v21126_v51, %v1275_v9  ;;  %v1413_v6 = vadd.f32 %v21106_v46, %v1285_v8  ;;  %v18186_v37 = vpack.c.bf16 %v1484_v35, %v1478_v33  ;;  %v18190_v39 = vld [vmem:[#allocation10 + $0x1e68] sm:$0xff]  ;;  %v21138_v33 = vld [vmem:[#allocation88_spill] sm:$0xff] }
 0x27a   : > { %8717 = vmatprep.subr.bf16.mxu0 %v21129_v47  ;;  %9056 = vmatprep.subr.bf16.mxu1 %v21130_v61  ;;  %v21133_v47 = vld [vmem:[#allocation80_spill] sm:$0xff]  ;;  %v1146_v9 = vmul.f32 %v17518_v49, %v21134_v14  ;;  %v21135_v16 = vld [vmem:[#allocation78_spill] sm:$0xff]  ;;  %v21136_v12 = vcombine.low %v21127_v56, %v21128_v31  ;;  %v21137_v35 = vcombine.low %v17555_v60, %v17557_v50 }
 0x27b   : > { %21131 = vst [vmem:[#allocation39_spill] sm:$0xff] %v18186_v37  ;;  %v18192_v53 = vpack.c.bf16 %v1403_v13, %v1397_v28  ;;  %v1140_v61 = vmul.f32 %v21084_v11, %v21133_v47  ;;  %v1153_v8 = vmul.f32 %v17504_v25, %v21135_v16  ;;  %v1163_v28 = vmul.f32 %v17551_v5, %v21138_v33  ;;  %v21139_v11 = vld [vmem:[#allocation84_spill] sm:$0xff] }
 0x27c   : > { %8718 = vmatpush1.bf16.msra.mxu0 %v21136_v12  ;;  %9057 = vmatpush1.bf16.msra.mxu1 %v21137_v35  ;;  %v1297_v13 = vmul.f32 %v21094_v7, %v1169_v18  ;;  %v1159_v47 = vmul.f32 %v17544_v63, %v21139_v11  ;;  %v21140_v49 = vcombine.high %v17627_v27, %v17629_v1  ;;  %v21143_v18 = vld [vmem:[#allocation25_spill] sm:$0xff]  ;;  %v21182_v16 = vld [vmem:[#allocation36_spill] sm:$0xff] }
 0x27d   : > { %21132 = vst [vmem:[#allocation54_spill] sm:$0xff] %v18192_v53  ;;  %v21141_v31 = vcombine.high %v17643_v45, %v17645_v57  ;;  %v1268_v56 = vmul.f32 %v17622_v59, %v1140_v61  ;;  %v1274_v60 = vmul.f32 %v17622_v59, %v1146_v9  ;;  %v1281_v50 = vmul.f32 %v21122_v19, %v1153_v8 }
 0x27e   : > { %8800 = vmatprep.subr.bf16.mxu0 %v21140_v49  ;;  %v18220_v14 = vpack.c.bf16 %v1413_v6, %v1407_v22  ;;  %v1181_v12 = vmul.f32 %v17678_v30, %v21143_v18  ;;  %v1287_v35 = vmul.f32 %v21122_v19, %v1159_v47  ;;  %v21144_v22 = vcombine.low %v17627_v27, %v17629_v1  ;;  %v21146_v49 = vld [vmem:[#allocation22_spill] sm:$0xff]  ;;  %v21148_v27 = vld [vmem:[#allocation77_spill] sm:$0xff] }
 0x27f   : > { %9139 = vmatprep.subr.bf16.mxu1 %v21141_v31  ;;  %8720 = vmatmul.mubr.bf16.vlgmr.msra.gmra.mrb[0].mxu0 %v17613_v17  ;;  %v1396_v61 = vadd.f32 %v17665_v54, %v1268_v56  ;;  %v1402_v9 = vadd.f32 %v17665_v54, %v1274_v60  ;;  %v1409_v8 = vadd.f32 %v21126_v51, %v1281_v50  ;;  %v21152_v50 = vld [vmem:[#allocation83_spill] sm:$0xff] }
 0x280   : > { %21142 = vst [vmem:[#allocation125_spill] sm:$0xff] %v18220_v14  ;;  %9059 = vmatmul.mubr.bf16.vlgmr.msra.gmra.mrb[0].mxu1 %v17613_v17  ;;  %8801 = vmatpush1.bf16.msra.mxu0 %v21144_v22  ;;  %v21145_v6 = vcombine.low %v17643_v45, %v17645_v57  ;;  %v1291_v33 = vmul.f32 %v21094_v7, %v1163_v28  ;;  %v18255_v28 = vld [vmem:[#allocation10 + $0x1ec0] sm:$0xff] }
 0x281   : > { %v1425_v11 = vadd.f32 %v21106_v46, %v1297_v13  ;;  %v1415_v47 = vadd.f32 %v21126_v51, %v1287_v35  ;;  %8729 = vmatprep.mubr.bf16.mxu0 %v18220_v14  ;;  %9068 = vmatprep.mubr.bf16.mxu1 %v18220_v14  ;;  %v1175_v31 = vmul.f32 %v17632_v24, %v21146_v49  ;;  %v18257_v13 = vld [vmem:[#allocation10 + $0x1f20] sm:$0xff]  ;;  %v21153_v35 = vld [vmem:[#allocation90_spill] sm:$0xff] }
 0x282   : > { %9140 = vmatpush1.bf16.msra.mxu1 %v21145_v6  ;;  %v18245_v56 = vpack.c.bf16 %v1402_v9, %v1396_v61  ;;  %v1152_v1 = vmul.f32 %v17504_v25, %v21148_v27  ;;  %v21149_v45 = vcombine.high %v17673_v62, %v17675_v38  ;;  %v21150_v57 = vcombine.high %v17714_v58, %v17716_v26  ;;  %v21154_v6 = vld [vmem:[#allocation94_spill] sm:$0xff] }
 0x283   : > { %v18259_v60 = vpack.c.bf16 %v1415_v47, %v1409_v8  ;;  %v1158_v18 = vmul.f32 %v17544_v63, %v21152_v50  ;;  %v1165_v25 = vmul.f32 %v17551_v5, %v21153_v35  ;;  %v1309_v61 = vmul.f32 %v21094_v7, %v1181_v12  ;;  %v21215_v14 = vld [vmem:[#allocation114_spill] sm:$0xff] }
 0x284   : > { %21147 = vst [vmem:[#allocation126_spill] sm:$0xff] %v18245_v56  ;;  %8802 = vmatprep.subr.bf16.mxu0 %v21149_v45  ;;  %9141 = vmatprep.subr.bf16.mxu1 %v21150_v57  ;;  %v1280_v22 = vmul.f32 %v17622_v59, %v1152_v1  ;;  %v1171_v49 = vmul.f32 %v17585_v21, %v21154_v6  ;;  %v21158_v45 = vld [vmem:[#allocation91_spill] sm:$0xff]  ;;  %v21159_v57 = vld [vmem:[#allocation105_spill] sm:$0xff] }
 0x285   : > { %21151 = vst [vmem:[#allocation127_spill] sm:$0xff] %v18259_v60  ;;  %v21155_v8 = vcombine.low %v17673_v62, %v17675_v38  ;;  %v21156_v63 = vcombine.low %v17714_v58, %v17716_v26  ;;  %v1419_v47 = vadd.f32 %v21106_v46, %v1291_v33  ;;  %v1286_v12 = vmul.f32 %v17622_v59, %v1158_v18 }
 0x286   : > { %v1293_v27 = vmul.f32 %v21122_v19, %v1165_v25  ;;  %v21157_v1 = vcombine.high %v17740_v32, %v17742_v29  ;;  %v21160_v50 = vcombine.high %v21158_v45, %v21159_v57  ;;  %v1408_v26 = vadd.f32 %v17665_v54, %v1280_v22  ;;  %v21162_v25 = vld [vmem:[#allocation101_spill] sm:$0xff] }
 0x287   : > { %8803 = vmatpush1.bf16.msra.mxu0 %v21155_v8  ;;  %9142 = vmatpush1.bf16.msra.mxu1 %v21156_v63  ;;  %v1299_v58 = vmul.f32 %v21122_v19, %v1171_v49  ;;  %v18290_v38 = vpack.c.bf16 %v1425_v11, %v1419_v47  ;;  %v1303_v33 = vmul.f32 %v21094_v7, %v1175_v31  ;;  %v21163_v8 = vld [vmem:[#allocation37_spill] sm:$0xff]  ;;  %v18307_v49 = vld [vmem:[#allocation10 + $0x1ec8] sm:$0xff] }
 0x288   : > { %8804 = vmatprep.subr.bf16.mxu0 %v21157_v1  ;;  %9143 = vmatprep.subr.bf16.mxu1 %v21160_v50  ;;  %v1414_v18 = vadd.f32 %v17665_v54, %v1286_v12  ;;  %v1421_v35 = vadd.f32 %v21126_v51, %v1293_v27  ;;  %v1437_v6 = vadd.f32 %v21106_v46, %v1309_v61  ;;  %v18309_v47 = vld [vmem:[#allocation10 + $0x1f28] sm:$0xff]  ;;  %v21167_v61 = vld [vmem:[#allocation89_spill] sm:$0xff] }
 0x289   : > { %21161 = vst [vmem:[#allocation128_spill] sm:$0xff] %v18290_v38  ;;  %8730 = vmatmul.mubr.bf16.gmra.mrb[4].mxu0 %v21162_v25  ;;  %9069 = vmatmul.mubr.bf16.gmra.mrb[4].mxu1 %v21162_v25  ;;  %v1193_v63 = vmul.f32 %v17766_v15, %v21163_v8  ;;  %v1427_v22 = vadd.f32 %v21126_v51, %v1299_v58  ;;  %v21168_v1 = vld [vmem:[#allocation93_spill] sm:$0xff] }
 0x28a   : > { %v21164_v11 = vcombine.low %v17740_v32, %v17742_v29  ;;  %v21165_v31 = vcombine.low %v21158_v45, %v21159_v57  ;;  %v18311_v12 = vpack.c.bf16 %v1414_v18, %v1408_v26  ;;  %v1164_v27 = vmul.f32 %v17551_v5, %v21167_v61  ;;  %8739 = vmatprep.mubr.bf16.mxu0 %v18290_v38  ;;  %v21170_v29 = vld [vmem:[#allocation24_spill] sm:$0xff]  ;;  %v21173_v18 = vld [vmem:[#allocation109_spill] sm:$0xff]  ;;  %v21175_v5 = vld [vmem:[#allocation110_spill] sm:$0xff] }
 0x28b   : > { %v1170_v50 = vmul.f32 %v17585_v21, %v21168_v1  ;;  %9078 = vmatprep.mubr.bf16.mxu1 %v18290_v38  ;;  %v18319_v32 = vpack.c.bf16 %v1427_v22, %v1421_v35  ;;  %v1177_v45 = vmul.f32 %v17632_v24, %v21170_v29  ;;  %v21171_v57 = vld [vmem:[#allocation28_spill] sm:$0xff]  ;;  %v21178_v21 = vld [vmem:[#allocation31_spill] sm:$0xff]  ;;  %v21193_v38 = vld [vmem:[#allocation26_spill] sm:$0xff] }
 0x28c   : > { %8805 = vmatpush1.bf16.msra.mxu0 %v21164_v11  ;;  %9144 = vmatpush1.bf16.msra.mxu1 %v21165_v31  ;;  %21166 = vst [vmem:[#allocation53_spill] sm:$0xff] %v18311_v12  ;;  %v1183_v58 = vmul.f32 %v17678_v30, %v21171_v57  ;;  %v21172_v26 = vld [vmem:[#allocation108_spill] sm:$0xff]  ;;  %v21176_v11 = vld [vmem:[#allocation111_spill] sm:$0xff]  ;;  %v1292_v35 = vmul.f32 %v17622_v59, %v1164_v27 }
 0x28d   : > { %21169 = vst [vmem:[#allocation60_spill] sm:$0xff] %v18319_v32  ;;  %v21174_v8 = vcombine.high %v21172_v26, %v21173_v18  ;;  %v21177_v31 = vcombine.high %v21175_v5, %v21176_v11  ;;  %v21179_v61 = vld [vmem:[#allocation104_spill] sm:$0xff]  ;;  %v1298_v22 = vmul.f32 %v17622_v59, %v1170_v50  ;;  %v1305_v62 = vmul.f32 %v21122_v19, %v1177_v45  ;;  %v21183_v57 = vld [vmem:[#allocation35_spill] sm:$0xff] }
 0x28e   : > { %v1187_v1 = vmul.f32 %v21179_v61, %v21178_v21  ;;  %v21181_v21 = vcombine.low %v21175_v5, %v21176_v11  ;;  %v1431_v27 = vadd.f32 %v21106_v46, %v1303_v33  ;;  %v1420_v50 = vadd.f32 %v17665_v54, %v1292_v35  ;;  %v21185_v45 = vld [vmem:[#allocation115_spill] sm:$0xff]  ;;  %v18359_v5 = vld [vmem:[#allocation10 + $0x1fe0] sm:$0xff] }
 0x28f   : > { %8806 = vmatprep.subr.bf16.mxu0 %v21174_v8  ;;  %9145 = vmatprep.subr.bf16.mxu1 %v21177_v31  ;;  %v1311_v8 = vmul.f32 %v21122_v19, %v1183_v58  ;;  %v21180_v31 = vcombine.low %v21172_v26, %v21173_v18  ;;  %v1426_v29 = vadd.f32 %v17665_v54, %v1298_v22  ;;  %v21186_v58 = vld [vmem:[#allocation116_spill] sm:$0xff]  ;;  %v18357_v18 = vld [vmem:[#allocation10 + $0x1f80] sm:$0xff] }
 0x290   : > { %9146 = vmatpush1.bf16.msra.mxu1 %v21181_v21  ;;  %v21184_v9 = vcombine.high %v21182_v16, %v21183_v57  ;;  %v21187_v3 = vcombine.high %v21185_v45, %v21186_v58  ;;  %v1321_v26 = vmul.f32 %v21094_v7, %v1193_v63  ;;  %v1433_v33 = vadd.f32 %v21126_v51, %v1305_v62  ;;  %v21192_v21 = vld [vmem:[#allocation23_spill] sm:$0xff] }
 0x291   : > { %8807 = vmatpush1.bf16.msra.mxu0 %v21180_v31  ;;  %v1439_v11 = vadd.f32 %v21126_v51, %v1311_v8  ;;  %v18363_v35 = vpack.c.bf16 %v1437_v6, %v1431_v27  ;;  %v1315_v22 = vmul.f32 %v21094_v7, %v1187_v1  ;;  %v18368_v31 = vpack.c.bf16 %v1426_v29, %v1420_v50  ;;  %v21196_v27 = vld [vmem:[#allocation34_spill] sm:$0xff] }
 0x292   : > { %8808 = vmatprep.subr.bf16.mxu0 %v21184_v9  ;;  %9147 = vmatprep.subr.bf16.mxu1 %v21187_v3  ;;  %v21190_v3 = vld [vmem:[#allocation107_spill] sm:$0xff]  ;;  %v1176_v62 = vmul.f32 %v17632_v24, %v21192_v21  ;;  %v1182_v6 = vmul.f32 %v17678_v30, %v21193_v38  ;;  %v21194_v1 = vcombine.low %v21182_v16, %v21183_v57  ;;  %v21205_v9 = vld [vmem:[#allocation49_spill] sm:$0xff] }
 0x293   : > { %21188 = vst [vmem:[#allocation59_spill] sm:$0xff] %v18363_v35  ;;  %21189 = vst [vmem:[#allocation129_spill] sm:$0xff] %v18368_v31  ;;  %8740 = vmatmul.mubr.bf16.gmra.mrb[8].mxu0 %v21190_v3  ;;  %9079 = vmatmul.mubr.bf16.gmra.mrb[8].mxu1 %v21190_v3  ;;  %v18372_v63 = vpack.c.bf16 %v1439_v11, %v1433_v33  ;;  %v21195_v29 = vcombine.low %v21185_v45, %v21186_v58  ;;  %v21197_v33 = vld [vmem:[#allocation40_spill] sm:$0xff]  ;;  %v21198_v57 = vld [vmem:[#allocation27_spill] sm:$0xff] }
 0x294   : > { %v1189_v50 = vmul.f32 %v21179_v61, %v21196_v27  ;;  %v1195_v24 = vmul.f32 %v17766_v15, %v21197_v33  ;;  %8749 = vmatprep.mubr.bf16.mxu0 %v18363_v35  ;;  %9088 = vmatprep.mubr.bf16.mxu1 %v18363_v35  ;;  %v1449_v30 = vadd.f32 %v21106_v46, %v1321_v26  ;;  %v21200_v58 = vld [vmem:[#allocation117_spill] sm:$0xff]  ;;  %v21201_v11 = vld [vmem:[#allocation118_spill] sm:$0xff]  ;;  %v21203_v33 = vld [vmem:[#allocation43_spill] sm:$0xff] }
 0x295   : > { %21191 = vst [vmem:[#allocation130_spill] sm:$0xff] %v18372_v63  ;;  %8809 = vmatpush1.bf16.msra.mxu0 %v21194_v1  ;;  %9148 = vmatpush1.bf16.msra.mxu1 %v21195_v29  ;;  %v1304_v16 = vmul.f32 %v17622_v59, %v1176_v62  ;;  %v1310_v38 = vmul.f32 %v17622_v59, %v1182_v6  ;;  %v18402_v29 = vld [vmem:[#allocation10 + $0x1f88] sm:$0xff]  ;;  %v21204_v6 = vld [vmem:[#allocation29_spill] sm:$0xff] }
 0x296   : > { %v21199_v45 = vcombine.high %v17925_v44, %v21198_v57  ;;  %v21202_v21 = vcombine.high %v21200_v58, %v21201_v11  ;;  %v1443_v1 = vadd.f32 %v21106_v46, %v1315_v22  ;;  %v18404_v27 = vld [vmem:[#allocation10 + $0x1fe8] sm:$0xff]  ;;  %v1317_v26 = vmul.f32 %v21122_v19, %v1189_v50  ;;  %v21206_v35 = vld [vmem:[#allocation21_spill] sm:$0xff] }
 0x297   : > { %v1323_v62 = vmul.f32 %v21122_v19, %v1195_v24  ;;  %v1199_v8 = vmul.f32 %v21204_v6, %v21203_v33  ;;  %v1432_v3 = vadd.f32 %v17665_v54, %v1304_v16  ;;  %v21207_v22 = vcombine.low %v17925_v44, %v21198_v57 }
 0x298   : > { %8810 = vmatprep.subr.bf16.mxu0 %v21199_v45  ;;  %9149 = vmatprep.subr.bf16.mxu1 %v21202_v21  ;;  %v1205_v45 = vmul.f32 %v21206_v35, %v21205_v9  ;;  %v1438_v21 = vadd.f32 %v17665_v54, %v1310_v38  ;;  %v21208_v25 = vcombine.low %v21200_v58, %v21201_v11  ;;  %v21209_v9 = vld [vmem:[#allocation41_spill] sm:$0xff]  ;;  %v21212_v11 = vld [vmem:[#allocation32_spill] sm:$0xff] }
 0x299   : > { %8811 = vmatpush1.bf16.msra.mxu0 %v21207_v22  ;;  %v1445_v24 = vadd.f32 %v21126_v51, %v1317_v26  ;;  %v1451_v33 = vadd.f32 %v21126_v51, %v1323_v62  ;;  %v21210_v16 = vcombine.high %v17982_v52, %v21209_v9  ;;  %v21211_v38 = vcombine.high %v18030_v41, %v18032_v42  ;;  %v21213_v62 = vld [vmem:[#allocation38_spill] sm:$0xff] }
 0x29a   : > { %9150 = vmatpush1.bf16.msra.mxu1 %v21208_v25  ;;  %v18430_v44 = vpack.c.bf16 %v1449_v30, %v1443_v1  ;;  %v14203_v25 = vcombine.low %v18402_v29, %v18404_v27  ;;  %v18434_v57 = vpack.c.bf16 %v1438_v21, %v1432_v3  ;;  %v1188_v26 = vmul.f32 %v21179_v61, %v21212_v11  ;;  %v21216_v1 = vld [vmem:[#allocation52_spill] sm:$0xff]  ;;  %v21220_v11 = vld [vmem:[#allocation61_spill] sm:$0xff] }
 0x29b   : > { %8812 = vmatprep.subr.bf16.mxu0 %v21210_v16  ;;  %9151 = vmatprep.subr.bf16.mxu1 %v21211_v38  ;;  %v18436_v58 = vpack.c.bf16 %v1451_v33, %v1445_v24  ;;  %v1194_v22 = vmul.f32 %v17766_v15, %v21213_v62  ;;  %v21214_v16 = vld [vmem:[#allocation46_spill] sm:$0xff]  ;;  %v1327_v30 = vmul.f32 %v21094_v7, %v1199_v8  ;;  %v18456_v24 = vld [vmem:[#allocation10 + $0x2040] sm:$0xff] }
 0x29c   : > { %v1201_v50 = vmul.f32 %v21204_v6, %v21214_v16  ;;  %8750 = vmatmul.mubr.bf16.gmra.mrb[12].mxu0 %v21215_v14  ;;  %9089 = vmatmul.mubr.bf16.gmra.mrb[12].mxu1 %v21215_v14  ;;  %v1333_v3 = vmul.f32 %v21094_v7, %v1205_v45  ;;  %v1207_v21 = vmul.f32 %v21206_v35, %v21216_v1  ;;  %v18458_v33 = vld [vmem:[#allocation10 + $0x20a0] sm:$0xff] }
 0x29d   : > { %v21217_v61 = vcombine.low %v17982_v52, %v21209_v9  ;;  %v21218_v15 = vcombine.low %v18030_v41, %v18032_v42  ;;  %v1316_v38 = vmul.f32 %v17622_v59, %v1188_v26  ;;  %v1322_v8 = vmul.f32 %v17622_v59, %v1194_v22  ;;  %8759 = vmatprep.mubr.bf16.mxu0 %v18430_v44  ;;  %v21219_v52 = vld [vmem:[#allocation55_spill] sm:$0xff] }
 0x29e   : > { %v1329_v45 = vmul.f32 %v21122_v19, %v1201_v50  ;;  %9098 = vmatprep.mubr.bf16.mxu1 %v18430_v44  ;;  %v1211_v9 = vmul.f32 %v17906_v23, %v21219_v52  ;;  %v1217_v41 = vmul.f32 %v17944_v34, %v21220_v11  ;;  %v1335_v42 = vmul.f32 %v21122_v19, %v1207_v21 }
 0x29f   : > { %8813 = vmatpush1.bf16.msra.mxu0 %v21217_v61  ;;  %9152 = vmatpush1.bf16.msra.mxu1 %v21218_v15  ;;  %v21221_v62 = vcombine.high %v18074_v20, %v18076_v36  ;;  %v21222_v26 = vcombine.high %v18125_v48, %v18127_v10  ;;  %v1444_v50 = vadd.f32 %v17665_v54, %v1316_v38 }
 0x2a0   : > { %v1450_v22 = vadd.f32 %v17665_v54, %v1322_v8  ;;  %v1457_v16 = vadd.f32 %v21126_v51, %v1329_v45  ;;  %v1461_v1 = vadd.f32 %v21106_v46, %v1333_v3  ;;  %v14204_v61 = vcombine.high %v18402_v29, %v18404_v27  ;;  %v21225_v3 = vld [vmem:[#allocation44_spill] sm:$0xff] }
 0x2a1   : > { %8814 = vmatprep.subr.bf16.mxu0 %v21221_v62  ;;  %9153 = vmatprep.subr.bf16.mxu1 %v21222_v26  ;;  %v14225_v21 = vcombine.low %v18456_v24, %v18458_v33  ;;  %v1463_v15 = vadd.f32 %v21126_v51, %v1335_v42  ;;  %v21223_v52 = vcombine.low %v18074_v20, %v18076_v36  ;;  %v21228_v20 = vld [vmem:[#allocation50_spill] sm:$0xff]  ;;  %v21248_v29 = vld [vmem:[#allocation68_spill] sm:$0xff] }
 0x2a2   : > { %v21224_v38 = vcombine.low %v18125_v48, %v18127_v10  ;;  %v1455_v8 = vadd.f32 %v21106_v46, %v1327_v30  ;;  %v18492_v45 = vpack.c.bf16 %v1450_v22, %v1444_v50  ;;  %v1200_v11 = vmul.f32 %v21204_v6, %v21225_v3  ;;  %v21229_v10 = vld [vmem:[#allocation58_spill] sm:$0xff] }
 0x2a3   : > { %8815 = vmatpush1.bf16.msra.mxu0 %v21223_v52  ;;  %v21226_v62 = vcombine.high %v18149_v2, %v18151_v43  ;;  %v21227_v42 = vcombine.high %v18188_v55, %v18190_v39  ;;  %v18502_v36 = vpack.c.bf16 %v1463_v15, %v1457_v16  ;;  %v1206_v48 = vmul.f32 %v21206_v35, %v21228_v20  ;;  %v18510_v50 = vld [vmem:[#allocation10 + $0x2048] sm:$0xff]  ;;  %v21231_v15 = vld [vmem:[#allocation120_spill] sm:$0xff] }
 0x2a4   : > { %9154 = vmatpush1.bf16.msra.mxu1 %v21224_v38  ;;  %v1213_v30 = vmul.f32 %v17906_v23, %v21229_v10  ;;  %v1339_v26 = vmul.f32 %v21094_v7, %v1211_v9  ;;  %v1345_v6 = vmul.f32 %v21094_v7, %v1217_v41  ;;  %v18512_v22 = vld [vmem:[#allocation10 + $0x20a8] sm:$0xff]  ;;  %v1328_v52 = vmul.f32 %v17622_v59, %v1200_v11  ;;  %v21230_v38 = vld [vmem:[#allocation64_spill] sm:$0xff] }
 0x2a5   : > { %8816 = vmatprep.subr.bf16.mxu0 %v21226_v62  ;;  %9155 = vmatprep.subr.bf16.mxu1 %v21227_v42  ;;  %v1219_v16 = vmul.f32 %v17944_v34, %v21230_v38  ;;  %v18519_v35 = vpack.c.bf16 %v1461_v1, %v1455_v8  ;;  %v1334_v3 = vmul.f32 %v17622_v59, %v1206_v48 }
 0x2a6   : > { %8760 = vmatmul.mubr.bf16.gmra.mrb[16].mxu0 %v21231_v15  ;;  %9099 = vmatmul.mubr.bf16.gmra.mrb[16].mxu1 %v21231_v15  ;;  %v1341_v9 = vmul.f32 %v21122_v19, %v1213_v30  ;;  %v21232_v41 = vcombine.low %v18149_v2, %v18151_v43  ;;  %v21233_v11 = vcombine.low %v18188_v55, %v18190_v39  ;;  %v21236_v30 = vld [vmem:[#allocation73_spill] sm:$0xff] }
 0x2a7   : > { %v14226_v62 = vcombine.high %v18456_v24, %v18458_v33  ;;  %v1456_v42 = vadd.f32 %v17665_v54, %v1328_v52  ;;  %v1347_v1 = vmul.f32 %v21122_v19, %v1219_v16  ;;  %8769 = vmatprep.mubr.bf16.mxu0 %v18519_v35  ;;  %9108 = vmatprep.mubr.bf16.mxu1 %v18519_v35  ;;  %v21237_v16 = vld [vmem:[#allocation56_spill] sm:$0xff] }
 0x2a8   : > { %8817 = vmatpush1.bf16.msra.mxu0 %v21232_v41  ;;  %9156 = vmatpush1.bf16.msra.mxu1 %v21233_v11  ;;  %v14227_v8 = vcombine.low %v18510_v50, %v18512_v22  ;;  %v1462_v2 = vadd.f32 %v17665_v54, %v1334_v3  ;;  %v1469_v43 = vadd.f32 %v21126_v51, %v1341_v9  ;;  %v21238_v9 = vld [vmem:[#allocation62_spill] sm:$0xff] }
 0x2a9   : > { %v21234_v55 = vcombine.high %v18255_v28, %v18257_v13  ;;  %v21235_v39 = vcombine.high %v18307_v49, %v18309_v47  ;;  %v1467_v20 = vadd.f32 %v21106_v46, %v1339_v26  ;;  %v1473_v48 = vadd.f32 %v21106_v46, %v1345_v6 }
 0x2aa   : > { %v1475_v10 = vadd.f32 %v21126_v51, %v1347_v1  ;;  %v1229_v52 = vmul.f32 %v18035_v4, %v21236_v30  ;;  %v18550_v38 = vpack.c.bf16 %v1462_v2, %v1456_v42  ;;  %v1212_v3 = vmul.f32 %v17906_v23, %v21237_v16  ;;  %v21241_v1 = vld [vmem:[#allocation71_spill] sm:$0xff]  ;;  %v2593_v30 = vld [vmem:[#allocation10 + $0x2108] sm:$0xff] }
 0x2ab   : > { %8818 = vmatprep.subr.bf16.mxu0 %v21234_v55  ;;  %9157 = vmatprep.subr.bf16.mxu1 %v21235_v39  ;;  %v1218_v41 = vmul.f32 %v17944_v34, %v21238_v9  ;;  %v21239_v11 = vcombine.low %v18255_v28, %v18257_v13  ;;  %v21240_v26 = vcombine.low %v18307_v49, %v18309_v47  ;;  %v21242_v2 = vld [vmem:[#allocation75_spill] sm:$0xff]  ;;  %v2592_v34 = vld [vmem:[#allocation10 + $0x2100] sm:$0xff]  ;;  %v2605_v16 = vld [vmem:[#allocation10 + $0x2168] sm:$0xff] }
 0x2ac   : > { %v18562_v6 = vpack.c.bf16 %v1475_v10, %v1469_v43  ;;  %v1225_v42 = vmul.f32 %v17996_v0, %v21241_v1  ;;  %v1231_v55 = vmul.f32 %v18035_v4, %v21242_v2  ;;  %v21243_v23 = vcombine.high %v18357_v18, %v18359_v5  ;;  %v2604_v28 = vld [vmem:[#allocation10 + $0x2160] sm:$0xff]  ;;  %v21244_v13 = vld [vmem:[#allocation95_spill] sm:$0xff]  ;;  %v2629_v2 = vld [vmem:[#allocation10 + $0x2228] sm:$0xff] }
 0x2ad   : > { %8819 = vmatpush1.bf16.msra.mxu0 %v21239_v11  ;;  %9158 = vmatpush1.bf16.msra.mxu1 %v21240_v26  ;;  %v1223_v39 = vmul.f32 %v17996_v0, %v21244_v13  ;;  %v1340_v49 = vmul.f32 %v17622_v59, %v1212_v3  ;;  %v1346_v47 = vmul.f32 %v17622_v59, %v1218_v41  ;;  %v21246_v11 = vld [vmem:[#allocation121_spill] sm:$0xff] }
 0x2ae   : > { %8820 = vmatprep.subr.bf16.mxu0 %v21243_v23  ;;  %9159 = vmatprep.subr.bf16.mxu1 %v14204_v61  ;;  %v18575_v43 = vpack.c.bf16 %v1473_v48, %v1467_v20  ;;  %v14228_v10 = vcombine.high %v18510_v50, %v18512_v22  ;;  %v1353_v9 = vmul.f32 %v21122_v19, %v1225_v42  ;;  %v2617_v42 = vld [vmem:[#allocation10 + $0x21c8] sm:$0xff] }
 0x2af   : > { %v1359_v61 = vmul.f32 %v21122_v19, %v1231_v55  ;;  %8770 = vmatmul.mubr.bf16.gmra.mrb[20].mxu0 %v21246_v11  ;;  %9109 = vmatmul.mubr.bf16.gmra.mrb[20].mxu1 %v21246_v11  ;;  %v1357_v26 = vmul.f32 %v21094_v7, %v1229_v52  ;;  %v1468_v3 = vadd.f32 %v17665_v54, %v1340_v49  ;;  %v21249_v55 = vld [vmem:[#allocation74_spill] sm:$0xff] }
 0x2b0   : > { %21245 = vst [vmem:[#allocation131_spill] sm:$0xff] %v18575_v43  ;;  %v1474_v20 = vadd.f32 %v17665_v54, %v1346_v47  ;;  %v21247_v48 = vcombine.low %v18357_v18, %v18359_v5  ;;  %v14250_v50 = vcombine.high %v2592_v34, %v2604_v28  ;;  %v1481_v19 = vadd.f32 %v21126_v51, %v1353_v9  ;;  %v2616_v18 = vld [vmem:[#allocation10 + $0x21c0] sm:$0xff] }
 0x2b1   : > { %9160 = vmatpush1.bf16.msra.mxu1 %v14203_v25  ;;  %v1487_v22 = vadd.f32 %v21126_v51, %v1359_v61  ;;  %8779 = vmatprep.mubr.bf16.mxu0 %v18575_v43  ;;  %v14252_v52 = vcombine.high %v2593_v30, %v2605_v16  ;;  %v1351_v41 = vmul.f32 %v21094_v7, %v1223_v39  ;;  %v2628_v51 = vld [vmem:[#allocation10 + $0x2220] sm:$0xff]  ;;  %v2653_v61 = vld [vmem:[#allocation10 + $0x22e8] sm:$0xff] }
 0x2b2   : > { %8821 = vmatpush1.bf16.msra.mxu0 %v21247_v48  ;;  %9118 = vmatprep.mubr.bf16.mxu1 %v18575_v43  ;;  %v18597_v1 = vpack.c.bf16 %v1474_v20, %v1468_v3  ;;  %v1224_v27 = vmul.f32 %v17996_v0, %v21248_v29  ;;  %v1485_v25 = vadd.f32 %v21106_v46, %v1357_v26  ;;  %v2640_v39 = vld [vmem:[#allocation10 + $0x2280] sm:$0xff]  ;;  %v2665_v26 = vld [vmem:[#allocation10 + $0x2348] sm:$0xff]  ;;  %v1538_v48 = vld [vmem:[#allocation10 + $0x10] sm:$0xff] }
 0x2b3   : > { %8822 = vmatprep.subr.bf16.mxu0 %v14226_v62  ;;  %9161 = vmatprep.subr.bf16.mxu1 %v14228_v10  ;;  %v18599_v5 = vpack.c.bf16 %v1487_v22, %v1481_v19  ;;  %v1230_v23 = vmul.f32 %v18035_v4, %v21249_v55  ;;  %v14249_v7 = vcombine.low %v2592_v34, %v2604_v28  ;;  %v2652_v9 = vld [vmem:[#allocation10 + $0x22e0] sm:$0xff]  ;;  %v2641_v4 = vld [vmem:[#allocation10 + $0x2288] sm:$0xff]  ;;  %v1550_v22 = vld [vmem:[#allocation10 + $0x70] sm:$0xff] }
 0x2b4   : > { %v14251_v62 = vcombine.low %v2593_v30, %v2605_v16  ;;  %v1352_v13 = vmul.f32 %v17622_v59, %v1224_v27  ;;  %v1479_v0 = vadd.f32 %v21106_v46, %v1351_v41  ;;  %v14274_v47 = vcombine.high %v2616_v18, %v2628_v51  ;;  %v2664_v30 = vld [vmem:[#allocation10 + $0x2340] sm:$0xff]  ;;  %v2677_v3 = vld [vmem:[#allocation10 + $0x23a8] sm:$0xff]  ;;  %v1551_v41 = vld [vmem:[#allocation10 + $0x78] sm:$0xff] }
 0x2b5   : > { %9162 = vmatpush1.bf16.msra.mxu1 %v14227_v8  ;;  %v1358_v49 = vmul.f32 %v17622_v59, %v1230_v23  ;;  %v14276_v10 = vcombine.high %v2617_v42, %v2629_v2  ;;  %v14273_v46 = vcombine.low %v2616_v18, %v2628_v51  ;;  %v14275_v8 = vcombine.low %v2617_v42, %v2629_v2  ;;  %v2676_v16 = vld [vmem:[#allocation10 + $0x23a0] sm:$0xff]  ;;  %v1562_v51 = vld [vmem:[#allocation10 + $0xd0] sm:$0xff]  ;;  %v1563_v2 = vld [vmem:[#allocation10 + $0xd8] sm:$0xff] }
 0x2b6   : > { %8823 = vmatpush1.bf16.msra.mxu0 %v14225_v21  ;;  %9163 = vmatprep.subr.bf16.mxu1 %v14252_v52  ;;  %v1480_v24 = vadd.f32 %v17665_v54, %v1352_v13  ;;  %v18615_v33 = vpack.c.bf16 %v1485_v25, %v1479_v0  ;;  %v14298_v59 = vcombine.high %v2640_v39, %v2652_v9  ;;  %v1539_v52 = vld [vmem:[#allocation10 + $0x18] sm:$0xff]  ;;  %v1574_v42 = vld [vmem:[#allocation10 + $0x130] sm:$0xff] }
 0x2b7   : > { %8824 = vmatprep.subr.bf16.mxu0 %v14250_v50  ;;  %8780 = vmatmul.mubr.bf16.gmra.mrb[24].mxu0 %v18129_v40  ;;  %v1486_v21 = vadd.f32 %v17665_v54, %v1358_v49  ;;  %v14300_v34 = vcombine.high %v2641_v4, %v2653_v61  ;;  %v14297_v54 = vcombine.low %v2640_v39, %v2652_v9  ;;  %v1575_v55 = vld [vmem:[#allocation10 + $0x138] sm:$0xff]  ;;  %v1598_v39 = vld [vmem:[#allocation10 + $0x1f0] sm:$0xff] }
 0x2b8   : > { %9119 = vmatmul.mubr.bf16.gmra.mrb[24].mxu1 %v18129_v40  ;;  %21250 = vst [vmem:[#allocation132_spill] sm:$0xff] %v18615_v33  ;;  %8789 = vmatprep.mubr.bf16.mxu0 %v18615_v33  ;;  %v14299_v20 = vcombine.low %v2641_v4, %v2653_v61  ;;  %v14322_v50 = vcombine.high %v2664_v30, %v2676_v16  ;;  %v1587_v49 = vld [vmem:[#allocation10 + $0x198] sm:$0xff] }
 0x2b9   : > { %9164 = vmatpush1.bf16.msra.mxu1 %v14251_v62  ;;  %9128 = vmatprep.mubr.bf16.mxu1 %v18615_v33  ;;  %v18620_v28 = vpack.c.bf16 %v1486_v21, %v1480_v24  ;;  %v14324_v19 = vcombine.high %v2665_v26, %v2677_v3  ;;  %v14321_v18 = vcombine.low %v2664_v30, %v2676_v16  ;;  %v1586_v62 = vld [vmem:[#allocation10 + $0x190] sm:$0xff] }
 0x2ba   : > { %8825 = vmatpush1.bf16.msra.mxu0 %v14249_v7  ;;  %9165 = vmatprep.subr.bf16.mxu1 %v14276_v10  ;;  %v14323_v29 = vcombine.low %v2665_v26, %v2677_v3  ;;  %v13198_v27 = vcombine.high %v1538_v48, %v1550_v22  ;;  %v13200_v25 = vcombine.high %v1539_v52, %v1551_v41  ;;  %v1610_v24 = vld [vmem:[#allocation10 + $0x250] sm:$0xff] }
 0x2bb   : > { %8826 = vmatprep.subr.bf16.mxu0 %v14274_v47  ;;  %v13197_v23 = vcombine.low %v1538_v48, %v1550_v22  ;;  %v13199_v7 = vcombine.low %v1539_v52, %v1551_v41  ;;  %v13222_v13 = vcombine.high %v1562_v51, %v1574_v42  ;;  %v13224_v0 = vcombine.high %v1563_v2, %v1575_v55  ;;  %v1599_v47 = vld [vmem:[#allocation10 + $0x1f8] sm:$0xff]  ;;  %v1622_v21 = vld [vmem:[#allocation10 + $0x2b0] sm:$0xff] }
 0x2bc   : > { %v13221_v10 = vcombine.low %v1562_v51, %v1574_v42  ;;  %v13223_v9 = vcombine.low %v1563_v2, %v1575_v55  ;;  %v13246_v4 = vcombine.high %v1586_v62, %v1598_v39  ;;  %v13248_v61 = vcombine.high %v1587_v49, %v1599_v47  ;;  %v1634_v30 = vld [vmem:[#allocation10 + $0x310] sm:$0xff] }
 0x2bd   : > { %9166 = vmatpush1.bf16.msra.mxu1 %v14275_v8  ;;  %v1623_v8 = vld [vmem:[#allocation10 + $0x2b8] sm:$0xff]  ;;  %v13270_v16 = vcombine.high %v1610_v24, %v1622_v21  ;;  %v1646_v3 = vld [vmem:[#allocation10 + $0x370] sm:$0xff]  ;;  %v13269_v48 = vcombine.low %v1610_v24, %v1622_v21 }
 0x2be   : > { %8827 = vmatpush1.bf16.msra.mxu0 %v14273_v46  ;;  %9167 = vmatprep.subr.bf16.mxu1 %v14300_v34  ;;  %v1611_v46 = vld [vmem:[#allocation10 + $0x258] sm:$0xff]  ;;  %v13247_v34 = vcombine.low %v1587_v49, %v1599_v47  ;;  %v1658_v52 = vld [vmem:[#allocation10 + $0x3d0] sm:$0xff] }
 0x2bf   : > { %8828 = vmatprep.subr.bf16.mxu0 %v14298_v59  ;;  %8790 = vmatmul.mubr.bf16.gmra.mrb[28].mxu0 %v18186_v37  ;;  %v13245_v59 = vcombine.low %v1586_v62, %v1598_v39  ;;  %v13272_v26 = vcombine.high %v1611_v46, %v1623_v8  ;;  %v1670_v41 = vld [vmem:[#allocation10 + $0x430] sm:$0xff] }
 0x2c0   : > { %9129 = vmatmul.mubr.bf16.gmra.mrb[28].mxu1 %v18186_v37  ;;  %8832 = vmatprep.mubr.bf16.mxu0 %v18192_v53  ;;  %v1682_v51 = vld [vmem:[#allocation10 + $0x490] sm:$0xff]  ;;  %v13318_v42 = vcombine.high %v1658_v52, %v1670_v41  ;;  %v13317_v62 = vcombine.low %v1658_v52, %v1670_v41 }
 0x2c1   : > { %9168 = vmatpush1.bf16.msra.mxu1 %v14299_v20  ;;  %9171 = vmatprep.mubr.bf16.mxu1 %v18192_v53  ;;  %v1647_v20 = vld [vmem:[#allocation10 + $0x378] sm:$0xff]  ;;  %v1694_v55 = vld [vmem:[#allocation10 + $0x4f0] sm:$0xff] }
 0x2c2   : > { %8829 = vmatpush1.bf16.msra.mxu0 %v14297_v54  ;;  %9169 = vmatprep.subr.bf16.mxu1 %v14324_v19  ;;  %v1635_v54 = vld [vmem:[#allocation10 + $0x318] sm:$0xff]  ;;  %v13294_v19 = vcombine.high %v1634_v30, %v1646_v3  ;;  %v1706_v49 = vld [vmem:[#allocation10 + $0x550] sm:$0xff] }
 0x2c3   : > { %8830 = vmatprep.subr.bf16.mxu0 %v14322_v50  ;;  %v13271_v50 = vcombine.low %v1611_v46, %v1623_v8  ;;  %v13296_v22 = vcombine.high %v1635_v54, %v1647_v20  ;;  %v1718_v47 = vld [vmem:[#allocation10 + $0x5b0] sm:$0xff] }
 0x2c4   : > { %v1730_v24 = vld [vmem:[#allocation10 + $0x610] sm:$0xff]  ;;  %v13366_v21 = vcombine.high %v1706_v49, %v1718_v47 }
 0x2c5   : > { %9170 = vmatpush1.bf16.msra.mxu1 %v14323_v29  ;;  %v1671_v29 = vld [vmem:[#allocation10 + $0x438] sm:$0xff]  ;;  %v1742_v8 = vld [vmem:[#allocation10 + $0x670] sm:$0xff] }
 0x2c6   : > { %8831 = vmatpush1.bf16.msra.mxu0 %v14321_v18  ;;  %9591 = vmatprep.subr.bf16.mxu1 %v13200_v25  ;;  %v1659_v18 = vld [vmem:[#allocation10 + $0x3d8] sm:$0xff]  ;;  %v13295_v25 = vcombine.low %v1635_v54, %v1647_v20  ;;  %v1754_v54 = vld [vmem:[#allocation10 + $0x6d0] sm:$0xff] }
 0x2c7   : > { %9252 = vmatprep.subr.bf16.mxu0 %v13198_v27  ;;  %v13293_v27 = vcombine.low %v1634_v30, %v1646_v3  ;;  %v13320_v2 = vcombine.high %v1659_v18, %v1671_v29  ;;  %v13365_v30 = vcombine.low %v1706_v49, %v1718_v47  ;;  %v1766_v20 = vld [vmem:[#allocation10 + $0x730] sm:$0xff] }
 0x2c8   : > { %9172 = vmatmul.mubr.bf16.vlgmr.msra.gmra.mrb[0].mxu1 %v18245_v56  ;;  %v1778_v52 = vld [vmem:[#allocation10 + $0x790] sm:$0xff]  ;;  %v13414_v41 = vcombine.high %v1754_v54, %v1766_v20 }
 0x2c9   : > { %8833 = vmatmul.mubr.bf16.vlgmr.msra.gmra.mrb[0].mxu0 %v18245_v56  ;;  %9592 = vmatpush1.bf16.msra.mxu1 %v13199_v7  ;;  %v1695_v7 = vld [vmem:[#allocation10 + $0x4f8] sm:$0xff]  ;;  %v1826_v49 = vld [vmem:[#allocation10 + $0x910] sm:$0xff] }
 0x2ca   : > { %9253 = vmatpush1.bf16.msra.mxu0 %v13197_v23  ;;  %8842 = vmatprep.mubr.bf16.mxu0 %v18259_v60  ;;  %v1683_v23 = vld [vmem:[#allocation10 + $0x498] sm:$0xff] }
 0x2cb   : > { %9181 = vmatprep.mubr.bf16.mxu1 %v18259_v60  ;;  %9254 = vmatprep.subr.bf16.mxu0 %v13222_v13  ;;  %v13319_v13 = vcombine.low %v1659_v18, %v1671_v29  ;;  %v13344_v39 = vcombine.high %v1683_v23, %v1695_v7  ;;  %v1790_v29 = vld [vmem:[#allocation10 + $0x7f0] sm:$0xff] }
 0x2cc   : > { %9593 = vmatprep.subr.bf16.mxu1 %v13224_v0  ;;  %v13342_v0 = vcombine.high %v1682_v51, %v1694_v55 }
 0x2cd   : > { %9594 = vmatpush1.bf16.msra.mxu1 %v13223_v9  ;;  %v1719_v9 = vld [vmem:[#allocation10 + $0x5b8] sm:$0xff] }
 0x2ce   : > { %9255 = vmatpush1.bf16.msra.mxu0 %v13221_v10  ;;  %9595 = vmatprep.subr.bf16.mxu1 %v13248_v61  ;;  %v1707_v10 = vld [vmem:[#allocation10 + $0x558] sm:$0xff]  ;;  %v13343_v61 = vcombine.low %v1683_v23, %v1695_v7  ;;  %v1802_v23 = vld [vmem:[#allocation10 + $0x850] sm:$0xff] }
 0x2cf   : > { %9256 = vmatprep.subr.bf16.mxu0 %v13246_v4  ;;  %v13341_v4 = vcombine.low %v1682_v51, %v1694_v55  ;;  %v13368_v46 = vcombine.high %v1707_v10, %v1719_v9  ;;  %v13413_v51 = vcombine.low %v1754_v54, %v1766_v20  ;;  %v1814_v7 = vld [vmem:[#allocation10 + $0x8b0] sm:$0xff] }
 0x2d0   : > { %9182 = vmatmul.mubr.bf16.gmra.mrb[4].mxu1 %v18311_v12  ;;  %v13462_v47 = vcombine.high %v1802_v23, %v1814_v7  ;;  %v1874_v54 = vld [vmem:[#allocation10 + $0xa90] sm:$0xff] }
 0x2d1   : > { %8843 = vmatmul.mubr.bf16.gmra.mrb[4].mxu0 %v18311_v12  ;;  %9596 = vmatpush1.bf16.msra.mxu1 %v13247_v34  ;;  %v1743_v34 = vld [vmem:[#allocation10 + $0x678] sm:$0xff] }
 0x2d2   : > { %9257 = vmatpush1.bf16.msra.mxu0 %v13245_v59  ;;  %8852 = vmatprep.mubr.bf16.mxu0 %v18319_v32  ;;  %v1731_v59 = vld [vmem:[#allocation10 + $0x618] sm:$0xff] }
 0x2d3   : > { %9191 = vmatprep.mubr.bf16.mxu1 %v18319_v32  ;;  %9258 = vmatprep.subr.bf16.mxu0 %v13270_v16  ;;  %v13367_v16 = vcombine.low %v1707_v10, %v1719_v9  ;;  %v13392_v3 = vcombine.high %v1731_v59, %v1743_v34  ;;  %v1838_v9 = vld [vmem:[#allocation10 + $0x970] sm:$0xff] }
 0x2d4   : > { %9597 = vmatprep.subr.bf16.mxu1 %v13272_v26  ;;  %v13390_v26 = vcombine.high %v1730_v24, %v1742_v8 }
 0x2d5   : > { %9598 = vmatpush1.bf16.msra.mxu1 %v13271_v50  ;;  %v1767_v50 = vld [vmem:[#allocation10 + $0x738] sm:$0xff] }
 0x2d6   : > { %9259 = vmatpush1.bf16.msra.mxu0 %v13269_v48  ;;  %9599 = vmatprep.subr.bf16.mxu1 %v13296_v22  ;;  %v1755_v48 = vld [vmem:[#allocation10 + $0x6d8] sm:$0xff]  ;;  %v13391_v22 = vcombine.low %v1731_v59, %v1743_v34  ;;  %v1850_v59 = vld [vmem:[#allocation10 + $0x9d0] sm:$0xff] }
 0x2d7   : > { %9260 = vmatprep.subr.bf16.mxu0 %v13294_v19  ;;  %v13389_v19 = vcombine.low %v1730_v24, %v1742_v8  ;;  %v13416_v18 = vcombine.high %v1755_v48, %v1767_v50  ;;  %v13461_v24 = vcombine.low %v1802_v23, %v1814_v7  ;;  %v1862_v34 = vld [vmem:[#allocation10 + $0xa30] sm:$0xff] }
 0x2d8   : > { %9192 = vmatmul.mubr.bf16.gmra.mrb[8].mxu1 %v18368_v31  ;;  %v13510_v20 = vcombine.high %v1850_v59, %v1862_v34  ;;  %v1922_v23 = vld [vmem:[#allocation10 + $0xc10] sm:$0xff] }
 0x2d9   : > { %8853 = vmatmul.mubr.bf16.gmra.mrb[8].mxu0 %v18368_v31  ;;  %9600 = vmatpush1.bf16.msra.mxu1 %v13295_v25  ;;  %v1791_v25 = vld [vmem:[#allocation10 + $0x7f8] sm:$0xff] }
 0x2da   : > { %9261 = vmatpush1.bf16.msra.mxu0 %v13293_v27  ;;  %8862 = vmatprep.mubr.bf16.mxu0 %v18372_v63  ;;  %v1779_v27 = vld [vmem:[#allocation10 + $0x798] sm:$0xff] }
 0x2db   : > { %9201 = vmatprep.mubr.bf16.mxu1 %v18372_v63  ;;  %9262 = vmatprep.subr.bf16.mxu0 %v13318_v42  ;;  %v13415_v42 = vcombine.low %v1755_v48, %v1767_v50  ;;  %v13440_v55 = vcombine.high %v1779_v27, %v1791_v25  ;;  %v1886_v50 = vld [vmem:[#allocation10 + $0xaf0] sm:$0xff] }
 0x2dc   : > { %9601 = vmatprep.subr.bf16.mxu1 %v13320_v2  ;;  %v13438_v2 = vcombine.high %v1778_v52, %v1790_v29 }
 0x2dd   : > { %9602 = vmatpush1.bf16.msra.mxu1 %v13319_v13  ;;  %v1815_v13 = vld [vmem:[#allocation10 + $0x8b8] sm:$0xff] }
 0x2de   : > { %9263 = vmatpush1.bf16.msra.mxu0 %v13317_v62  ;;  %9603 = vmatprep.subr.bf16.mxu1 %v13344_v39  ;;  %v1803_v62 = vld [vmem:[#allocation10 + $0x858] sm:$0xff]  ;;  %v13439_v39 = vcombine.low %v1779_v27, %v1791_v25  ;;  %v1898_v27 = vld [vmem:[#allocation10 + $0xb50] sm:$0xff] }
 0x2df   : > { %9264 = vmatprep.subr.bf16.mxu0 %v13342_v0  ;;  %v13437_v0 = vcombine.low %v1778_v52, %v1790_v29  ;;  %v13464_v10 = vcombine.high %v1803_v62, %v1815_v13  ;;  %v13509_v52 = vcombine.low %v1850_v59, %v1862_v34  ;;  %v1910_v25 = vld [vmem:[#allocation10 + $0xbb0] sm:$0xff] }
 0x2e0   : > { %9202 = vmatmul.mubr.bf16.gmra.mrb[12].mxu1 %v18434_v57  ;;  %v13558_v7 = vcombine.high %v1898_v27, %v1910_v25  ;;  %v1970_v34 = vld [vmem:[#allocation10 + $0xd90] sm:$0xff] }
 0x2e1   : > { %8863 = vmatmul.mubr.bf16.gmra.mrb[12].mxu0 %v18434_v57  ;;  %9604 = vmatpush1.bf16.msra.mxu1 %v13343_v61  ;;  %v1839_v61 = vld [vmem:[#allocation10 + $0x978] sm:$0xff] }
 0x2e2   : > { %9265 = vmatpush1.bf16.msra.mxu0 %v13341_v4  ;;  %8872 = vmatprep.mubr.bf16.mxu0 %v18436_v58  ;;  %v1827_v4 = vld [vmem:[#allocation10 + $0x918] sm:$0xff] }
 0x2e3   : > { %9211 = vmatprep.mubr.bf16.mxu1 %v18436_v58  ;;  %9266 = vmatprep.subr.bf16.mxu0 %v13366_v21  ;;  %v13463_v21 = vcombine.low %v1803_v62, %v1815_v13  ;;  %v13488_v8 = vcombine.high %v1827_v4, %v1839_v61  ;;  %v1934_v13 = vld [vmem:[#allocation10 + $0xc70] sm:$0xff] }
 0x2e4   : > { %9605 = vmatprep.subr.bf16.mxu1 %v13368_v46  ;;  %v13486_v46 = vcombine.high %v1826_v49, %v1838_v9 }
 0x2e5   : > { %9606 = vmatpush1.bf16.msra.mxu1 %v13367_v16  ;;  %v1863_v16 = vld [vmem:[#allocation10 + $0xa38] sm:$0xff] }
 0x2e6   : > { %9267 = vmatpush1.bf16.msra.mxu0 %v13365_v30  ;;  %9607 = vmatprep.subr.bf16.mxu1 %v13392_v3  ;;  %v1851_v30 = vld [vmem:[#allocation10 + $0x9d8] sm:$0xff]  ;;  %v13487_v3 = vcombine.low %v1827_v4, %v1839_v61  ;;  %v1946_v61 = vld [vmem:[#allocation10 + $0xcd0] sm:$0xff] }
 0x2e7   : > { %9268 = vmatprep.subr.bf16.mxu0 %v13390_v26  ;;  %v13485_v26 = vcombine.low %v1826_v49, %v1838_v9  ;;  %v13512_v48 = vcombine.high %v1851_v30, %v1863_v16  ;;  %v13557_v49 = vcombine.low %v1898_v27, %v1910_v25  ;;  %v13582_v9 = vcombine.high %v1922_v23, %v1934_v13  ;;  %v2007_v27 = vld [vmem:[#allocation10 + $0xeb8] sm:$0xff] }
 0x2e8   : > { %9212 = vmatmul.mubr.bf16.gmra.mrb[16].mxu1 %v18492_v45 }
 0x2e9   : > { %8873 = vmatmul.mubr.bf16.gmra.mrb[16].mxu0 %v18492_v45  ;;  %9608 = vmatpush1.bf16.msra.mxu1 %v13391_v22  ;;  %v1887_v22 = vld [vmem:[#allocation10 + $0xaf8] sm:$0xff] }
 0x2ea   : > { %9269 = vmatpush1.bf16.msra.mxu0 %v13389_v19  ;;  %8882 = vmatprep.mubr.bf16.mxu0 %v18502_v36  ;;  %v1875_v19 = vld [vmem:[#allocation10 + $0xa98] sm:$0xff] }
 0x2eb   : > { %9221 = vmatprep.mubr.bf16.mxu1 %v18502_v36  ;;  %9270 = vmatprep.subr.bf16.mxu0 %v13414_v41  ;;  %v13511_v41 = vcombine.low %v1851_v30, %v1863_v16  ;;  %v13536_v29 = vcombine.high %v1875_v19, %v1887_v22 }
 0x2ec   : > { %9609 = vmatprep.subr.bf16.mxu1 %v13416_v18  ;;  %v13534_v18 = vcombine.high %v1874_v54, %v1886_v50 }
 0x2ed   : > { %9610 = vmatpush1.bf16.msra.mxu1 %v13415_v42  ;;  %v1911_v42 = vld [vmem:[#allocation10 + $0xbb8] sm:$0xff] }
 0x2ee   : > { %9271 = vmatpush1.bf16.msra.mxu0 %v13413_v51  ;;  %9611 = vmatprep.subr.bf16.mxu1 %v13440_v55  ;;  %v1899_v51 = vld [vmem:[#allocation10 + $0xb58] sm:$0xff]  ;;  %v13535_v55 = vcombine.low %v1875_v19, %v1887_v22  ;;  %v21253_v19 = vld [vmem:[#allocation153_spill] sm:$0xff] }
 0x2ef   : > { %9272 = vmatprep.subr.bf16.mxu0 %v13438_v2  ;;  %v13533_v2 = vcombine.low %v1874_v54, %v1886_v50  ;;  %v13560_v62 = vcombine.high %v1899_v51, %v1911_v42  ;;  %v1983_v54 = vld [vmem:[#allocation10 + $0xdf8] sm:$0xff] }
 0x2f0   : > { %9222 = vmatmul.mubr.bf16.gmra.mrb[20].mxu1 %v18550_v38 }
 0x2f1   : > { %8883 = vmatmul.mubr.bf16.gmra.mrb[20].mxu0 %v18550_v38  ;;  %9612 = vmatpush1.bf16.msra.mxu1 %v13439_v39  ;;  %v1935_v39 = vld [vmem:[#allocation10 + $0xc78] sm:$0xff] }
 0x2f2   : > { %9273 = vmatpush1.bf16.msra.mxu0 %v13437_v0  ;;  %8892 = vmatprep.mubr.bf16.mxu0 %v18562_v6  ;;  %v1923_v0 = vld [vmem:[#allocation10 + $0xc18] sm:$0xff] }
 0x2f3   : > { %9231 = vmatprep.mubr.bf16.mxu1 %v18562_v6  ;;  %9274 = vmatprep.subr.bf16.mxu0 %v13462_v47  ;;  %v13559_v47 = vcombine.low %v1899_v51, %v1911_v42  ;;  %v13584_v4 = vcombine.high %v1923_v0, %v1935_v39  ;;  %v13583_v59 = vcombine.low %v1923_v0, %v1935_v39  ;;  %v2018_v42 = vld [vmem:[#allocation10 + $0xf10] sm:$0xff] }
 0x2f4   : > { %9613 = vmatprep.subr.bf16.mxu1 %v13464_v10  ;;  %v21251_v10 = vld [vmem:[#allocation150_spill] sm:$0xff] }
 0x2f5   : > { %9614 = vmatpush1.bf16.msra.mxu1 %v13463_v21  ;;  %v1947_v21 = vld [vmem:[#allocation10 + $0xcd8] sm:$0xff] }
 0x2f6   : > { %9275 = vmatpush1.bf16.msra.mxu0 %v13461_v24  ;;  %9615 = vmatprep.subr.bf16.mxu1 %v13488_v8  ;;  %v1958_v24 = vld [vmem:[#allocation10 + $0xd30] sm:$0xff]  ;;  %v13581_v8 = vcombine.low %v1922_v23, %v1934_v13 }
 0x2f7   : > { %9276 = vmatprep.subr.bf16.mxu0 %v13486_v46  ;;  %v1959_v46 = vld [vmem:[#allocation10 + $0xd38] sm:$0xff]  ;;  %v13606_v30 = vcombine.high %v1946_v61, %v1958_v24  ;;  %v2030_v23 = vld [vmem:[#allocation10 + $0xf70] sm:$0xff] }
 0x2f8   : > { %9232 = vmatmul.mubr.bf16.gmra.mrb[24].mxu1 %v18597_v1  ;;  %v13608_v16 = vcombine.high %v1947_v21, %v1959_v46  ;;  %v13607_v50 = vcombine.low %v1947_v21, %v1959_v46  ;;  %v21254_v13 = vld [vmem:[#allocation155_spill] sm:$0xff]  ;;  %v2055_v21 = vld [vmem:[#allocation10 + $0x1038] sm:$0xff]  ;;  %v13677_v46 = vcombine.low %v2018_v42, %v2030_v23 }
 0x2f9   : > { %8893 = vmatmul.mubr.bf16.gmra.mrb[24].mxu0 %v18597_v1  ;;  %9616 = vmatpush1.bf16.msra.mxu1 %v13487_v3  ;;  %v1971_v3 = vld [vmem:[#allocation10 + $0xd98] sm:$0xff] }
 0x2fa   : > { %9277 = vmatpush1.bf16.msra.mxu0 %v13485_v26  ;;  %8902 = vmatprep.mubr.bf16.mxu0 %v18599_v5  ;;  %v1982_v26 = vld [vmem:[#allocation10 + $0xdf0] sm:$0xff]  ;;  %v13631_v51 = vcombine.low %v1971_v3, %v1983_v54 }
 0x2fb   : > { %9241 = vmatprep.mubr.bf16.mxu1 %v18599_v5  ;;  %9278 = vmatprep.subr.bf16.mxu0 %v13510_v20  ;;  %v21252_v20 = vld [vmem:[#allocation151_spill] sm:$0xff]  ;;  %v13630_v22 = vcombine.high %v1970_v34, %v1982_v26  ;;  %v13629_v25 = vcombine.low %v1970_v34, %v1982_v26  ;;  %v2067_v26 = vld [vmem:[#allocation10 + $0x1098] sm:$0xff] }
 0x2fc   : > { %9617 = vmatprep.subr.bf16.mxu1 %v13512_v48  ;;  %v13605_v48 = vcombine.low %v1946_v61, %v1958_v24  ;;  %v2054_v61 = vld [vmem:[#allocation10 + $0x1030] sm:$0xff]  ;;  %v2043_v24 = vld [vmem:[#allocation10 + $0xfd8] sm:$0xff] }
 0x2fd   : > { %9618 = vmatpush1.bf16.msra.mxu1 %v13511_v41  ;;  %v1994_v41 = vld [vmem:[#allocation10 + $0xe50] sm:$0xff] }
 0x2fe   : > { %9279 = vmatpush1.bf16.msra.mxu0 %v13509_v52  ;;  %9619 = vmatprep.subr.bf16.mxu1 %v13536_v29  ;;  %v13632_v52 = vcombine.high %v1971_v3, %v1983_v54  ;;  %v1995_v29 = vld [vmem:[#allocation10 + $0xe58] sm:$0xff]  ;;  %v21256_v54 = vld [vmem:[#allocation103_spill] sm:$0xff] }
 0x2ff   : > { %9280 = vmatprep.subr.bf16.mxu0 %v13534_v18  ;;  %v2006_v18 = vld [vmem:[#allocation10 + $0xeb0] sm:$0xff]  ;;  %v13655_v39 = vcombine.low %v1995_v29, %v2007_v27  ;;  %v2079_v3 = vld [vmem:[#allocation10 + $0x10f8] sm:$0xff] }
 0x300   : > { %9242 = vmatmul.mubr.bf16.gmra.mrb[28].mxu1 %v18620_v28  ;;  %v13653_v0 = vcombine.low %v1994_v41, %v2006_v18 }
 0x301   : > { %8903 = vmatmul.mubr.bf16.gmra.mrb[28].mxu0 %v18620_v28  ;;  %9620 = vmatpush1.bf16.msra.mxu1 %v13535_v55  ;;  %v13656_v55 = vcombine.high %v1995_v29, %v2007_v27  ;;  %v2102_v29 = vld [vmem:[#allocation10 + $0x11b0] sm:$0xff]  ;;  %v2091_v27 = vld [vmem:[#allocation10 + $0x1158] sm:$0xff] }
 0x302   : > { %9281 = vmatpush1.bf16.msra.mxu0 %v13533_v2  ;;  %9284 = vmatprep.mubr.bf16.mxu0 %v21251_v10  ;;  %v13654_v2 = vcombine.high %v1994_v41, %v2006_v18  ;;  %v13728_v41 = vcombine.high %v2067_v26, %v2079_v3  ;;  %v2090_v18 = vld [vmem:[#allocation10 + $0x1150] sm:$0xff] }
 0x303   : > { %9623 = vmatprep.mubr.bf16.mxu1 %v21251_v10  ;;  %9282 = vmatprep.subr.bf16.mxu0 %v13558_v7  ;;  %v2019_v7 = vld [vmem:[#allocation10 + $0xf18] sm:$0xff] }
 0x304   : > { %9621 = vmatprep.subr.bf16.mxu1 %v13560_v62  ;;  %v2031_v62 = vld [vmem:[#allocation10 + $0xf78] sm:$0xff] }
 0x305   : > { %9622 = vmatpush1.bf16.msra.mxu1 %v13559_v47  ;;  %v13678_v47 = vcombine.high %v2018_v42, %v2030_v23  ;;  %v13727_v42 = vcombine.low %v2067_v26, %v2079_v3 }
 0x306   : > { %9283 = vmatpush1.bf16.msra.mxu0 %v13557_v49  ;;  %9704 = vmatprep.subr.bf16.mxu1 %v13584_v4  ;;  %v21255_v49 = vld [vmem:[#allocation156_spill] sm:$0xff]  ;;  %v2042_v4 = vld [vmem:[#allocation10 + $0xfd0] sm:$0xff] }
 0x307   : > { %9365 = vmatprep.subr.bf16.mxu0 %v13582_v9  ;;  %v13680_v9 = vcombine.high %v2019_v7, %v2031_v62  ;;  %v13702_v34 = vcombine.high %v2042_v4, %v2054_v61 }
 0x308   : > { %9624 = vmatmul.mubr.bf16.vlgmr.msra.gmra.mrb[32].mxu1 %v21252_v20 }
 0x309   : > { %9285 = vmatmul.mubr.bf16.vlgmr.msra.gmra.mrb[32].mxu0 %v21252_v20  ;;  %9705 = vmatpush1.bf16.msra.mxu1 %v13583_v59  ;;  %v2066_v59 = vld [vmem:[#allocation10 + $0x1090] sm:$0xff] }
 0x30a   : > { %9366 = vmatpush1.bf16.msra.mxu0 %v13581_v8  ;;  %9294 = vmatprep.mubr.bf16.mxu0 %v21253_v19  ;;  %v13679_v8 = vcombine.low %v2019_v7, %v2031_v62  ;;  %v2126_v7 = vld [vmem:[#allocation10 + $0x1270] sm:$0xff]  ;;  %v2115_v62 = vld [vmem:[#allocation10 + $0x1218] sm:$0xff] }
 0x30b   : > { %9633 = vmatprep.mubr.bf16.mxu1 %v21253_v19  ;;  %9367 = vmatprep.subr.bf16.mxu0 %v13606_v30  ;;  %v13704_v30 = vcombine.high %v2043_v24, %v2055_v21 }
 0x30c   : > { %9706 = vmatprep.subr.bf16.mxu1 %v13608_v16  ;;  %v2078_v16 = vld [vmem:[#allocation10 + $0x10f0] sm:$0xff] }
 0x30d   : > { %9707 = vmatpush1.bf16.msra.mxu1 %v13607_v50  ;;  %v13703_v50 = vcombine.low %v2043_v24, %v2055_v21  ;;  %v2138_v21 = vld [vmem:[#allocation10 + $0x12d0] sm:$0xff] }
 0x30e   : > { %9368 = vmatpush1.bf16.msra.mxu0 %v13605_v48  ;;  %9708 = vmatprep.subr.bf16.mxu1 %v13632_v52  ;;  %v13701_v48 = vcombine.low %v2042_v4, %v2054_v61  ;;  %v13726_v52 = vcombine.high %v2066_v59, %v2078_v16  ;;  %v21259_v4 = vld [vmem:[#allocation112_spill] sm:$0xff] }
 0x30f   : > { %9369 = vmatprep.subr.bf16.mxu0 %v13630_v22  ;;  %v21257_v22 = vld [vmem:[#allocation20_spill] sm:$0xff] }
 0x310   : > { %9634 = vmatmul.mubr.bf16.gmra.mrb[36].mxu1 %v21254_v13 }
 0x311   : > { %9295 = vmatmul.mubr.bf16.gmra.mrb[36].mxu0 %v21254_v13  ;;  %9709 = vmatpush1.bf16.msra.mxu1 %v13631_v51  ;;  %v13725_v51 = vcombine.low %v2066_v59, %v2078_v16  ;;  %v2151_v59 = vld [vmem:[#allocation10 + $0x1338] sm:$0xff]  ;;  %v2162_v16 = vld [vmem:[#allocation10 + $0x1390] sm:$0xff] }
 0x312   : > { %9370 = vmatpush1.bf16.msra.mxu0 %v13629_v25  ;;  %9304 = vmatprep.mubr.bf16.mxu0 %v21255_v49  ;;  %v2103_v25 = vld [vmem:[#allocation10 + $0x11b8] sm:$0xff] }
 0x313   : > { %9643 = vmatprep.mubr.bf16.mxu1 %v21255_v49  ;;  %9371 = vmatprep.subr.bf16.mxu0 %v13654_v2  ;;  %v2114_v2 = vld [vmem:[#allocation10 + $0x1210] sm:$0xff]  ;;  %v13752_v23 = vcombine.high %v2091_v27, %v2103_v25 }
 0x314   : > { %9710 = vmatprep.subr.bf16.mxu1 %v13656_v55  ;;  %v13750_v55 = vcombine.high %v2090_v18, %v2102_v29  ;;  %v13774_v61 = vcombine.high %v2114_v2, %v2126_v7 }
 0x315   : > { %9711 = vmatpush1.bf16.msra.mxu1 %v13655_v39  ;;  %v21258_v39 = vld [vmem:[#allocation30_spill] sm:$0xff] }
 0x316   : > { %9372 = vmatpush1.bf16.msra.mxu0 %v13653_v0  ;;  %9712 = vmatprep.subr.bf16.mxu1 %v13680_v9  ;;  %v2127_v0 = vld [vmem:[#allocation10 + $0x1278] sm:$0xff]  ;;  %v13751_v9 = vcombine.low %v2091_v27, %v2103_v25  ;;  %v21261_v27 = vld [vmem:[#allocation42_spill] sm:$0xff] }
 0x317   : > { %9373 = vmatprep.subr.bf16.mxu0 %v13678_v47  ;;  %v13749_v47 = vcombine.low %v2090_v18, %v2102_v29  ;;  %v13776_v24 = vcombine.high %v2115_v62, %v2127_v0 }
 0x318   : > { %9644 = vmatmul.mubr.bf16.gmra.mrb[40].mxu1 %v21256_v54 }
 0x319   : > { %9305 = vmatmul.mubr.bf16.gmra.mrb[40].mxu0 %v21256_v54  ;;  %9713 = vmatpush1.bf16.msra.mxu1 %v13679_v8  ;;  %v2139_v8 = vld [vmem:[#allocation10 + $0x12d8] sm:$0xff] }
 0x31a   : > { %9374 = vmatpush1.bf16.msra.mxu0 %v13677_v46  ;;  %9314 = vmatprep.mubr.bf16.mxu0 %v21257_v22  ;;  %v2150_v46 = vld [vmem:[#allocation10 + $0x1330] sm:$0xff]  ;;  %v13800_v3 = vcombine.high %v2139_v8, %v2151_v59  ;;  %v13799_v29 = vcombine.low %v2139_v8, %v2151_v59 }
 0x31b   : > { %9653 = vmatprep.mubr.bf16.mxu1 %v21257_v22  ;;  %9375 = vmatprep.subr.bf16.mxu0 %v13702_v34  ;;  %v13773_v34 = vcombine.low %v2114_v2, %v2126_v7  ;;  %v13798_v26 = vcombine.high %v2138_v21, %v2150_v46  ;;  %v13797_v18 = vcombine.low %v2138_v21, %v2150_v46  ;;  %v2198_v2 = vld [vmem:[#allocation10 + $0x14b0] sm:$0xff]  ;;  %v2223_v21 = vld [vmem:[#allocation10 + $0x1578] sm:$0xff] }
 0x31c   : > { %9714 = vmatprep.subr.bf16.mxu1 %v13704_v30  ;;  %v13775_v30 = vcombine.low %v2115_v62, %v2127_v0  ;;  %v2210_v0 = vld [vmem:[#allocation10 + $0x1510] sm:$0xff] }
 0x31d   : > { %9715 = vmatpush1.bf16.msra.mxu1 %v13703_v50  ;;  %v2163_v50 = vld [vmem:[#allocation10 + $0x1398] sm:$0xff]  ;;  %v21262_v46 = vld [vmem:[#allocation119_spill] sm:$0xff] }
 0x31e   : > { %9376 = vmatpush1.bf16.msra.mxu0 %v13701_v48  ;;  %9716 = vmatprep.subr.bf16.mxu1 %v13728_v41  ;;  %v2174_v48 = vld [vmem:[#allocation10 + $0x13f0] sm:$0xff]  ;;  %v21260_v41 = vld [vmem:[#allocation113_spill] sm:$0xff] }
 0x31f   : > { %9377 = vmatprep.subr.bf16.mxu0 %v13726_v52  ;;  %v2175_v52 = vld [vmem:[#allocation10 + $0x13f8] sm:$0xff]  ;;  %v13822_v25 = vcombine.high %v2162_v16, %v2174_v48  ;;  %v13821_v7 = vcombine.low %v2162_v16, %v2174_v48 }
 0x320   : > { %9654 = vmatmul.mubr.bf16.gmra.mrb[44].mxu1 %v21258_v39  ;;  %v13823_v62 = vcombine.low %v2163_v50, %v2175_v52  ;;  %v2235_v48 = vld [vmem:[#allocation10 + $0x15d8] sm:$0xff] }
 0x321   : > { %9315 = vmatmul.mubr.bf16.gmra.mrb[44].mxu0 %v21258_v39  ;;  %9717 = vmatpush1.bf16.msra.mxu1 %v13727_v42  ;;  %v2186_v42 = vld [vmem:[#allocation10 + $0x1450] sm:$0xff] }
 0x322   : > { %9378 = vmatpush1.bf16.msra.mxu0 %v13725_v51  ;;  %9324 = vmatprep.mubr.bf16.mxu0 %v21259_v4  ;;  %v13824_v51 = vcombine.high %v2163_v50, %v2175_v52  ;;  %v13845_v8 = vcombine.low %v2186_v42, %v2198_v2  ;;  %v2247_v50 = vld [vmem:[#allocation10 + $0x1638] sm:$0xff] }
 0x323   : > { %9663 = vmatprep.mubr.bf16.mxu1 %v21259_v4  ;;  %9379 = vmatprep.subr.bf16.mxu0 %v13750_v55  ;;  %v2187_v55 = vld [vmem:[#allocation10 + $0x1458] sm:$0xff] }
 0x324   : > { %9718 = vmatprep.subr.bf16.mxu1 %v13752_v23  ;;  %v2199_v23 = vld [vmem:[#allocation10 + $0x14b8] sm:$0xff] }
 0x325   : > { %9719 = vmatpush1.bf16.msra.mxu1 %v13751_v9  ;;  %v13848_v9 = vcombine.high %v2187_v55, %v2199_v23  ;;  %v13847_v59 = vcombine.low %v2187_v55, %v2199_v23  ;;  %v2271_v55 = vld [vmem:[#allocation10 + $0x16f8] sm:$0xff]  ;;  %v21264_v23 = vld [vmem:[#allocation47_spill] sm:$0xff] }
 0x326   : > { %9380 = vmatpush1.bf16.msra.mxu0 %v13749_v47  ;;  %9720 = vmatprep.subr.bf16.mxu1 %v13776_v24  ;;  %v13846_v47 = vcombine.high %v2186_v42, %v2198_v2  ;;  %v2211_v24 = vld [vmem:[#allocation10 + $0x1518] sm:$0xff]  ;;  %v2270_v42 = vld [vmem:[#allocation10 + $0x16f0] sm:$0xff] }
 0x327   : > { %9381 = vmatprep.subr.bf16.mxu0 %v13774_v61  ;;  %v2222_v61 = vld [vmem:[#allocation10 + $0x1570] sm:$0xff]  ;;  %v13872_v16 = vcombine.high %v2211_v24, %v2223_v21  ;;  %v2259_v2 = vld [vmem:[#allocation10 + $0x1698] sm:$0xff] }
 0x328   : > { %9664 = vmatmul.mubr.bf16.gmra.mrb[48].mxu1 %v21260_v41  ;;  %v13869_v52 = vcombine.low %v2210_v0, %v2222_v61 }
 0x329   : > { %9325 = vmatmul.mubr.bf16.gmra.mrb[48].mxu0 %v21260_v41  ;;  %9721 = vmatpush1.bf16.msra.mxu1 %v13775_v30  ;;  %v13870_v30 = vcombine.high %v2210_v0, %v2222_v61  ;;  %v2282_v61 = vld [vmem:[#allocation10 + $0x1750] sm:$0xff] }
 0x32a   : > { %9382 = vmatpush1.bf16.msra.mxu0 %v13773_v34  ;;  %9334 = vmatprep.mubr.bf16.mxu0 %v21261_v27  ;;  %v21263_v34 = vld [vmem:[#allocation48_spill] sm:$0xff] }
 0x32b   : > { %9673 = vmatprep.mubr.bf16.mxu1 %v21261_v27  ;;  %9383 = vmatprep.subr.bf16.mxu0 %v13798_v26  ;;  %v2234_v26 = vld [vmem:[#allocation10 + $0x15d0] sm:$0xff] }
 0x32c   : > { %9722 = vmatprep.subr.bf16.mxu1 %v13800_v3  ;;  %v2246_v3 = vld [vmem:[#allocation10 + $0x1630] sm:$0xff] }
 0x32d   : > { %9723 = vmatpush1.bf16.msra.mxu1 %v13799_v29  ;;  %v2258_v29 = vld [vmem:[#allocation10 + $0x1690] sm:$0xff] }
 0x32e   : > { %9384 = vmatpush1.bf16.msra.mxu0 %v13797_v18  ;;  %9724 = vmatprep.subr.bf16.mxu1 %v13824_v51  ;;  %v13871_v18 = vcombine.low %v2211_v24, %v2223_v21  ;;  %v13896_v51 = vcombine.high %v2235_v48, %v2247_v50  ;;  %v13918_v0 = vcombine.high %v2258_v29, %v2270_v42  ;;  %v2294_v24 = vld [vmem:[#allocation10 + $0x17b0] sm:$0xff]  ;;  %v2283_v21 = vld [vmem:[#allocation10 + $0x1758] sm:$0xff] }
 0x32f   : > { %9385 = vmatprep.subr.bf16.mxu0 %v13822_v25  ;;  %v13894_v25 = vcombine.high %v2234_v26, %v2246_v3 }
 0x330   : > { %9674 = vmatmul.mubr.bf16.gmra.mrb[52].mxu1 %v21262_v46 }
 0x331   : > { %9335 = vmatmul.mubr.bf16.gmra.mrb[52].mxu0 %v21262_v46  ;;  %9725 = vmatpush1.bf16.msra.mxu1 %v13823_v62  ;;  %v13895_v62 = vcombine.low %v2235_v48, %v2247_v50  ;;  %v2318_v48 = vld [vmem:[#allocation10 + $0x1870] sm:$0xff]  ;;  %v2307_v50 = vld [vmem:[#allocation10 + $0x1818] sm:$0xff] }
 0x332   : > { %9386 = vmatpush1.bf16.msra.mxu0 %v13821_v7  ;;  %9344 = vmatprep.mubr.bf16.mxu0 %v21263_v34  ;;  %v13893_v7 = vcombine.low %v2234_v26, %v2246_v3  ;;  %v13942_v26 = vcombine.high %v2282_v61, %v2294_v24 }
 0x333   : > { %9683 = vmatprep.mubr.bf16.mxu1 %v21263_v34  ;;  %9387 = vmatprep.subr.bf16.mxu0 %v13846_v47  ;;  %v21265_v47 = vld [vmem:[#allocation122_spill] sm:$0xff] }
 0x334   : > { %9726 = vmatprep.subr.bf16.mxu1 %v13848_v9  ;;  %v13920_v9 = vcombine.high %v2259_v2, %v2271_v55 }
 0x335   : > { %9727 = vmatpush1.bf16.msra.mxu1 %v13847_v59  ;;  %v13917_v59 = vcombine.low %v2258_v29, %v2270_v42 }
 0x336   : > { %9388 = vmatpush1.bf16.msra.mxu0 %v13845_v8  ;;  %9728 = vmatprep.subr.bf16.mxu1 %v13872_v16  ;;  %v2295_v8 = vld [vmem:[#allocation10 + $0x17b8] sm:$0xff]  ;;  %v2306_v16 = vld [vmem:[#allocation10 + $0x1810] sm:$0xff] }
 0x337   : > { %9389 = vmatprep.subr.bf16.mxu0 %v13870_v30  ;;  %v13919_v30 = vcombine.low %v2259_v2, %v2271_v55  ;;  %v13944_v3 = vcombine.high %v2283_v21, %v2295_v8  ;;  %v13966_v29 = vcombine.high %v2306_v16, %v2318_v48  ;;  %v2330_v2 = vld [vmem:[#allocation10 + $0x18d0] sm:$0xff] }
 0x338   : > { %9684 = vmatmul.mubr.bf16.gmra.mrb[56].mxu1 %v21264_v23  ;;  %v2342_v55 = vld [vmem:[#allocation10 + $0x1930] sm:$0xff] }
 0x339   : > { %9345 = vmatmul.mubr.bf16.gmra.mrb[56].mxu0 %v21264_v23  ;;  %9729 = vmatpush1.bf16.msra.mxu1 %v13871_v18  ;;  %v21266_v18 = vld [vmem:[#allocation123_spill] sm:$0xff] }
 0x33a   : > { %9390 = vmatpush1.bf16.msra.mxu0 %v13869_v52  ;;  %9354 = vmatprep.mubr.bf16.mxu0 %v21265_v47  ;;  %v2319_v52 = vld [vmem:[#allocation10 + $0x1878] sm:$0xff] }
 0x33b   : > { %9693 = vmatprep.mubr.bf16.mxu1 %v21265_v47  ;;  %9391 = vmatprep.subr.bf16.mxu0 %v13894_v25  ;;  %v13941_v25 = vcombine.low %v2282_v61, %v2294_v24  ;;  %v13968_v42 = vcombine.high %v2307_v50, %v2319_v52  ;;  %v2354_v61 = vld [vmem:[#allocation10 + $0x1990] sm:$0xff]  ;;  %v13990_v24 = vcombine.high %v2330_v2, %v2342_v55 }
 0x33c   : > { %9730 = vmatprep.subr.bf16.mxu1 %v13896_v51  ;;  %v13943_v51 = vcombine.low %v2283_v21, %v2295_v8  ;;  %v2366_v8 = vld [vmem:[#allocation10 + $0x19f0] sm:$0xff] }
 0x33d   : > { %9731 = vmatpush1.bf16.msra.mxu1 %v13895_v62  ;;  %v2331_v62 = vld [vmem:[#allocation10 + $0x18d8] sm:$0xff] }
 0x33e   : > { %9392 = vmatpush1.bf16.msra.mxu0 %v13893_v7  ;;  %9732 = vmatprep.subr.bf16.mxu1 %v13920_v9  ;;  %v21267_v7 = vld [vmem:[#allocation33_spill] sm:$0xff]  ;;  %v13965_v9 = vcombine.low %v2306_v16, %v2318_v48  ;;  %v14014_v16 = vcombine.high %v2354_v61, %v2366_v8 }
 0x33f   : > { %9393 = vmatprep.subr.bf16.mxu0 %v13918_v0  ;;  %v2343_v0 = vld [vmem:[#allocation10 + $0x1938] sm:$0xff] }
 0x340   : > { %9694 = vmatmul.mubr.bf16.gmra.mrb[60].mxu1 %v21266_v18  ;;  %v13992_v21 = vcombine.high %v2331_v62, %v2343_v0 }
 0x341   : > { %9355 = vmatmul.mubr.bf16.gmra.mrb[60].mxu0 %v21266_v18  ;;  %9733 = vmatpush1.bf16.msra.mxu1 %v13919_v30  ;;  %v13967_v18 = vcombine.low %v2307_v50, %v2319_v52  ;;  %v2367_v30 = vld [vmem:[#allocation10 + $0x19f8] sm:$0xff]  ;;  %v2378_v50 = vld [vmem:[#allocation10 + $0x1a50] sm:$0xff] }
 0x342   : > { %9394 = vmatpush1.bf16.msra.mxu0 %v13917_v59  ;;  %9397 = vmatprep.mubr.bf16.mxu0 %v21267_v7  ;;  %v2355_v59 = vld [vmem:[#allocation10 + $0x1998] sm:$0xff]  ;;  %v2390_v52 = vld [vmem:[#allocation10 + $0x1ab0] sm:$0xff] }
 0x343   : > { %9736 = vmatprep.mubr.bf16.mxu1 %v21267_v7  ;;  %9395 = vmatprep.subr.bf16.mxu0 %v13942_v26  ;;  %v13989_v26 = vcombine.low %v2330_v2, %v2342_v55  ;;  %v14016_v48 = vcombine.high %v2355_v59, %v2367_v30  ;;  %v14038_v2 = vcombine.high %v2378_v50, %v2390_v52 }
 0x344   : > { %9734 = vmatprep.subr.bf16.mxu1 %v13944_v3  ;;  %v13991_v3 = vcombine.low %v2331_v62, %v2343_v0  ;;  %v2414_v62 = vld [vmem:[#allocation10 + $0x1b70] sm:$0xff]  ;;  %v2403_v0 = vld [vmem:[#allocation10 + $0x1b18] sm:$0xff] }
 0x345   : > { %9735 = vmatpush1.bf16.msra.mxu1 %v13943_v51  ;;  %v2379_v51 = vld [vmem:[#allocation10 + $0x1a58] sm:$0xff] }
 0x346   : > { %9396 = vmatpush1.bf16.msra.mxu0 %v13941_v25  ;;  %9817 = vmatprep.subr.bf16.mxu1 %v13968_v42  ;;  %v21268_v25 = vld [vmem:[#allocation125_spill] sm:$0xff]  ;;  %v14013_v42 = vcombine.low %v2354_v61, %v2366_v8 }
 0x347   : > { %9478 = vmatprep.subr.bf16.mxu0 %v13966_v29  ;;  %v2391_v29 = vld [vmem:[#allocation10 + $0x1ab8] sm:$0xff] }
 0x348   : > { %9737 = vmatmul.mubr.bf16.vlgmr.msra.gmra.mrb[32].mxu1 %v17613_v17  ;;  %v14040_v55 = vcombine.high %v2379_v51, %v2391_v29 }
 0x349   : > { %9398 = vmatmul.mubr.bf16.vlgmr.msra.gmra.mrb[32].mxu0 %v17613_v17  ;;  %9818 = vmatpush1.bf16.msra.mxu1 %v13967_v18  ;;  %v14015_v17 = vcombine.low %v2355_v59, %v2367_v30  ;;  %v2402_v18 = vld [vmem:[#allocation10 + $0x1b10] sm:$0xff] }
 0x34a   : > { %9479 = vmatpush1.bf16.msra.mxu0 %v13965_v9  ;;  %9407 = vmatprep.mubr.bf16.mxu0 %v21268_v25  ;;  %v2415_v9 = vld [vmem:[#allocation10 + $0x1b78] sm:$0xff]  ;;  %v14062_v61 = vcombine.high %v2402_v18, %v2414_v62  ;;  %v2426_v59 = vld [vmem:[#allocation10 + $0x1bd0] sm:$0xff] }
 0x34b   : > { %9746 = vmatprep.mubr.bf16.mxu1 %v21268_v25  ;;  %9480 = vmatprep.subr.bf16.mxu0 %v13990_v24  ;;  %v21269_v25 = vld [vmem:[#allocation101_spill] sm:$0xff]  ;;  %v14037_v24 = vcombine.low %v2378_v50, %v2390_v52  ;;  %v14064_v8 = vcombine.high %v2403_v0, %v2415_v9  ;;  %v2438_v30 = vld [vmem:[#allocation10 + $0x1c30] sm:$0xff] }
 0x34c   : > { %9819 = vmatprep.subr.bf16.mxu1 %v13992_v21  ;;  %v14039_v21 = vcombine.low %v2379_v51, %v2391_v29  ;;  %v14086_v50 = vcombine.high %v2426_v59, %v2438_v30  ;;  %v2462_v51 = vld [vmem:[#allocation10 + $0x1cf0] sm:$0xff]  ;;  %v2451_v29 = vld [vmem:[#allocation10 + $0x1c98] sm:$0xff] }
 0x34d   : > { %9820 = vmatpush1.bf16.msra.mxu1 %v13991_v3  ;;  %v2427_v3 = vld [vmem:[#allocation10 + $0x1bd8] sm:$0xff] }
 0x34e   : > { %9481 = vmatpush1.bf16.msra.mxu0 %v13989_v26  ;;  %9821 = vmatprep.subr.bf16.mxu1 %v14016_v48  ;;  %v21270_v26 = vld [vmem:[#allocation128_spill] sm:$0xff]  ;;  %v14061_v48 = vcombine.low %v2402_v18, %v2414_v62 }
 0x34f   : > { %9482 = vmatprep.subr.bf16.mxu0 %v14014_v16  ;;  %v2439_v16 = vld [vmem:[#allocation10 + $0x1c38] sm:$0xff] }
 0x350   : > { %9747 = vmatmul.mubr.bf16.gmra.mrb[36].mxu1 %v21269_v25  ;;  %v14088_v52 = vcombine.high %v2427_v3, %v2439_v16 }
 0x351   : > { %9408 = vmatmul.mubr.bf16.gmra.mrb[36].mxu0 %v21269_v25  ;;  %9822 = vmatpush1.bf16.msra.mxu1 %v14015_v17  ;;  %v14063_v25 = vcombine.low %v2403_v0, %v2415_v9  ;;  %v2450_v17 = vld [vmem:[#allocation10 + $0x1c90] sm:$0xff] }
 0x352   : > { %9483 = vmatpush1.bf16.msra.mxu0 %v14013_v42  ;;  %9417 = vmatprep.mubr.bf16.mxu0 %v21270_v26  ;;  %v2463_v42 = vld [vmem:[#allocation10 + $0x1cf8] sm:$0xff]  ;;  %v14110_v18 = vcombine.high %v2450_v17, %v2462_v51  ;;  %v2474_v0 = vld [vmem:[#allocation10 + $0x1d50] sm:$0xff] }
 0x353   : > { %9756 = vmatprep.mubr.bf16.mxu1 %v21270_v26  ;;  %9484 = vmatprep.subr.bf16.mxu0 %v14038_v2  ;;  %v21271_v26 = vld [vmem:[#allocation107_spill] sm:$0xff]  ;;  %v14085_v2 = vcombine.low %v2426_v59, %v2438_v30  ;;  %v14112_v62 = vcombine.high %v2451_v29, %v2463_v42 }
 0x354   : > { %9823 = vmatprep.subr.bf16.mxu1 %v14040_v55  ;;  %v14087_v55 = vcombine.low %v2427_v3, %v2439_v16  ;;  %v2486_v9 = vld [vmem:[#allocation10 + $0x1db0] sm:$0xff]  ;;  %v2499_v16 = vld [vmem:[#allocation10 + $0x1e18] sm:$0xff] }
 0x355   : > { %9824 = vmatpush1.bf16.msra.mxu1 %v14039_v21  ;;  %v2475_v21 = vld [vmem:[#allocation10 + $0x1d58] sm:$0xff]  ;;  %v14134_v59 = vcombine.high %v2474_v0, %v2486_v9  ;;  %v2510_v3 = vld [vmem:[#allocation10 + $0x1e70] sm:$0xff] }
 0x356   : > { %9485 = vmatpush1.bf16.msra.mxu0 %v14037_v24  ;;  %9825 = vmatprep.subr.bf16.mxu1 %v14064_v8  ;;  %v21272_v24 = vld [vmem:[#allocation59_spill] sm:$0xff]  ;;  %v14109_v8 = vcombine.low %v2450_v17, %v2462_v51 }
 0x357   : > { %9486 = vmatprep.subr.bf16.mxu0 %v14062_v61  ;;  %v2487_v61 = vld [vmem:[#allocation10 + $0x1db8] sm:$0xff] }
 0x358   : > { %9757 = vmatmul.mubr.bf16.gmra.mrb[40].mxu1 %v21271_v26  ;;  %v14136_v30 = vcombine.high %v2475_v21, %v2487_v61 }
 0x359   : > { %9418 = vmatmul.mubr.bf16.gmra.mrb[40].mxu0 %v21271_v26  ;;  %9826 = vmatpush1.bf16.msra.mxu1 %v14063_v25  ;;  %v14111_v26 = vcombine.low %v2451_v29, %v2463_v42  ;;  %v2498_v25 = vld [vmem:[#allocation10 + $0x1e10] sm:$0xff] }
 0x35a   : > { %9487 = vmatpush1.bf16.msra.mxu0 %v14061_v48  ;;  %9427 = vmatprep.mubr.bf16.mxu0 %v21272_v24  ;;  %v2511_v48 = vld [vmem:[#allocation10 + $0x1e78] sm:$0xff]  ;;  %v14158_v17 = vcombine.high %v2498_v25, %v2510_v3  ;;  %v2522_v29 = vld [vmem:[#allocation10 + $0x1ed0] sm:$0xff] }
 0x35b   : > { %9766 = vmatprep.mubr.bf16.mxu1 %v21272_v24  ;;  %9488 = vmatprep.subr.bf16.mxu0 %v14086_v50  ;;  %v14133_v50 = vcombine.low %v2474_v0, %v2486_v9  ;;  %v14160_v51 = vcombine.high %v2499_v16, %v2511_v48  ;;  %v2534_v42 = vld [vmem:[#allocation10 + $0x1f30] sm:$0xff] }
 0x35c   : > { %9827 = vmatprep.subr.bf16.mxu1 %v14088_v52  ;;  %v14135_v52 = vcombine.low %v2475_v21, %v2487_v61  ;;  %v14182_v0 = vcombine.high %v2522_v29, %v2534_v42  ;;  %v2558_v21 = vld [vmem:[#allocation10 + $0x1ff0] sm:$0xff]  ;;  %v2547_v61 = vld [vmem:[#allocation10 + $0x1f98] sm:$0xff] }
 0x35d   : > { %9828 = vmatpush1.bf16.msra.mxu1 %v14087_v55  ;;  %v2535_v55 = vld [vmem:[#allocation10 + $0x1f38] sm:$0xff] }
 0x35e   : > { %9489 = vmatpush1.bf16.msra.mxu0 %v14085_v2  ;;  %9829 = vmatprep.subr.bf16.mxu1 %v14112_v62  ;;  %v2523_v2 = vld [vmem:[#allocation10 + $0x1ed8] sm:$0xff]  ;;  %v14159_v62 = vcombine.low %v2499_v16, %v2511_v48  ;;  %v2570_v16 = vld [vmem:[#allocation10 + $0x2050] sm:$0xff] }
 0x35f   : > { %9490 = vmatprep.subr.bf16.mxu0 %v14110_v18  ;;  %v14157_v18 = vcombine.low %v2498_v25, %v2510_v3  ;;  %v14184_v9 = vcombine.high %v2523_v2, %v2535_v55  ;;  %v2582_v48 = vld [vmem:[#allocation10 + $0x20b0] sm:$0xff] }
 0x360   : > { %9767 = vmatmul.mubr.bf16.gmra.mrb[44].mxu1 %v21215_v14 }
 0x361   : > { %9428 = vmatmul.mubr.bf16.gmra.mrb[44].mxu0 %v21215_v14  ;;  %9830 = vmatpush1.bf16.msra.mxu1 %v14111_v26  ;;  %v2546_v26 = vld [vmem:[#allocation10 + $0x1f90] sm:$0xff] }
 0x362   : > { %9491 = vmatpush1.bf16.msra.mxu0 %v14109_v8  ;;  %9437 = vmatprep.mubr.bf16.mxu0 %v18430_v44  ;;  %v2559_v8 = vld [vmem:[#allocation10 + $0x1ff8] sm:$0xff]  ;;  %v14206_v25 = vcombine.high %v2546_v26, %v2558_v21 }
 0x363   : > { %9776 = vmatprep.mubr.bf16.mxu1 %v18430_v44  ;;  %9492 = vmatprep.subr.bf16.mxu0 %v14134_v59  ;;  %v14181_v59 = vcombine.low %v2522_v29, %v2534_v42  ;;  %v14208_v3 = vcombine.high %v2547_v61, %v2559_v8  ;;  %v2594_v29 = vld [vmem:[#allocation10 + $0x2110] sm:$0xff]  ;;  %v14230_v42 = vcombine.high %v2570_v16, %v2582_v48 }
 0x364   : > { %9831 = vmatprep.subr.bf16.mxu1 %v14136_v30  ;;  %v14183_v30 = vcombine.low %v2523_v2, %v2535_v55  ;;  %v2606_v55 = vld [vmem:[#allocation10 + $0x2170] sm:$0xff] }
 0x365   : > { %9832 = vmatpush1.bf16.msra.mxu1 %v14135_v52  ;;  %v2583_v52 = vld [vmem:[#allocation10 + $0x20b8] sm:$0xff] }
 0x366   : > { %9493 = vmatpush1.bf16.msra.mxu0 %v14133_v50  ;;  %9833 = vmatprep.subr.bf16.mxu1 %v14160_v51  ;;  %v2571_v50 = vld [vmem:[#allocation10 + $0x2058] sm:$0xff]  ;;  %v14207_v51 = vcombine.low %v2547_v61, %v2559_v8  ;;  %v2618_v61 = vld [vmem:[#allocation10 + $0x21d0] sm:$0xff] }
 0x367   : > { %9494 = vmatprep.subr.bf16.mxu0 %v14158_v17  ;;  %v14205_v17 = vcombine.low %v2546_v26, %v2558_v21  ;;  %v14232_v2 = vcombine.high %v2571_v50, %v2583_v52  ;;  %v14254_v26 = vcombine.high %v2594_v29, %v2606_v55  ;;  %v2630_v8 = vld [vmem:[#allocation10 + $0x2230] sm:$0xff] }
 0x368   : > { %9777 = vmatmul.mubr.bf16.gmra.mrb[48].mxu1 %v21231_v15 }
 0x369   : > { %9438 = vmatmul.mubr.bf16.gmra.mrb[48].mxu0 %v21231_v15  ;;  %9834 = vmatpush1.bf16.msra.mxu1 %v14159_v62  ;;  %v2607_v62 = vld [vmem:[#allocation10 + $0x2178] sm:$0xff] }
 0x36a   : > { %9495 = vmatpush1.bf16.msra.mxu0 %v14157_v18  ;;  %9447 = vmatprep.mubr.bf16.mxu0 %v18519_v35  ;;  %v2595_v18 = vld [vmem:[#allocation10 + $0x2118] sm:$0xff] }
 0x36b   : > { %9786 = vmatprep.mubr.bf16.mxu1 %v18519_v35  ;;  %9496 = vmatprep.subr.bf16.mxu0 %v14182_v0  ;;  %v14229_v0 = vcombine.low %v2570_v16, %v2582_v48  ;;  %v14256_v21 = vcombine.high %v2595_v18, %v2607_v62  ;;  %v2642_v16 = vld [vmem:[#allocation10 + $0x2290] sm:$0xff]  ;;  %v14278_v48 = vcombine.high %v2618_v61, %v2630_v8 }
 0x36c   : > { %9835 = vmatprep.subr.bf16.mxu1 %v14184_v9  ;;  %v14231_v9 = vcombine.low %v2571_v50, %v2583_v52  ;;  %v2654_v52 = vld [vmem:[#allocation10 + $0x22f0] sm:$0xff] }
 0x36d   : > { %9836 = vmatpush1.bf16.msra.mxu1 %v14183_v30  ;;  %v2631_v30 = vld [vmem:[#allocation10 + $0x2238] sm:$0xff] }
 0x36e   : > { %9497 = vmatpush1.bf16.msra.mxu0 %v14181_v59  ;;  %9837 = vmatprep.subr.bf16.mxu1 %v14208_v3  ;;  %v2619_v59 = vld [vmem:[#allocation10 + $0x21d8] sm:$0xff]  ;;  %v14255_v3 = vcombine.low %v2595_v18, %v2607_v62  ;;  %v2666_v18 = vld [vmem:[#allocation10 + $0x2350] sm:$0xff] }
 0x36f   : > { %9498 = vmatprep.subr.bf16.mxu0 %v14206_v25  ;;  %v14253_v25 = vcombine.low %v2594_v29, %v2606_v55  ;;  %v14280_v50 = vcombine.high %v2619_v59, %v2631_v30  ;;  %v14302_v29 = vcombine.high %v2642_v16, %v2654_v52  ;;  %v2678_v62 = vld [vmem:[#allocation10 + $0x23b0] sm:$0xff] }
 0x370   : > { %9787 = vmatmul.mubr.bf16.gmra.mrb[52].mxu1 %v21246_v11 }
 0x371   : > { %9448 = vmatmul.mubr.bf16.gmra.mrb[52].mxu0 %v21246_v11  ;;  %9838 = vmatpush1.bf16.msra.mxu1 %v14207_v51  ;;  %v2655_v51 = vld [vmem:[#allocation10 + $0x22f8] sm:$0xff] }
 0x372   : > { %9499 = vmatpush1.bf16.msra.mxu0 %v14205_v17  ;;  %9457 = vmatprep.mubr.bf16.mxu0 %v18575_v43  ;;  %v2643_v17 = vld [vmem:[#allocation10 + $0x2298] sm:$0xff] }
 0x373   : > { %9796 = vmatprep.mubr.bf16.mxu1 %v18575_v43  ;;  %9500 = vmatprep.subr.bf16.mxu0 %v14230_v42  ;;  %v14277_v42 = vcombine.low %v2618_v61, %v2630_v8  ;;  %v14304_v55 = vcombine.high %v2643_v17, %v2655_v51  ;;  %v1540_v61 = vld [vmem:[#allocation10 + $0x20] sm:$0xff]  ;;  %v14326_v8 = vcombine.high %v2666_v18, %v2678_v62 }
 0x374   : > { %9839 = vmatprep.subr.bf16.mxu1 %v14232_v2  ;;  %v14279_v2 = vcombine.low %v2619_v59, %v2631_v30  ;;  %v1552_v30 = vld [vmem:[#allocation10 + $0x80] sm:$0xff] }
 0x375   : > { %9840 = vmatpush1.bf16.msra.mxu1 %v14231_v9  ;;  %v2679_v9 = vld [vmem:[#allocation10 + $0x23b8] sm:$0xff] }
 0x376   : > { %9501 = vmatpush1.bf16.msra.mxu0 %v14229_v0  ;;  %9841 = vmatprep.subr.bf16.mxu1 %v14256_v21  ;;  %v2667_v0 = vld [vmem:[#allocation10 + $0x2358] sm:$0xff]  ;;  %v14303_v21 = vcombine.low %v2643_v17, %v2655_v51  ;;  %v1564_v17 = vld [vmem:[#allocation10 + $0xe0] sm:$0xff] }
 0x377   : > { %9502 = vmatprep.subr.bf16.mxu0 %v14254_v26  ;;  %v14301_v26 = vcombine.low %v2642_v16, %v2654_v52  ;;  %v14328_v59 = vcombine.high %v2667_v0, %v2679_v9  ;;  %v13202_v16 = vcombine.high %v1540_v61, %v1552_v30  ;;  %v1576_v51 = vld [vmem:[#allocation10 + $0x140] sm:$0xff] }
 0x378   : > { %9797 = vmatmul.mubr.bf16.gmra.mrb[56].mxu1 %v18129_v40 }
 0x379   : > { %9458 = vmatmul.mubr.bf16.gmra.mrb[56].mxu0 %v18129_v40  ;;  %9842 = vmatpush1.bf16.msra.mxu1 %v14255_v3  ;;  %v1553_v3 = vld [vmem:[#allocation10 + $0x88] sm:$0xff] }
 0x37a   : > { %9503 = vmatpush1.bf16.msra.mxu0 %v14253_v25  ;;  %9467 = vmatprep.mubr.bf16.mxu0 %v18615_v33  ;;  %v1541_v25 = vld [vmem:[#allocation10 + $0x28] sm:$0xff] }
 0x37b   : > { %9806 = vmatprep.mubr.bf16.mxu1 %v18615_v33  ;;  %9504 = vmatprep.subr.bf16.mxu0 %v14278_v48  ;;  %v14325_v48 = vcombine.low %v2666_v18, %v2678_v62  ;;  %v13204_v52 = vcombine.high %v1541_v25, %v1553_v3  ;;  %v1588_v18 = vld [vmem:[#allocation10 + $0x1a0] sm:$0xff]  ;;  %v13226_v62 = vcombine.high %v1564_v17, %v1576_v51 }
 0x37c   : > { %9843 = vmatprep.subr.bf16.mxu1 %v14280_v50  ;;  %v14327_v50 = vcombine.low %v2667_v0, %v2679_v9  ;;  %v1600_v9 = vld [vmem:[#allocation10 + $0x200] sm:$0xff] }
 0x37d   : > { %9844 = vmatpush1.bf16.msra.mxu1 %v14279_v2  ;;  %v1577_v2 = vld [vmem:[#allocation10 + $0x148] sm:$0xff] }
 0x37e   : > { %9505 = vmatpush1.bf16.msra.mxu0 %v14277_v42  ;;  %9845 = vmatprep.subr.bf16.mxu1 %v14304_v55  ;;  %v1565_v42 = vld [vmem:[#allocation10 + $0xe8] sm:$0xff]  ;;  %v13203_v55 = vcombine.low %v1541_v25, %v1553_v3  ;;  %v1612_v25 = vld [vmem:[#allocation10 + $0x260] sm:$0xff] }
 0x37f   : > { %9506 = vmatprep.subr.bf16.mxu0 %v14302_v29  ;;  %v13201_v29 = vcombine.low %v1540_v61, %v1552_v30  ;;  %v13228_v0 = vcombine.high %v1565_v42, %v1577_v2  ;;  %v13250_v61 = vcombine.high %v1588_v18, %v1600_v9  ;;  %v1624_v3 = vld [vmem:[#allocation10 + $0x2c0] sm:$0xff] }
 0x380   : > { %9807 = vmatmul.mubr.bf16.gmra.mrb[60].mxu1 %v18186_v37 }
 0x381   : > { %9468 = vmatmul.mubr.bf16.gmra.mrb[60].mxu0 %v18186_v37  ;;  %9846 = vmatpush1.bf16.msra.mxu1 %v14303_v21  ;;  %v1601_v21 = vld [vmem:[#allocation10 + $0x208] sm:$0xff] }
 0x382   : > { %9507 = vmatpush1.bf16.msra.mxu0 %v14301_v26  ;;  %9510 = vmatprep.mubr.bf16.mxu0 %v18192_v53  ;;  %v1589_v26 = vld [vmem:[#allocation10 + $0x1a8] sm:$0xff] }
 0x383   : > { %9849 = vmatprep.mubr.bf16.mxu1 %v18192_v53  ;;  %9508 = vmatprep.subr.bf16.mxu0 %v14326_v8  ;;  %v13225_v8 = vcombine.low %v1564_v17, %v1576_v51  ;;  %v13252_v30 = vcombine.high %v1589_v26, %v1601_v21  ;;  %v1636_v17 = vld [vmem:[#allocation10 + $0x320] sm:$0xff]  ;;  %v13274_v51 = vcombine.high %v1612_v25, %v1624_v3 }
 0x384   : > { %9847 = vmatprep.subr.bf16.mxu1 %v14328_v59  ;;  %v13227_v59 = vcombine.low %v1565_v42, %v1577_v2  ;;  %v1648_v2 = vld [vmem:[#allocation10 + $0x380] sm:$0xff] }
 0x385   : > { %9848 = vmatpush1.bf16.msra.mxu1 %v14327_v50  ;;  %v1625_v50 = vld [vmem:[#allocation10 + $0x2c8] sm:$0xff] }
 0x386   : > { %9509 = vmatpush1.bf16.msra.mxu0 %v14325_v48  ;;  %10269 = vmatprep.subr.bf16.mxu1 %v13204_v52  ;;  %v1613_v48 = vld [vmem:[#allocation10 + $0x268] sm:$0xff]  ;;  %v13251_v52 = vcombine.low %v1589_v26, %v1601_v21  ;;  %v1660_v26 = vld [vmem:[#allocation10 + $0x3e0] sm:$0xff] }
 0x387   : > { %9930 = vmatprep.subr.bf16.mxu0 %v13202_v16  ;;  %v13249_v16 = vcombine.low %v1588_v18, %v1600_v9  ;;  %v13276_v42 = vcombine.high %v1613_v48, %v1625_v50  ;;  %v13298_v18 = vcombine.high %v1636_v17, %v1648_v2  ;;  %v1672_v21 = vld [vmem:[#allocation10 + $0x440] sm:$0xff] }
 0x388   : > { %9850 = vmatmul.mubr.bf16.vlgmr.msra.gmra.mrb[32].mxu1 %v18245_v56 }
 0x389   : > { %9511 = vmatmul.mubr.bf16.vlgmr.msra.gmra.mrb[32].mxu0 %v18245_v56  ;;  %10270 = vmatpush1.bf16.msra.mxu1 %v13203_v55  ;;  %v1649_v55 = vld [vmem:[#allocation10 + $0x388] sm:$0xff] }
 0x38a   : > { %9931 = vmatpush1.bf16.msra.mxu0 %v13201_v29  ;;  %9520 = vmatprep.mubr.bf16.mxu0 %v18259_v60  ;;  %v1637_v29 = vld [vmem:[#allocation10 + $0x328] sm:$0xff] }
 0x38b   : > { %9859 = vmatprep.mubr.bf16.mxu1 %v18259_v60  ;;  %9932 = vmatprep.subr.bf16.mxu0 %v13226_v62  ;;  %v13273_v62 = vcombine.low %v1612_v25, %v1624_v3  ;;  %v13300_v9 = vcombine.high %v1637_v29, %v1649_v55  ;;  %v18730_v25 = vld [vmem:[#allocation10 + $0x4a0] sm:$0xff]  ;;  %v13322_v3 = vcombine.high %v1660_v26, %v1672_v21 }
 0x38c   : > { %10271 = vmatprep.subr.bf16.mxu1 %v13228_v0  ;;  %v13275_v0 = vcombine.low %v1613_v48, %v1625_v50  ;;  %v1696_v50 = vld [vmem:[#allocation10 + $0x500] sm:$0xff] }
 0x38d   : > { %10272 = vmatpush1.bf16.msra.mxu1 %v13227_v59  ;;  %v1673_v59 = vld [vmem:[#allocation10 + $0x448] sm:$0xff] }
 0x38e   : > { %9933 = vmatpush1.bf16.msra.mxu0 %v13225_v8  ;;  %10273 = vmatprep.subr.bf16.mxu1 %v13252_v30  ;;  %v1661_v8 = vld [vmem:[#allocation10 + $0x3e8] sm:$0xff]  ;;  %v13299_v30 = vcombine.low %v1637_v29, %v1649_v55  ;;  %v21275_v29 = vld [vmem:[#allocation97_spill] sm:$0xff] }
 0x38f   : > { %9934 = vmatprep.subr.bf16.mxu0 %v13250_v61  ;;  %v13297_v61 = vcombine.low %v1636_v17, %v1648_v2  ;;  %v13324_v48 = vcombine.high %v1661_v8, %v1673_v59  ;;  %v21274_v17 = vld [vmem:[#allocation100_spill] sm:$0xff] }
 0x390   : > { %9860 = vmatmul.mubr.bf16.gmra.mrb[36].mxu1 %v18311_v12 }
 0x391   : > { %9521 = vmatmul.mubr.bf16.gmra.mrb[36].mxu0 %v18311_v12  ;;  %10274 = vmatpush1.bf16.msra.mxu1 %v13251_v52  ;;  %v1685_v52 = vld [vmem:[#allocation10 + $0x4a8] sm:$0xff] }
 0x392   : > { %9935 = vmatpush1.bf16.msra.mxu0 %v13249_v16  ;;  %9530 = vmatprep.mubr.bf16.mxu0 %v18319_v32  ;;  %v2688_v16 = vld [vmem:[#allocation11] sm:$0xff] }
 0x393   : > { %9869 = vmatprep.mubr.bf16.mxu1 %v18319_v32  ;;  %9936 = vmatprep.subr.bf16.mxu0 %v13274_v51  ;;  %v1697_v51 = vld [vmem:[#allocation10 + $0x508] sm:$0xff]  ;;  %v18739_v2 = vrot.slane %v2688_v16, %v21274_v17  ;;  %v18742_v55 = vrot.slane %v2688_v16, %v21275_v29  ;;  %v18750_v29 = vld [vmem:[#allocation10 + $0x560] sm:$0xff] }
 0x394   : > { %10275 = vmatprep.subr.bf16.mxu1 %v13276_v42  ;;  %v21273_v42 = vld [vmem:[#allocation98_spill] sm:$0xff]  ;;  %v13347_v56 = vcombine.low %v1685_v52, %v1697_v51 }
 0x395   : > { %10276 = vmatpush1.bf16.msra.mxu1 %v13275_v0  ;;  %v13321_v0 = vcombine.low %v1660_v26, %v1672_v21 }
 0x396   : > { %9937 = vmatpush1.bf16.msra.mxu0 %v13273_v62  ;;  %10277 = vmatprep.subr.bf16.mxu1 %v13300_v9  ;;  %v18736_v62 = vrot.slane %v2688_v16, %v21273_v42  ;;  %v21276_v9 = vld [vmem:[#allocation99_spill] sm:$0xff]  ;;  %v13346_v42 = vcombine.high %v18730_v25, %v1696_v50 }
 0x397   : > { %9938 = vmatprep.subr.bf16.mxu0 %v13298_v18  ;;  %v13323_v18 = vcombine.low %v1661_v8, %v1673_v59  ;;  %v18745_v32 = vrot.slane %v2688_v16, %v21276_v9  ;;  %v1709_v16 = vld [vmem:[#allocation10 + $0x568] sm:$0xff] }
 0x398   : > { %9870 = vmatmul.mubr.bf16.gmra.mrb[40].mxu1 %v18368_v31  ;;  %v1721_v9 = vld [vmem:[#allocation10 + $0x5c8] sm:$0xff] }
 0x399   : > { %9531 = vmatmul.mubr.bf16.gmra.mrb[40].mxu0 %v18368_v31  ;;  %10278 = vmatpush1.bf16.msra.mxu1 %v13299_v30  ;;  %v13348_v31 = vcombine.high %v1685_v52, %v1697_v51  ;;  %v1720_v30 = vld [vmem:[#allocation10 + $0x5c0] sm:$0xff] }
 0x39a   : > { %9939 = vmatpush1.bf16.msra.mxu0 %v13297_v61  ;;  %9540 = vmatprep.mubr.bf16.mxu0 %v18372_v63  ;;  %v13345_v61 = vcombine.low %v18730_v25, %v1696_v50  ;;  %v18765_v52 = vld [vmem:[#allocation10 + $0x620] sm:$0xff] }
 0x39b   : > { %9879 = vmatprep.mubr.bf16.mxu1 %v18372_v63  ;;  %v9173_v17 = vpop.f32.mrb[0].mxu1  ;;  %9940 = vmatprep.subr.bf16.mxu0 %v13322_v3 }
 0x39c   : > { %v8834_v12 = vpop.f32.mrb[0].mxu0  ;;  %10279 = vmatprep.subr.bf16.mxu1 %v13324_v48  ;;  %v14382_v21 = vadd.f32 %v9173_v17, %v18739_v2  ;;  %v9175_v59 = vpop.f32.mrb[1].mxu1 }
 0x39d   : > { %v14350_v26 = vadd.f32 %v8834_v12, %v18736_v62  ;;  %v8836_v8 = vpop.f32.mrb[1].mxu0  ;;  %v14383_v60 = vadd.f32 %v9175_v59, %v18745_v32  ;;  %10280 = vmatpush1.bf16.msra.mxu1 %v13323_v18  ;;  %v9177_v48 = vpop.f32.mrb[2].mxu1  ;;  %v13370_v18 = vcombine.high %v18750_v29, %v1720_v30  ;;  %v1745_v59 = vld [vmem:[#allocation10 + $0x688] sm:$0xff] }
 0x39e   : > { %v14351_v63 = vadd.f32 %v8836_v8, %v18742_v55  ;;  %9941 = vmatpush1.bf16.msra.mxu0 %v13321_v0  ;;  %v8838_v3 = vpop.f32.mrb[2].mxu0  ;;  %12644 = vst [vmem:[%s18759_s11 + $0x10] sm:$0xff] %v14382_v21  ;;  %v14384_v25 = vadd.f32 %v9177_v48, %v18739_v2  ;;  %v9179_v17 = vpop.f32.mrb[3].mxu1  ;;  %10281 = vmatprep.subr.bf16.mxu1 %v13348_v31  ;;  %v1744_v21 = vld [vmem:[#allocation10 + $0x680] sm:$0xff]  ;;  %v1733_v8 = vld [vmem:[#allocation10 + $0x628] sm:$0xff] }
 0x39f   : > { %12642 = vst [vmem:[%s18759_s11] sm:$0xff] %v14350_v26  ;;  %v14352_v12 = vadd.f32 %v8838_v3, %v18736_v62  ;;  %v8840_v50 = vpop.f32.mrb[3].mxu0  ;;  %9942 = vmatprep.subr.bf16.mxu0 %v13346_v42  ;;  %12645 = vst [vmem:[%s18759_s11 + $0x18] sm:$0xff] %v14383_v60  ;;  %v14385_v0 = vadd.f32 %v9179_v17, %v18745_v32  ;;  %v13372_v26 = vcombine.high %v1709_v16, %v1721_v9 }
 0x3a0   : > { %12643 = vst [vmem:[%s18759_s11 + $0x8] sm:$0xff] %v14351_v63  ;;  %v14353_v51 = vadd.f32 %v8840_v50, %v18742_v55  ;;  %12668 = vst [vmem:[%s18759_s11 + $0xd0] sm:$0xff] %v14384_v25  ;;  %9880 = vmatmul.mubr.bf16.gmra.mrb[44].mxu1 %v18434_v57  ;;  %v13369_v60 = vcombine.low %v18750_v29, %v1720_v30  ;;  %v13371_v31 = vcombine.low %v1709_v16, %v1721_v9  ;;  %v1768_v16 = vld [vmem:[#allocation10 + $0x740] sm:$0xff]  ;;  %v1757_v25 = vld [vmem:[#allocation10 + $0x6e8] sm:$0xff] }
 0x3a1   : > { %12666 = vst [vmem:[%s18759_s11 + $0xc0] sm:$0xff] %v14352_v12  ;;  %9541 = vmatmul.mubr.bf16.gmra.mrb[44].mxu0 %v18434_v57  ;;  %12669 = vst [vmem:[%s18759_s11 + $0xd8] sm:$0xff] %v14385_v0  ;;  %10282 = vmatpush1.bf16.msra.mxu1 %v13347_v56  ;;  %v13394_v63 = vcombine.high %v18765_v52, %v1744_v21  ;;  %v13396_v42 = vcombine.high %v1733_v8, %v1745_v59  ;;  %v18782_v12 = vld [vmem:[#allocation10 + $0x6e0] sm:$0xff]  ;;  %v1769_v50 = vld [vmem:[#allocation10 + $0x748] sm:$0xff] }
 0x3a2   : > { %12667 = vst [vmem:[%s18759_s11 + $0xc8] sm:$0xff] %v14353_v51  ;;  %9943 = vmatpush1.bf16.msra.mxu0 %v13345_v61  ;;  %9550 = vmatprep.mubr.bf16.mxu0 %v18436_v58  ;;  %v13393_v30 = vcombine.low %v18765_v52, %v1744_v21 }
 0x3a3   : > { %9889 = vmatprep.mubr.bf16.mxu1 %v18436_v58  ;;  %v9183_v48 = vpop.f32.mrb[4].mxu1  ;;  %9944 = vmatprep.subr.bf16.mxu0 %v13370_v18 }
 0x3a4   : > { %v8844_v3 = vpop.f32.mrb[4].mxu0  ;;  %10283 = vmatprep.subr.bf16.mxu1 %v13372_v26  ;;  %v14386_v56 = vadd.f32 %v9183_v48, %v18739_v2  ;;  %v9185_v9 = vpop.f32.mrb[5].mxu1  ;;  %v13395_v26 = vcombine.low %v1733_v8, %v1745_v59 }
 0x3a5   : > { %v14354_v61 = vadd.f32 %v8844_v3, %v18736_v62  ;;  %v8846_v29 = vpop.f32.mrb[5].mxu0  ;;  %v14387_v51 = vadd.f32 %v9185_v9, %v18745_v32  ;;  %10284 = vmatpush1.bf16.msra.mxu1 %v13371_v31  ;;  %v9187_v18 = vpop.f32.mrb[6].mxu1  ;;  %v13420_v31 = vcombine.high %v1757_v25, %v1769_v50  ;;  %v1793_v9 = vld [vmem:[#allocation10 + $0x808] sm:$0xff] }
 0x3a6   : > { %v14355_v17 = vadd.f32 %v8846_v29, %v18742_v55  ;;  %9945 = vmatpush1.bf16.msra.mxu0 %v13369_v60  ;;  %v8848_v0 = vpop.f32.mrb[6].mxu0  ;;  %12692 = vst [vmem:[%s18759_s11 + $0x190] sm:$0xff] %v14386_v56  ;;  %v14388_v52 = vadd.f32 %v9187_v18, %v18739_v2  ;;  %v9189_v48 = vpop.f32.mrb[7].mxu1  ;;  %10285 = vmatprep.subr.bf16.mxu1 %v13396_v42  ;;  %v18793_v29 = vld [vmem:[#allocation10 + $0x7a0] sm:$0xff]  ;;  %v1781_v56 = vld [vmem:[#allocation10 + $0x7a8] sm:$0xff] }
 0x3a7   : > { %12690 = vst [vmem:[%s18759_s11 + $0x180] sm:$0xff] %v14354_v61  ;;  %v14356_v3 = vadd.f32 %v8848_v0, %v18736_v62  ;;  %v8850_v21 = vpop.f32.mrb[7].mxu0  ;;  %9946 = vmatprep.subr.bf16.mxu0 %v13394_v63  ;;  %12693 = vst [vmem:[%s18759_s11 + $0x198] sm:$0xff] %v14387_v51  ;;  %v14389_v59 = vadd.f32 %v9189_v48, %v18745_v32  ;;  %v13418_v60 = vcombine.high %v18782_v12, %v1768_v16  ;;  %v1792_v61 = vld [vmem:[#allocation10 + $0x800] sm:$0xff] }
 0x3a8   : > { %12691 = vst [vmem:[%s18759_s11 + $0x188] sm:$0xff] %v14355_v17  ;;  %v14357_v8 = vadd.f32 %v8850_v21, %v18742_v55  ;;  %12716 = vst [vmem:[%s18759_s11 + $0x250] sm:$0xff] %v14388_v52  ;;  %9890 = vmatmul.mubr.bf16.gmra.mrb[48].mxu1 %v18492_v45  ;;  %v13417_v63 = vcombine.low %v18782_v12, %v1768_v16  ;;  %v13419_v42 = vcombine.low %v1757_v25, %v1769_v50  ;;  %v1805_v52 = vld [vmem:[#allocation10 + $0x868] sm:$0xff] }
 0x3a9   : > { %12714 = vst [vmem:[%s18759_s11 + $0x240] sm:$0xff] %v14356_v3  ;;  %9551 = vmatmul.mubr.bf16.gmra.mrb[48].mxu0 %v18492_v45  ;;  %12717 = vst [vmem:[%s18759_s11 + $0x258] sm:$0xff] %v14389_v59  ;;  %10286 = vmatpush1.bf16.msra.mxu1 %v13395_v26  ;;  %v13442_v17 = vcombine.high %v18793_v29, %v1792_v61  ;;  %v13444_v51 = vcombine.high %v1781_v56, %v1793_v9  ;;  %v18810_v3 = vld [vmem:[#allocation10 + $0x860] sm:$0xff]  ;;  %v1817_v21 = vld [vmem:[#allocation10 + $0x8c8] sm:$0xff] }
 0x3aa   : > { %12715 = vst [vmem:[%s18759_s11 + $0x248] sm:$0xff] %v14357_v8  ;;  %9947 = vmatpush1.bf16.msra.mxu0 %v13393_v30  ;;  %9560 = vmatprep.mubr.bf16.mxu0 %v18502_v36  ;;  %v13441_v50 = vcombine.low %v18793_v29, %v1792_v61  ;;  %v1816_v26 = vld [vmem:[#allocation10 + $0x8c0] sm:$0xff] }
 0x3ab   : > { %9899 = vmatprep.mubr.bf16.mxu1 %v18502_v36  ;;  %v9193_v18 = vpop.f32.mrb[8].mxu1  ;;  %9948 = vmatprep.subr.bf16.mxu0 %v13418_v60 }
 0x3ac   : > { %v8854_v0 = vpop.f32.mrb[8].mxu0  ;;  %10287 = vmatprep.subr.bf16.mxu1 %v13420_v31  ;;  %v14390_v12 = vadd.f32 %v9193_v18, %v18739_v2  ;;  %v9195_v25 = vpop.f32.mrb[9].mxu1  ;;  %v13443_v31 = vcombine.low %v1781_v56, %v1793_v9 }
 0x3ad   : > { %v14358_v30 = vadd.f32 %v8854_v0, %v18736_v62  ;;  %v8856_v16 = vpop.f32.mrb[9].mxu0  ;;  %v14391_v8 = vadd.f32 %v9195_v25, %v18745_v32  ;;  %10288 = vmatpush1.bf16.msra.mxu1 %v13419_v42  ;;  %v9197_v60 = vpop.f32.mrb[10].mxu1  ;;  %v13468_v42 = vcombine.high %v1805_v52, %v1817_v21  ;;  %v1841_v25 = vld [vmem:[#allocation10 + $0x988] sm:$0xff] }
 0x3ae   : > { %v14359_v48 = vadd.f32 %v8856_v16, %v18742_v55  ;;  %9949 = vmatpush1.bf16.msra.mxu0 %v13417_v63  ;;  %v8858_v59 = vpop.f32.mrb[10].mxu0  ;;  %12740 = vst [vmem:[%s18759_s11 + $0x310] sm:$0xff] %v14390_v12  ;;  %v14392_v29 = vadd.f32 %v9197_v60, %v18739_v2  ;;  %v9199_v18 = vpop.f32.mrb[11].mxu1  ;;  %10289 = vmatprep.subr.bf16.mxu1 %v13444_v51  ;;  %v18821_v16 = vld [vmem:[#allocation10 + $0x920] sm:$0xff]  ;;  %v1829_v12 = vld [vmem:[#allocation10 + $0x928] sm:$0xff] }
 0x3af   : > { %12738 = vst [vmem:[%s18759_s11 + $0x300] sm:$0xff] %v14358_v30  ;;  %v14360_v0 = vadd.f32 %v8858_v59, %v18736_v62  ;;  %v8860_v61 = vpop.f32.mrb[11].mxu0  ;;  %9950 = vmatprep.subr.bf16.mxu0 %v13442_v17  ;;  %12741 = vst [vmem:[%s18759_s11 + $0x318] sm:$0xff] %v14391_v8  ;;  %v14393_v9 = vadd.f32 %v9199_v18, %v18745_v32  ;;  %v13466_v63 = vcombine.high %v18810_v3, %v1816_v26  ;;  %v1840_v30 = vld [vmem:[#allocation10 + $0x980] sm:$0xff] }
 0x3b0   : > { %12739 = vst [vmem:[%s18759_s11 + $0x308] sm:$0xff] %v14359_v48  ;;  %v14361_v56 = vadd.f32 %v8860_v61, %v18742_v55  ;;  %12764 = vst [vmem:[%s18759_s11 + $0x3d0] sm:$0xff] %v14392_v29  ;;  %9900 = vmatmul.mubr.bf16.gmra.mrb[52].mxu1 %v18550_v38  ;;  %v13465_v17 = vcombine.low %v18810_v3, %v1816_v26  ;;  %v13467_v51 = vcombine.low %v1805_v52, %v1817_v21  ;;  %v1853_v29 = vld [vmem:[#allocation10 + $0x9e8] sm:$0xff] }
 0x3b1   : > { %12762 = vst [vmem:[%s18759_s11 + $0x3c0] sm:$0xff] %v14360_v0  ;;  %9561 = vmatmul.mubr.bf16.gmra.mrb[52].mxu0 %v18550_v38  ;;  %12765 = vst [vmem:[%s18759_s11 + $0x3d8] sm:$0xff] %v14393_v9  ;;  %10290 = vmatpush1.bf16.msra.mxu1 %v13443_v31  ;;  %v13490_v48 = vcombine.high %v18821_v16, %v1840_v30  ;;  %v13492_v8 = vcombine.high %v1829_v12, %v1841_v25  ;;  %v18838_v0 = vld [vmem:[#allocation10 + $0x9e0] sm:$0xff]  ;;  %v1865_v61 = vld [vmem:[#allocation10 + $0xa48] sm:$0xff] }
 0x3b2   : > { %12763 = vst [vmem:[%s18759_s11 + $0x3c8] sm:$0xff] %v14361_v56  ;;  %9951 = vmatpush1.bf16.msra.mxu0 %v13441_v50  ;;  %9570 = vmatprep.mubr.bf16.mxu0 %v18562_v6  ;;  %v13489_v21 = vcombine.low %v18821_v16, %v1840_v30  ;;  %v1864_v31 = vld [vmem:[#allocation10 + $0xa40] sm:$0xff] }
 0x3b3   : > { %9909 = vmatprep.mubr.bf16.mxu1 %v18562_v6  ;;  %v9203_v60 = vpop.f32.mrb[12].mxu1  ;;  %9952 = vmatprep.subr.bf16.mxu0 %v13466_v63 }
 0x3b4   : > { %v8864_v59 = vpop.f32.mrb[12].mxu0  ;;  %10291 = vmatprep.subr.bf16.mxu1 %v13468_v42  ;;  %v14394_v3 = vadd.f32 %v9203_v60, %v18739_v2  ;;  %v9205_v52 = vpop.f32.mrb[13].mxu1  ;;  %v13491_v42 = vcombine.low %v1829_v12, %v1841_v25 }
 0x3b5   : > { %v14362_v50 = vadd.f32 %v8864_v59, %v18736_v62  ;;  %v8866_v26 = vpop.f32.mrb[13].mxu0  ;;  %v14395_v56 = vadd.f32 %v9205_v52, %v18745_v32  ;;  %10292 = vmatpush1.bf16.msra.mxu1 %v13467_v51  ;;  %v9207_v63 = vpop.f32.mrb[14].mxu1  ;;  %v13516_v51 = vcombine.high %v1853_v29, %v1865_v61  ;;  %v1889_v52 = vld [vmem:[#allocation10 + $0xb08] sm:$0xff] }
 0x3b6   : > { %v14363_v18 = vadd.f32 %v8866_v26, %v18742_v55  ;;  %9953 = vmatpush1.bf16.msra.mxu0 %v13465_v17  ;;  %v8868_v9 = vpop.f32.mrb[14].mxu0  ;;  %12788 = vst [vmem:[%s18759_s11 + $0x490] sm:$0xff] %v14394_v3  ;;  %v14396_v16 = vadd.f32 %v9207_v63, %v18739_v2  ;;  %v9209_v60 = vpop.f32.mrb[15].mxu1  ;;  %10293 = vmatprep.subr.bf16.mxu1 %v13492_v8  ;;  %v18849_v26 = vld [vmem:[#allocation10 + $0xaa0] sm:$0xff]  ;;  %v1877_v3 = vld [vmem:[#allocation10 + $0xaa8] sm:$0xff] }
 0x3b7   : > { %12786 = vst [vmem:[%s18759_s11 + $0x480] sm:$0xff] %v14362_v50  ;;  %v14364_v59 = vadd.f32 %v8868_v9, %v18736_v62  ;;  %v8870_v30 = vpop.f32.mrb[15].mxu0  ;;  %9954 = vmatprep.subr.bf16.mxu0 %v13490_v48  ;;  %12789 = vst [vmem:[%s18759_s11 + $0x498] sm:$0xff] %v14395_v56  ;;  %v14397_v25 = vadd.f32 %v9209_v60, %v18745_v32  ;;  %v13514_v17 = vcombine.high %v18838_v0, %v1864_v31  ;;  %v1888_v50 = vld [vmem:[#allocation10 + $0xb00] sm:$0xff] }
 0x3b8   : > { %12787 = vst [vmem:[%s18759_s11 + $0x488] sm:$0xff] %v14363_v18  ;;  %v14365_v12 = vadd.f32 %v8870_v30, %v18742_v55  ;;  %12812 = vst [vmem:[%s18759_s11 + $0x550] sm:$0xff] %v14396_v16  ;;  %9910 = vmatmul.mubr.bf16.gmra.mrb[56].mxu1 %v18597_v1  ;;  %v13513_v48 = vcombine.low %v18838_v0, %v1864_v31  ;;  %v13515_v8 = vcombine.low %v1853_v29, %v1865_v61  ;;  %v1901_v16 = vld [vmem:[#allocation10 + $0xb68] sm:$0xff] }
 0x3b9   : > { %12810 = vst [vmem:[%s18759_s11 + $0x540] sm:$0xff] %v14364_v59  ;;  %9571 = vmatmul.mubr.bf16.gmra.mrb[56].mxu0 %v18597_v1  ;;  %12813 = vst [vmem:[%s18759_s11 + $0x558] sm:$0xff] %v14397_v25  ;;  %10294 = vmatpush1.bf16.msra.mxu1 %v13491_v42  ;;  %v13538_v18 = vcombine.high %v18849_v26, %v1888_v50  ;;  %v13540_v56 = vcombine.high %v1877_v3, %v1889_v52  ;;  %v18866_v59 = vld [vmem:[#allocation10 + $0xb60] sm:$0xff]  ;;  %v1913_v30 = vld [vmem:[#allocation10 + $0xbc8] sm:$0xff] }
 0x3ba   : > { %12811 = vst [vmem:[%s18759_s11 + $0x548] sm:$0xff] %v14365_v12  ;;  %9955 = vmatpush1.bf16.msra.mxu0 %v13489_v21  ;;  %9580 = vmatprep.mubr.bf16.mxu0 %v18599_v5  ;;  %v13537_v61 = vcombine.low %v18849_v26, %v1888_v50  ;;  %v1912_v42 = vld [vmem:[#allocation10 + $0xbc0] sm:$0xff] }
 0x3bb   : > { %9919 = vmatprep.mubr.bf16.mxu1 %v18599_v5  ;;  %v9213_v63 = vpop.f32.mrb[16].mxu1  ;;  %9956 = vmatprep.subr.bf16.mxu0 %v13514_v17 }
 0x3bc   : > { %v8874_v9 = vpop.f32.mrb[16].mxu0  ;;  %10295 = vmatprep.subr.bf16.mxu1 %v13516_v51  ;;  %v14398_v0 = vadd.f32 %v9213_v63, %v18739_v2  ;;  %v9215_v29 = vpop.f32.mrb[17].mxu1  ;;  %v13539_v51 = vcombine.low %v1877_v3, %v1889_v52 }
 0x3bd   : > { %v14366_v21 = vadd.f32 %v8874_v9, %v18736_v62  ;;  %v8876_v31 = vpop.f32.mrb[17].mxu0  ;;  %v14399_v12 = vadd.f32 %v9215_v29, %v18745_v32  ;;  %10296 = vmatpush1.bf16.msra.mxu1 %v13515_v8  ;;  %v9217_v17 = vpop.f32.mrb[18].mxu1  ;;  %v13564_v8 = vcombine.high %v1901_v16, %v1913_v30  ;;  %v1937_v29 = vld [vmem:[#allocation10 + $0xc88] sm:$0xff] }
 0x3be   : > { %v14367_v60 = vadd.f32 %v8876_v31, %v18742_v55  ;;  %9957 = vmatpush1.bf16.msra.mxu0 %v13513_v48  ;;  %v8878_v25 = vpop.f32.mrb[18].mxu0  ;;  %12836 = vst [vmem:[%s18759_s11 + $0x610] sm:$0xff] %v14398_v0  ;;  %v14400_v26 = vadd.f32 %v9217_v17, %v18739_v2  ;;  %v9219_v63 = vpop.f32.mrb[19].mxu1  ;;  %10297 = vmatprep.subr.bf16.mxu1 %v13540_v56  ;;  %v18877_v31 = vld [vmem:[#allocation10 + $0xc20] sm:$0xff]  ;;  %v1925_v0 = vld [vmem:[#allocation10 + $0xc28] sm:$0xff] }
 0x3bf   : > { %12834 = vst [vmem:[%s18759_s11 + $0x600] sm:$0xff] %v14366_v21  ;;  %v14368_v9 = vadd.f32 %v8878_v25, %v18736_v62  ;;  %v8880_v50 = vpop.f32.mrb[19].mxu0  ;;  %9958 = vmatprep.subr.bf16.mxu0 %v13538_v18  ;;  %12837 = vst [vmem:[%s18759_s11 + $0x618] sm:$0xff] %v14399_v12  ;;  %v14401_v52 = vadd.f32 %v9219_v63, %v18745_v32  ;;  %v13562_v48 = vcombine.high %v18866_v59, %v1912_v42  ;;  %v1936_v21 = vld [vmem:[#allocation10 + $0xc80] sm:$0xff] }
 0x3c0   : > { %12835 = vst [vmem:[%s18759_s11 + $0x608] sm:$0xff] %v14367_v60  ;;  %v14369_v3 = vadd.f32 %v8880_v50, %v18742_v55  ;;  %12860 = vst [vmem:[%s18759_s11 + $0x6d0] sm:$0xff] %v14400_v26  ;;  %9920 = vmatmul.mubr.bf16.gmra.mrb[60].mxu1 %v18620_v28  ;;  %v13561_v18 = vcombine.low %v18866_v59, %v1912_v42  ;;  %v13563_v56 = vcombine.low %v1901_v16, %v1913_v30  ;;  %v1949_v26 = vld [vmem:[#allocation10 + $0xce8] sm:$0xff] }
 0x3c1   : > { %12858 = vst [vmem:[%s18759_s11 + $0x6c0] sm:$0xff] %v14368_v9  ;;  %9581 = vmatmul.mubr.bf16.gmra.mrb[60].mxu0 %v18620_v28  ;;  %12861 = vst [vmem:[%s18759_s11 + $0x6d8] sm:$0xff] %v14401_v52  ;;  %10298 = vmatpush1.bf16.msra.mxu1 %v13539_v51  ;;  %v13586_v60 = vcombine.high %v18877_v31, %v1936_v21  ;;  %v13588_v12 = vcombine.high %v1925_v0, %v1937_v29  ;;  %v18894_v9 = vld [vmem:[#allocation10 + $0xce0] sm:$0xff]  ;;  %v1961_v50 = vld [vmem:[#allocation10 + $0xd48] sm:$0xff] }
 0x3c2   : > { %12859 = vst [vmem:[%s18759_s11 + $0x6c8] sm:$0xff] %v14369_v3  ;;  %9959 = vmatpush1.bf16.msra.mxu0 %v13537_v61  ;;  %9962 = vmatprep.mubr.bf16.mxu0 %v21251_v10  ;;  %v13585_v30 = vcombine.low %v18877_v31, %v1936_v21  ;;  %v1960_v51 = vld [vmem:[#allocation10 + $0xd40] sm:$0xff] }
 0x3c3   : > { %10301 = vmatprep.mubr.bf16.mxu1 %v21251_v10  ;;  %v9223_v17 = vpop.f32.mrb[20].mxu1  ;;  %9960 = vmatprep.subr.bf16.mxu0 %v13562_v48 }
 0x3c4   : > { %v8884_v25 = vpop.f32.mrb[20].mxu0  ;;  %10299 = vmatprep.subr.bf16.mxu1 %v13564_v8  ;;  %v14402_v59 = vadd.f32 %v9223_v17, %v18739_v2  ;;  %v9225_v16 = vpop.f32.mrb[21].mxu1  ;;  %v13587_v8 = vcombine.low %v1925_v0, %v1937_v29 }
 0x3c5   : > { %v14370_v61 = vadd.f32 %v8884_v25, %v18736_v62  ;;  %v8886_v42 = vpop.f32.mrb[21].mxu0  ;;  %v14403_v3 = vadd.f32 %v9225_v16, %v18745_v32  ;;  %10300 = vmatpush1.bf16.msra.mxu1 %v13563_v56  ;;  %v9227_v48 = vpop.f32.mrb[22].mxu1  ;;  %v13612_v56 = vcombine.high %v1949_v26, %v1961_v50  ;;  %v1985_v16 = vld [vmem:[#allocation10 + $0xe08] sm:$0xff] }
 0x3c6   : > { %v14371_v63 = vadd.f32 %v8886_v42, %v18742_v55  ;;  %9961 = vmatpush1.bf16.msra.mxu0 %v13561_v18  ;;  %v8888_v52 = vpop.f32.mrb[22].mxu0  ;;  %12884 = vst [vmem:[%s18759_s11 + $0x790] sm:$0xff] %v14402_v59  ;;  %v14404_v31 = vadd.f32 %v9227_v48, %v18739_v2  ;;  %v9229_v17 = vpop.f32.mrb[23].mxu1  ;;  %10382 = vmatprep.subr.bf16.mxu1 %v13588_v12  ;;  %v18905_v42 = vld [vmem:[#allocation10 + $0xda0] sm:$0xff]  ;;  %v1973_v59 = vld [vmem:[#allocation10 + $0xda8] sm:$0xff] }
 0x3c7   : > { %12882 = vst [vmem:[%s18759_s11 + $0x780] sm:$0xff] %v14370_v61  ;;  %v14372_v25 = vadd.f32 %v8888_v52, %v18736_v62  ;;  %v8890_v21 = vpop.f32.mrb[23].mxu0  ;;  %10043 = vmatprep.subr.bf16.mxu0 %v13586_v60  ;;  %12885 = vst [vmem:[%s18759_s11 + $0x798] sm:$0xff] %v14403_v3  ;;  %v14405_v29 = vadd.f32 %v9229_v17, %v18745_v32  ;;  %v13610_v18 = vcombine.high %v18894_v9, %v1960_v51  ;;  %v1984_v61 = vld [vmem:[#allocation10 + $0xe00] sm:$0xff] }
 0x3c8   : > { %12883 = vst [vmem:[%s18759_s11 + $0x788] sm:$0xff] %v14371_v63  ;;  %v14373_v0 = vadd.f32 %v8890_v21, %v18742_v55  ;;  %12908 = vst [vmem:[%s18759_s11 + $0x850] sm:$0xff] %v14404_v31  ;;  %10302 = vmatmul.mubr.bf16.vlgmr.msra.gmra.mrb[64].mxu1 %v21252_v20  ;;  %v13609_v60 = vcombine.low %v18894_v9, %v1960_v51  ;;  %v13611_v12 = vcombine.low %v1949_v26, %v1961_v50  ;;  %v1997_v31 = vld [vmem:[#allocation10 + $0xe68] sm:$0xff] }
 0x3c9   : > { %12906 = vst [vmem:[%s18759_s11 + $0x840] sm:$0xff] %v14372_v25  ;;  %9963 = vmatmul.mubr.bf16.vlgmr.msra.gmra.mrb[64].mxu0 %v21252_v20  ;;  %12909 = vst [vmem:[%s18759_s11 + $0x858] sm:$0xff] %v14405_v29  ;;  %10383 = vmatpush1.bf16.msra.mxu1 %v13587_v8  ;;  %v13634_v63 = vcombine.high %v18905_v42, %v1984_v61  ;;  %v13636_v3 = vcombine.high %v1973_v59, %v1985_v16  ;;  %v18922_v25 = vld [vmem:[#allocation10 + $0xe60] sm:$0xff]  ;;  %v2009_v21 = vld [vmem:[#allocation10 + $0xec8] sm:$0xff] }
 0x3ca   : > { %12907 = vst [vmem:[%s18759_s11 + $0x848] sm:$0xff] %v14373_v0  ;;  %10044 = vmatpush1.bf16.msra.mxu0 %v13585_v30  ;;  %9972 = vmatprep.mubr.bf16.mxu0 %v21253_v19  ;;  %v13633_v50 = vcombine.low %v18905_v42, %v1984_v61  ;;  %v2008_v8 = vld [vmem:[#allocation10 + $0xec0] sm:$0xff] }
 0x3cb   : > { %10311 = vmatprep.mubr.bf16.mxu1 %v21253_v19  ;;  %v9233_v48 = vpop.f32.mrb[24].mxu1  ;;  %10045 = vmatprep.subr.bf16.mxu0 %v13610_v18 }
 0x3cc   : > { %v8894_v52 = vpop.f32.mrb[24].mxu0  ;;  %10384 = vmatprep.subr.bf16.mxu1 %v13612_v56  ;;  %v14406_v9 = vadd.f32 %v9233_v48, %v18739_v2  ;;  %v9235_v26 = vpop.f32.mrb[25].mxu1  ;;  %v13635_v56 = vcombine.low %v1973_v59, %v1985_v16 }
 0x3cd   : > { %v14374_v30 = vadd.f32 %v8894_v52, %v18736_v62  ;;  %v8896_v51 = vpop.f32.mrb[25].mxu0  ;;  %v14407_v0 = vadd.f32 %v9235_v26, %v18745_v32  ;;  %10385 = vmatpush1.bf16.msra.mxu1 %v13611_v12  ;;  %v9237_v18 = vpop.f32.mrb[26].mxu1  ;;  %v13660_v12 = vcombine.high %v1997_v31, %v2009_v21  ;;  %v2033_v26 = vld [vmem:[#allocation10 + $0xf88] sm:$0xff] }
 0x3ce   : > { %v14375_v17 = vadd.f32 %v8896_v51, %v18742_v55  ;;  %10046 = vmatpush1.bf16.msra.mxu0 %v13609_v60  ;;  %v8898_v29 = vpop.f32.mrb[26].mxu0  ;;  %12932 = vst [vmem:[%s18759_s11 + $0x910] sm:$0xff] %v14406_v9  ;;  %v14408_v42 = vadd.f32 %v9237_v18, %v18739_v2  ;;  %v9239_v48 = vpop.f32.mrb[27].mxu1  ;;  %10386 = vmatprep.subr.bf16.mxu1 %v13636_v3  ;;  %v18933_v51 = vld [vmem:[#allocation10 + $0xf20] sm:$0xff]  ;;  %v2021_v9 = vld [vmem:[#allocation10 + $0xf28] sm:$0xff] }
 0x3cf   : > { %12930 = vst [vmem:[%s18759_s11 + $0x900] sm:$0xff] %v14374_v30  ;;  %v14376_v52 = vadd.f32 %v8898_v29, %v18736_v62  ;;  %v8900_v61 = vpop.f32.mrb[27].mxu0  ;;  %10047 = vmatprep.subr.bf16.mxu0 %v13634_v63  ;;  %12933 = vst [vmem:[%s18759_s11 + $0x918] sm:$0xff] %v14407_v0  ;;  %v14409_v16 = vadd.f32 %v9239_v48, %v18745_v32  ;;  %v13658_v60 = vcombine.high %v18922_v25, %v2008_v8  ;;  %v2032_v30 = vld [vmem:[#allocation10 + $0xf80] sm:$0xff] }
 0x3d0   : > { %12931 = vst [vmem:[%s18759_s11 + $0x908] sm:$0xff] %v14375_v17  ;;  %v14377_v59 = vadd.f32 %v8900_v61, %v18742_v55  ;;  %12956 = vst [vmem:[%s18759_s11 + $0x9d0] sm:$0xff] %v14408_v42  ;;  %10312 = vmatmul.mubr.bf16.gmra.mrb[68].mxu1 %v21254_v13  ;;  %v13657_v63 = vcombine.low %v18922_v25, %v2008_v8  ;;  %v13659_v3 = vcombine.low %v1997_v31, %v2009_v21  ;;  %v2056_v21 = vld [vmem:[#allocation10 + $0x1040] sm:$0xff]  ;;  %v2057_v61 = vld [vmem:[#allocation10 + $0x1048] sm:$0xff] }
 0x3d1   : > { %12954 = vst [vmem:[%s18759_s11 + $0x9c0] sm:$0xff] %v14376_v52  ;;  %9973 = vmatmul.mubr.bf16.gmra.mrb[68].mxu0 %v21254_v13  ;;  %12957 = vst [vmem:[%s18759_s11 + $0x9d8] sm:$0xff] %v14409_v16  ;;  %10387 = vmatpush1.bf16.msra.mxu1 %v13635_v56  ;;  %v13682_v17 = vcombine.high %v18933_v51, %v2032_v30  ;;  %v13684_v0 = vcombine.high %v2021_v9, %v2033_v26  ;;  %v2044_v52 = vld [vmem:[#allocation10 + $0xfe0] sm:$0xff]  ;;  %v2045_v56 = vld [vmem:[#allocation10 + $0xfe8] sm:$0xff] }
 0x3d2   : > { %12955 = vst [vmem:[%s18759_s11 + $0x9c8] sm:$0xff] %v14377_v59  ;;  %10048 = vmatpush1.bf16.msra.mxu0 %v13633_v50  ;;  %9982 = vmatprep.mubr.bf16.mxu0 %v21255_v49  ;;  %v13681_v31 = vcombine.low %v18933_v51, %v2032_v30 }
 0x3d3   : > { %10321 = vmatprep.mubr.bf16.mxu1 %v21255_v49  ;;  %v9243_v18 = vpop.f32.mrb[28].mxu1  ;;  %10049 = vmatprep.subr.bf16.mxu0 %v13658_v60 }
 0x3d4   : > { %v8904_v29 = vpop.f32.mrb[28].mxu0  ;;  %10388 = vmatprep.subr.bf16.mxu1 %v13660_v12  ;;  %v14410_v50 = vadd.f32 %v9243_v18, %v18739_v2  ;;  %v9245_v8 = vpop.f32.mrb[29].mxu1  ;;  %v13683_v12 = vcombine.low %v2021_v9, %v2033_v26  ;;  %v13706_v26 = vcombine.high %v2044_v52, %v2056_v21 }
 0x3d5   : > { %v14378_v42 = vadd.f32 %v8904_v29, %v18736_v62  ;;  %v8906_v25 = vpop.f32.mrb[29].mxu0  ;;  %v14411_v59 = vadd.f32 %v9245_v8, %v18745_v32  ;;  %10389 = vmatpush1.bf16.msra.mxu1 %v13659_v3  ;;  %v9247_v60 = vpop.f32.mrb[30].mxu1  ;;  %v13708_v3 = vcombine.high %v2045_v56, %v2057_v61  ;;  %v2104_v8 = vld [vmem:[#allocation10 + $0x11c0] sm:$0xff] }
 0x3d6   : > { %v14379_v48 = vadd.f32 %v8906_v25, %v18742_v55  ;;  %10050 = vmatpush1.bf16.msra.mxu0 %v13657_v63  ;;  %v8908_v16 = vpop.f32.mrb[30].mxu0  ;;  %12980 = vst [vmem:[%s18759_s11 + $0xa90] sm:$0xff] %v14410_v50  ;;  %v14412_v51 = vadd.f32 %v9247_v60, %v18739_v2  ;;  %v9249_v18 = vpop.f32.mrb[31].mxu1  ;;  %10390 = vmatprep.subr.bf16.mxu1 %v13684_v0  ;;  %v2068_v25 = vld [vmem:[#allocation10 + $0x10a0] sm:$0xff]  ;;  %v2081_v50 = vld [vmem:[#allocation10 + $0x1108] sm:$0xff] }
 0x3d7   : > { %12978 = vst [vmem:[%s18759_s11 + $0xa80] sm:$0xff] %v14378_v42  ;;  %v14380_v29 = vadd.f32 %v8908_v16, %v18736_v62  ;;  %v8910_v30 = vpop.f32.mrb[31].mxu0  ;;  %10051 = vmatprep.subr.bf16.mxu0 %v13682_v17  ;;  %12981 = vst [vmem:[%s18759_s11 + $0xa98] sm:$0xff] %v14411_v59  ;;  %v14413_v9 = vadd.f32 %v9249_v18, %v18745_v32  ;;  %v2080_v62 = vld [vmem:[#allocation10 + $0x1100] sm:$0xff]  ;;  %v2069_v42 = vld [vmem:[#allocation10 + $0x10a8] sm:$0xff]  ;;  %v13705_v2 = vcombine.low %v2044_v52, %v2056_v21 }
 0x3d8   : > { %12979 = vst [vmem:[%s18759_s11 + $0xa88] sm:$0xff] %v14379_v48  ;;  %v14381_v63 = vadd.f32 %v8910_v30, %v18742_v55  ;;  %13004 = vst [vmem:[%s18759_s11 + $0xb50] sm:$0xff] %v14412_v51  ;;  %10322 = vmatmul.mubr.bf16.gmra.mrb[72].mxu1 %v21256_v54  ;;  %v13707_v17 = vcombine.low %v2045_v56, %v2057_v61  ;;  %v13730_v32 = vcombine.high %v2068_v25, %v2080_v62  ;;  %v2092_v0 = vld [vmem:[#allocation10 + $0x1160] sm:$0xff]  ;;  %v2093_v48 = vld [vmem:[#allocation10 + $0x1168] sm:$0xff] }
 0x3d9   : > { %13002 = vst [vmem:[%s18759_s11 + $0xb40] sm:$0xff] %v14380_v29  ;;  %9983 = vmatmul.mubr.bf16.gmra.mrb[72].mxu0 %v21256_v54  ;;  %13005 = vst [vmem:[%s18759_s11 + $0xb58] sm:$0xff] %v14413_v9  ;;  %10391 = vmatpush1.bf16.msra.mxu1 %v13683_v12  ;;  %v13732_v55 = vcombine.high %v2069_v42, %v2081_v50  ;;  %v2105_v59 = vld [vmem:[#allocation10 + $0x11c8] sm:$0xff]  ;;  %v13729_v16 = vcombine.low %v2068_v25, %v2080_v62  ;;  %v2116_v52 = vld [vmem:[#allocation10 + $0x1220] sm:$0xff] }
 0x3da   : > { %13003 = vst [vmem:[%s18759_s11 + $0xb48] sm:$0xff] %v14381_v63  ;;  %10052 = vmatpush1.bf16.msra.mxu0 %v13681_v31  ;;  %9992 = vmatprep.mubr.bf16.mxu0 %v21257_v22  ;;  %v13731_v60 = vcombine.low %v2069_v42, %v2081_v50  ;;  %v13754_v31 = vcombine.high %v2092_v0, %v2104_v8  ;;  %v2128_v56 = vld [vmem:[#allocation10 + $0x1280] sm:$0xff]  ;;  %v2117_v61 = vld [vmem:[#allocation10 + $0x1228] sm:$0xff] }
 0x3db   : > { %10331 = vmatprep.mubr.bf16.mxu1 %v21257_v22  ;;  %10053 = vmatprep.subr.bf16.mxu0 %v13706_v26  ;;  %v13756_v21 = vcombine.high %v2093_v48, %v2105_v59  ;;  %v2129_v12 = vld [vmem:[#allocation10 + $0x1288] sm:$0xff]  ;;  %v13753_v29 = vcombine.low %v2092_v0, %v2104_v8  ;;  %v13755_v51 = vcombine.low %v2093_v48, %v2105_v59  ;;  %v2140_v25 = vld [vmem:[#allocation10 + $0x12e0] sm:$0xff] }
 0x3dc   : > { %10392 = vmatprep.subr.bf16.mxu1 %v13708_v3  ;;  %v13778_v30 = vcombine.high %v2116_v52, %v2128_v56  ;;  %v13780_v18 = vcombine.high %v2117_v61, %v2129_v12  ;;  %v2152_v63 = vld [vmem:[#allocation10 + $0x1340] sm:$0xff]  ;;  %v2141_v9 = vld [vmem:[#allocation10 + $0x12e8] sm:$0xff]  ;;  %v13777_v3 = vcombine.low %v2116_v52, %v2128_v56  ;;  %v13779_v62 = vcombine.low %v2117_v61, %v2129_v12 }
 0x3dd   : > { %10393 = vmatpush1.bf16.msra.mxu1 %v13707_v17  ;;  %v2153_v26 = vld [vmem:[#allocation10 + $0x1348] sm:$0xff]  ;;  %v2164_v42 = vld [vmem:[#allocation10 + $0x13a0] sm:$0xff]  ;;  %v13802_v50 = vcombine.high %v2140_v25, %v2152_v63  ;;  %v13801_v0 = vcombine.low %v2140_v25, %v2152_v63 }
 0x3de   : > { %10054 = vmatpush1.bf16.msra.mxu0 %v13705_v2  ;;  %10394 = vmatprep.subr.bf16.mxu1 %v13732_v55  ;;  %v13804_v2 = vcombine.high %v2141_v9, %v2153_v26  ;;  %v2176_v17 = vld [vmem:[#allocation10 + $0x1400] sm:$0xff]  ;;  %v2177_v55 = vld [vmem:[#allocation10 + $0x1408] sm:$0xff]  ;;  %v13803_v8 = vcombine.low %v2141_v9, %v2153_v26 }
 0x3df   : > { %10055 = vmatprep.subr.bf16.mxu0 %v13730_v32  ;;  %v2165_v32 = vld [vmem:[#allocation10 + $0x13a8] sm:$0xff]  ;;  %v13826_v48 = vcombine.high %v2164_v42, %v2176_v17  ;;  %v2212_v61 = vld [vmem:[#allocation10 + $0x1520] sm:$0xff] }
 0x3e0   : > { %10332 = vmatmul.mubr.bf16.gmra.mrb[76].mxu1 %v21258_v39  ;;  %v13828_v59 = vcombine.high %v2165_v32, %v2177_v55  ;;  %v2189_v52 = vld [vmem:[#allocation10 + $0x1468] sm:$0xff]  ;;  %v13827_v56 = vcombine.low %v2165_v32, %v2177_v55  ;;  %v2260_v32 = vld [vmem:[#allocation10 + $0x16a0] sm:$0xff] }
 0x3e1   : > { %9993 = vmatmul.mubr.bf16.gmra.mrb[76].mxu0 %v21258_v39  ;;  %10395 = vmatpush1.bf16.msra.mxu1 %v13731_v60  ;;  %v2200_v60 = vld [vmem:[#allocation10 + $0x14c0] sm:$0xff] }
 0x3e2   : > { %10056 = vmatpush1.bf16.msra.mxu0 %v13729_v16  ;;  %10002 = vmatprep.mubr.bf16.mxu0 %v21259_v4  ;;  %v2188_v16 = vld [vmem:[#allocation10 + $0x1460] sm:$0xff] }
 0x3e3   : > { %10341 = vmatprep.mubr.bf16.mxu1 %v21259_v4  ;;  %10057 = vmatprep.subr.bf16.mxu0 %v13754_v31  ;;  %v2201_v31 = vld [vmem:[#allocation10 + $0x14c8] sm:$0xff]  ;;  %v13850_v12 = vcombine.high %v2188_v16, %v2200_v60  ;;  %v13849_v25 = vcombine.low %v2188_v16, %v2200_v60 }
 0x3e4   : > { %10396 = vmatprep.subr.bf16.mxu1 %v13756_v21  ;;  %v13825_v21 = vcombine.low %v2164_v42, %v2176_v17  ;;  %v13851_v63 = vcombine.low %v2189_v52, %v2201_v31  ;;  %v2237_v42 = vld [vmem:[#allocation10 + $0x15e8] sm:$0xff] }
 0x3e5   : > { %10397 = vmatpush1.bf16.msra.mxu1 %v13755_v51  ;;  %v2224_v51 = vld [vmem:[#allocation10 + $0x1580] sm:$0xff] }
 0x3e6   : > { %10058 = vmatpush1.bf16.msra.mxu0 %v13753_v29  ;;  %10398 = vmatprep.subr.bf16.mxu1 %v13780_v18  ;;  %v13852_v29 = vcombine.high %v2189_v52, %v2201_v31  ;;  %v2225_v18 = vld [vmem:[#allocation10 + $0x1588] sm:$0xff]  ;;  %v13874_v9 = vcombine.high %v2212_v61, %v2224_v51 }
 0x3e7   : > { %10059 = vmatprep.subr.bf16.mxu0 %v13778_v30  ;;  %v2213_v30 = vld [vmem:[#allocation10 + $0x1528] sm:$0xff] }
 0x3e8   : > { %10342 = vmatmul.mubr.bf16.gmra.mrb[80].mxu1 %v21260_v41  ;;  %v13876_v26 = vcombine.high %v2213_v30, %v2225_v18  ;;  %v13875_v17 = vcombine.low %v2213_v30, %v2225_v18  ;;  %v2308_v30 = vld [vmem:[#allocation10 + $0x1820] sm:$0xff] }
 0x3e9   : > { %10003 = vmatmul.mubr.bf16.gmra.mrb[80].mxu0 %v21260_v41  ;;  %10399 = vmatpush1.bf16.msra.mxu1 %v13779_v62  ;;  %v2248_v62 = vld [vmem:[#allocation10 + $0x1640] sm:$0xff] }
 0x3ea   : > { %10060 = vmatpush1.bf16.msra.mxu0 %v13777_v3  ;;  %10012 = vmatprep.mubr.bf16.mxu0 %v21261_v27  ;;  %v2236_v3 = vld [vmem:[#allocation10 + $0x15e0] sm:$0xff] }
 0x3eb   : > { %10351 = vmatprep.mubr.bf16.mxu1 %v21261_v27  ;;  %10061 = vmatprep.subr.bf16.mxu0 %v13802_v50  ;;  %v2249_v50 = vld [vmem:[#allocation10 + $0x1648] sm:$0xff]  ;;  %v13898_v55 = vcombine.high %v2236_v3, %v2248_v62  ;;  %v13897_v16 = vcombine.low %v2236_v3, %v2248_v62  ;;  %v21277_v3 = vld [vmem:[#allocation123_spill] sm:$0xff] }
 0x3ec   : > { %10400 = vmatprep.subr.bf16.mxu1 %v13804_v2  ;;  %v13873_v2 = vcombine.low %v2212_v61, %v2224_v51  ;;  %v13899_v60 = vcombine.low %v2237_v42, %v2249_v50  ;;  %v2285_v61 = vld [vmem:[#allocation10 + $0x1768] sm:$0xff] }
 0x3ed   : > { %10401 = vmatpush1.bf16.msra.mxu1 %v13803_v8  ;;  %v2272_v8 = vld [vmem:[#allocation10 + $0x1700] sm:$0xff] }
 0x3ee   : > { %10062 = vmatpush1.bf16.msra.mxu0 %v13801_v0  ;;  %10402 = vmatprep.subr.bf16.mxu1 %v13828_v59  ;;  %v13900_v0 = vcombine.high %v2237_v42, %v2249_v50  ;;  %v2273_v59 = vld [vmem:[#allocation10 + $0x1708] sm:$0xff]  ;;  %v13922_v52 = vcombine.high %v2260_v32, %v2272_v8 }
 0x3ef   : > { %10063 = vmatprep.subr.bf16.mxu0 %v13826_v48  ;;  %v2261_v48 = vld [vmem:[#allocation10 + $0x16a8] sm:$0xff] }
 0x3f0   : > { %10352 = vmatmul.mubr.bf16.gmra.mrb[84].mxu1 %v21262_v46  ;;  %v13924_v31 = vcombine.high %v2261_v48, %v2273_v59  ;;  %v13923_v51 = vcombine.low %v2261_v48, %v2273_v59  ;;  %v2356_v59 = vld [vmem:[#allocation10 + $0x19a0] sm:$0xff] }
 0x3f1   : > { %10013 = vmatmul.mubr.bf16.gmra.mrb[84].mxu0 %v21262_v46  ;;  %10403 = vmatpush1.bf16.msra.mxu1 %v13827_v56  ;;  %v2296_v56 = vld [vmem:[#allocation10 + $0x17c0] sm:$0xff] }
 0x3f2   : > { %10064 = vmatpush1.bf16.msra.mxu0 %v13825_v21  ;;  %10022 = vmatprep.mubr.bf16.mxu0 %v21263_v34  ;;  %v2284_v21 = vld [vmem:[#allocation10 + $0x1760] sm:$0xff] }
 0x3f3   : > { %10361 = vmatprep.mubr.bf16.mxu1 %v21263_v34  ;;  %10065 = vmatprep.subr.bf16.mxu0 %v13850_v12  ;;  %v2297_v12 = vld [vmem:[#allocation10 + $0x17c8] sm:$0xff]  ;;  %v13946_v18 = vcombine.high %v2284_v21, %v2296_v56  ;;  %v13945_v62 = vcombine.low %v2284_v21, %v2296_v56 }
 0x3f4   : > { %10404 = vmatprep.subr.bf16.mxu1 %v13852_v29  ;;  %v13921_v29 = vcombine.low %v2260_v32, %v2272_v8  ;;  %v13947_v42 = vcombine.low %v2285_v61, %v2297_v12  ;;  %v2344_v32 = vld [vmem:[#allocation10 + $0x1940] sm:$0xff]  ;;  %v2369_v21 = vld [vmem:[#allocation10 + $0x1a08] sm:$0xff] }
 0x3f5   : > { %10405 = vmatpush1.bf16.msra.mxu1 %v13851_v63  ;;  %v2320_v63 = vld [vmem:[#allocation10 + $0x1880] sm:$0xff]  ;;  %v21278_v56 = vld [vmem:[#allocation154_spill] sm:$0xff] }
 0x3f6   : > { %10066 = vmatpush1.bf16.msra.mxu0 %v13849_v25  ;;  %10406 = vmatprep.subr.bf16.mxu1 %v13876_v26  ;;  %v13948_v25 = vcombine.high %v2285_v61, %v2297_v12  ;;  %v2321_v26 = vld [vmem:[#allocation10 + $0x1888] sm:$0xff]  ;;  %v13970_v50 = vcombine.high %v2308_v30, %v2320_v63  ;;  %v13969_v8 = vcombine.low %v2308_v30, %v2320_v63 }
 0x3f7   : > { %10067 = vmatprep.subr.bf16.mxu0 %v13874_v9  ;;  %v2309_v9 = vld [vmem:[#allocation10 + $0x1828] sm:$0xff] }
 0x3f8   : > { %10362 = vmatmul.mubr.bf16.gmra.mrb[88].mxu1 %v21264_v23  ;;  %v13971_v48 = vcombine.low %v2309_v9, %v2321_v26  ;;  %v2381_v63 = vld [vmem:[#allocation10 + $0x1a68] sm:$0xff] }
 0x3f9   : > { %10023 = vmatmul.mubr.bf16.gmra.mrb[88].mxu0 %v21264_v23  ;;  %10407 = vmatpush1.bf16.msra.mxu1 %v13875_v17  ;;  %v2332_v17 = vld [vmem:[#allocation10 + $0x18e0] sm:$0xff] }
 0x3fa   : > { %10068 = vmatpush1.bf16.msra.mxu0 %v13873_v2  ;;  %10032 = vmatprep.mubr.bf16.mxu0 %v21265_v47  ;;  %v13972_v2 = vcombine.high %v2309_v9, %v2321_v26  ;;  %v13993_v61 = vcombine.low %v2332_v17, %v2344_v32  ;;  %v2393_v9 = vld [vmem:[#allocation10 + $0x1ac8] sm:$0xff] }
 0x3fb   : > { %10371 = vmatprep.mubr.bf16.mxu1 %v21265_v47  ;;  %10069 = vmatprep.subr.bf16.mxu0 %v13898_v55  ;;  %v2333_v55 = vld [vmem:[#allocation10 + $0x18e8] sm:$0xff] }
 0x3fc   : > { %10408 = vmatprep.subr.bf16.mxu1 %v13900_v0  ;;  %v2345_v0 = vld [vmem:[#allocation10 + $0x1948] sm:$0xff] }
 0x3fd   : > { %10409 = vmatpush1.bf16.msra.mxu1 %v13899_v60  ;;  %v13996_v60 = vcombine.high %v2333_v55, %v2345_v0  ;;  %v13995_v12 = vcombine.low %v2333_v55, %v2345_v0  ;;  %v2417_v55 = vld [vmem:[#allocation10 + $0x1b88] sm:$0xff]  ;;  %v21280_v0 = vld [vmem:[#allocation101_spill] sm:$0xff] }
 0x3fe   : > { %10070 = vmatpush1.bf16.msra.mxu0 %v13897_v16  ;;  %10410 = vmatprep.subr.bf16.mxu1 %v13924_v31  ;;  %v13994_v16 = vcombine.high %v2332_v17, %v2344_v32  ;;  %v2357_v31 = vld [vmem:[#allocation10 + $0x19a8] sm:$0xff]  ;;  %v2416_v17 = vld [vmem:[#allocation10 + $0x1b80] sm:$0xff] }
 0x3ff   : > { %10071 = vmatprep.subr.bf16.mxu0 %v13922_v52  ;;  %v2368_v52 = vld [vmem:[#allocation10 + $0x1a00] sm:$0xff]  ;;  %v14020_v30 = vcombine.high %v2357_v31, %v2369_v21  ;;  %v2405_v32 = vld [vmem:[#allocation10 + $0x1b28] sm:$0xff] }
 0x400   : > { %10372 = vmatmul.mubr.bf16.gmra.mrb[92].mxu1 %v21277_v3  ;;  %v14017_v26 = vcombine.low %v2356_v59, %v2368_v52 }
 0x401   : > { %10033 = vmatmul.mubr.bf16.gmra.mrb[92].mxu0 %v21277_v3  ;;  %10411 = vmatpush1.bf16.msra.mxu1 %v13923_v51  ;;  %v14018_v51 = vcombine.high %v2356_v59, %v2368_v52  ;;  %v2428_v52 = vld [vmem:[#allocation10 + $0x1be0] sm:$0xff] }
 0x402   : > { %10072 = vmatpush1.bf16.msra.mxu0 %v13921_v29  ;;  %10075 = vmatprep.mubr.bf16.mxu0 %v21267_v7  ;;  %v21279_v29 = vld [vmem:[#allocation125_spill] sm:$0xff] }
 0x403   : > { %10414 = vmatprep.mubr.bf16.mxu1 %v21267_v7  ;;  %10073 = vmatprep.subr.bf16.mxu0 %v13946_v18  ;;  %v2380_v18 = vld [vmem:[#allocation10 + $0x1a60] sm:$0xff] }
 0x404   : > { %10412 = vmatprep.subr.bf16.mxu1 %v13948_v25  ;;  %v2392_v25 = vld [vmem:[#allocation10 + $0x1ac0] sm:$0xff] }
 0x405   : > { %10413 = vmatpush1.bf16.msra.mxu1 %v13947_v42  ;;  %v2404_v42 = vld [vmem:[#allocation10 + $0x1b20] sm:$0xff] }
 0x406   : > { %10074 = vmatpush1.bf16.msra.mxu0 %v13945_v62  ;;  %10495 = vmatprep.subr.bf16.mxu1 %v13972_v2  ;;  %v14019_v62 = vcombine.low %v2357_v31, %v2369_v21  ;;  %v14044_v2 = vcombine.high %v2381_v63, %v2393_v9  ;;  %v14066_v59 = vcombine.high %v2404_v42, %v2416_v17  ;;  %v2440_v31 = vld [vmem:[#allocation10 + $0x1c40] sm:$0xff]  ;;  %v2429_v21 = vld [vmem:[#allocation10 + $0x1be8] sm:$0xff] }
 0x407   : > { %10156 = vmatprep.subr.bf16.mxu0 %v13970_v50  ;;  %v14042_v50 = vcombine.high %v2380_v18, %v2392_v25 }
 0x408   : > { %10415 = vmatmul.mubr.bf16.vlgmr.msra.gmra.mrb[64].mxu1 %v21278_v56 }
 0x409   : > { %10076 = vmatmul.mubr.bf16.vlgmr.msra.gmra.mrb[64].mxu0 %v21278_v56  ;;  %10496 = vmatpush1.bf16.msra.mxu1 %v13971_v48  ;;  %v14043_v48 = vcombine.low %v2381_v63, %v2393_v9  ;;  %v2464_v63 = vld [vmem:[#allocation10 + $0x1d00] sm:$0xff]  ;;  %v2453_v9 = vld [vmem:[#allocation10 + $0x1ca8] sm:$0xff] }
 0x40a   : > { %10157 = vmatpush1.bf16.msra.mxu0 %v13969_v8  ;;  %10085 = vmatprep.mubr.bf16.mxu0 %v21279_v29  ;;  %v14041_v8 = vcombine.low %v2380_v18, %v2392_v25  ;;  %v14090_v18 = vcombine.high %v2428_v52, %v2440_v31 }
 0x40b   : > { %10424 = vmatprep.mubr.bf16.mxu1 %v21279_v29  ;;  %10158 = vmatprep.subr.bf16.mxu0 %v13994_v16  ;;  %v21281_v16 = vld [vmem:[#allocation128_spill] sm:$0xff] }
 0x40c   : > { %10497 = vmatprep.subr.bf16.mxu1 %v13996_v60  ;;  %v14068_v60 = vcombine.high %v2405_v32, %v2417_v55 }
 0x40d   : > { %10498 = vmatpush1.bf16.msra.mxu1 %v13995_v12  ;;  %v14065_v12 = vcombine.low %v2404_v42, %v2416_v17 }
 0x40e   : > { %10159 = vmatpush1.bf16.msra.mxu0 %v13993_v61  ;;  %10499 = vmatprep.subr.bf16.mxu1 %v14020_v30  ;;  %v2441_v61 = vld [vmem:[#allocation10 + $0x1c48] sm:$0xff]  ;;  %v2452_v30 = vld [vmem:[#allocation10 + $0x1ca0] sm:$0xff] }
 0x40f   : > { %10160 = vmatprep.subr.bf16.mxu0 %v14018_v51  ;;  %v14067_v51 = vcombine.low %v2405_v32, %v2417_v55  ;;  %v14092_v25 = vcombine.high %v2429_v21, %v2441_v61  ;;  %v14114_v42 = vcombine.high %v2452_v30, %v2464_v63  ;;  %v2476_v32 = vld [vmem:[#allocation10 + $0x1d60] sm:$0xff] }
 0x410   : > { %10425 = vmatmul.mubr.bf16.gmra.mrb[68].mxu1 %v21280_v0  ;;  %v2488_v55 = vld [vmem:[#allocation10 + $0x1dc0] sm:$0xff] }
 0x411   : > { %10086 = vmatmul.mubr.bf16.gmra.mrb[68].mxu0 %v21280_v0  ;;  %10500 = vmatpush1.bf16.msra.mxu1 %v14019_v62  ;;  %v21282_v62 = vld [vmem:[#allocation107_spill] sm:$0xff] }
 0x412   : > { %10161 = vmatpush1.bf16.msra.mxu0 %v14017_v26  ;;  %10095 = vmatprep.mubr.bf16.mxu0 %v21281_v16  ;;  %v2465_v26 = vld [vmem:[#allocation10 + $0x1d08] sm:$0xff] }
 0x413   : > { %10434 = vmatprep.mubr.bf16.mxu1 %v21281_v16  ;;  %10162 = vmatprep.subr.bf16.mxu0 %v14042_v50  ;;  %v14089_v50 = vcombine.low %v2428_v52, %v2440_v31  ;;  %v14116_v17 = vcombine.high %v2453_v9, %v2465_v26  ;;  %v2500_v52 = vld [vmem:[#allocation10 + $0x1e20] sm:$0xff]  ;;  %v14138_v31 = vcombine.high %v2476_v32, %v2488_v55 }
 0x414   : > { %10501 = vmatprep.subr.bf16.mxu1 %v14044_v2  ;;  %v14091_v2 = vcombine.low %v2429_v21, %v2441_v61  ;;  %v2512_v61 = vld [vmem:[#allocation10 + $0x1e80] sm:$0xff] }
 0x415   : > { %10502 = vmatpush1.bf16.msra.mxu1 %v14043_v48  ;;  %v2489_v48 = vld [vmem:[#allocation10 + $0x1dc8] sm:$0xff] }
 0x416   : > { %10163 = vmatpush1.bf16.msra.mxu0 %v14041_v8  ;;  %10503 = vmatprep.subr.bf16.mxu1 %v14068_v60  ;;  %v2477_v8 = vld [vmem:[#allocation10 + $0x1d68] sm:$0xff]  ;;  %v14115_v60 = vcombine.low %v2453_v9, %v2465_v26  ;;  %v2524_v9 = vld [vmem:[#allocation10 + $0x1ee0] sm:$0xff] }
 0x417   : > { %10164 = vmatprep.subr.bf16.mxu0 %v14066_v59  ;;  %v14113_v59 = vcombine.low %v2452_v30, %v2464_v63  ;;  %v14140_v21 = vcombine.high %v2477_v8, %v2489_v48  ;;  %v14162_v30 = vcombine.high %v2500_v52, %v2512_v61  ;;  %v2536_v26 = vld [vmem:[#allocation10 + $0x1f40] sm:$0xff] }
 0x418   : > { %10435 = vmatmul.mubr.bf16.gmra.mrb[72].mxu1 %v21282_v62 }
 0x419   : > { %10096 = vmatmul.mubr.bf16.gmra.mrb[72].mxu0 %v21282_v62  ;;  %10504 = vmatpush1.bf16.msra.mxu1 %v14067_v51  ;;  %v2513_v51 = vld [vmem:[#allocation10 + $0x1e88] sm:$0xff] }
 0x41a   : > { %10165 = vmatpush1.bf16.msra.mxu0 %v14065_v12  ;;  %10105 = vmatprep.mubr.bf16.mxu0 %v21272_v24  ;;  %v2501_v12 = vld [vmem:[#allocation10 + $0x1e28] sm:$0xff] }
 0x41b   : > { %10444 = vmatprep.mubr.bf16.mxu1 %v21272_v24  ;;  %10166 = vmatprep.subr.bf16.mxu0 %v14090_v18  ;;  %v14137_v18 = vcombine.low %v2476_v32, %v2488_v55  ;;  %v14164_v63 = vcombine.high %v2501_v12, %v2513_v51  ;;  %v2548_v32 = vld [vmem:[#allocation10 + $0x1fa0] sm:$0xff]  ;;  %v14186_v55 = vcombine.high %v2524_v9, %v2536_v26 }
 0x41c   : > { %10505 = vmatprep.subr.bf16.mxu1 %v14092_v25  ;;  %v14139_v25 = vcombine.low %v2477_v8, %v2489_v48  ;;  %v2560_v48 = vld [vmem:[#allocation10 + $0x2000] sm:$0xff] }
 0x41d   : > { %10506 = vmatpush1.bf16.msra.mxu1 %v14091_v2  ;;  %v2537_v2 = vld [vmem:[#allocation10 + $0x1f48] sm:$0xff] }
 0x41e   : > { %10167 = vmatpush1.bf16.msra.mxu0 %v14089_v50  ;;  %10507 = vmatprep.subr.bf16.mxu1 %v14116_v17  ;;  %v2525_v50 = vld [vmem:[#allocation10 + $0x1ee8] sm:$0xff]  ;;  %v14163_v17 = vcombine.low %v2501_v12, %v2513_v51  ;;  %v2572_v12 = vld [vmem:[#allocation10 + $0x2060] sm:$0xff] }
 0x41f   : > { %10168 = vmatprep.subr.bf16.mxu0 %v14114_v42  ;;  %v14161_v42 = vcombine.low %v2500_v52, %v2512_v61  ;;  %v14188_v8 = vcombine.high %v2525_v50, %v2537_v2  ;;  %v14210_v52 = vcombine.high %v2548_v32, %v2560_v48  ;;  %v2584_v51 = vld [vmem:[#allocation10 + $0x20c0] sm:$0xff] }
 0x420   : > { %10445 = vmatmul.mubr.bf16.gmra.mrb[76].mxu1 %v21215_v14 }
 0x421   : > { %10106 = vmatmul.mubr.bf16.gmra.mrb[76].mxu0 %v21215_v14  ;;  %10508 = vmatpush1.bf16.msra.mxu1 %v14115_v60  ;;  %v2561_v60 = vld [vmem:[#allocation10 + $0x2008] sm:$0xff] }
 0x422   : > { %10169 = vmatpush1.bf16.msra.mxu0 %v14113_v59  ;;  %10115 = vmatprep.mubr.bf16.mxu0 %v18430_v44  ;;  %v2549_v59 = vld [vmem:[#allocation10 + $0x1fa8] sm:$0xff] }
 0x423   : > { %10454 = vmatprep.mubr.bf16.mxu1 %v18430_v44  ;;  %10170 = vmatprep.subr.bf16.mxu0 %v14138_v31  ;;  %v14185_v31 = vcombine.low %v2524_v9, %v2536_v26  ;;  %v14212_v61 = vcombine.high %v2549_v59, %v2561_v60  ;;  %v2596_v9 = vld [vmem:[#allocation10 + $0x2120] sm:$0xff]  ;;  %v14234_v26 = vcombine.high %v2572_v12, %v2584_v51 }
 0x424   : > { %10509 = vmatprep.subr.bf16.mxu1 %v14140_v21  ;;  %v14187_v21 = vcombine.low %v2525_v50, %v2537_v2  ;;  %v2608_v2 = vld [vmem:[#allocation10 + $0x2180] sm:$0xff] }
 0x425   : > { %10510 = vmatpush1.bf16.msra.mxu1 %v14139_v25  ;;  %v2585_v25 = vld [vmem:[#allocation10 + $0x20c8] sm:$0xff] }
 0x426   : > { %10171 = vmatpush1.bf16.msra.mxu0 %v14137_v18  ;;  %10511 = vmatprep.subr.bf16.mxu1 %v14164_v63  ;;  %v2573_v18 = vld [vmem:[#allocation10 + $0x2068] sm:$0xff]  ;;  %v14211_v63 = vcombine.low %v2549_v59, %v2561_v60  ;;  %v2620_v59 = vld [vmem:[#allocation10 + $0x21e0] sm:$0xff] }
 0x427   : > { %10172 = vmatprep.subr.bf16.mxu0 %v14162_v30  ;;  %v14209_v30 = vcombine.low %v2548_v32, %v2560_v48  ;;  %v14236_v50 = vcombine.high %v2573_v18, %v2585_v25  ;;  %v14258_v32 = vcombine.high %v2596_v9, %v2608_v2  ;;  %v2632_v60 = vld [vmem:[#allocation10 + $0x2240] sm:$0xff] }
 0x428   : > { %10455 = vmatmul.mubr.bf16.gmra.mrb[80].mxu1 %v21231_v15 }
 0x429   : > { %10116 = vmatmul.mubr.bf16.gmra.mrb[80].mxu0 %v21231_v15  ;;  %10512 = vmatpush1.bf16.msra.mxu1 %v14163_v17  ;;  %v2609_v17 = vld [vmem:[#allocation10 + $0x2188] sm:$0xff] }
 0x42a   : > { %10173 = vmatpush1.bf16.msra.mxu0 %v14161_v42  ;;  %10125 = vmatprep.mubr.bf16.mxu0 %v18519_v35  ;;  %v2597_v42 = vld [vmem:[#allocation10 + $0x2128] sm:$0xff] }
 0x42b   : > { %10464 = vmatprep.mubr.bf16.mxu1 %v18519_v35  ;;  %10174 = vmatprep.subr.bf16.mxu0 %v14186_v55  ;;  %v14233_v55 = vcombine.low %v2572_v12, %v2584_v51  ;;  %v14260_v48 = vcombine.high %v2597_v42, %v2609_v17  ;;  %v2644_v12 = vld [vmem:[#allocation10 + $0x22a0] sm:$0xff]  ;;  %v14282_v51 = vcombine.high %v2620_v59, %v2632_v60 }
 0x42c   : > { %10513 = vmatprep.subr.bf16.mxu1 %v14188_v8  ;;  %v14235_v8 = vcombine.low %v2573_v18, %v2585_v25  ;;  %v2656_v25 = vld [vmem:[#allocation10 + $0x2300] sm:$0xff] }
 0x42d   : > { %10514 = vmatpush1.bf16.msra.mxu1 %v14187_v21  ;;  %v2633_v21 = vld [vmem:[#allocation10 + $0x2248] sm:$0xff] }
 0x42e   : > { %10175 = vmatpush1.bf16.msra.mxu0 %v14185_v31  ;;  %10515 = vmatprep.subr.bf16.mxu1 %v14212_v61  ;;  %v2621_v31 = vld [vmem:[#allocation10 + $0x21e8] sm:$0xff]  ;;  %v14259_v61 = vcombine.low %v2597_v42, %v2609_v17  ;;  %v2668_v42 = vld [vmem:[#allocation10 + $0x2360] sm:$0xff] }
 0x42f   : > { %10176 = vmatprep.subr.bf16.mxu0 %v14210_v52  ;;  %v14257_v52 = vcombine.low %v2596_v9, %v2608_v2  ;;  %v14284_v18 = vcombine.high %v2621_v31, %v2633_v21  ;;  %v14306_v9 = vcombine.high %v2644_v12, %v2656_v25  ;;  %v2680_v17 = vld [vmem:[#allocation10 + $0x23c0] sm:$0xff] }
 0x430   : > { %10465 = vmatmul.mubr.bf16.gmra.mrb[84].mxu1 %v21246_v11 }
 0x431   : > { %10126 = vmatmul.mubr.bf16.gmra.mrb[84].mxu0 %v21246_v11  ;;  %10516 = vmatpush1.bf16.msra.mxu1 %v14211_v63  ;;  %v2657_v63 = vld [vmem:[#allocation10 + $0x2308] sm:$0xff] }
 0x432   : > { %10177 = vmatpush1.bf16.msra.mxu0 %v14209_v30  ;;  %10135 = vmatprep.mubr.bf16.mxu0 %v18575_v43  ;;  %v2645_v30 = vld [vmem:[#allocation10 + $0x22a8] sm:$0xff] }
 0x433   : > { %10474 = vmatprep.mubr.bf16.mxu1 %v18575_v43  ;;  %10178 = vmatprep.subr.bf16.mxu0 %v14234_v26  ;;  %v14281_v26 = vcombine.low %v2620_v59, %v2632_v60  ;;  %v14308_v2 = vcombine.high %v2645_v30, %v2657_v63  ;;  %v1542_v59 = vld [vmem:[#allocation10 + $0x30] sm:$0xff]  ;;  %v14330_v60 = vcombine.high %v2668_v42, %v2680_v17 }
 0x434   : > { %10517 = vmatprep.subr.bf16.mxu1 %v14236_v50  ;;  %v14283_v50 = vcombine.low %v2621_v31, %v2633_v21  ;;  %v1554_v21 = vld [vmem:[#allocation10 + $0x90] sm:$0xff] }
 0x435   : > { %10518 = vmatpush1.bf16.msra.mxu1 %v14235_v8  ;;  %v2681_v8 = vld [vmem:[#allocation10 + $0x23c8] sm:$0xff] }
 0x436   : > { %10179 = vmatpush1.bf16.msra.mxu0 %v14233_v55  ;;  %10519 = vmatprep.subr.bf16.mxu1 %v14260_v48  ;;  %v2669_v55 = vld [vmem:[#allocation10 + $0x2368] sm:$0xff]  ;;  %v14307_v48 = vcombine.low %v2645_v30, %v2657_v63  ;;  %v1566_v30 = vld [vmem:[#allocation10 + $0xf0] sm:$0xff] }
 0x437   : > { %10180 = vmatprep.subr.bf16.mxu0 %v14258_v32  ;;  %v14305_v32 = vcombine.low %v2644_v12, %v2656_v25  ;;  %v14332_v31 = vcombine.high %v2669_v55, %v2681_v8  ;;  %v13206_v12 = vcombine.high %v1542_v59, %v1554_v21  ;;  %v1578_v63 = vld [vmem:[#allocation10 + $0x150] sm:$0xff] }
 0x438   : > { %10475 = vmatmul.mubr.bf16.gmra.mrb[88].mxu1 %v18129_v40 }
 0x439   : > { %10136 = vmatmul.mubr.bf16.gmra.mrb[88].mxu0 %v18129_v40  ;;  %10520 = vmatpush1.bf16.msra.mxu1 %v14259_v61  ;;  %v1555_v61 = vld [vmem:[#allocation10 + $0x98] sm:$0xff] }
 0x43a   : > { %10181 = vmatpush1.bf16.msra.mxu0 %v14257_v52  ;;  %10145 = vmatprep.mubr.bf16.mxu0 %v18615_v33  ;;  %v1543_v52 = vld [vmem:[#allocation10 + $0x38] sm:$0xff] }
 0x43b   : > { %10484 = vmatprep.mubr.bf16.mxu1 %v18615_v33  ;;  %10182 = vmatprep.subr.bf16.mxu0 %v14282_v51  ;;  %v14329_v51 = vcombine.low %v2668_v42, %v2680_v17  ;;  %v13208_v25 = vcombine.high %v1543_v52, %v1555_v61  ;;  %v1590_v42 = vld [vmem:[#allocation10 + $0x1b0] sm:$0xff]  ;;  %v13230_v17 = vcombine.high %v1566_v30, %v1578_v63  ;;  %v21293_v33 = vld [vmem:[#allocation130_spill] sm:$0xff] }
 0x43c   : > { %10521 = vmatprep.subr.bf16.mxu1 %v14284_v18  ;;  %v14331_v18 = vcombine.low %v2669_v55, %v2681_v8  ;;  %v1602_v8 = vld [vmem:[#allocation10 + $0x210] sm:$0xff] }
 0x43d   : > { %10522 = vmatpush1.bf16.msra.mxu1 %v14283_v50  ;;  %v1579_v50 = vld [vmem:[#allocation10 + $0x158] sm:$0xff] }
 0x43e   : > { %10183 = vmatpush1.bf16.msra.mxu0 %v14281_v26  ;;  %10523 = vmatprep.subr.bf16.mxu1 %v14308_v2  ;;  %v1567_v26 = vld [vmem:[#allocation10 + $0xf8] sm:$0xff]  ;;  %v13207_v2 = vcombine.low %v1543_v52, %v1555_v61  ;;  %v1614_v52 = vld [vmem:[#allocation10 + $0x270] sm:$0xff] }
 0x43f   : > { %10184 = vmatprep.subr.bf16.mxu0 %v14306_v9  ;;  %v13205_v9 = vcombine.low %v1542_v59, %v1554_v21  ;;  %v13232_v55 = vcombine.high %v1567_v26, %v1579_v50  ;;  %v13254_v59 = vcombine.high %v1590_v42, %v1602_v8  ;;  %v1626_v61 = vld [vmem:[#allocation10 + $0x2d0] sm:$0xff] }
 0x440   : > { %10485 = vmatmul.mubr.bf16.gmra.mrb[92].mxu1 %v18186_v37 }
 0x441   : > { %10146 = vmatmul.mubr.bf16.gmra.mrb[92].mxu0 %v18186_v37  ;;  %10524 = vmatpush1.bf16.msra.mxu1 %v14307_v48  ;;  %v1603_v48 = vld [vmem:[#allocation10 + $0x218] sm:$0xff] }
 0x442   : > { %10185 = vmatpush1.bf16.msra.mxu0 %v14305_v32  ;;  %10188 = vmatprep.mubr.bf16.mxu0 %v18192_v53  ;;  %v1591_v32 = vld [vmem:[#allocation10 + $0x1b8] sm:$0xff] }
 0x443   : > { %10527 = vmatprep.mubr.bf16.mxu1 %v18192_v53  ;;  %10186 = vmatprep.subr.bf16.mxu0 %v14330_v60  ;;  %v21283_v53 = vld [vmem:[#allocation126_spill] sm:$0xff]  ;;  %v13229_v60 = vcombine.low %v1566_v30, %v1578_v63  ;;  %v13256_v21 = vcombine.high %v1591_v32, %v1603_v48  ;;  %v1638_v30 = vld [vmem:[#allocation10 + $0x330] sm:$0xff]  ;;  %v13278_v63 = vcombine.high %v1614_v52, %v1626_v61  ;;  %v1675_v37 = vld [vmem:[#allocation10 + $0x458] sm:$0xff] }
 0x444   : > { %10525 = vmatprep.subr.bf16.mxu1 %v14332_v31  ;;  %v13231_v31 = vcombine.low %v1567_v26, %v1579_v50  ;;  %v1650_v50 = vld [vmem:[#allocation10 + $0x390] sm:$0xff] }
 0x445   : > { %10526 = vmatpush1.bf16.msra.mxu1 %v14331_v18  ;;  %v1615_v18 = vld [vmem:[#allocation10 + $0x278] sm:$0xff] }
 0x446   : > { %10187 = vmatpush1.bf16.msra.mxu0 %v14329_v51  ;;  %10947 = vmatprep.subr.bf16.mxu1 %v13208_v25  ;;  %v21284_v51 = vld [vmem:[#allocation127_spill] sm:$0xff]  ;;  %v13253_v25 = vcombine.low %v1590_v42, %v1602_v8  ;;  %v13302_v42 = vcombine.high %v1638_v30, %v1650_v50 }
 0x447   : > { %10608 = vmatprep.subr.bf16.mxu0 %v13206_v12  ;;  %v1627_v12 = vld [vmem:[#allocation10 + $0x2d8] sm:$0xff] }
 0x448   : > { %10528 = vmatmul.mubr.bf16.vlgmr.msra.gmra.mrb[64].mxu1 %v21283_v53  ;;  %v13280_v26 = vcombine.high %v1615_v18, %v1627_v12 }
 0x449   : > { %10189 = vmatmul.mubr.bf16.vlgmr.msra.gmra.mrb[64].mxu0 %v21283_v53  ;;  %10948 = vmatpush1.bf16.msra.mxu1 %v13207_v2  ;;  %v13255_v53 = vcombine.low %v1591_v32, %v1603_v48  ;;  %v1651_v2 = vld [vmem:[#allocation10 + $0x398] sm:$0xff]  ;;  %v1662_v32 = vld [vmem:[#allocation10 + $0x3f0] sm:$0xff] }
 0x44a   : > { %10609 = vmatpush1.bf16.msra.mxu0 %v13205_v9  ;;  %10198 = vmatprep.mubr.bf16.mxu0 %v21284_v51  ;;  %v1639_v9 = vld [vmem:[#allocation10 + $0x338] sm:$0xff] }
 0x44b   : > { %10537 = vmatprep.mubr.bf16.mxu1 %v21284_v51  ;;  %10610 = vmatprep.subr.bf16.mxu0 %v13230_v17  ;;  %v21285_v51 = vld [vmem:[#allocation53_spill] sm:$0xff]  ;;  %v13277_v17 = vcombine.low %v1614_v52, %v1626_v61  ;;  %v13304_v8 = vcombine.high %v1639_v9, %v1651_v2  ;;  %v21287_v48 = vld [vmem:[#allocation96_spill] sm:$0xff]  ;;  %v13303_v52 = vcombine.low %v1639_v9, %v1651_v2 }
 0x44c   : > { %10949 = vmatprep.subr.bf16.mxu1 %v13232_v55  ;;  %v13279_v55 = vcombine.low %v1615_v18, %v1627_v12  ;;  %v19035_v61 = vsub.s32 7, %v21287_v48  ;;  %v19037_v18 = vld [vmem:[#allocation10 + $0x4b0] sm:$0xff]  ;;  %v21292_v9 = vld [vmem:[#allocation141_spill] sm:$0xff] }
 0x44d   : > { %10950 = vmatpush1.bf16.msra.mxu1 %v13231_v31  ;;  %v19032_v31 = vsub.s32 6, %v21287_v48 }
 0x44e   : > { %10611 = vmatpush1.bf16.msra.mxu0 %v13229_v60  ;;  %10951 = vmatprep.subr.bf16.mxu1 %v13256_v21  ;;  %v21286_v60 = vld [vmem:[#allocation60_spill] sm:$0xff]  ;;  %21289 = vst [vmem:[#allocation51_spill] sm:$0xff] %v19035_v61 }
 0x44f   : > { %10612 = vmatprep.subr.bf16.mxu0 %v13254_v59  ;;  %21288 = vst [vmem:[#allocation45_spill] sm:$0xff] %v19032_v31  ;;  %v1674_v59 = vld [vmem:[#allocation10 + $0x450] sm:$0xff]  ;;  %v1663_v21 = vld [vmem:[#allocation10 + $0x3f8] sm:$0xff] }
 0x450   : > { %10538 = vmatmul.mubr.bf16.gmra.mrb[68].mxu1 %v21285_v51  ;;  %v13326_v12 = vcombine.high %v1662_v32, %v1674_v59 }
 0x451   : > { %10199 = vmatmul.mubr.bf16.gmra.mrb[68].mxu0 %v21285_v51  ;;  %10952 = vmatpush1.bf16.msra.mxu1 %v13255_v53  ;;  %v13301_v53 = vcombine.low %v1638_v30, %v1650_v50  ;;  %v21290_v51 = vld [vmem:[#allocation129_spill] sm:$0xff] }
 0x452   : > { %10613 = vmatpush1.bf16.msra.mxu0 %v13253_v25  ;;  %10208 = vmatprep.mubr.bf16.mxu0 %v21286_v60  ;;  %v13328_v25 = vcombine.high %v1663_v21, %v1675_v37 }
 0x453   : > { %10547 = vmatprep.mubr.bf16.mxu1 %v21286_v60  ;;  %10614 = vmatprep.subr.bf16.mxu0 %v13278_v63  ;;  %v1698_v63 = vld [vmem:[#allocation10 + $0x510] sm:$0xff]  ;;  %v1699_v60 = vld [vmem:[#allocation10 + $0x518] sm:$0xff] }
 0x454   : > { %10953 = vmatprep.subr.bf16.mxu1 %v13280_v26  ;;  %v1687_v26 = vld [vmem:[#allocation10 + $0x4b8] sm:$0xff] }
 0x455   : > { %10954 = vmatpush1.bf16.msra.mxu1 %v13279_v55  ;;  %v21291_v55 = vld [vmem:[#allocation152_spill] sm:$0xff]  ;;  %v13351_v43 = vcombine.low %v1687_v26, %v1699_v60 }
 0x456   : > { %10615 = vmatpush1.bf16.msra.mxu0 %v13277_v17  ;;  %10955 = vmatprep.subr.bf16.mxu1 %v13304_v8  ;;  %v15639_v17 = vld [vmem:[#allocation11] sm:$0xff]  ;;  %v13327_v8 = vcombine.low %v1663_v21, %v1675_v37 }
 0x457   : > { %10616 = vmatprep.subr.bf16.mxu0 %v13302_v42  ;;  %v19042_v30 = vrot.slane %v15639_v17, %v21291_v55  ;;  %v19045_v50 = vrot.slane %v15639_v17, %v19032_v31  ;;  %v19048_v2 = vrot.slane %v15639_v17, %v21292_v9  ;;  %v13325_v42 = vcombine.low %v1662_v32, %v1674_v59  ;;  %v19056_v9 = vld [vmem:[#allocation10 + $0x570] sm:$0xff] }
 0x458   : > { %10548 = vmatmul.mubr.bf16.gmra.mrb[72].mxu1 %v21290_v51  ;;  %v19051_v48 = vrot.slane %v15639_v17, %v19035_v61  ;;  %v13350_v55 = vcombine.high %v19037_v18, %v1698_v63  ;;  %v1711_v17 = vld [vmem:[#allocation10 + $0x578] sm:$0xff] }
 0x459   : > { %10209 = vmatmul.mubr.bf16.gmra.mrb[72].mxu0 %v21290_v51  ;;  %10956 = vmatpush1.bf16.msra.mxu1 %v13303_v52  ;;  %v13352_v51 = vcombine.high %v1687_v26, %v1699_v60  ;;  %v1722_v52 = vld [vmem:[#allocation10 + $0x5d0] sm:$0xff]  ;;  %v1723_v61 = vld [vmem:[#allocation10 + $0x5d8] sm:$0xff] }
 0x45a   : > { %10617 = vmatpush1.bf16.msra.mxu0 %v13301_v53  ;;  %10218 = vmatprep.mubr.bf16.mxu0 %v21293_v33  ;;  %v13349_v53 = vcombine.low %v19037_v18, %v1698_v63 }
 0x45b   : > { %10557 = vmatprep.mubr.bf16.mxu1 %v21293_v33  ;;  %v9851_v31 = vpop.f32.mrb[32].mxu1  ;;  %10618 = vmatprep.subr.bf16.mxu0 %v13326_v12 }
 0x45c   : > { %v9512_v40 = vpop.f32.mrb[32].mxu0  ;;  %10957 = vmatprep.subr.bf16.mxu1 %v13328_v25  ;;  %v14446_v37 = vadd.f32 %v9851_v31, %v19045_v50  ;;  %v9853_v21 = vpop.f32.mrb[33].mxu1 }
 0x45d   : > { %v14414_v32 = vadd.f32 %v9512_v40, %v19042_v30  ;;  %v9514_v59 = vpop.f32.mrb[33].mxu0  ;;  %v14447_v12 = vadd.f32 %v9853_v21, %v19051_v48  ;;  %10958 = vmatpush1.bf16.msra.mxu1 %v13327_v8  ;;  %v9855_v40 = vpop.f32.mrb[34].mxu1  ;;  %v13376_v8 = vcombine.high %v1711_v17, %v1723_v61  ;;  %v1747_v21 = vld [vmem:[#allocation10 + $0x698] sm:$0xff] }
 0x45e   : > { %v14415_v33 = vadd.f32 %v9514_v59, %v19048_v2  ;;  %10619 = vmatpush1.bf16.msra.mxu0 %v13325_v42  ;;  %v9516_v25 = vpop.f32.mrb[34].mxu0  ;;  %12648 = vst [vmem:[%s18759_s11 + $0x30] sm:$0xff] %v14446_v37  ;;  %v14448_v18 = vadd.f32 %v9855_v40, %v19045_v50  ;;  %v9857_v11 = vpop.f32.mrb[35].mxu1  ;;  %10959 = vmatprep.subr.bf16.mxu1 %v13352_v51  ;;  %v19067_v59 = vld [vmem:[#allocation10 + $0x630] sm:$0xff]  ;;  %v1735_v37 = vld [vmem:[#allocation10 + $0x638] sm:$0xff] }
 0x45f   : > { %12646 = vst [vmem:[%s18759_s11 + $0x20] sm:$0xff] %v14414_v32  ;;  %v14416_v31 = vadd.f32 %v9516_v25, %v19042_v30  ;;  %v9518_v63 = vpop.f32.mrb[35].mxu0  ;;  %10620 = vmatprep.subr.bf16.mxu0 %v13350_v55  ;;  %12649 = vst [vmem:[%s18759_s11 + $0x38] sm:$0xff] %v14447_v12  ;;  %v14449_v26 = vadd.f32 %v9857_v11, %v19051_v48  ;;  %v13374_v42 = vcombine.high %v19056_v9, %v1722_v52  ;;  %v1746_v32 = vld [vmem:[#allocation10 + $0x690] sm:$0xff] }
 0x460   : > { %12647 = vst [vmem:[%s18759_s11 + $0x28] sm:$0xff] %v14415_v33  ;;  %v14417_v60 = vadd.f32 %v9518_v63, %v19048_v2  ;;  %12672 = vst [vmem:[%s18759_s11 + $0xf0] sm:$0xff] %v14448_v18  ;;  %10558 = vmatmul.mubr.bf16.gmra.mrb[76].mxu1 %v18434_v57  ;;  %v13373_v33 = vcombine.low %v19056_v9, %v1722_v52  ;;  %v13375_v51 = vcombine.low %v1711_v17, %v1723_v61  ;;  %v19084_v40 = vld [vmem:[#allocation10 + $0x6f0] sm:$0xff]  ;;  %v1771_v18 = vld [vmem:[#allocation10 + $0x758] sm:$0xff] }
 0x461   : > { %12670 = vst [vmem:[%s18759_s11 + $0xe0] sm:$0xff] %v14416_v31  ;;  %10219 = vmatmul.mubr.bf16.gmra.mrb[76].mxu0 %v18434_v57  ;;  %12673 = vst [vmem:[%s18759_s11 + $0xf8] sm:$0xff] %v14449_v26  ;;  %10960 = vmatpush1.bf16.msra.mxu1 %v13351_v43  ;;  %v13398_v11 = vcombine.high %v19067_v59, %v1746_v32  ;;  %v13400_v55 = vcombine.high %v1735_v37, %v1747_v21  ;;  %v1770_v17 = vld [vmem:[#allocation10 + $0x750] sm:$0xff]  ;;  %v1759_v31 = vld [vmem:[#allocation10 + $0x6f8] sm:$0xff] }
 0x462   : > { %12671 = vst [vmem:[%s18759_s11 + $0xe8] sm:$0xff] %v14417_v60  ;;  %10621 = vmatpush1.bf16.msra.mxu0 %v13349_v53  ;;  %10228 = vmatprep.mubr.bf16.mxu0 %v18436_v58  ;;  %v13397_v52 = vcombine.low %v19067_v59, %v1746_v32 }
 0x463   : > { %10567 = vmatprep.mubr.bf16.mxu1 %v18436_v58  ;;  %v9861_v25 = vpop.f32.mrb[36].mxu1  ;;  %10622 = vmatprep.subr.bf16.mxu0 %v13374_v42 }
 0x464   : > { %v9522_v12 = vpop.f32.mrb[36].mxu0  ;;  %10961 = vmatprep.subr.bf16.mxu1 %v13376_v8  ;;  %v14450_v43 = vadd.f32 %v9861_v25, %v19045_v50  ;;  %v9863_v9 = vpop.f32.mrb[37].mxu1  ;;  %v13399_v8 = vcombine.low %v1735_v37, %v1747_v21 }
 0x465   : > { %v14418_v53 = vadd.f32 %v9522_v12, %v19042_v30  ;;  %v9524_v61 = vpop.f32.mrb[37].mxu0  ;;  %v14451_v60 = vadd.f32 %v9863_v9, %v19051_v48  ;;  %10962 = vmatpush1.bf16.msra.mxu1 %v13375_v51  ;;  %v9865_v42 = vpop.f32.mrb[38].mxu1  ;;  %v13424_v51 = vcombine.high %v1759_v31, %v1771_v18  ;;  %v1795_v9 = vld [vmem:[#allocation10 + $0x818] sm:$0xff] }
 0x466   : > { %v14419_v63 = vadd.f32 %v9524_v61, %v19048_v2  ;;  %10623 = vmatpush1.bf16.msra.mxu0 %v13373_v33  ;;  %v9526_v26 = vpop.f32.mrb[38].mxu0  ;;  %12696 = vst [vmem:[%s18759_s11 + $0x1b0] sm:$0xff] %v14450_v43  ;;  %v14452_v59 = vadd.f32 %v9865_v42, %v19045_v50  ;;  %v9867_v25 = vpop.f32.mrb[39].mxu1  ;;  %10963 = vmatprep.subr.bf16.mxu1 %v13400_v55  ;;  %v19095_v61 = vld [vmem:[#allocation10 + $0x7b0] sm:$0xff]  ;;  %v1783_v43 = vld [vmem:[#allocation10 + $0x7b8] sm:$0xff] }
 0x467   : > { %12694 = vst [vmem:[%s18759_s11 + $0x1a0] sm:$0xff] %v14418_v53  ;;  %v14420_v12 = vadd.f32 %v9526_v26, %v19042_v30  ;;  %v9528_v32 = vpop.f32.mrb[39].mxu0  ;;  %10624 = vmatprep.subr.bf16.mxu0 %v13398_v11  ;;  %12697 = vst [vmem:[%s18759_s11 + $0x1b8] sm:$0xff] %v14451_v60  ;;  %v14453_v21 = vadd.f32 %v9867_v25, %v19051_v48  ;;  %v13422_v33 = vcombine.high %v19084_v40, %v1770_v17  ;;  %v1794_v53 = vld [vmem:[#allocation10 + $0x810] sm:$0xff] }
 0x468   : > { %12695 = vst [vmem:[%s18759_s11 + $0x1a8] sm:$0xff] %v14419_v63  ;;  %v14421_v37 = vadd.f32 %v9528_v32, %v19048_v2  ;;  %12720 = vst [vmem:[%s18759_s11 + $0x270] sm:$0xff] %v14452_v59  ;;  %10568 = vmatmul.mubr.bf16.gmra.mrb[80].mxu1 %v18492_v45  ;;  %v13421_v11 = vcombine.low %v19084_v40, %v1770_v17  ;;  %v13423_v55 = vcombine.low %v1759_v31, %v1771_v18  ;;  %v1807_v59 = vld [vmem:[#allocation10 + $0x878] sm:$0xff] }
 0x469   : > { %12718 = vst [vmem:[%s18759_s11 + $0x260] sm:$0xff] %v14420_v12  ;;  %10229 = vmatmul.mubr.bf16.gmra.mrb[80].mxu0 %v18492_v45  ;;  %12721 = vst [vmem:[%s18759_s11 + $0x278] sm:$0xff] %v14453_v21  ;;  %10964 = vmatpush1.bf16.msra.mxu1 %v13399_v8  ;;  %v13446_v63 = vcombine.high %v19095_v61, %v1794_v53  ;;  %v13448_v60 = vcombine.high %v1783_v43, %v1795_v9  ;;  %v19112_v12 = vld [vmem:[#allocation10 + $0x870] sm:$0xff]  ;;  %v1819_v32 = vld [vmem:[#allocation10 + $0x8d8] sm:$0xff] }
 0x46a   : > { %12719 = vst [vmem:[%s18759_s11 + $0x268] sm:$0xff] %v14421_v37  ;;  %10625 = vmatpush1.bf16.msra.mxu0 %v13397_v52  ;;  %10238 = vmatprep.mubr.bf16.mxu0 %v18502_v36  ;;  %v13445_v18 = vcombine.low %v19095_v61, %v1794_v53  ;;  %v1818_v8 = vld [vmem:[#allocation10 + $0x8d0] sm:$0xff] }
 0x46b   : > { %10577 = vmatprep.mubr.bf16.mxu1 %v18502_v36  ;;  %v9871_v42 = vpop.f32.mrb[40].mxu1  ;;  %10626 = vmatprep.subr.bf16.mxu0 %v13422_v33 }
 0x46c   : > { %v9532_v26 = vpop.f32.mrb[40].mxu0  ;;  %10965 = vmatprep.subr.bf16.mxu1 %v13424_v51  ;;  %v14454_v40 = vadd.f32 %v9871_v42, %v19045_v50  ;;  %v9873_v31 = vpop.f32.mrb[41].mxu1  ;;  %v13447_v51 = vcombine.low %v1783_v43, %v1795_v9 }
 0x46d   : > { %v14422_v52 = vadd.f32 %v9532_v26, %v19042_v30  ;;  %v9534_v17 = vpop.f32.mrb[41].mxu0  ;;  %v14455_v37 = vadd.f32 %v9873_v31, %v19051_v48  ;;  %10966 = vmatpush1.bf16.msra.mxu1 %v13423_v55  ;;  %v9875_v33 = vpop.f32.mrb[42].mxu1  ;;  %v13472_v55 = vcombine.high %v1807_v59, %v1819_v32  ;;  %v1843_v31 = vld [vmem:[#allocation10 + $0x998] sm:$0xff] }
 0x46e   : > { %v14423_v25 = vadd.f32 %v9534_v17, %v19048_v2  ;;  %10627 = vmatpush1.bf16.msra.mxu0 %v13421_v11  ;;  %v9536_v21 = vpop.f32.mrb[42].mxu0  ;;  %12744 = vst [vmem:[%s18759_s11 + $0x330] sm:$0xff] %v14454_v40  ;;  %v14456_v61 = vadd.f32 %v9875_v33, %v19045_v50  ;;  %v9877_v42 = vpop.f32.mrb[43].mxu1  ;;  %10967 = vmatprep.subr.bf16.mxu1 %v13448_v60  ;;  %v19123_v17 = vld [vmem:[#allocation10 + $0x930] sm:$0xff]  ;;  %v1831_v40 = vld [vmem:[#allocation10 + $0x938] sm:$0xff] }
 0x46f   : > { %12742 = vst [vmem:[%s18759_s11 + $0x320] sm:$0xff] %v14422_v52  ;;  %v14424_v26 = vadd.f32 %v9536_v21, %v19042_v30  ;;  %v9538_v53 = vpop.f32.mrb[43].mxu0  ;;  %10628 = vmatprep.subr.bf16.mxu0 %v13446_v63  ;;  %12745 = vst [vmem:[%s18759_s11 + $0x338] sm:$0xff] %v14455_v37  ;;  %v14457_v9 = vadd.f32 %v9877_v42, %v19051_v48  ;;  %v13470_v11 = vcombine.high %v19112_v12, %v1818_v8  ;;  %v1842_v52 = vld [vmem:[#allocation10 + $0x990] sm:$0xff] }
 0x470   : > { %12743 = vst [vmem:[%s18759_s11 + $0x328] sm:$0xff] %v14423_v25  ;;  %v14425_v43 = vadd.f32 %v9538_v53, %v19048_v2  ;;  %12768 = vst [vmem:[%s18759_s11 + $0x3f0] sm:$0xff] %v14456_v61  ;;  %10578 = vmatmul.mubr.bf16.gmra.mrb[84].mxu1 %v18550_v38  ;;  %v13469_v63 = vcombine.low %v19112_v12, %v1818_v8  ;;  %v13471_v60 = vcombine.low %v1807_v59, %v1819_v32  ;;  %v1855_v61 = vld [vmem:[#allocation10 + $0x9f8] sm:$0xff] }
 0x471   : > { %12766 = vst [vmem:[%s18759_s11 + $0x3e0] sm:$0xff] %v14424_v26  ;;  %10239 = vmatmul.mubr.bf16.gmra.mrb[84].mxu0 %v18550_v38  ;;  %12769 = vst [vmem:[%s18759_s11 + $0x3f8] sm:$0xff] %v14457_v9  ;;  %10968 = vmatpush1.bf16.msra.mxu1 %v13447_v51  ;;  %v13494_v25 = vcombine.high %v19123_v17, %v1842_v52  ;;  %v13496_v37 = vcombine.high %v1831_v40, %v1843_v31  ;;  %v19140_v26 = vld [vmem:[#allocation10 + $0x9f0] sm:$0xff]  ;;  %v1867_v53 = vld [vmem:[#allocation10 + $0xa58] sm:$0xff] }
 0x472   : > { %12767 = vst [vmem:[%s18759_s11 + $0x3e8] sm:$0xff] %v14425_v43  ;;  %10629 = vmatpush1.bf16.msra.mxu0 %v13445_v18  ;;  %10248 = vmatprep.mubr.bf16.mxu0 %v18562_v6  ;;  %v13493_v32 = vcombine.low %v19123_v17, %v1842_v52  ;;  %v1866_v51 = vld [vmem:[#allocation10 + $0xa50] sm:$0xff] }
 0x473   : > { %10587 = vmatprep.mubr.bf16.mxu1 %v18562_v6  ;;  %v9881_v33 = vpop.f32.mrb[44].mxu1  ;;  %10630 = vmatprep.subr.bf16.mxu0 %v13470_v11 }
 0x474   : > { %v9542_v21 = vpop.f32.mrb[44].mxu0  ;;  %10969 = vmatprep.subr.bf16.mxu1 %v13472_v55  ;;  %v14458_v12 = vadd.f32 %v9881_v33, %v19045_v50  ;;  %v9883_v59 = vpop.f32.mrb[45].mxu1  ;;  %v13495_v55 = vcombine.low %v1831_v40, %v1843_v31 }
 0x475   : > { %v14426_v18 = vadd.f32 %v9542_v21, %v19042_v30  ;;  %v9544_v8 = vpop.f32.mrb[45].mxu0  ;;  %v14459_v43 = vadd.f32 %v9883_v59, %v19051_v48  ;;  %10970 = vmatpush1.bf16.msra.mxu1 %v13471_v60  ;;  %v9885_v11 = vpop.f32.mrb[46].mxu1  ;;  %v13520_v60 = vcombine.high %v1855_v61, %v1867_v53  ;;  %v1891_v59 = vld [vmem:[#allocation10 + $0xb18] sm:$0xff] }
 0x476   : > { %v14427_v42 = vadd.f32 %v9544_v8, %v19048_v2  ;;  %10631 = vmatpush1.bf16.msra.mxu0 %v13469_v63  ;;  %v9546_v9 = vpop.f32.mrb[46].mxu0  ;;  %12792 = vst [vmem:[%s18759_s11 + $0x4b0] sm:$0xff] %v14458_v12  ;;  %v14460_v17 = vadd.f32 %v9885_v11, %v19045_v50  ;;  %v9887_v33 = vpop.f32.mrb[47].mxu1  ;;  %10971 = vmatprep.subr.bf16.mxu1 %v13496_v37  ;;  %v19151_v8 = vld [vmem:[#allocation10 + $0xab0] sm:$0xff]  ;;  %v1879_v12 = vld [vmem:[#allocation10 + $0xab8] sm:$0xff] }
 0x477   : > { %12790 = vst [vmem:[%s18759_s11 + $0x4a0] sm:$0xff] %v14426_v18  ;;  %v14428_v21 = vadd.f32 %v9546_v9, %v19042_v30  ;;  %v9548_v52 = vpop.f32.mrb[47].mxu0  ;;  %10632 = vmatprep.subr.bf16.mxu0 %v13494_v25  ;;  %12793 = vst [vmem:[%s18759_s11 + $0x4b8] sm:$0xff] %v14459_v43  ;;  %v14461_v31 = vadd.f32 %v9887_v33, %v19051_v48  ;;  %v13518_v63 = vcombine.high %v19140_v26, %v1866_v51  ;;  %v1890_v18 = vld [vmem:[#allocation10 + $0xb10] sm:$0xff] }
 0x478   : > { %12791 = vst [vmem:[%s18759_s11 + $0x4a8] sm:$0xff] %v14427_v42  ;;  %v14429_v40 = vadd.f32 %v9548_v52, %v19048_v2  ;;  %12816 = vst [vmem:[%s18759_s11 + $0x570] sm:$0xff] %v14460_v17  ;;  %10588 = vmatmul.mubr.bf16.gmra.mrb[88].mxu1 %v18597_v1  ;;  %v13517_v25 = vcombine.low %v19140_v26, %v1866_v51  ;;  %v13519_v37 = vcombine.low %v1855_v61, %v1867_v53  ;;  %v1903_v17 = vld [vmem:[#allocation10 + $0xb78] sm:$0xff] }
 0x479   : > { %12814 = vst [vmem:[%s18759_s11 + $0x560] sm:$0xff] %v14428_v21  ;;  %10249 = vmatmul.mubr.bf16.gmra.mrb[88].mxu0 %v18597_v1  ;;  %12817 = vst [vmem:[%s18759_s11 + $0x578] sm:$0xff] %v14461_v31  ;;  %10972 = vmatpush1.bf16.msra.mxu1 %v13495_v55  ;;  %v13542_v42 = vcombine.high %v19151_v8, %v1890_v18  ;;  %v13544_v43 = vcombine.high %v1879_v12, %v1891_v59  ;;  %v19168_v21 = vld [vmem:[#allocation10 + $0xb70] sm:$0xff]  ;;  %v1915_v52 = vld [vmem:[#allocation10 + $0xbd8] sm:$0xff] }
 0x47a   : > { %12815 = vst [vmem:[%s18759_s11 + $0x568] sm:$0xff] %v14429_v40  ;;  %10633 = vmatpush1.bf16.msra.mxu0 %v13493_v32  ;;  %10258 = vmatprep.mubr.bf16.mxu0 %v18599_v5  ;;  %v13541_v53 = vcombine.low %v19151_v8, %v1890_v18  ;;  %v1914_v55 = vld [vmem:[#allocation10 + $0xbd0] sm:$0xff] }
 0x47b   : > { %10597 = vmatprep.mubr.bf16.mxu1 %v18599_v5  ;;  %v9891_v11 = vpop.f32.mrb[48].mxu1  ;;  %10634 = vmatprep.subr.bf16.mxu0 %v13518_v63 }
 0x47c   : > { %v9552_v9 = vpop.f32.mrb[48].mxu0  ;;  %10973 = vmatprep.subr.bf16.mxu1 %v13520_v60  ;;  %v14462_v26 = vadd.f32 %v9891_v11, %v19045_v50  ;;  %v9893_v61 = vpop.f32.mrb[49].mxu1  ;;  %v13543_v60 = vcombine.low %v1879_v12, %v1891_v59 }
 0x47d   : > { %v14430_v32 = vadd.f32 %v9552_v9, %v19042_v30  ;;  %v9554_v51 = vpop.f32.mrb[49].mxu0  ;;  %v14463_v40 = vadd.f32 %v9893_v61, %v19051_v48  ;;  %10974 = vmatpush1.bf16.msra.mxu1 %v13519_v37  ;;  %v9895_v63 = vpop.f32.mrb[50].mxu1  ;;  %v13568_v37 = vcombine.high %v1903_v17, %v1915_v52  ;;  %v1939_v61 = vld [vmem:[#allocation10 + $0xc98] sm:$0xff] }
 0x47e   : > { %v14431_v33 = vadd.f32 %v9554_v51, %v19048_v2  ;;  %10635 = vmatpush1.bf16.msra.mxu0 %v13517_v25  ;;  %v9556_v31 = vpop.f32.mrb[50].mxu0  ;;  %12840 = vst [vmem:[%s18759_s11 + $0x630] sm:$0xff] %v14462_v26  ;;  %v14464_v8 = vadd.f32 %v9895_v63, %v19045_v50  ;;  %v9897_v11 = vpop.f32.mrb[51].mxu1  ;;  %10975 = vmatprep.subr.bf16.mxu1 %v13544_v43  ;;  %v19179_v51 = vld [vmem:[#allocation10 + $0xc30] sm:$0xff]  ;;  %v1927_v26 = vld [vmem:[#allocation10 + $0xc38] sm:$0xff] }
 0x47f   : > { %12838 = vst [vmem:[%s18759_s11 + $0x620] sm:$0xff] %v14430_v32  ;;  %v14432_v9 = vadd.f32 %v9556_v31, %v19042_v30  ;;  %v9558_v18 = vpop.f32.mrb[51].mxu0  ;;  %10636 = vmatprep.subr.bf16.mxu0 %v13542_v42  ;;  %12841 = vst [vmem:[%s18759_s11 + $0x638] sm:$0xff] %v14463_v40  ;;  %v14465_v59 = vadd.f32 %v9897_v11, %v19051_v48  ;;  %v13566_v25 = vcombine.high %v19168_v21, %v1914_v55  ;;  %v1938_v32 = vld [vmem:[#allocation10 + $0xc90] sm:$0xff] }
 0x480   : > { %12839 = vst [vmem:[%s18759_s11 + $0x628] sm:$0xff] %v14431_v33  ;;  %v14433_v12 = vadd.f32 %v9558_v18, %v19048_v2  ;;  %12864 = vst [vmem:[%s18759_s11 + $0x6f0] sm:$0xff] %v14464_v8  ;;  %10598 = vmatmul.mubr.bf16.gmra.mrb[92].mxu1 %v18620_v28  ;;  %v13565_v42 = vcombine.low %v19168_v21, %v1914_v55  ;;  %v13567_v43 = vcombine.low %v1903_v17, %v1915_v52  ;;  %v1951_v8 = vld [vmem:[#allocation10 + $0xcf8] sm:$0xff] }
 0x481   : > { %12862 = vst [vmem:[%s18759_s11 + $0x6e0] sm:$0xff] %v14432_v9  ;;  %10259 = vmatmul.mubr.bf16.gmra.mrb[92].mxu0 %v18620_v28  ;;  %12865 = vst [vmem:[%s18759_s11 + $0x6f8] sm:$0xff] %v14465_v59  ;;  %10976 = vmatpush1.bf16.msra.mxu1 %v13543_v60  ;;  %v13590_v33 = vcombine.high %v19179_v51, %v1938_v32  ;;  %v13592_v40 = vcombine.high %v1927_v26, %v1939_v61  ;;  %v19196_v9 = vld [vmem:[#allocation10 + $0xcf0] sm:$0xff]  ;;  %v1963_v18 = vld [vmem:[#allocation10 + $0xd58] sm:$0xff] }
 0x482   : > { %12863 = vst [vmem:[%s18759_s11 + $0x6e8] sm:$0xff] %v14433_v12  ;;  %10637 = vmatpush1.bf16.msra.mxu0 %v13541_v53  ;;  %10640 = vmatprep.mubr.bf16.mxu0 %v21251_v10  ;;  %v13589_v52 = vcombine.low %v19179_v51, %v1938_v32  ;;  %v1962_v60 = vld [vmem:[#allocation10 + $0xd50] sm:$0xff] }
 0x483   : > { %10979 = vmatprep.mubr.bf16.mxu1 %v21251_v10  ;;  %v9901_v63 = vpop.f32.mrb[52].mxu1  ;;  %10638 = vmatprep.subr.bf16.mxu0 %v13566_v25 }
 0x484   : > { %v9562_v31 = vpop.f32.mrb[52].mxu0  ;;  %10977 = vmatprep.subr.bf16.mxu1 %v13568_v37  ;;  %v14466_v21 = vadd.f32 %v9901_v63, %v19045_v50  ;;  %v9903_v17 = vpop.f32.mrb[53].mxu1  ;;  %v13591_v37 = vcombine.low %v1927_v26, %v1939_v61 }
 0x485   : > { %v14434_v53 = vadd.f32 %v9562_v31, %v19042_v30  ;;  %v9564_v55 = vpop.f32.mrb[53].mxu0  ;;  %v14467_v12 = vadd.f32 %v9903_v17, %v19051_v48  ;;  %10978 = vmatpush1.bf16.msra.mxu1 %v13567_v43  ;;  %v9905_v25 = vpop.f32.mrb[54].mxu1  ;;  %v13616_v43 = vcombine.high %v1951_v8, %v1963_v18  ;;  %v1987_v17 = vld [vmem:[#allocation10 + $0xe18] sm:$0xff] }
 0x486   : > { %v14435_v11 = vadd.f32 %v9564_v55, %v19048_v2  ;;  %10639 = vmatpush1.bf16.msra.mxu0 %v13565_v42  ;;  %v9566_v59 = vpop.f32.mrb[54].mxu0  ;;  %12888 = vst [vmem:[%s18759_s11 + $0x7b0] sm:$0xff] %v14466_v21  ;;  %v14468_v51 = vadd.f32 %v9905_v25, %v19045_v50  ;;  %v9907_v63 = vpop.f32.mrb[55].mxu1  ;;  %11060 = vmatprep.subr.bf16.mxu1 %v13592_v40  ;;  %v19207_v55 = vld [vmem:[#allocation10 + $0xdb0] sm:$0xff]  ;;  %v1975_v21 = vld [vmem:[#allocation10 + $0xdb8] sm:$0xff] }
 0x487   : > { %12886 = vst [vmem:[%s18759_s11 + $0x7a0] sm:$0xff] %v14434_v53  ;;  %v14436_v31 = vadd.f32 %v9566_v59, %v19042_v30  ;;  %v9568_v32 = vpop.f32.mrb[55].mxu0  ;;  %10721 = vmatprep.subr.bf16.mxu0 %v13590_v33  ;;  %12889 = vst [vmem:[%s18759_s11 + $0x7b8] sm:$0xff] %v14467_v12  ;;  %v14469_v61 = vadd.f32 %v9907_v63, %v19051_v48  ;;  %v13614_v42 = vcombine.high %v19196_v9, %v1962_v60  ;;  %v1986_v53 = vld [vmem:[#allocation10 + $0xe10] sm:$0xff] }
 0x488   : > { %12887 = vst [vmem:[%s18759_s11 + $0x7a8] sm:$0xff] %v14435_v11  ;;  %v14437_v26 = vadd.f32 %v9568_v32, %v19048_v2  ;;  %12912 = vst [vmem:[%s18759_s11 + $0x870] sm:$0xff] %v14468_v51  ;;  %10980 = vmatmul.mubr.bf16.vlgmr.msra.gmra.mrb[96].mxu1 %v21252_v20  ;;  %v13613_v33 = vcombine.low %v19196_v9, %v1962_v60  ;;  %v13615_v40 = vcombine.low %v1951_v8, %v1963_v18  ;;  %v1999_v51 = vld [vmem:[#allocation10 + $0xe78] sm:$0xff] }
 0x489   : > { %12910 = vst [vmem:[%s18759_s11 + $0x860] sm:$0xff] %v14436_v31  ;;  %10641 = vmatmul.mubr.bf16.vlgmr.msra.gmra.mrb[96].mxu0 %v21252_v20  ;;  %12913 = vst [vmem:[%s18759_s11 + $0x878] sm:$0xff] %v14469_v61  ;;  %11061 = vmatpush1.bf16.msra.mxu1 %v13591_v37  ;;  %v13638_v11 = vcombine.high %v19207_v55, %v1986_v53  ;;  %v13640_v12 = vcombine.high %v1975_v21, %v1987_v17  ;;  %v19224_v31 = vld [vmem:[#allocation10 + $0xe70] sm:$0xff]  ;;  %v2011_v32 = vld [vmem:[#allocation10 + $0xed8] sm:$0xff] }
 0x48a   : > { %12911 = vst [vmem:[%s18759_s11 + $0x868] sm:$0xff] %v14437_v26  ;;  %10722 = vmatpush1.bf16.msra.mxu0 %v13589_v52  ;;  %10650 = vmatprep.mubr.bf16.mxu0 %v21253_v19  ;;  %v13637_v18 = vcombine.low %v19207_v55, %v1986_v53  ;;  %v2010_v37 = vld [vmem:[#allocation10 + $0xed0] sm:$0xff] }
 0x48b   : > { %10989 = vmatprep.mubr.bf16.mxu1 %v21253_v19  ;;  %v9911_v25 = vpop.f32.mrb[56].mxu1  ;;  %10723 = vmatprep.subr.bf16.mxu0 %v13614_v42 }
 0x48c   : > { %v9572_v59 = vpop.f32.mrb[56].mxu0  ;;  %11062 = vmatprep.subr.bf16.mxu1 %v13616_v43  ;;  %v14470_v9 = vadd.f32 %v9911_v25, %v19045_v50  ;;  %v9913_v8 = vpop.f32.mrb[57].mxu1  ;;  %v13639_v43 = vcombine.low %v1975_v21, %v1987_v17 }
 0x48d   : > { %v14438_v52 = vadd.f32 %v9572_v59, %v19042_v30  ;;  %v9574_v60 = vpop.f32.mrb[57].mxu0  ;;  %v14471_v26 = vadd.f32 %v9913_v8, %v19051_v48  ;;  %11063 = vmatpush1.bf16.msra.mxu1 %v13615_v40  ;;  %v9915_v42 = vpop.f32.mrb[58].mxu1  ;;  %v13664_v40 = vcombine.high %v1999_v51, %v2011_v32  ;;  %v2035_v8 = vld [vmem:[#allocation10 + $0xf98] sm:$0xff] }
 0x48e   : > { %v14439_v63 = vadd.f32 %v9574_v60, %v19048_v2  ;;  %10724 = vmatpush1.bf16.msra.mxu0 %v13613_v33  ;;  %v9576_v61 = vpop.f32.mrb[58].mxu0  ;;  %12936 = vst [vmem:[%s18759_s11 + $0x930] sm:$0xff] %v14470_v9  ;;  %v14472_v55 = vadd.f32 %v9915_v42, %v19045_v50  ;;  %v9917_v25 = vpop.f32.mrb[59].mxu1  ;;  %11064 = vmatprep.subr.bf16.mxu1 %v13640_v12  ;;  %v19235_v60 = vld [vmem:[#allocation10 + $0xf30] sm:$0xff]  ;;  %v2023_v9 = vld [vmem:[#allocation10 + $0xf38] sm:$0xff] }
 0x48f   : > { %12934 = vst [vmem:[%s18759_s11 + $0x920] sm:$0xff] %v14438_v52  ;;  %v14440_v59 = vadd.f32 %v9576_v61, %v19042_v30  ;;  %v9578_v53 = vpop.f32.mrb[59].mxu0  ;;  %10725 = vmatprep.subr.bf16.mxu0 %v13638_v11  ;;  %12937 = vst [vmem:[%s18759_s11 + $0x938] sm:$0xff] %v14471_v26  ;;  %v14473_v17 = vadd.f32 %v9917_v25, %v19051_v48  ;;  %v13662_v33 = vcombine.high %v19224_v31, %v2010_v37  ;;  %v2034_v52 = vld [vmem:[#allocation10 + $0xf90] sm:$0xff] }
 0x490   : > { %12935 = vst [vmem:[%s18759_s11 + $0x928] sm:$0xff] %v14439_v63  ;;  %v14441_v21 = vadd.f32 %v9578_v53, %v19048_v2  ;;  %12960 = vst [vmem:[%s18759_s11 + $0x9f0] sm:$0xff] %v14472_v55  ;;  %10990 = vmatmul.mubr.bf16.gmra.mrb[100].mxu1 %v21254_v13  ;;  %v13661_v11 = vcombine.low %v19224_v31, %v2010_v37  ;;  %v13663_v12 = vcombine.low %v1999_v51, %v2011_v32  ;;  %v2058_v32 = vld [vmem:[#allocation10 + $0x1050] sm:$0xff]  ;;  %v2059_v53 = vld [vmem:[#allocation10 + $0x1058] sm:$0xff] }
 0x491   : > { %12958 = vst [vmem:[%s18759_s11 + $0x9e0] sm:$0xff] %v14440_v59  ;;  %10651 = vmatmul.mubr.bf16.gmra.mrb[100].mxu0 %v21254_v13  ;;  %12961 = vst [vmem:[%s18759_s11 + $0x9f8] sm:$0xff] %v14473_v17  ;;  %11065 = vmatpush1.bf16.msra.mxu1 %v13639_v43  ;;  %v13686_v63 = vcombine.high %v19235_v60, %v2034_v52  ;;  %v13688_v26 = vcombine.high %v2023_v9, %v2035_v8  ;;  %v2046_v59 = vld [vmem:[#allocation10 + $0xff0] sm:$0xff]  ;;  %v2047_v43 = vld [vmem:[#allocation10 + $0xff8] sm:$0xff] }
 0x492   : > { %12959 = vst [vmem:[%s18759_s11 + $0x9e8] sm:$0xff] %v14441_v21  ;;  %10726 = vmatpush1.bf16.msra.mxu0 %v13637_v18  ;;  %10660 = vmatprep.mubr.bf16.mxu0 %v21255_v49  ;;  %v13685_v51 = vcombine.low %v19235_v60, %v2034_v52 }
 0x493   : > { %10999 = vmatprep.mubr.bf16.mxu1 %v21255_v49  ;;  %v9921_v42 = vpop.f32.mrb[60].mxu1  ;;  %10727 = vmatprep.subr.bf16.mxu0 %v13662_v33 }
 0x494   : > { %v9582_v61 = vpop.f32.mrb[60].mxu0  ;;  %11066 = vmatprep.subr.bf16.mxu1 %v13664_v40  ;;  %v14474_v18 = vadd.f32 %v9921_v42, %v19045_v50  ;;  %v9923_v37 = vpop.f32.mrb[61].mxu1  ;;  %v13687_v40 = vcombine.low %v2023_v9, %v2035_v8  ;;  %v13710_v8 = vcombine.high %v2046_v59, %v2058_v32 }
 0x495   : > { %v14442_v55 = vadd.f32 %v9582_v61, %v19042_v30  ;;  %v9584_v31 = vpop.f32.mrb[61].mxu0  ;;  %v14475_v21 = vadd.f32 %v9923_v37, %v19051_v48  ;;  %11067 = vmatpush1.bf16.msra.mxu1 %v13663_v12  ;;  %v9925_v33 = vpop.f32.mrb[62].mxu1  ;;  %v13712_v12 = vcombine.high %v2047_v43, %v2059_v53  ;;  %v2106_v37 = vld [vmem:[#allocation10 + $0x11d0] sm:$0xff] }
 0x496   : > { %v14443_v25 = vadd.f32 %v9584_v31, %v19048_v2  ;;  %10728 = vmatpush1.bf16.msra.mxu0 %v13661_v11  ;;  %v9586_v17 = vpop.f32.mrb[62].mxu0  ;;  %12984 = vst [vmem:[%s18759_s11 + $0xab0] sm:$0xff] %v14474_v18  ;;  %v14476_v60 = vadd.f32 %v9925_v33, %v19045_v50  ;;  %v9927_v42 = vpop.f32.mrb[63].mxu1  ;;  %11068 = vmatprep.subr.bf16.mxu1 %v13688_v26  ;;  %v2070_v31 = vld [vmem:[#allocation10 + $0x10b0] sm:$0xff]  ;;  %v2083_v18 = vld [vmem:[#allocation10 + $0x1118] sm:$0xff] }
 0x497   : > { %12982 = vst [vmem:[%s18759_s11 + $0xaa0] sm:$0xff] %v14442_v55  ;;  %v14444_v61 = vadd.f32 %v9586_v17, %v19042_v30  ;;  %v9588_v52 = vpop.f32.mrb[63].mxu0  ;;  %10729 = vmatprep.subr.bf16.mxu0 %v13686_v63  ;;  %12985 = vst [vmem:[%s18759_s11 + $0xab8] sm:$0xff] %v14475_v21  ;;  %v14477_v9 = vadd.f32 %v9927_v42, %v19051_v48  ;;  %v2082_v30 = vld [vmem:[#allocation10 + $0x1110] sm:$0xff]  ;;  %v2071_v55 = vld [vmem:[#allocation10 + $0x10b8] sm:$0xff]  ;;  %v13709_v50 = vcombine.low %v2046_v59, %v2058_v32 }
 0x498   : > { %12983 = vst [vmem:[%s18759_s11 + $0xaa8] sm:$0xff] %v14443_v25  ;;  %v14445_v11 = vadd.f32 %v9588_v52, %v19048_v2  ;;  %13008 = vst [vmem:[%s18759_s11 + $0xb70] sm:$0xff] %v14476_v60  ;;  %11000 = vmatmul.mubr.bf16.gmra.mrb[104].mxu1 %v21256_v54  ;;  %v13711_v63 = vcombine.low %v2047_v43, %v2059_v53  ;;  %v13734_v2 = vcombine.high %v2070_v31, %v2082_v30  ;;  %v2094_v26 = vld [vmem:[#allocation10 + $0x1170] sm:$0xff]  ;;  %v2095_v25 = vld [vmem:[#allocation10 + $0x1178] sm:$0xff] }
 0x499   : > { %13006 = vst [vmem:[%s18759_s11 + $0xb60] sm:$0xff] %v14444_v61  ;;  %10661 = vmatmul.mubr.bf16.gmra.mrb[104].mxu0 %v21256_v54  ;;  %13009 = vst [vmem:[%s18759_s11 + $0xb78] sm:$0xff] %v14477_v9  ;;  %11069 = vmatpush1.bf16.msra.mxu1 %v13687_v40  ;;  %v13736_v48 = vcombine.high %v2071_v55, %v2083_v18  ;;  %v2107_v21 = vld [vmem:[#allocation10 + $0x11d8] sm:$0xff]  ;;  %v13733_v17 = vcombine.low %v2070_v31, %v2082_v30  ;;  %v2118_v59 = vld [vmem:[#allocation10 + $0x1230] sm:$0xff] }
 0x49a   : > { %13007 = vst [vmem:[%s18759_s11 + $0xb68] sm:$0xff] %v14445_v11  ;;  %10730 = vmatpush1.bf16.msra.mxu0 %v13685_v51  ;;  %10670 = vmatprep.mubr.bf16.mxu0 %v21257_v22  ;;  %v13735_v33 = vcombine.low %v2071_v55, %v2083_v18  ;;  %v13758_v51 = vcombine.high %v2094_v26, %v2106_v37  ;;  %v2130_v43 = vld [vmem:[#allocation10 + $0x1290] sm:$0xff]  ;;  %v2119_v53 = vld [vmem:[#allocation10 + $0x1238] sm:$0xff] }
 0x49b   : > { %11009 = vmatprep.mubr.bf16.mxu1 %v21257_v22  ;;  %10731 = vmatprep.subr.bf16.mxu0 %v13710_v8  ;;  %v13760_v32 = vcombine.high %v2095_v25, %v2107_v21  ;;  %v2131_v40 = vld [vmem:[#allocation10 + $0x1298] sm:$0xff]  ;;  %v13757_v61 = vcombine.low %v2094_v26, %v2106_v37  ;;  %v13759_v60 = vcombine.low %v2095_v25, %v2107_v21  ;;  %v2142_v31 = vld [vmem:[#allocation10 + $0x12f0] sm:$0xff] }
 0x49c   : > { %11070 = vmatprep.subr.bf16.mxu1 %v13712_v12  ;;  %v13782_v52 = vcombine.high %v2118_v59, %v2130_v43  ;;  %v13784_v42 = vcombine.high %v2119_v53, %v2131_v40  ;;  %v2154_v11 = vld [vmem:[#allocation10 + $0x1350] sm:$0xff]  ;;  %v2143_v9 = vld [vmem:[#allocation10 + $0x12f8] sm:$0xff]  ;;  %v13781_v12 = vcombine.low %v2118_v59, %v2130_v43  ;;  %v13783_v30 = vcombine.low %v2119_v53, %v2131_v40 }
 0x49d   : > { %11071 = vmatpush1.bf16.msra.mxu1 %v13711_v63  ;;  %v2155_v8 = vld [vmem:[#allocation10 + $0x1358] sm:$0xff]  ;;  %v2166_v55 = vld [vmem:[#allocation10 + $0x13b0] sm:$0xff]  ;;  %v13806_v18 = vcombine.high %v2142_v31, %v2154_v11  ;;  %v13805_v26 = vcombine.low %v2142_v31, %v2154_v11 }
 0x49e   : > { %10732 = vmatpush1.bf16.msra.mxu0 %v13709_v50  ;;  %11072 = vmatprep.subr.bf16.mxu1 %v13736_v48  ;;  %v13808_v50 = vcombine.high %v2143_v9, %v2155_v8  ;;  %v2178_v63 = vld [vmem:[#allocation10 + $0x1410] sm:$0xff]  ;;  %v2179_v48 = vld [vmem:[#allocation10 + $0x1418] sm:$0xff]  ;;  %v13807_v37 = vcombine.low %v2143_v9, %v2155_v8 }
 0x49f   : > { %10733 = vmatprep.subr.bf16.mxu0 %v13734_v2  ;;  %v2167_v2 = vld [vmem:[#allocation10 + $0x13b8] sm:$0xff]  ;;  %v13830_v25 = vcombine.high %v2166_v55, %v2178_v63  ;;  %v2214_v53 = vld [vmem:[#allocation10 + $0x1530] sm:$0xff] }
 0x4a0   : > { %11010 = vmatmul.mubr.bf16.gmra.mrb[108].mxu1 %v21258_v39  ;;  %v13832_v21 = vcombine.high %v2167_v2, %v2179_v48  ;;  %v2191_v59 = vld [vmem:[#allocation10 + $0x1478] sm:$0xff]  ;;  %v13831_v43 = vcombine.low %v2167_v2, %v2179_v48  ;;  %v2262_v2 = vld [vmem:[#allocation10 + $0x16b0] sm:$0xff] }
 0x4a1   : > { %10671 = vmatmul.mubr.bf16.gmra.mrb[108].mxu0 %v21258_v39  ;;  %11073 = vmatpush1.bf16.msra.mxu1 %v13735_v33  ;;  %v2202_v33 = vld [vmem:[#allocation10 + $0x14d0] sm:$0xff] }
 0x4a2   : > { %10734 = vmatpush1.bf16.msra.mxu0 %v13733_v17  ;;  %10680 = vmatprep.mubr.bf16.mxu0 %v21259_v4  ;;  %v2190_v17 = vld [vmem:[#allocation10 + $0x1470] sm:$0xff] }
 0x4a3   : > { %11019 = vmatprep.mubr.bf16.mxu1 %v21259_v4  ;;  %10735 = vmatprep.subr.bf16.mxu0 %v13758_v51  ;;  %v2203_v51 = vld [vmem:[#allocation10 + $0x14d8] sm:$0xff]  ;;  %v13854_v40 = vcombine.high %v2190_v17, %v2202_v33  ;;  %v13853_v31 = vcombine.low %v2190_v17, %v2202_v33 }
 0x4a4   : > { %11074 = vmatprep.subr.bf16.mxu1 %v13760_v32  ;;  %v13829_v32 = vcombine.low %v2166_v55, %v2178_v63  ;;  %v13855_v11 = vcombine.low %v2191_v59, %v2203_v51  ;;  %v2239_v55 = vld [vmem:[#allocation10 + $0x15f8] sm:$0xff] }
 0x4a5   : > { %11075 = vmatpush1.bf16.msra.mxu1 %v13759_v60  ;;  %v2226_v60 = vld [vmem:[#allocation10 + $0x1590] sm:$0xff] }
 0x4a6   : > { %10736 = vmatpush1.bf16.msra.mxu0 %v13757_v61  ;;  %11076 = vmatprep.subr.bf16.mxu1 %v13784_v42  ;;  %v13856_v61 = vcombine.high %v2191_v59, %v2203_v51  ;;  %v2227_v42 = vld [vmem:[#allocation10 + $0x1598] sm:$0xff]  ;;  %v13878_v9 = vcombine.high %v2214_v53, %v2226_v60 }
 0x4a7   : > { %10737 = vmatprep.subr.bf16.mxu0 %v13782_v52  ;;  %v2215_v52 = vld [vmem:[#allocation10 + $0x1538] sm:$0xff] }
 0x4a8   : > { %11020 = vmatmul.mubr.bf16.gmra.mrb[112].mxu1 %v21260_v41  ;;  %v13880_v8 = vcombine.high %v2215_v52, %v2227_v42  ;;  %v13879_v63 = vcombine.low %v2215_v52, %v2227_v42  ;;  %v2310_v52 = vld [vmem:[#allocation10 + $0x1830] sm:$0xff] }
 0x4a9   : > { %10681 = vmatmul.mubr.bf16.gmra.mrb[112].mxu0 %v21260_v41  ;;  %11077 = vmatpush1.bf16.msra.mxu1 %v13783_v30  ;;  %v2250_v30 = vld [vmem:[#allocation10 + $0x1650] sm:$0xff] }
 0x4aa   : > { %10738 = vmatpush1.bf16.msra.mxu0 %v13781_v12  ;;  %10690 = vmatprep.mubr.bf16.mxu0 %v21261_v27  ;;  %v2238_v12 = vld [vmem:[#allocation10 + $0x15f0] sm:$0xff] }
 0x4ab   : > { %11029 = vmatprep.mubr.bf16.mxu1 %v21261_v27  ;;  %10739 = vmatprep.subr.bf16.mxu0 %v13806_v18  ;;  %v2251_v18 = vld [vmem:[#allocation10 + $0x1658] sm:$0xff]  ;;  %v13902_v48 = vcombine.high %v2238_v12, %v2250_v30  ;;  %v13901_v17 = vcombine.low %v2238_v12, %v2250_v30 }
 0x4ac   : > { %11078 = vmatprep.subr.bf16.mxu1 %v13808_v50  ;;  %v13877_v50 = vcombine.low %v2214_v53, %v2226_v60  ;;  %v13903_v33 = vcombine.low %v2239_v55, %v2251_v18  ;;  %v2287_v53 = vld [vmem:[#allocation10 + $0x1778] sm:$0xff] }
 0x4ad   : > { %11079 = vmatpush1.bf16.msra.mxu1 %v13807_v37  ;;  %v2274_v37 = vld [vmem:[#allocation10 + $0x1710] sm:$0xff] }
 0x4ae   : > { %10740 = vmatpush1.bf16.msra.mxu0 %v13805_v26  ;;  %11080 = vmatprep.subr.bf16.mxu1 %v13832_v21  ;;  %v13904_v26 = vcombine.high %v2239_v55, %v2251_v18  ;;  %v2275_v21 = vld [vmem:[#allocation10 + $0x1718] sm:$0xff]  ;;  %v13926_v59 = vcombine.high %v2262_v2, %v2274_v37 }
 0x4af   : > { %10741 = vmatprep.subr.bf16.mxu0 %v13830_v25  ;;  %v2263_v25 = vld [vmem:[#allocation10 + $0x16b8] sm:$0xff] }
 0x4b0   : > { %11030 = vmatmul.mubr.bf16.gmra.mrb[116].mxu1 %v21262_v46  ;;  %v13928_v51 = vcombine.high %v2263_v25, %v2275_v21  ;;  %v13927_v60 = vcombine.low %v2263_v25, %v2275_v21  ;;  %v2358_v25 = vld [vmem:[#allocation10 + $0x19b0] sm:$0xff] }
 0x4b1   : > { %10691 = vmatmul.mubr.bf16.gmra.mrb[116].mxu0 %v21262_v46  ;;  %11081 = vmatpush1.bf16.msra.mxu1 %v13831_v43  ;;  %v2298_v43 = vld [vmem:[#allocation10 + $0x17d0] sm:$0xff] }
 0x4b2   : > { %10742 = vmatpush1.bf16.msra.mxu0 %v13829_v32  ;;  %10700 = vmatprep.mubr.bf16.mxu0 %v21263_v34  ;;  %v2286_v32 = vld [vmem:[#allocation10 + $0x1770] sm:$0xff] }
 0x4b3   : > { %11039 = vmatprep.mubr.bf16.mxu1 %v21263_v34  ;;  %10743 = vmatprep.subr.bf16.mxu0 %v13854_v40  ;;  %v2299_v40 = vld [vmem:[#allocation10 + $0x17d8] sm:$0xff]  ;;  %v13950_v42 = vcombine.high %v2286_v32, %v2298_v43  ;;  %v13949_v12 = vcombine.low %v2286_v32, %v2298_v43 }
 0x4b4   : > { %11082 = vmatprep.subr.bf16.mxu1 %v13856_v61  ;;  %v13925_v61 = vcombine.low %v2262_v2, %v2274_v37  ;;  %v13951_v30 = vcombine.low %v2287_v53, %v2299_v40  ;;  %v2335_v2 = vld [vmem:[#allocation10 + $0x18f8] sm:$0xff] }
 0x4b5   : > { %11083 = vmatpush1.bf16.msra.mxu1 %v13855_v11  ;;  %v2322_v11 = vld [vmem:[#allocation10 + $0x1890] sm:$0xff] }
 0x4b6   : > { %10744 = vmatpush1.bf16.msra.mxu0 %v13853_v31  ;;  %11084 = vmatprep.subr.bf16.mxu1 %v13880_v8  ;;  %v13952_v31 = vcombine.high %v2287_v53, %v2299_v40  ;;  %v2323_v8 = vld [vmem:[#allocation10 + $0x1898] sm:$0xff]  ;;  %v13974_v55 = vcombine.high %v2310_v52, %v2322_v11 }
 0x4b7   : > { %10745 = vmatprep.subr.bf16.mxu0 %v13878_v9  ;;  %v2311_v9 = vld [vmem:[#allocation10 + $0x1838] sm:$0xff] }
 0x4b8   : > { %11040 = vmatmul.mubr.bf16.gmra.mrb[120].mxu1 %v21264_v23  ;;  %v13976_v18 = vcombine.high %v2311_v9, %v2323_v8  ;;  %v13975_v37 = vcombine.low %v2311_v9, %v2323_v8  ;;  %v2406_v9 = vld [vmem:[#allocation10 + $0x1b30] sm:$0xff] }
 0x4b9   : > { %10701 = vmatmul.mubr.bf16.gmra.mrb[120].mxu0 %v21264_v23  ;;  %11085 = vmatpush1.bf16.msra.mxu1 %v13879_v63  ;;  %v2346_v63 = vld [vmem:[#allocation10 + $0x1950] sm:$0xff] }
 0x4ba   : > { %10746 = vmatpush1.bf16.msra.mxu0 %v13877_v50  ;;  %10710 = vmatprep.mubr.bf16.mxu0 %v21265_v47  ;;  %v2334_v50 = vld [vmem:[#allocation10 + $0x18f0] sm:$0xff] }
 0x4bb   : > { %11049 = vmatprep.mubr.bf16.mxu1 %v21265_v47  ;;  %10747 = vmatprep.subr.bf16.mxu0 %v13902_v48  ;;  %v2347_v48 = vld [vmem:[#allocation10 + $0x1958] sm:$0xff]  ;;  %v13998_v21 = vcombine.high %v2334_v50, %v2346_v63  ;;  %v13997_v32 = vcombine.low %v2334_v50, %v2346_v63 }
 0x4bc   : > { %11086 = vmatprep.subr.bf16.mxu1 %v13904_v26  ;;  %v13973_v26 = vcombine.low %v2310_v52, %v2322_v11  ;;  %v13999_v43 = vcombine.low %v2335_v2, %v2347_v48  ;;  %v2383_v52 = vld [vmem:[#allocation10 + $0x1a78] sm:$0xff] }
 0x4bd   : > { %11087 = vmatpush1.bf16.msra.mxu1 %v13903_v33  ;;  %v2370_v33 = vld [vmem:[#allocation10 + $0x1a10] sm:$0xff] }
 0x4be   : > { %10748 = vmatpush1.bf16.msra.mxu0 %v13901_v17  ;;  %11088 = vmatprep.subr.bf16.mxu1 %v13928_v51  ;;  %v14000_v17 = vcombine.high %v2335_v2, %v2347_v48  ;;  %v2371_v51 = vld [vmem:[#allocation10 + $0x1a18] sm:$0xff]  ;;  %v14022_v53 = vcombine.high %v2358_v25, %v2370_v33 }
 0x4bf   : > { %10749 = vmatprep.subr.bf16.mxu0 %v13926_v59  ;;  %v2359_v59 = vld [vmem:[#allocation10 + $0x19b8] sm:$0xff] }
 0x4c0   : > { %11050 = vmatmul.mubr.bf16.gmra.mrb[124].mxu1 %v21277_v3  ;;  %v14024_v40 = vcombine.high %v2359_v59, %v2371_v51  ;;  %v14023_v11 = vcombine.low %v2359_v59, %v2371_v51  ;;  %v2454_v59 = vld [vmem:[#allocation10 + $0x1cb0] sm:$0xff] }
 0x4c1   : > { %10711 = vmatmul.mubr.bf16.gmra.mrb[124].mxu0 %v21277_v3  ;;  %11089 = vmatpush1.bf16.msra.mxu1 %v13927_v60  ;;  %v2394_v60 = vld [vmem:[#allocation10 + $0x1ad0] sm:$0xff] }
 0x4c2   : > { %10750 = vmatpush1.bf16.msra.mxu0 %v13925_v61  ;;  %10753 = vmatprep.mubr.bf16.mxu0 %v21267_v7  ;;  %v2382_v61 = vld [vmem:[#allocation10 + $0x1a70] sm:$0xff] }
 0x4c3   : > { %11092 = vmatprep.mubr.bf16.mxu1 %v21267_v7  ;;  %10751 = vmatprep.subr.bf16.mxu0 %v13950_v42  ;;  %v2395_v42 = vld [vmem:[#allocation10 + $0x1ad8] sm:$0xff]  ;;  %v14046_v8 = vcombine.high %v2382_v61, %v2394_v60  ;;  %v14045_v50 = vcombine.low %v2382_v61, %v2394_v60 }
 0x4c4   : > { %11090 = vmatprep.subr.bf16.mxu1 %v13952_v31  ;;  %v14021_v31 = vcombine.low %v2358_v25, %v2370_v33  ;;  %v14047_v63 = vcombine.low %v2383_v52, %v2395_v42  ;;  %v2431_v25 = vld [vmem:[#allocation10 + $0x1bf8] sm:$0xff] }
 0x4c5   : > { %11091 = vmatpush1.bf16.msra.mxu1 %v13951_v30  ;;  %v2418_v30 = vld [vmem:[#allocation10 + $0x1b90] sm:$0xff] }
 0x4c6   : > { %10752 = vmatpush1.bf16.msra.mxu0 %v13949_v12  ;;  %11173 = vmatprep.subr.bf16.mxu1 %v13976_v18  ;;  %v14048_v12 = vcombine.high %v2383_v52, %v2395_v42  ;;  %v2419_v18 = vld [vmem:[#allocation10 + $0x1b98] sm:$0xff]  ;;  %v14070_v2 = vcombine.high %v2406_v9, %v2418_v30 }
 0x4c7   : > { %10834 = vmatprep.subr.bf16.mxu0 %v13974_v55  ;;  %v2407_v55 = vld [vmem:[#allocation10 + $0x1b38] sm:$0xff] }
 0x4c8   : > { %11093 = vmatmul.mubr.bf16.vlgmr.msra.gmra.mrb[96].mxu1 %v21278_v56  ;;  %v14072_v48 = vcombine.high %v2407_v55, %v2419_v18  ;;  %v14071_v33 = vcombine.low %v2407_v55, %v2419_v18  ;;  %v2502_v55 = vld [vmem:[#allocation10 + $0x1e30] sm:$0xff] }
 0x4c9   : > { %10754 = vmatmul.mubr.bf16.vlgmr.msra.gmra.mrb[96].mxu0 %v21278_v56  ;;  %11174 = vmatpush1.bf16.msra.mxu1 %v13975_v37  ;;  %v2442_v37 = vld [vmem:[#allocation10 + $0x1c50] sm:$0xff] }
 0x4ca   : > { %10835 = vmatpush1.bf16.msra.mxu0 %v13973_v26  ;;  %10763 = vmatprep.mubr.bf16.mxu0 %v21279_v29  ;;  %v2430_v26 = vld [vmem:[#allocation10 + $0x1bf0] sm:$0xff] }
 0x4cb   : > { %11102 = vmatprep.mubr.bf16.mxu1 %v21279_v29  ;;  %10836 = vmatprep.subr.bf16.mxu0 %v13998_v21  ;;  %v2443_v21 = vld [vmem:[#allocation10 + $0x1c58] sm:$0xff]  ;;  %v14094_v51 = vcombine.high %v2430_v26, %v2442_v37  ;;  %v14093_v61 = vcombine.low %v2430_v26, %v2442_v37 }
 0x4cc   : > { %11175 = vmatprep.subr.bf16.mxu1 %v14000_v17  ;;  %v14069_v17 = vcombine.low %v2406_v9, %v2418_v30  ;;  %v14095_v60 = vcombine.low %v2431_v25, %v2443_v21  ;;  %v2479_v9 = vld [vmem:[#allocation10 + $0x1d78] sm:$0xff] }
 0x4cd   : > { %11176 = vmatpush1.bf16.msra.mxu1 %v13999_v43  ;;  %v2466_v43 = vld [vmem:[#allocation10 + $0x1d10] sm:$0xff] }
 0x4ce   : > { %10837 = vmatpush1.bf16.msra.mxu0 %v13997_v32  ;;  %11177 = vmatprep.subr.bf16.mxu1 %v14024_v40  ;;  %v14096_v32 = vcombine.high %v2431_v25, %v2443_v21  ;;  %v2467_v40 = vld [vmem:[#allocation10 + $0x1d18] sm:$0xff]  ;;  %v14118_v52 = vcombine.high %v2454_v59, %v2466_v43 }
 0x4cf   : > { %10838 = vmatprep.subr.bf16.mxu0 %v14022_v53  ;;  %v2455_v53 = vld [vmem:[#allocation10 + $0x1cb8] sm:$0xff] }
 0x4d0   : > { %11103 = vmatmul.mubr.bf16.gmra.mrb[100].mxu1 %v21280_v0  ;;  %v14120_v42 = vcombine.high %v2455_v53, %v2467_v40  ;;  %v14119_v30 = vcombine.low %v2455_v53, %v2467_v40  ;;  %v2550_v53 = vld [vmem:[#allocation10 + $0x1fb0] sm:$0xff] }
 0x4d1   : > { %10764 = vmatmul.mubr.bf16.gmra.mrb[100].mxu0 %v21280_v0  ;;  %11178 = vmatpush1.bf16.msra.mxu1 %v14023_v11  ;;  %v2490_v11 = vld [vmem:[#allocation10 + $0x1dd0] sm:$0xff] }
 0x4d2   : > { %10839 = vmatpush1.bf16.msra.mxu0 %v14021_v31  ;;  %10773 = vmatprep.mubr.bf16.mxu0 %v21281_v16  ;;  %v2478_v31 = vld [vmem:[#allocation10 + $0x1d70] sm:$0xff] }
 0x4d3   : > { %11112 = vmatprep.mubr.bf16.mxu1 %v21281_v16  ;;  %10840 = vmatprep.subr.bf16.mxu0 %v14046_v8  ;;  %v2491_v8 = vld [vmem:[#allocation10 + $0x1dd8] sm:$0xff]  ;;  %v14142_v18 = vcombine.high %v2478_v31, %v2490_v11  ;;  %v14141_v26 = vcombine.low %v2478_v31, %v2490_v11 }
 0x4d4   : > { %11179 = vmatprep.subr.bf16.mxu1 %v14048_v12  ;;  %v14117_v12 = vcombine.low %v2454_v59, %v2466_v43  ;;  %v14143_v37 = vcombine.low %v2479_v9, %v2491_v8  ;;  %v2527_v59 = vld [vmem:[#allocation10 + $0x1ef8] sm:$0xff] }
 0x4d5   : > { %11180 = vmatpush1.bf16.msra.mxu1 %v14047_v63  ;;  %v2514_v63 = vld [vmem:[#allocation10 + $0x1e90] sm:$0xff] }
 0x4d6   : > { %10841 = vmatpush1.bf16.msra.mxu0 %v14045_v50  ;;  %11181 = vmatprep.subr.bf16.mxu1 %v14072_v48  ;;  %v14144_v50 = vcombine.high %v2479_v9, %v2491_v8  ;;  %v2515_v48 = vld [vmem:[#allocation10 + $0x1e98] sm:$0xff]  ;;  %v14166_v25 = vcombine.high %v2502_v55, %v2514_v63 }
 0x4d7   : > { %10842 = vmatprep.subr.bf16.mxu0 %v14070_v2  ;;  %v2503_v2 = vld [vmem:[#allocation10 + $0x1e38] sm:$0xff] }
 0x4d8   : > { %11113 = vmatmul.mubr.bf16.gmra.mrb[104].mxu1 %v21282_v62  ;;  %v14168_v21 = vcombine.high %v2503_v2, %v2515_v48  ;;  %v14167_v43 = vcombine.low %v2503_v2, %v2515_v48  ;;  %v2598_v2 = vld [vmem:[#allocation10 + $0x2130] sm:$0xff] }
 0x4d9   : > { %10774 = vmatmul.mubr.bf16.gmra.mrb[104].mxu0 %v21282_v62  ;;  %11182 = vmatpush1.bf16.msra.mxu1 %v14071_v33  ;;  %v2538_v33 = vld [vmem:[#allocation10 + $0x1f50] sm:$0xff] }
 0x4da   : > { %10843 = vmatpush1.bf16.msra.mxu0 %v14069_v17  ;;  %10783 = vmatprep.mubr.bf16.mxu0 %v21272_v24  ;;  %v2526_v17 = vld [vmem:[#allocation10 + $0x1ef0] sm:$0xff] }
 0x4db   : > { %11122 = vmatprep.mubr.bf16.mxu1 %v21272_v24  ;;  %10844 = vmatprep.subr.bf16.mxu0 %v14094_v51  ;;  %v2539_v51 = vld [vmem:[#allocation10 + $0x1f58] sm:$0xff]  ;;  %v14190_v40 = vcombine.high %v2526_v17, %v2538_v33  ;;  %v14189_v31 = vcombine.low %v2526_v17, %v2538_v33  ;;  %v21294_v17 = vld [vmem:[#allocation121_spill] sm:$0xff] }
 0x4dc   : > { %11183 = vmatprep.subr.bf16.mxu1 %v14096_v32  ;;  %v14165_v32 = vcombine.low %v2502_v55, %v2514_v63  ;;  %v14191_v11 = vcombine.low %v2527_v59, %v2539_v51  ;;  %v2575_v55 = vld [vmem:[#allocation10 + $0x2078] sm:$0xff] }
 0x4dd   : > { %11184 = vmatpush1.bf16.msra.mxu1 %v14095_v60  ;;  %v2562_v60 = vld [vmem:[#allocation10 + $0x2010] sm:$0xff] }
 0x4de   : > { %10845 = vmatpush1.bf16.msra.mxu0 %v14093_v61  ;;  %11185 = vmatprep.subr.bf16.mxu1 %v14120_v42  ;;  %v14192_v61 = vcombine.high %v2527_v59, %v2539_v51  ;;  %v2563_v42 = vld [vmem:[#allocation10 + $0x2018] sm:$0xff]  ;;  %v14214_v9 = vcombine.high %v2550_v53, %v2562_v60  ;;  %v21295_v51 = vld [vmem:[#allocation131_spill] sm:$0xff] }
 0x4df   : > { %10846 = vmatprep.subr.bf16.mxu0 %v14118_v52  ;;  %v2551_v52 = vld [vmem:[#allocation10 + $0x1fb8] sm:$0xff] }
 0x4e0   : > { %11123 = vmatmul.mubr.bf16.gmra.mrb[108].mxu1 %v21215_v14  ;;  %v14216_v8 = vcombine.high %v2551_v52, %v2563_v42  ;;  %v14215_v63 = vcombine.low %v2551_v52, %v2563_v42 }
 0x4e1   : > { %10784 = vmatmul.mubr.bf16.gmra.mrb[108].mxu0 %v21215_v14  ;;  %11186 = vmatpush1.bf16.msra.mxu1 %v14119_v30  ;;  %v2586_v30 = vld [vmem:[#allocation10 + $0x20d0] sm:$0xff] }
 0x4e2   : > { %10847 = vmatpush1.bf16.msra.mxu0 %v14117_v12  ;;  %10793 = vmatprep.mubr.bf16.mxu0 %v18430_v44  ;;  %v2574_v12 = vld [vmem:[#allocation10 + $0x2070] sm:$0xff] }
 0x4e3   : > { %11132 = vmatprep.mubr.bf16.mxu1 %v18430_v44  ;;  %10848 = vmatprep.subr.bf16.mxu0 %v14142_v18  ;;  %v2587_v18 = vld [vmem:[#allocation10 + $0x20d8] sm:$0xff]  ;;  %v14238_v48 = vcombine.high %v2574_v12, %v2586_v30  ;;  %v14237_v33 = vcombine.low %v2574_v12, %v2586_v30 }
 0x4e4   : > { %11187 = vmatprep.subr.bf16.mxu1 %v14144_v50  ;;  %v14213_v50 = vcombine.low %v2550_v53, %v2562_v60  ;;  %v14239_v59 = vcombine.low %v2575_v55, %v2587_v18  ;;  %v2622_v53 = vld [vmem:[#allocation10 + $0x21f0] sm:$0xff]  ;;  %v2635_v60 = vld [vmem:[#allocation10 + $0x2258] sm:$0xff] }
 0x4e5   : > { %11188 = vmatpush1.bf16.msra.mxu1 %v14143_v37  ;;  %v2610_v37 = vld [vmem:[#allocation10 + $0x2190] sm:$0xff]  ;;  %v2647_v12 = vld [vmem:[#allocation10 + $0x22b8] sm:$0xff] }
 0x4e6   : > { %10849 = vmatpush1.bf16.msra.mxu0 %v14141_v26  ;;  %11189 = vmatprep.subr.bf16.mxu1 %v14168_v21  ;;  %v14240_v26 = vcombine.high %v2575_v55, %v2587_v18  ;;  %v2611_v21 = vld [vmem:[#allocation10 + $0x2198] sm:$0xff]  ;;  %v14261_v52 = vcombine.low %v2598_v2, %v2610_v37 }
 0x4e7   : > { %10850 = vmatprep.subr.bf16.mxu0 %v14166_v25  ;;  %v2599_v25 = vld [vmem:[#allocation10 + $0x2138] sm:$0xff] }
 0x4e8   : > { %11133 = vmatmul.mubr.bf16.gmra.mrb[112].mxu1 %v21231_v15  ;;  %v14263_v42 = vcombine.low %v2599_v25, %v2611_v21  ;;  %v2659_v30 = vld [vmem:[#allocation10 + $0x2318] sm:$0xff] }
 0x4e9   : > { %10794 = vmatmul.mubr.bf16.gmra.mrb[112].mxu0 %v21231_v15  ;;  %11190 = vmatpush1.bf16.msra.mxu1 %v14167_v43  ;;  %v14264_v43 = vcombine.high %v2599_v25, %v2611_v21  ;;  %v21296_v55 = vld [vmem:[#allocation124_spill] sm:$0xff] }
 0x4ea   : > { %10851 = vmatpush1.bf16.msra.mxu0 %v14165_v32  ;;  %10803 = vmatprep.mubr.bf16.mxu0 %v18519_v35  ;;  %v14262_v32 = vcombine.high %v2598_v2, %v2610_v37  ;;  %v2682_v37 = vld [vmem:[#allocation10 + $0x23d0] sm:$0xff]  ;;  %v2671_v25 = vld [vmem:[#allocation10 + $0x2378] sm:$0xff] }
 0x4eb   : > { %11142 = vmatprep.mubr.bf16.mxu1 %v18519_v35  ;;  %10852 = vmatprep.subr.bf16.mxu0 %v14190_v40  ;;  %v2634_v40 = vld [vmem:[#allocation10 + $0x2250] sm:$0xff]  ;;  %v2683_v21 = vld [vmem:[#allocation10 + $0x23d8] sm:$0xff] }
 0x4ec   : > { %11191 = vmatprep.subr.bf16.mxu1 %v14192_v61  ;;  %v2623_v61 = vld [vmem:[#allocation10 + $0x21f8] sm:$0xff]  ;;  %v14285_v18 = vcombine.low %v2622_v53, %v2634_v40 }
 0x4ed   : > { %11192 = vmatpush1.bf16.msra.mxu1 %v14191_v11  ;;  %v14286_v11 = vcombine.high %v2622_v53, %v2634_v40  ;;  %v14336_v53 = vcombine.high %v2671_v25, %v2683_v21  ;;  %v1556_v40 = vld [vmem:[#allocation10 + $0xa0] sm:$0xff] }
 0x4ee   : > { %10853 = vmatpush1.bf16.msra.mxu0 %v14189_v31  ;;  %11193 = vmatprep.subr.bf16.mxu1 %v14216_v8  ;;  %v2646_v31 = vld [vmem:[#allocation10 + $0x22b0] sm:$0xff] }
 0x4ef   : > { %10854 = vmatprep.subr.bf16.mxu0 %v14214_v9  ;;  %v14288_v9 = vcombine.high %v2623_v61, %v2635_v60  ;;  %v2658_v8 = vld [vmem:[#allocation10 + $0x2310] sm:$0xff] }
 0x4f0   : > { %11143 = vmatmul.mubr.bf16.gmra.mrb[116].mxu1 %v21294_v17  ;;  %v14310_v2 = vcombine.high %v2646_v31, %v2658_v8 }
 0x4f1   : > { %10804 = vmatmul.mubr.bf16.gmra.mrb[116].mxu0 %v21294_v17  ;;  %11194 = vmatpush1.bf16.msra.mxu1 %v14215_v63  ;;  %v21297_v63 = vld [vmem:[#allocation132_spill] sm:$0xff] }
 0x4f2   : > { %10855 = vmatpush1.bf16.msra.mxu0 %v14213_v50  ;;  %10813 = vmatprep.mubr.bf16.mxu0 %v21295_v51  ;;  %v14287_v50 = vcombine.low %v2623_v61, %v2635_v60  ;;  %v1545_v61 = vld [vmem:[#allocation10 + $0x48] sm:$0xff] }
 0x4f3   : > { %11152 = vmatprep.mubr.bf16.mxu1 %v21295_v51  ;;  %10856 = vmatprep.subr.bf16.mxu0 %v14238_v48  ;;  %v14312_v48 = vcombine.high %v2647_v12, %v2659_v30  ;;  %v1557_v60 = vld [vmem:[#allocation10 + $0xa8] sm:$0xff] }
 0x4f4   : > { %11195 = vmatprep.subr.bf16.mxu1 %v14240_v26  ;;  %v2670_v26 = vld [vmem:[#allocation10 + $0x2370] sm:$0xff] }
 0x4f5   : > { %11196 = vmatpush1.bf16.msra.mxu1 %v14239_v59  ;;  %v14311_v59 = vcombine.low %v2647_v12, %v2659_v30  ;;  %v1568_v12 = vld [vmem:[#allocation10 + $0x100] sm:$0xff] }
 0x4f6   : > { %10857 = vmatpush1.bf16.msra.mxu0 %v14237_v33  ;;  %11197 = vmatprep.subr.bf16.mxu1 %v14264_v43  ;;  %v14309_v33 = vcombine.low %v2646_v31, %v2658_v8  ;;  %v14334_v43 = vcombine.high %v2670_v26, %v2682_v37  ;;  %v13212_v8 = vcombine.high %v1545_v61, %v1557_v60  ;;  %v1580_v30 = vld [vmem:[#allocation10 + $0x160] sm:$0xff] }
 0x4f7   : > { %10858 = vmatprep.subr.bf16.mxu0 %v14262_v32  ;;  %v1544_v32 = vld [vmem:[#allocation10 + $0x40] sm:$0xff] }
 0x4f8   : > { %11153 = vmatmul.mubr.bf16.gmra.mrb[120].mxu1 %v21296_v55  ;;  %v13210_v31 = vcombine.high %v1544_v32, %v1556_v40 }
 0x4f9   : > { %10814 = vmatmul.mubr.bf16.gmra.mrb[120].mxu0 %v21296_v55  ;;  %11198 = vmatpush1.bf16.msra.mxu1 %v14263_v42  ;;  %v14333_v42 = vcombine.low %v2670_v26, %v2682_v37  ;;  %v1592_v26 = vld [vmem:[#allocation10 + $0x1c0] sm:$0xff]  ;;  %v13234_v37 = vcombine.high %v1568_v12, %v1580_v30 }
 0x4fa   : > { %10859 = vmatpush1.bf16.msra.mxu0 %v14261_v52  ;;  %10823 = vmatprep.mubr.bf16.mxu0 %v21297_v63  ;;  %v21298_v52 = vld [vmem:[#allocation39_spill] sm:$0xff] }
 0x4fb   : > { %11162 = vmatprep.mubr.bf16.mxu1 %v21297_v63  ;;  %10860 = vmatprep.subr.bf16.mxu0 %v14286_v11  ;;  %v14335_v11 = vcombine.low %v2671_v25, %v2683_v21  ;;  %v1604_v21 = vld [vmem:[#allocation10 + $0x220] sm:$0xff]  ;;  %v21309_v63 = vld [vmem:[#allocation130_spill] sm:$0xff] }
 0x4fc   : > { %11199 = vmatprep.subr.bf16.mxu1 %v14288_v9  ;;  %v21299_v9 = vld [vmem:[#allocation54_spill] sm:$0xff] }
 0x4fd   : > { %11200 = vmatpush1.bf16.msra.mxu1 %v14287_v50  ;;  %v1581_v50 = vld [vmem:[#allocation10 + $0x168] sm:$0xff] }
 0x4fe   : > { %10861 = vmatpush1.bf16.msra.mxu0 %v14285_v18  ;;  %11201 = vmatprep.subr.bf16.mxu1 %v14312_v48  ;;  %v1569_v18 = vld [vmem:[#allocation10 + $0x108] sm:$0xff]  ;;  %v13211_v48 = vcombine.low %v1545_v61, %v1557_v60  ;;  %v1616_v61 = vld [vmem:[#allocation10 + $0x280] sm:$0xff] }
 0x4ff   : > { %10862 = vmatprep.subr.bf16.mxu0 %v14310_v2  ;;  %v13209_v2 = vcombine.low %v1544_v32, %v1556_v40  ;;  %v13236_v25 = vcombine.high %v1569_v18, %v1581_v50  ;;  %v13258_v32 = vcombine.high %v1592_v26, %v1604_v21  ;;  %v1628_v60 = vld [vmem:[#allocation10 + $0x2e0] sm:$0xff] }
 0x500   : > { %11163 = vmatmul.mubr.bf16.gmra.mrb[124].mxu1 %v21298_v52 }
 0x501   : > { %10824 = vmatmul.mubr.bf16.gmra.mrb[124].mxu0 %v21298_v52  ;;  %11202 = vmatpush1.bf16.msra.mxu1 %v14311_v59  ;;  %v1605_v59 = vld [vmem:[#allocation10 + $0x228] sm:$0xff] }
 0x502   : > { %10863 = vmatpush1.bf16.msra.mxu0 %v14309_v33  ;;  %10866 = vmatprep.mubr.bf16.mxu0 %v21299_v9  ;;  %v1593_v33 = vld [vmem:[#allocation10 + $0x1c8] sm:$0xff] }
 0x503   : > { %11205 = vmatprep.mubr.bf16.mxu1 %v21299_v9  ;;  %10864 = vmatprep.subr.bf16.mxu0 %v14334_v43  ;;  %v21300_v9 = vld [vmem:[#allocation126_spill] sm:$0xff]  ;;  %v13233_v43 = vcombine.low %v1568_v12, %v1580_v30  ;;  %v13260_v40 = vcombine.high %v1593_v33, %v1605_v59  ;;  %v1640_v12 = vld [vmem:[#allocation10 + $0x340] sm:$0xff]  ;;  %v13282_v30 = vcombine.high %v1616_v61, %v1628_v60 }
 0x504   : > { %11203 = vmatprep.subr.bf16.mxu1 %v14336_v53  ;;  %v13235_v53 = vcombine.low %v1569_v18, %v1581_v50  ;;  %v1652_v50 = vld [vmem:[#allocation10 + $0x3a0] sm:$0xff] }
 0x505   : > { %11204 = vmatpush1.bf16.msra.mxu1 %v14335_v11  ;;  %v1617_v11 = vld [vmem:[#allocation10 + $0x288] sm:$0xff] }
 0x506   : > { %10865 = vmatpush1.bf16.msra.mxu0 %v14333_v42  ;;  %11625 = vmatprep.subr.bf16.mxu1 %v13212_v8  ;;  %v21301_v42 = vld [vmem:[#allocation127_spill] sm:$0xff]  ;;  %v13257_v8 = vcombine.low %v1592_v26, %v1604_v21  ;;  %v13306_v26 = vcombine.high %v1640_v12, %v1652_v50 }
 0x507   : > { %11286 = vmatprep.subr.bf16.mxu0 %v13210_v31  ;;  %v1629_v31 = vld [vmem:[#allocation10 + $0x2e8] sm:$0xff] }
 0x508   : > { %11206 = vmatmul.mubr.bf16.vlgmr.msra.gmra.mrb[96].mxu1 %v21300_v9  ;;  %v13284_v18 = vcombine.high %v1617_v11, %v1629_v31 }
 0x509   : > { %10867 = vmatmul.mubr.bf16.vlgmr.msra.gmra.mrb[96].mxu0 %v21300_v9  ;;  %11626 = vmatpush1.bf16.msra.mxu1 %v13211_v48  ;;  %v13259_v9 = vcombine.low %v1593_v33, %v1605_v59  ;;  %v1653_v48 = vld [vmem:[#allocation10 + $0x3a8] sm:$0xff]  ;;  %v1664_v33 = vld [vmem:[#allocation10 + $0x400] sm:$0xff] }
 0x50a   : > { %11287 = vmatpush1.bf16.msra.mxu0 %v13209_v2  ;;  %10876 = vmatprep.mubr.bf16.mxu0 %v21301_v42  ;;  %v1641_v2 = vld [vmem:[#allocation10 + $0x348] sm:$0xff]  ;;  %v1676_v59 = vld [vmem:[#allocation10 + $0x460] sm:$0xff] }
 0x50b   : > { %11215 = vmatprep.mubr.bf16.mxu1 %v21301_v42  ;;  %11288 = vmatprep.subr.bf16.mxu0 %v13234_v37  ;;  %v21302_v42 = vld [vmem:[#allocation53_spill] sm:$0xff]  ;;  %v13281_v37 = vcombine.low %v1616_v61, %v1628_v60  ;;  %v13308_v21 = vcombine.high %v1641_v2, %v1653_v48  ;;  %v13330_v61 = vcombine.high %v1664_v33, %v1676_v59 }
 0x50c   : > { %11627 = vmatprep.subr.bf16.mxu1 %v13236_v25  ;;  %v13283_v25 = vcombine.low %v1617_v11, %v1629_v31  ;;  %v1700_v11 = vld [vmem:[#allocation10 + $0x520] sm:$0xff]  ;;  %v1689_v31 = vld [vmem:[#allocation10 + $0x4c8] sm:$0xff] }
 0x50d   : > { %11628 = vmatpush1.bf16.msra.mxu1 %v13235_v53  ;;  %v1665_v53 = vld [vmem:[#allocation10 + $0x408] sm:$0xff] }
 0x50e   : > { %11289 = vmatpush1.bf16.msra.mxu0 %v13233_v43  ;;  %11629 = vmatprep.subr.bf16.mxu1 %v13260_v40  ;;  %v21303_v43 = vld [vmem:[#allocation60_spill] sm:$0xff]  ;;  %v13305_v40 = vcombine.low %v1640_v12, %v1652_v50  ;;  %v21307_v50 = vld [vmem:[#allocation97_spill] sm:$0xff] }
 0x50f   : > { %11290 = vmatprep.subr.bf16.mxu0 %v13258_v32  ;;  %v1677_v32 = vld [vmem:[#allocation10 + $0x468] sm:$0xff] }
 0x510   : > { %11216 = vmatmul.mubr.bf16.gmra.mrb[100].mxu1 %v21302_v42  ;;  %v13332_v60 = vcombine.high %v1665_v53, %v1677_v32 }
 0x511   : > { %10877 = vmatmul.mubr.bf16.gmra.mrb[100].mxu0 %v21302_v42  ;;  %11630 = vmatpush1.bf16.msra.mxu1 %v13259_v9  ;;  %v13307_v42 = vcombine.low %v1641_v2, %v1653_v48  ;;  %v19333_v9 = vld [vmem:[#allocation10 + $0x4c0] sm:$0xff]  ;;  %v13329_v48 = vcombine.low %v1664_v33, %v1676_v59 }
 0x512   : > { %11291 = vmatpush1.bf16.msra.mxu0 %v13257_v8  ;;  %10886 = vmatprep.mubr.bf16.mxu0 %v21303_v43  ;;  %v2689_v8 = vld [vmem:[#allocation11 + $0x8] sm:$0xff] }
 0x513   : > { %11225 = vmatprep.mubr.bf16.mxu1 %v21303_v43  ;;  %11292 = vmatprep.subr.bf16.mxu0 %v13282_v30  ;;  %v1701_v43 = vld [vmem:[#allocation10 + $0x528] sm:$0xff]  ;;  %v21304_v30 = vld [vmem:[#allocation129_spill] sm:$0xff]  ;;  %v19344_v2 = vrot.slane %v2689_v8, %v21307_v50 }
 0x514   : > { %11631 = vmatprep.subr.bf16.mxu1 %v13284_v18  ;;  %v21305_v18 = vld [vmem:[#allocation98_spill] sm:$0xff]  ;;  %v19352_v50 = vld [vmem:[#allocation10 + $0x580] sm:$0xff]  ;;  %v13355_v51 = vcombine.low %v1689_v31, %v1701_v43 }
 0x515   : > { %11632 = vmatpush1.bf16.msra.mxu1 %v13283_v25  ;;  %v19338_v52 = vrot.slane %v2689_v8, %v21305_v18  ;;  %v13331_v25 = vcombine.low %v1665_v53, %v1677_v32  ;;  %v13354_v18 = vcombine.high %v19333_v9, %v1700_v11  ;;  %v13353_v32 = vcombine.low %v19333_v9, %v1700_v11 }
 0x516   : > { %11293 = vmatpush1.bf16.msra.mxu0 %v13281_v37  ;;  %11633 = vmatprep.subr.bf16.mxu1 %v13308_v21  ;;  %v21306_v37 = vld [vmem:[#allocation100_spill] sm:$0xff] }
 0x517   : > { %11294 = vmatprep.subr.bf16.mxu0 %v13306_v26  ;;  %v19341_v12 = vrot.slane %v2689_v8, %v21306_v37  ;;  %v21308_v26 = vld [vmem:[#allocation99_spill] sm:$0xff] }
 0x518   : > { %11226 = vmatmul.mubr.bf16.gmra.mrb[104].mxu1 %v21304_v30  ;;  %v19347_v21 = vrot.slane %v2689_v8, %v21308_v26  ;;  %v1713_v8 = vld [vmem:[#allocation10 + $0x588] sm:$0xff] }
 0x519   : > { %10887 = vmatmul.mubr.bf16.gmra.mrb[104].mxu0 %v21304_v30  ;;  %11634 = vmatpush1.bf16.msra.mxu1 %v13307_v42  ;;  %v13356_v30 = vcombine.high %v1689_v31, %v1701_v43  ;;  %v1725_v26 = vld [vmem:[#allocation10 + $0x5e8] sm:$0xff] }
 0x51a   : > { %11295 = vmatpush1.bf16.msra.mxu0 %v13305_v40  ;;  %10896 = vmatprep.mubr.bf16.mxu0 %v21309_v63  ;;  %v1724_v40 = vld [vmem:[#allocation10 + $0x5e0] sm:$0xff] }
 0x51b   : > { %11235 = vmatprep.mubr.bf16.mxu1 %v21309_v63  ;;  %v10529_v37 = vpop.f32.mrb[64].mxu1  ;;  %11296 = vmatprep.subr.bf16.mxu0 %v13330_v61 }
 0x51c   : > { %v10190_v55 = vpop.f32.mrb[64].mxu0  ;;  %11635 = vmatprep.subr.bf16.mxu1 %v13332_v60  ;;  %v14510_v33 = vadd.f32 %v10529_v37, %v19341_v12  ;;  %v10531_v53 = vpop.f32.mrb[65].mxu1 }
 0x51d   : > { %v14478_v42 = vadd.f32 %v10190_v55, %v19338_v52  ;;  %v10192_v59 = vpop.f32.mrb[65].mxu0  ;;  %v14511_v61 = vadd.f32 %v10531_v53, %v19347_v21  ;;  %11636 = vmatpush1.bf16.msra.mxu1 %v13331_v25  ;;  %v10533_v55 = vpop.f32.mrb[66].mxu1  ;;  %v13380_v25 = vcombine.high %v1713_v8, %v1725_v26  ;;  %v1749_v53 = vld [vmem:[#allocation10 + $0x6a8] sm:$0xff] }
 0x51e   : > { %v14479_v63 = vadd.f32 %v10192_v59, %v19344_v2  ;;  %11297 = vmatpush1.bf16.msra.mxu0 %v13329_v48  ;;  %v10194_v60 = vpop.f32.mrb[66].mxu0  ;;  %12652 = vst [vmem:[%s18759_s11 + $0x50] sm:$0xff] %v14510_v33  ;;  %v14512_v9 = vadd.f32 %v10533_v55, %v19341_v12  ;;  %v10535_v17 = vpop.f32.mrb[67].mxu1  ;;  %11637 = vmatprep.subr.bf16.mxu1 %v13356_v30  ;;  %v19363_v59 = vld [vmem:[#allocation10 + $0x640] sm:$0xff]  ;;  %v1737_v33 = vld [vmem:[#allocation10 + $0x648] sm:$0xff] }
 0x51f   : > { %12650 = vst [vmem:[%s18759_s11 + $0x40] sm:$0xff] %v14478_v42  ;;  %v14480_v37 = vadd.f32 %v10194_v60, %v19338_v52  ;;  %v10196_v11 = vpop.f32.mrb[67].mxu0  ;;  %11298 = vmatprep.subr.bf16.mxu0 %v13354_v18  ;;  %12653 = vst [vmem:[%s18759_s11 + $0x58] sm:$0xff] %v14511_v61  ;;  %v14513_v31 = vadd.f32 %v10535_v17, %v19347_v21  ;;  %v13378_v48 = vcombine.high %v19352_v50, %v1724_v40  ;;  %v1748_v42 = vld [vmem:[#allocation10 + $0x6a0] sm:$0xff] }
 0x520   : > { %12651 = vst [vmem:[%s18759_s11 + $0x48] sm:$0xff] %v14479_v63  ;;  %v14481_v43 = vadd.f32 %v10196_v11, %v19344_v2  ;;  %12676 = vst [vmem:[%s18759_s11 + $0x110] sm:$0xff] %v14512_v9  ;;  %11236 = vmatmul.mubr.bf16.gmra.mrb[108].mxu1 %v18434_v57  ;;  %v13377_v63 = vcombine.low %v19352_v50, %v1724_v40  ;;  %v13379_v30 = vcombine.low %v1713_v8, %v1725_v26  ;;  %v19380_v55 = vld [vmem:[#allocation10 + $0x700] sm:$0xff]  ;;  %v1773_v9 = vld [vmem:[#allocation10 + $0x768] sm:$0xff] }
 0x521   : > { %12674 = vst [vmem:[%s18759_s11 + $0x100] sm:$0xff] %v14480_v37  ;;  %10897 = vmatmul.mubr.bf16.gmra.mrb[108].mxu0 %v18434_v57  ;;  %12677 = vst [vmem:[%s18759_s11 + $0x118] sm:$0xff] %v14513_v31  ;;  %11638 = vmatpush1.bf16.msra.mxu1 %v13355_v51  ;;  %v13402_v17 = vcombine.high %v19363_v59, %v1748_v42  ;;  %v13404_v18 = vcombine.high %v1737_v33, %v1749_v53  ;;  %v1772_v8 = vld [vmem:[#allocation10 + $0x760] sm:$0xff]  ;;  %v1761_v37 = vld [vmem:[#allocation10 + $0x708] sm:$0xff] }
 0x522   : > { %12675 = vst [vmem:[%s18759_s11 + $0x108] sm:$0xff] %v14481_v43  ;;  %11299 = vmatpush1.bf16.msra.mxu0 %v13353_v32  ;;  %10906 = vmatprep.mubr.bf16.mxu0 %v18436_v58  ;;  %v13401_v40 = vcombine.low %v19363_v59, %v1748_v42 }
 0x523   : > { %11245 = vmatprep.mubr.bf16.mxu1 %v18436_v58  ;;  %v10539_v60 = vpop.f32.mrb[68].mxu1  ;;  %11300 = vmatprep.subr.bf16.mxu0 %v13378_v48 }
 0x524   : > { %v10200_v61 = vpop.f32.mrb[68].mxu0  ;;  %11639 = vmatprep.subr.bf16.mxu1 %v13380_v25  ;;  %v14514_v51 = vadd.f32 %v10539_v60, %v19341_v12  ;;  %v10541_v26 = vpop.f32.mrb[69].mxu1  ;;  %v13403_v25 = vcombine.low %v1737_v33, %v1749_v53 }
 0x525   : > { %v14482_v32 = vadd.f32 %v10200_v61, %v19338_v52  ;;  %v10202_v50 = vpop.f32.mrb[69].mxu0  ;;  %v14515_v43 = vadd.f32 %v10541_v26, %v19347_v21  ;;  %11640 = vmatpush1.bf16.msra.mxu1 %v13379_v30  ;;  %v10543_v48 = vpop.f32.mrb[70].mxu1  ;;  %v13428_v30 = vcombine.high %v1761_v37, %v1773_v9  ;;  %v1797_v26 = vld [vmem:[#allocation10 + $0x828] sm:$0xff] }
 0x526   : > { %v14483_v11 = vadd.f32 %v10202_v50, %v19344_v2  ;;  %11301 = vmatpush1.bf16.msra.mxu0 %v13377_v63  ;;  %v10204_v31 = vpop.f32.mrb[70].mxu0  ;;  %12700 = vst [vmem:[%s18759_s11 + $0x1d0] sm:$0xff] %v14514_v51  ;;  %v14516_v59 = vadd.f32 %v10543_v48, %v19341_v12  ;;  %v10545_v60 = vpop.f32.mrb[71].mxu1  ;;  %11641 = vmatprep.subr.bf16.mxu1 %v13404_v18  ;;  %v19391_v50 = vld [vmem:[#allocation10 + $0x7c0] sm:$0xff]  ;;  %v1785_v51 = vld [vmem:[#allocation10 + $0x7c8] sm:$0xff] }
 0x527   : > { %12698 = vst [vmem:[%s18759_s11 + $0x1c0] sm:$0xff] %v14482_v32  ;;  %v14484_v61 = vadd.f32 %v10204_v31, %v19338_v52  ;;  %v10206_v42 = vpop.f32.mrb[71].mxu0  ;;  %11302 = vmatprep.subr.bf16.mxu0 %v13402_v17  ;;  %12701 = vst [vmem:[%s18759_s11 + $0x1d8] sm:$0xff] %v14515_v43  ;;  %v14517_v53 = vadd.f32 %v10545_v60, %v19347_v21  ;;  %v13426_v63 = vcombine.high %v19380_v55, %v1772_v8  ;;  %v1796_v32 = vld [vmem:[#allocation10 + $0x820] sm:$0xff] }
 0x528   : > { %12699 = vst [vmem:[%s18759_s11 + $0x1c8] sm:$0xff] %v14483_v11  ;;  %v14485_v33 = vadd.f32 %v10206_v42, %v19344_v2  ;;  %12724 = vst [vmem:[%s18759_s11 + $0x290] sm:$0xff] %v14516_v59  ;;  %11246 = vmatmul.mubr.bf16.gmra.mrb[112].mxu1 %v18492_v45  ;;  %v13425_v17 = vcombine.low %v19380_v55, %v1772_v8  ;;  %v13427_v18 = vcombine.low %v1761_v37, %v1773_v9  ;;  %v1809_v59 = vld [vmem:[#allocation10 + $0x888] sm:$0xff] }
 0x529   : > { %12722 = vst [vmem:[%s18759_s11 + $0x280] sm:$0xff] %v14484_v61  ;;  %10907 = vmatmul.mubr.bf16.gmra.mrb[112].mxu0 %v18492_v45  ;;  %12725 = vst [vmem:[%s18759_s11 + $0x298] sm:$0xff] %v14517_v53  ;;  %11642 = vmatpush1.bf16.msra.mxu1 %v13403_v25  ;;  %v13450_v11 = vcombine.high %v19391_v50, %v1796_v32  ;;  %v13452_v43 = vcombine.high %v1785_v51, %v1797_v26  ;;  %v19408_v61 = vld [vmem:[#allocation10 + $0x880] sm:$0xff]  ;;  %v1821_v42 = vld [vmem:[#allocation10 + $0x8e8] sm:$0xff] }
 0x52a   : > { %12723 = vst [vmem:[%s18759_s11 + $0x288] sm:$0xff] %v14485_v33  ;;  %11303 = vmatpush1.bf16.msra.mxu0 %v13401_v40  ;;  %10916 = vmatprep.mubr.bf16.mxu0 %v18502_v36  ;;  %v13449_v9 = vcombine.low %v19391_v50, %v1796_v32  ;;  %v1820_v25 = vld [vmem:[#allocation10 + $0x8e0] sm:$0xff] }
 0x52b   : > { %11255 = vmatprep.mubr.bf16.mxu1 %v18502_v36  ;;  %v10549_v48 = vpop.f32.mrb[72].mxu1  ;;  %11304 = vmatprep.subr.bf16.mxu0 %v13426_v63 }
 0x52c   : > { %v10210_v31 = vpop.f32.mrb[72].mxu0  ;;  %11643 = vmatprep.subr.bf16.mxu1 %v13428_v30  ;;  %v14518_v55 = vadd.f32 %v10549_v48, %v19341_v12  ;;  %v10551_v37 = vpop.f32.mrb[73].mxu1  ;;  %v13451_v30 = vcombine.low %v1785_v51, %v1797_v26 }
 0x52d   : > { %v14486_v40 = vadd.f32 %v10210_v31, %v19338_v52  ;;  %v10212_v8 = vpop.f32.mrb[73].mxu0  ;;  %v14519_v33 = vadd.f32 %v10551_v37, %v19347_v21  ;;  %11644 = vmatpush1.bf16.msra.mxu1 %v13427_v18  ;;  %v10553_v63 = vpop.f32.mrb[74].mxu1  ;;  %v13476_v18 = vcombine.high %v1809_v59, %v1821_v42  ;;  %v1845_v37 = vld [vmem:[#allocation10 + $0x9a8] sm:$0xff] }
 0x52e   : > { %v14487_v60 = vadd.f32 %v10212_v8, %v19344_v2  ;;  %11305 = vmatpush1.bf16.msra.mxu0 %v13425_v17  ;;  %v10214_v53 = vpop.f32.mrb[74].mxu0  ;;  %12748 = vst [vmem:[%s18759_s11 + $0x350] sm:$0xff] %v14518_v55  ;;  %v14520_v50 = vadd.f32 %v10553_v63, %v19341_v12  ;;  %v10555_v48 = vpop.f32.mrb[75].mxu1  ;;  %11645 = vmatprep.subr.bf16.mxu1 %v13452_v43  ;;  %v19419_v8 = vld [vmem:[#allocation10 + $0x940] sm:$0xff]  ;;  %v1833_v55 = vld [vmem:[#allocation10 + $0x948] sm:$0xff] }
 0x52f   : > { %12746 = vst [vmem:[%s18759_s11 + $0x340] sm:$0xff] %v14486_v40  ;;  %v14488_v31 = vadd.f32 %v10214_v53, %v19338_v52  ;;  %v10216_v32 = vpop.f32.mrb[75].mxu0  ;;  %11306 = vmatprep.subr.bf16.mxu0 %v13450_v11  ;;  %12749 = vst [vmem:[%s18759_s11 + $0x358] sm:$0xff] %v14519_v33  ;;  %v14521_v26 = vadd.f32 %v10555_v48, %v19347_v21  ;;  %v13474_v17 = vcombine.high %v19408_v61, %v1820_v25  ;;  %v1844_v40 = vld [vmem:[#allocation10 + $0x9a0] sm:$0xff] }
 0x530   : > { %12747 = vst [vmem:[%s18759_s11 + $0x348] sm:$0xff] %v14487_v60  ;;  %v14489_v51 = vadd.f32 %v10216_v32, %v19344_v2  ;;  %12772 = vst [vmem:[%s18759_s11 + $0x410] sm:$0xff] %v14520_v50  ;;  %11256 = vmatmul.mubr.bf16.gmra.mrb[116].mxu1 %v18550_v38  ;;  %v13473_v11 = vcombine.low %v19408_v61, %v1820_v25  ;;  %v13475_v43 = vcombine.low %v1809_v59, %v1821_v42  ;;  %v1857_v50 = vld [vmem:[#allocation10 + $0xa08] sm:$0xff] }
 0x531   : > { %12770 = vst [vmem:[%s18759_s11 + $0x400] sm:$0xff] %v14488_v31  ;;  %10917 = vmatmul.mubr.bf16.gmra.mrb[116].mxu0 %v18550_v38  ;;  %12773 = vst [vmem:[%s18759_s11 + $0x418] sm:$0xff] %v14521_v26  ;;  %11646 = vmatpush1.bf16.msra.mxu1 %v13451_v30  ;;  %v13498_v60 = vcombine.high %v19419_v8, %v1844_v40  ;;  %v13500_v33 = vcombine.high %v1833_v55, %v1845_v37  ;;  %v19436_v31 = vld [vmem:[#allocation10 + $0xa00] sm:$0xff]  ;;  %v1869_v32 = vld [vmem:[#allocation10 + $0xa68] sm:$0xff] }
 0x532   : > { %12771 = vst [vmem:[%s18759_s11 + $0x408] sm:$0xff] %v14489_v51  ;;  %11307 = vmatpush1.bf16.msra.mxu0 %v13449_v9  ;;  %10926 = vmatprep.mubr.bf16.mxu0 %v18562_v6  ;;  %v13497_v42 = vcombine.low %v19419_v8, %v1844_v40  ;;  %v1868_v30 = vld [vmem:[#allocation10 + $0xa60] sm:$0xff] }
 0x533   : > { %11265 = vmatprep.mubr.bf16.mxu1 %v18562_v6  ;;  %v10559_v63 = vpop.f32.mrb[76].mxu1  ;;  %11308 = vmatprep.subr.bf16.mxu0 %v13474_v17 }
 0x534   : > { %v10220_v53 = vpop.f32.mrb[76].mxu0  ;;  %11647 = vmatprep.subr.bf16.mxu1 %v13476_v18  ;;  %v14522_v61 = vadd.f32 %v10559_v63, %v19341_v12  ;;  %v10561_v59 = vpop.f32.mrb[77].mxu1  ;;  %v13499_v18 = vcombine.low %v1833_v55, %v1845_v37 }
 0x535   : > { %v14490_v9 = vadd.f32 %v10220_v53, %v19338_v52  ;;  %v10222_v25 = vpop.f32.mrb[77].mxu0  ;;  %v14523_v51 = vadd.f32 %v10561_v59, %v19347_v21  ;;  %11648 = vmatpush1.bf16.msra.mxu1 %v13475_v43  ;;  %v10563_v17 = vpop.f32.mrb[78].mxu1  ;;  %v13524_v43 = vcombine.high %v1857_v50, %v1869_v32  ;;  %v1893_v59 = vld [vmem:[#allocation10 + $0xb28] sm:$0xff] }
 0x536   : > { %v14491_v48 = vadd.f32 %v10222_v25, %v19344_v2  ;;  %11309 = vmatpush1.bf16.msra.mxu0 %v13473_v11  ;;  %v10224_v26 = vpop.f32.mrb[78].mxu0  ;;  %12796 = vst [vmem:[%s18759_s11 + $0x4d0] sm:$0xff] %v14522_v61  ;;  %v14524_v8 = vadd.f32 %v10563_v17, %v19341_v12  ;;  %v10565_v63 = vpop.f32.mrb[79].mxu1  ;;  %11649 = vmatprep.subr.bf16.mxu1 %v13500_v33  ;;  %v19447_v25 = vld [vmem:[#allocation10 + $0xac0] sm:$0xff]  ;;  %v1881_v61 = vld [vmem:[#allocation10 + $0xac8] sm:$0xff] }
 0x537   : > { %12794 = vst [vmem:[%s18759_s11 + $0x4c0] sm:$0xff] %v14490_v9  ;;  %v14492_v53 = vadd.f32 %v10224_v26, %v19338_v52  ;;  %v10226_v40 = vpop.f32.mrb[79].mxu0  ;;  %11310 = vmatprep.subr.bf16.mxu0 %v13498_v60  ;;  %12797 = vst [vmem:[%s18759_s11 + $0x4d8] sm:$0xff] %v14523_v51  ;;  %v14525_v37 = vadd.f32 %v10565_v63, %v19347_v21  ;;  %v13522_v11 = vcombine.high %v19436_v31, %v1868_v30  ;;  %v1892_v9 = vld [vmem:[#allocation10 + $0xb20] sm:$0xff] }
 0x538   : > { %12795 = vst [vmem:[%s18759_s11 + $0x4c8] sm:$0xff] %v14491_v48  ;;  %v14493_v55 = vadd.f32 %v10226_v40, %v19344_v2  ;;  %12820 = vst [vmem:[%s18759_s11 + $0x590] sm:$0xff] %v14524_v8  ;;  %11266 = vmatmul.mubr.bf16.gmra.mrb[120].mxu1 %v18597_v1  ;;  %v13521_v60 = vcombine.low %v19436_v31, %v1868_v30  ;;  %v13523_v33 = vcombine.low %v1857_v50, %v1869_v32  ;;  %v1905_v8 = vld [vmem:[#allocation10 + $0xb88] sm:$0xff] }
 0x539   : > { %12818 = vst [vmem:[%s18759_s11 + $0x580] sm:$0xff] %v14492_v53  ;;  %10927 = vmatmul.mubr.bf16.gmra.mrb[120].mxu0 %v18597_v1  ;;  %12821 = vst [vmem:[%s18759_s11 + $0x598] sm:$0xff] %v14525_v37  ;;  %11650 = vmatpush1.bf16.msra.mxu1 %v13499_v18  ;;  %v13546_v48 = vcombine.high %v19447_v25, %v1892_v9  ;;  %v13548_v51 = vcombine.high %v1881_v61, %v1893_v59  ;;  %v19464_v53 = vld [vmem:[#allocation10 + $0xb80] sm:$0xff]  ;;  %v1917_v40 = vld [vmem:[#allocation10 + $0xbe8] sm:$0xff] }
 0x53a   : > { %12819 = vst [vmem:[%s18759_s11 + $0x588] sm:$0xff] %v14493_v55  ;;  %11311 = vmatpush1.bf16.msra.mxu0 %v13497_v42  ;;  %10936 = vmatprep.mubr.bf16.mxu0 %v18599_v5  ;;  %v13545_v32 = vcombine.low %v19447_v25, %v1892_v9  ;;  %v1916_v18 = vld [vmem:[#allocation10 + $0xbe0] sm:$0xff] }
 0x53b   : > { %11275 = vmatprep.mubr.bf16.mxu1 %v18599_v5  ;;  %v10569_v17 = vpop.f32.mrb[80].mxu1  ;;  %11312 = vmatprep.subr.bf16.mxu0 %v13522_v11 }
 0x53c   : > { %v10230_v26 = vpop.f32.mrb[80].mxu0  ;;  %11651 = vmatprep.subr.bf16.mxu1 %v13524_v43  ;;  %v14526_v31 = vadd.f32 %v10569_v17, %v19341_v12  ;;  %v10571_v50 = vpop.f32.mrb[81].mxu1  ;;  %v13547_v43 = vcombine.low %v1881_v61, %v1893_v59 }
 0x53d   : > { %v14494_v42 = vadd.f32 %v10230_v26, %v19338_v52  ;;  %v10232_v30 = vpop.f32.mrb[81].mxu0  ;;  %v14527_v55 = vadd.f32 %v10571_v50, %v19347_v21  ;;  %11652 = vmatpush1.bf16.msra.mxu1 %v13523_v33  ;;  %v10573_v11 = vpop.f32.mrb[82].mxu1  ;;  %v13572_v33 = vcombine.high %v1905_v8, %v1917_v40  ;;  %v1941_v50 = vld [vmem:[#allocation10 + $0xca8] sm:$0xff] }
 0x53e   : > { %v14495_v63 = vadd.f32 %v10232_v30, %v19344_v2  ;;  %11313 = vmatpush1.bf16.msra.mxu0 %v13521_v60  ;;  %v10234_v37 = vpop.f32.mrb[82].mxu0  ;;  %12844 = vst [vmem:[%s18759_s11 + $0x650] sm:$0xff] %v14526_v31  ;;  %v14528_v25 = vadd.f32 %v10573_v11, %v19341_v12  ;;  %v10575_v17 = vpop.f32.mrb[83].mxu1  ;;  %11653 = vmatprep.subr.bf16.mxu1 %v13548_v51  ;;  %v19475_v30 = vld [vmem:[#allocation10 + $0xc40] sm:$0xff]  ;;  %v1929_v31 = vld [vmem:[#allocation10 + $0xc48] sm:$0xff] }
 0x53f   : > { %12842 = vst [vmem:[%s18759_s11 + $0x640] sm:$0xff] %v14494_v42  ;;  %v14496_v26 = vadd.f32 %v10234_v37, %v19338_v52  ;;  %v10236_v9 = vpop.f32.mrb[83].mxu0  ;;  %11314 = vmatprep.subr.bf16.mxu0 %v13546_v48  ;;  %12845 = vst [vmem:[%s18759_s11 + $0x658] sm:$0xff] %v14527_v55  ;;  %v14529_v59 = vadd.f32 %v10575_v17, %v19347_v21  ;;  %v13570_v60 = vcombine.high %v19464_v53, %v1916_v18  ;;  %v1940_v42 = vld [vmem:[#allocation10 + $0xca0] sm:$0xff] }
 0x540   : > { %12843 = vst [vmem:[%s18759_s11 + $0x648] sm:$0xff] %v14495_v63  ;;  %v14497_v61 = vadd.f32 %v10236_v9, %v19344_v2  ;;  %12868 = vst [vmem:[%s18759_s11 + $0x710] sm:$0xff] %v14528_v25  ;;  %11276 = vmatmul.mubr.bf16.gmra.mrb[124].mxu1 %v18620_v28  ;;  %v13569_v48 = vcombine.low %v19464_v53, %v1916_v18  ;;  %v13571_v51 = vcombine.low %v1905_v8, %v1917_v40  ;;  %v1953_v25 = vld [vmem:[#allocation10 + $0xd08] sm:$0xff] }
 0x541   : > { %12866 = vst [vmem:[%s18759_s11 + $0x700] sm:$0xff] %v14496_v26  ;;  %10937 = vmatmul.mubr.bf16.gmra.mrb[124].mxu0 %v18620_v28  ;;  %12869 = vst [vmem:[%s18759_s11 + $0x718] sm:$0xff] %v14529_v59  ;;  %11654 = vmatpush1.bf16.msra.mxu1 %v13547_v43  ;;  %v13594_v63 = vcombine.high %v19475_v30, %v1940_v42  ;;  %v13596_v55 = vcombine.high %v1929_v31, %v1941_v50  ;;  %v19492_v26 = vld [vmem:[#allocation10 + $0xd00] sm:$0xff]  ;;  %v1965_v9 = vld [vmem:[#allocation10 + $0xd68] sm:$0xff] }
 0x542   : > { %12867 = vst [vmem:[%s18759_s11 + $0x708] sm:$0xff] %v14497_v61  ;;  %11315 = vmatpush1.bf16.msra.mxu0 %v13545_v32  ;;  %11318 = vmatprep.mubr.bf16.mxu0 %v21251_v10  ;;  %v13593_v40 = vcombine.low %v19475_v30, %v1940_v42  ;;  %v1964_v43 = vld [vmem:[#allocation10 + $0xd60] sm:$0xff] }
 0x543   : > { %11657 = vmatprep.mubr.bf16.mxu1 %v21251_v10  ;;  %v10579_v11 = vpop.f32.mrb[84].mxu1  ;;  %11316 = vmatprep.subr.bf16.mxu0 %v13570_v60 }
 0x544   : > { %v10240_v37 = vpop.f32.mrb[84].mxu0  ;;  %11655 = vmatprep.subr.bf16.mxu1 %v13572_v33  ;;  %v14530_v53 = vadd.f32 %v10579_v11, %v19341_v12  ;;  %v10581_v8 = vpop.f32.mrb[85].mxu1  ;;  %v13595_v33 = vcombine.low %v1929_v31, %v1941_v50 }
 0x545   : > { %v14498_v32 = vadd.f32 %v10240_v37, %v19338_v52  ;;  %v10242_v18 = vpop.f32.mrb[85].mxu0  ;;  %v14531_v61 = vadd.f32 %v10581_v8, %v19347_v21  ;;  %11656 = vmatpush1.bf16.msra.mxu1 %v13571_v51  ;;  %v10583_v60 = vpop.f32.mrb[86].mxu1  ;;  %v13620_v51 = vcombine.high %v1953_v25, %v1965_v9  ;;  %v1989_v8 = vld [vmem:[#allocation10 + $0xe28] sm:$0xff] }
 0x546   : > { %v14499_v17 = vadd.f32 %v10242_v18, %v19344_v2  ;;  %11317 = vmatpush1.bf16.msra.mxu0 %v13569_v48  ;;  %v10244_v59 = vpop.f32.mrb[86].mxu0  ;;  %12892 = vst [vmem:[%s18759_s11 + $0x7d0] sm:$0xff] %v14530_v53  ;;  %v14532_v30 = vadd.f32 %v10583_v60, %v19341_v12  ;;  %v10585_v11 = vpop.f32.mrb[87].mxu1  ;;  %11738 = vmatprep.subr.bf16.mxu1 %v13596_v55  ;;  %v19503_v18 = vld [vmem:[#allocation10 + $0xdc0] sm:$0xff]  ;;  %v1977_v53 = vld [vmem:[#allocation10 + $0xdc8] sm:$0xff] }
 0x547   : > { %12890 = vst [vmem:[%s18759_s11 + $0x7c0] sm:$0xff] %v14498_v32  ;;  %v14500_v37 = vadd.f32 %v10244_v59, %v19338_v52  ;;  %v10246_v42 = vpop.f32.mrb[87].mxu0  ;;  %11399 = vmatprep.subr.bf16.mxu0 %v13594_v63  ;;  %12893 = vst [vmem:[%s18759_s11 + $0x7d8] sm:$0xff] %v14531_v61  ;;  %v14533_v50 = vadd.f32 %v10585_v11, %v19347_v21  ;;  %v13618_v48 = vcombine.high %v19492_v26, %v1964_v43  ;;  %v1988_v32 = vld [vmem:[#allocation10 + $0xe20] sm:$0xff] }
 0x548   : > { %12891 = vst [vmem:[%s18759_s11 + $0x7c8] sm:$0xff] %v14499_v17  ;;  %v14501_v31 = vadd.f32 %v10246_v42, %v19344_v2  ;;  %12916 = vst [vmem:[%s18759_s11 + $0x890] sm:$0xff] %v14532_v30  ;;  %11658 = vmatmul.mubr.bf16.vlgmr.msra.gmra.mrb[128].mxu1 %v21252_v20  ;;  %v13617_v63 = vcombine.low %v19492_v26, %v1964_v43  ;;  %v13619_v55 = vcombine.low %v1953_v25, %v1965_v9  ;;  %v2001_v30 = vld [vmem:[#allocation10 + $0xe88] sm:$0xff] }
 0x549   : > { %12914 = vst [vmem:[%s18759_s11 + $0x880] sm:$0xff] %v14500_v37  ;;  %11319 = vmatmul.mubr.bf16.vlgmr.msra.gmra.mrb[128].mxu0 %v21252_v20  ;;  %12917 = vst [vmem:[%s18759_s11 + $0x898] sm:$0xff] %v14533_v50  ;;  %11739 = vmatpush1.bf16.msra.mxu1 %v13595_v33  ;;  %v13642_v17 = vcombine.high %v19503_v18, %v1988_v32  ;;  %v13644_v61 = vcombine.high %v1977_v53, %v1989_v8  ;;  %v19520_v37 = vld [vmem:[#allocation10 + $0xe80] sm:$0xff]  ;;  %v2013_v42 = vld [vmem:[#allocation10 + $0xee8] sm:$0xff] }
 0x54a   : > { %12915 = vst [vmem:[%s18759_s11 + $0x888] sm:$0xff] %v14501_v31  ;;  %11400 = vmatpush1.bf16.msra.mxu0 %v13593_v40  ;;  %11328 = vmatprep.mubr.bf16.mxu0 %v21253_v19  ;;  %v13641_v9 = vcombine.low %v19503_v18, %v1988_v32  ;;  %v2012_v33 = vld [vmem:[#allocation10 + $0xee0] sm:$0xff] }
 0x54b   : > { %11667 = vmatprep.mubr.bf16.mxu1 %v21253_v19  ;;  %v10589_v60 = vpop.f32.mrb[88].mxu1  ;;  %11401 = vmatprep.subr.bf16.mxu0 %v13618_v48 }
 0x54c   : > { %v10250_v59 = vpop.f32.mrb[88].mxu0  ;;  %11740 = vmatprep.subr.bf16.mxu1 %v13620_v51  ;;  %v14534_v26 = vadd.f32 %v10589_v60, %v19341_v12  ;;  %v10591_v25 = vpop.f32.mrb[89].mxu1  ;;  %v13643_v51 = vcombine.low %v1977_v53, %v1989_v8 }
 0x54d   : > { %v14502_v40 = vadd.f32 %v10250_v59, %v19338_v52  ;;  %v10252_v43 = vpop.f32.mrb[89].mxu0  ;;  %v14535_v31 = vadd.f32 %v10591_v25, %v19347_v21  ;;  %11741 = vmatpush1.bf16.msra.mxu1 %v13619_v55  ;;  %v10593_v48 = vpop.f32.mrb[90].mxu1  ;;  %v13668_v55 = vcombine.high %v2001_v30, %v2013_v42  ;;  %v2037_v25 = vld [vmem:[#allocation10 + $0xfa8] sm:$0xff] }
 0x54e   : > { %v14503_v11 = vadd.f32 %v10252_v43, %v19344_v2  ;;  %11402 = vmatpush1.bf16.msra.mxu0 %v13617_v63  ;;  %v10254_v50 = vpop.f32.mrb[90].mxu0  ;;  %12940 = vst [vmem:[%s18759_s11 + $0x950] sm:$0xff] %v14534_v26  ;;  %v14536_v18 = vadd.f32 %v10593_v48, %v19341_v12  ;;  %v10595_v60 = vpop.f32.mrb[91].mxu1  ;;  %11742 = vmatprep.subr.bf16.mxu1 %v13644_v61  ;;  %v19531_v43 = vld [vmem:[#allocation10 + $0xf40] sm:$0xff]  ;;  %v2025_v26 = vld [vmem:[#allocation10 + $0xf48] sm:$0xff] }
 0x54f   : > { %12938 = vst [vmem:[%s18759_s11 + $0x940] sm:$0xff] %v14502_v40  ;;  %v14504_v59 = vadd.f32 %v10254_v50, %v19338_v52  ;;  %v10256_v32 = vpop.f32.mrb[91].mxu0  ;;  %11403 = vmatprep.subr.bf16.mxu0 %v13642_v17  ;;  %12941 = vst [vmem:[%s18759_s11 + $0x958] sm:$0xff] %v14535_v31  ;;  %v14537_v8 = vadd.f32 %v10595_v60, %v19347_v21  ;;  %v13666_v63 = vcombine.high %v19520_v37, %v2012_v33  ;;  %v2036_v40 = vld [vmem:[#allocation10 + $0xfa0] sm:$0xff] }
 0x550   : > { %12939 = vst [vmem:[%s18759_s11 + $0x948] sm:$0xff] %v14503_v11  ;;  %v14505_v53 = vadd.f32 %v10256_v32, %v19344_v2  ;;  %12964 = vst [vmem:[%s18759_s11 + $0xa10] sm:$0xff] %v14536_v18  ;;  %11668 = vmatmul.mubr.bf16.gmra.mrb[132].mxu1 %v21254_v13  ;;  %v13665_v17 = vcombine.low %v19520_v37, %v2012_v33  ;;  %v13667_v61 = vcombine.low %v2001_v30, %v2013_v42  ;;  %v2060_v42 = vld [vmem:[#allocation10 + $0x1060] sm:$0xff]  ;;  %v2061_v32 = vld [vmem:[#allocation10 + $0x1068] sm:$0xff] }
 0x551   : > { %12962 = vst [vmem:[%s18759_s11 + $0xa00] sm:$0xff] %v14504_v59  ;;  %11329 = vmatmul.mubr.bf16.gmra.mrb[132].mxu0 %v21254_v13  ;;  %12965 = vst [vmem:[%s18759_s11 + $0xa18] sm:$0xff] %v14537_v8  ;;  %11743 = vmatpush1.bf16.msra.mxu1 %v13643_v51  ;;  %v13690_v11 = vcombine.high %v19531_v43, %v2036_v40  ;;  %v13692_v31 = vcombine.high %v2025_v26, %v2037_v25  ;;  %v2048_v59 = vld [vmem:[#allocation10 + $0x1000] sm:$0xff]  ;;  %v2049_v51 = vld [vmem:[#allocation10 + $0x1008] sm:$0xff] }
 0x552   : > { %12963 = vst [vmem:[%s18759_s11 + $0xa08] sm:$0xff] %v14505_v53  ;;  %11404 = vmatpush1.bf16.msra.mxu0 %v13641_v9  ;;  %11338 = vmatprep.mubr.bf16.mxu0 %v21255_v49  ;;  %v13689_v30 = vcombine.low %v19531_v43, %v2036_v40 }
 0x553   : > { %11677 = vmatprep.mubr.bf16.mxu1 %v21255_v49  ;;  %v10599_v48 = vpop.f32.mrb[92].mxu1  ;;  %11405 = vmatprep.subr.bf16.mxu0 %v13666_v63 }
 0x554   : > { %v10260_v50 = vpop.f32.mrb[92].mxu0  ;;  %11744 = vmatprep.subr.bf16.mxu1 %v13668_v55  ;;  %v14538_v9 = vadd.f32 %v10599_v48, %v19341_v12  ;;  %v10601_v33 = vpop.f32.mrb[93].mxu1  ;;  %v13691_v55 = vcombine.low %v2025_v26, %v2037_v25  ;;  %v13714_v25 = vcombine.high %v2048_v59, %v2060_v42 }
 0x555   : > { %v14506_v18 = vadd.f32 %v10260_v50, %v19338_v52  ;;  %v10262_v37 = vpop.f32.mrb[93].mxu0  ;;  %v14539_v53 = vadd.f32 %v10601_v33, %v19347_v21  ;;  %11745 = vmatpush1.bf16.msra.mxu1 %v13667_v61  ;;  %v10603_v63 = vpop.f32.mrb[94].mxu1  ;;  %v13716_v61 = vcombine.high %v2049_v51, %v2061_v32  ;;  %v2108_v33 = vld [vmem:[#allocation10 + $0x11e0] sm:$0xff] }
 0x556   : > { %v14507_v60 = vadd.f32 %v10262_v37, %v19344_v2  ;;  %11406 = vmatpush1.bf16.msra.mxu0 %v13665_v17  ;;  %v10264_v8 = vpop.f32.mrb[94].mxu0  ;;  %12988 = vst [vmem:[%s18759_s11 + $0xad0] sm:$0xff] %v14538_v9  ;;  %v14540_v43 = vadd.f32 %v10603_v63, %v19341_v12  ;;  %v10605_v48 = vpop.f32.mrb[95].mxu1  ;;  %11746 = vmatprep.subr.bf16.mxu1 %v13692_v31  ;;  %v2072_v37 = vld [vmem:[#allocation10 + $0x10c0] sm:$0xff]  ;;  %v2085_v9 = vld [vmem:[#allocation10 + $0x1128] sm:$0xff] }
 0x557   : > { %12986 = vst [vmem:[%s18759_s11 + $0xac0] sm:$0xff] %v14506_v18  ;;  %v14508_v50 = vadd.f32 %v10264_v8, %v19338_v52  ;;  %v10266_v40 = vpop.f32.mrb[95].mxu0  ;;  %11407 = vmatprep.subr.bf16.mxu0 %v13690_v11  ;;  %12989 = vst [vmem:[%s18759_s11 + $0xad8] sm:$0xff] %v14539_v53  ;;  %v14541_v26 = vadd.f32 %v10605_v48, %v19347_v21  ;;  %v2084_v52 = vld [vmem:[#allocation10 + $0x1120] sm:$0xff]  ;;  %v2073_v18 = vld [vmem:[#allocation10 + $0x10c8] sm:$0xff]  ;;  %v13713_v12 = vcombine.low %v2048_v59, %v2060_v42 }
 0x558   : > { %12987 = vst [vmem:[%s18759_s11 + $0xac8] sm:$0xff] %v14507_v60  ;;  %v14509_v17 = vadd.f32 %v10266_v40, %v19344_v2  ;;  %13012 = vst [vmem:[%s18759_s11 + $0xb90] sm:$0xff] %v14540_v43  ;;  %11678 = vmatmul.mubr.bf16.gmra.mrb[136].mxu1 %v21256_v54  ;;  %v13715_v11 = vcombine.low %v2049_v51, %v2061_v32  ;;  %v13738_v2 = vcombine.high %v2072_v37, %v2084_v52  ;;  %v2096_v31 = vld [vmem:[#allocation10 + $0x1180] sm:$0xff]  ;;  %v2097_v60 = vld [vmem:[#allocation10 + $0x1188] sm:$0xff] }
 0x559   : > { %13010 = vst [vmem:[%s18759_s11 + $0xb80] sm:$0xff] %v14508_v50  ;;  %11339 = vmatmul.mubr.bf16.gmra.mrb[136].mxu0 %v21256_v54  ;;  %13013 = vst [vmem:[%s18759_s11 + $0xb98] sm:$0xff] %v14541_v26  ;;  %11747 = vmatpush1.bf16.msra.mxu1 %v13691_v55  ;;  %v13740_v21 = vcombine.high %v2073_v18, %v2085_v9  ;;  %v2109_v53 = vld [vmem:[#allocation10 + $0x11e8] sm:$0xff]  ;;  %v13737_v8 = vcombine.low %v2072_v37, %v2084_v52  ;;  %v2120_v59 = vld [vmem:[#allocation10 + $0x1240] sm:$0xff] }
 0x55a   : > { %13011 = vst [vmem:[%s18759_s11 + $0xb88] sm:$0xff] %v14509_v17  ;;  %11408 = vmatpush1.bf16.msra.mxu0 %v13689_v30  ;;  %11348 = vmatprep.mubr.bf16.mxu0 %v21257_v22  ;;  %v13739_v63 = vcombine.low %v2073_v18, %v2085_v9  ;;  %v13762_v30 = vcombine.high %v2096_v31, %v2108_v33  ;;  %v2132_v51 = vld [vmem:[#allocation10 + $0x12a0] sm:$0xff]  ;;  %v2121_v32 = vld [vmem:[#allocation10 + $0x1248] sm:$0xff] }
 0x55b   : > { %11687 = vmatprep.mubr.bf16.mxu1 %v21257_v22  ;;  %11409 = vmatprep.subr.bf16.mxu0 %v13714_v25  ;;  %v13764_v42 = vcombine.high %v2097_v60, %v2109_v53  ;;  %v2133_v55 = vld [vmem:[#allocation10 + $0x12a8] sm:$0xff]  ;;  %v13761_v50 = vcombine.low %v2096_v31, %v2108_v33  ;;  %v13763_v43 = vcombine.low %v2097_v60, %v2109_v53  ;;  %v2144_v37 = vld [vmem:[#allocation10 + $0x1300] sm:$0xff] }
 0x55c   : > { %11748 = vmatprep.subr.bf16.mxu1 %v13716_v61  ;;  %v13786_v40 = vcombine.high %v2120_v59, %v2132_v51  ;;  %v13788_v48 = vcombine.high %v2121_v32, %v2133_v55  ;;  %v2156_v17 = vld [vmem:[#allocation10 + $0x1360] sm:$0xff]  ;;  %v2145_v26 = vld [vmem:[#allocation10 + $0x1308] sm:$0xff]  ;;  %v13785_v61 = vcombine.low %v2120_v59, %v2132_v51  ;;  %v13787_v52 = vcombine.low %v2121_v32, %v2133_v55 }
 0x55d   : > { %11749 = vmatpush1.bf16.msra.mxu1 %v13715_v11  ;;  %v2157_v25 = vld [vmem:[#allocation10 + $0x1368] sm:$0xff]  ;;  %v2168_v18 = vld [vmem:[#allocation10 + $0x13c0] sm:$0xff]  ;;  %v13810_v9 = vcombine.high %v2144_v37, %v2156_v17  ;;  %v13809_v31 = vcombine.low %v2144_v37, %v2156_v17 }
 0x55e   : > { %11410 = vmatpush1.bf16.msra.mxu0 %v13713_v12  ;;  %11750 = vmatprep.subr.bf16.mxu1 %v13740_v21  ;;  %v13812_v12 = vcombine.high %v2145_v26, %v2157_v25  ;;  %v2180_v11 = vld [vmem:[#allocation10 + $0x1420] sm:$0xff]  ;;  %v2181_v21 = vld [vmem:[#allocation10 + $0x1428] sm:$0xff]  ;;  %v13811_v33 = vcombine.low %v2145_v26, %v2157_v25 }
 0x55f   : > { %11411 = vmatprep.subr.bf16.mxu0 %v13738_v2  ;;  %v2169_v2 = vld [vmem:[#allocation10 + $0x13c8] sm:$0xff]  ;;  %v13834_v60 = vcombine.high %v2168_v18, %v2180_v11  ;;  %v2216_v32 = vld [vmem:[#allocation10 + $0x1540] sm:$0xff] }
 0x560   : > { %11688 = vmatmul.mubr.bf16.gmra.mrb[140].mxu1 %v21258_v39  ;;  %v13836_v53 = vcombine.high %v2169_v2, %v2181_v21  ;;  %v2193_v59 = vld [vmem:[#allocation10 + $0x1488] sm:$0xff]  ;;  %v13835_v51 = vcombine.low %v2169_v2, %v2181_v21  ;;  %v2264_v2 = vld [vmem:[#allocation10 + $0x16c0] sm:$0xff] }
 0x561   : > { %11349 = vmatmul.mubr.bf16.gmra.mrb[140].mxu0 %v21258_v39  ;;  %11751 = vmatpush1.bf16.msra.mxu1 %v13739_v63  ;;  %v2204_v63 = vld [vmem:[#allocation10 + $0x14e0] sm:$0xff] }
 0x562   : > { %11412 = vmatpush1.bf16.msra.mxu0 %v13737_v8  ;;  %11358 = vmatprep.mubr.bf16.mxu0 %v21259_v4  ;;  %v2192_v8 = vld [vmem:[#allocation10 + $0x1480] sm:$0xff] }
 0x563   : > { %11697 = vmatprep.mubr.bf16.mxu1 %v21259_v4  ;;  %11413 = vmatprep.subr.bf16.mxu0 %v13762_v30  ;;  %v2205_v30 = vld [vmem:[#allocation10 + $0x14e8] sm:$0xff]  ;;  %v13858_v55 = vcombine.high %v2192_v8, %v2204_v63  ;;  %v13857_v37 = vcombine.low %v2192_v8, %v2204_v63 }
 0x564   : > { %11752 = vmatprep.subr.bf16.mxu1 %v13764_v42  ;;  %v13833_v42 = vcombine.low %v2168_v18, %v2180_v11  ;;  %v13859_v17 = vcombine.low %v2193_v59, %v2205_v30  ;;  %v2241_v18 = vld [vmem:[#allocation10 + $0x1608] sm:$0xff] }
 0x565   : > { %11753 = vmatpush1.bf16.msra.mxu1 %v13763_v43  ;;  %v2228_v43 = vld [vmem:[#allocation10 + $0x15a0] sm:$0xff] }
 0x566   : > { %11414 = vmatpush1.bf16.msra.mxu0 %v13761_v50  ;;  %11754 = vmatprep.subr.bf16.mxu1 %v13788_v48  ;;  %v13860_v50 = vcombine.high %v2193_v59, %v2205_v30  ;;  %v2229_v48 = vld [vmem:[#allocation10 + $0x15a8] sm:$0xff]  ;;  %v13882_v26 = vcombine.high %v2216_v32, %v2228_v43 }
 0x567   : > { %11415 = vmatprep.subr.bf16.mxu0 %v13786_v40  ;;  %v2217_v40 = vld [vmem:[#allocation10 + $0x1548] sm:$0xff] }
 0x568   : > { %11698 = vmatmul.mubr.bf16.gmra.mrb[144].mxu1 %v21260_v41  ;;  %v13884_v25 = vcombine.high %v2217_v40, %v2229_v48  ;;  %v13883_v11 = vcombine.low %v2217_v40, %v2229_v48  ;;  %v2312_v40 = vld [vmem:[#allocation10 + $0x1840] sm:$0xff] }
 0x569   : > { %11359 = vmatmul.mubr.bf16.gmra.mrb[144].mxu0 %v21260_v41  ;;  %11755 = vmatpush1.bf16.msra.mxu1 %v13787_v52  ;;  %v2252_v52 = vld [vmem:[#allocation10 + $0x1660] sm:$0xff] }
 0x56a   : > { %11416 = vmatpush1.bf16.msra.mxu0 %v13785_v61  ;;  %11368 = vmatprep.mubr.bf16.mxu0 %v21261_v27  ;;  %v2240_v61 = vld [vmem:[#allocation10 + $0x1600] sm:$0xff] }
 0x56b   : > { %11707 = vmatprep.mubr.bf16.mxu1 %v21261_v27  ;;  %11417 = vmatprep.subr.bf16.mxu0 %v13810_v9  ;;  %v2253_v9 = vld [vmem:[#allocation10 + $0x1668] sm:$0xff]  ;;  %v13906_v21 = vcombine.high %v2240_v61, %v2252_v52  ;;  %v13905_v8 = vcombine.low %v2240_v61, %v2252_v52 }
 0x56c   : > { %11756 = vmatprep.subr.bf16.mxu1 %v13812_v12  ;;  %v13881_v12 = vcombine.low %v2216_v32, %v2228_v43  ;;  %v13907_v63 = vcombine.low %v2241_v18, %v2253_v9  ;;  %v2289_v32 = vld [vmem:[#allocation10 + $0x1788] sm:$0xff] }
 0x56d   : > { %11757 = vmatpush1.bf16.msra.mxu1 %v13811_v33  ;;  %v2276_v33 = vld [vmem:[#allocation10 + $0x1720] sm:$0xff] }
 0x56e   : > { %11418 = vmatpush1.bf16.msra.mxu0 %v13809_v31  ;;  %11758 = vmatprep.subr.bf16.mxu1 %v13836_v53  ;;  %v13908_v31 = vcombine.high %v2241_v18, %v2253_v9  ;;  %v2277_v53 = vld [vmem:[#allocation10 + $0x1728] sm:$0xff]  ;;  %v13930_v59 = vcombine.high %v2264_v2, %v2276_v33 }
 0x56f   : > { %11419 = vmatprep.subr.bf16.mxu0 %v13834_v60  ;;  %v2265_v60 = vld [vmem:[#allocation10 + $0x16c8] sm:$0xff] }
 0x570   : > { %11708 = vmatmul.mubr.bf16.gmra.mrb[148].mxu1 %v21262_v46  ;;  %v13932_v30 = vcombine.high %v2265_v60, %v2277_v53  ;;  %v13931_v43 = vcombine.low %v2265_v60, %v2277_v53  ;;  %v2360_v60 = vld [vmem:[#allocation10 + $0x19c0] sm:$0xff] }
 0x571   : > { %11369 = vmatmul.mubr.bf16.gmra.mrb[148].mxu0 %v21262_v46  ;;  %11759 = vmatpush1.bf16.msra.mxu1 %v13835_v51  ;;  %v2300_v51 = vld [vmem:[#allocation10 + $0x17e0] sm:$0xff] }
 0x572   : > { %11420 = vmatpush1.bf16.msra.mxu0 %v13833_v42  ;;  %11378 = vmatprep.mubr.bf16.mxu0 %v21263_v34  ;;  %v2288_v42 = vld [vmem:[#allocation10 + $0x1780] sm:$0xff] }
 0x573   : > { %11717 = vmatprep.mubr.bf16.mxu1 %v21263_v34  ;;  %11421 = vmatprep.subr.bf16.mxu0 %v13858_v55  ;;  %v2301_v55 = vld [vmem:[#allocation10 + $0x17e8] sm:$0xff]  ;;  %v13954_v48 = vcombine.high %v2288_v42, %v2300_v51  ;;  %v13953_v61 = vcombine.low %v2288_v42, %v2300_v51 }
 0x574   : > { %11760 = vmatprep.subr.bf16.mxu1 %v13860_v50  ;;  %v13929_v50 = vcombine.low %v2264_v2, %v2276_v33  ;;  %v13955_v52 = vcombine.low %v2289_v32, %v2301_v55  ;;  %v2337_v2 = vld [vmem:[#allocation10 + $0x1908] sm:$0xff] }
 0x575   : > { %11761 = vmatpush1.bf16.msra.mxu1 %v13859_v17  ;;  %v2324_v17 = vld [vmem:[#allocation10 + $0x18a0] sm:$0xff] }
 0x576   : > { %11422 = vmatpush1.bf16.msra.mxu0 %v13857_v37  ;;  %11762 = vmatprep.subr.bf16.mxu1 %v13884_v25  ;;  %v13956_v37 = vcombine.high %v2289_v32, %v2301_v55  ;;  %v2325_v25 = vld [vmem:[#allocation10 + $0x18a8] sm:$0xff]  ;;  %v13978_v18 = vcombine.high %v2312_v40, %v2324_v17 }
 0x577   : > { %11423 = vmatprep.subr.bf16.mxu0 %v13882_v26  ;;  %v2313_v26 = vld [vmem:[#allocation10 + $0x1848] sm:$0xff] }
 0x578   : > { %11718 = vmatmul.mubr.bf16.gmra.mrb[152].mxu1 %v21264_v23  ;;  %v13980_v9 = vcombine.high %v2313_v26, %v2325_v25  ;;  %v13979_v33 = vcombine.low %v2313_v26, %v2325_v25  ;;  %v2408_v26 = vld [vmem:[#allocation10 + $0x1b40] sm:$0xff] }
 0x579   : > { %11379 = vmatmul.mubr.bf16.gmra.mrb[152].mxu0 %v21264_v23  ;;  %11763 = vmatpush1.bf16.msra.mxu1 %v13883_v11  ;;  %v2348_v11 = vld [vmem:[#allocation10 + $0x1960] sm:$0xff] }
 0x57a   : > { %11424 = vmatpush1.bf16.msra.mxu0 %v13881_v12  ;;  %11388 = vmatprep.mubr.bf16.mxu0 %v21265_v47  ;;  %v2336_v12 = vld [vmem:[#allocation10 + $0x1900] sm:$0xff] }
 0x57b   : > { %11727 = vmatprep.mubr.bf16.mxu1 %v21265_v47  ;;  %11425 = vmatprep.subr.bf16.mxu0 %v13906_v21  ;;  %v2349_v21 = vld [vmem:[#allocation10 + $0x1968] sm:$0xff]  ;;  %v14002_v53 = vcombine.high %v2336_v12, %v2348_v11  ;;  %v14001_v42 = vcombine.low %v2336_v12, %v2348_v11 }
 0x57c   : > { %11764 = vmatprep.subr.bf16.mxu1 %v13908_v31  ;;  %v13977_v31 = vcombine.low %v2312_v40, %v2324_v17  ;;  %v14003_v51 = vcombine.low %v2337_v2, %v2349_v21  ;;  %v2385_v40 = vld [vmem:[#allocation10 + $0x1a88] sm:$0xff] }
 0x57d   : > { %11765 = vmatpush1.bf16.msra.mxu1 %v13907_v63  ;;  %v2372_v63 = vld [vmem:[#allocation10 + $0x1a20] sm:$0xff] }
 0x57e   : > { %11426 = vmatpush1.bf16.msra.mxu0 %v13905_v8  ;;  %11766 = vmatprep.subr.bf16.mxu1 %v13932_v30  ;;  %v14004_v8 = vcombine.high %v2337_v2, %v2349_v21  ;;  %v2373_v30 = vld [vmem:[#allocation10 + $0x1a28] sm:$0xff]  ;;  %v14026_v32 = vcombine.high %v2360_v60, %v2372_v63 }
 0x57f   : > { %11427 = vmatprep.subr.bf16.mxu0 %v13930_v59  ;;  %v2361_v59 = vld [vmem:[#allocation10 + $0x19c8] sm:$0xff] }
 0x580   : > { %11728 = vmatmul.mubr.bf16.gmra.mrb[156].mxu1 %v21277_v3  ;;  %v14028_v55 = vcombine.high %v2361_v59, %v2373_v30  ;;  %v14027_v17 = vcombine.low %v2361_v59, %v2373_v30  ;;  %v2456_v59 = vld [vmem:[#allocation10 + $0x1cc0] sm:$0xff] }
 0x581   : > { %11389 = vmatmul.mubr.bf16.gmra.mrb[156].mxu0 %v21277_v3  ;;  %11767 = vmatpush1.bf16.msra.mxu1 %v13931_v43  ;;  %v2396_v43 = vld [vmem:[#allocation10 + $0x1ae0] sm:$0xff] }
 0x582   : > { %11428 = vmatpush1.bf16.msra.mxu0 %v13929_v50  ;;  %11431 = vmatprep.mubr.bf16.mxu0 %v21267_v7  ;;  %v2384_v50 = vld [vmem:[#allocation10 + $0x1a80] sm:$0xff] }
 0x583   : > { %11770 = vmatprep.mubr.bf16.mxu1 %v21267_v7  ;;  %11429 = vmatprep.subr.bf16.mxu0 %v13954_v48  ;;  %v2397_v48 = vld [vmem:[#allocation10 + $0x1ae8] sm:$0xff]  ;;  %v14050_v25 = vcombine.high %v2384_v50, %v2396_v43  ;;  %v14049_v12 = vcombine.low %v2384_v50, %v2396_v43 }
 0x584   : > { %11768 = vmatprep.subr.bf16.mxu1 %v13956_v37  ;;  %v14025_v37 = vcombine.low %v2360_v60, %v2372_v63  ;;  %v14051_v11 = vcombine.low %v2385_v40, %v2397_v48  ;;  %v2433_v60 = vld [vmem:[#allocation10 + $0x1c08] sm:$0xff] }
 0x585   : > { %11769 = vmatpush1.bf16.msra.mxu1 %v13955_v52  ;;  %v2420_v52 = vld [vmem:[#allocation10 + $0x1ba0] sm:$0xff] }
 0x586   : > { %11430 = vmatpush1.bf16.msra.mxu0 %v13953_v61  ;;  %11851 = vmatprep.subr.bf16.mxu1 %v13980_v9  ;;  %v14052_v61 = vcombine.high %v2385_v40, %v2397_v48  ;;  %v2421_v9 = vld [vmem:[#allocation10 + $0x1ba8] sm:$0xff]  ;;  %v14074_v2 = vcombine.high %v2408_v26, %v2420_v52 }
 0x587   : > { %11512 = vmatprep.subr.bf16.mxu0 %v13978_v18  ;;  %v2409_v18 = vld [vmem:[#allocation10 + $0x1b48] sm:$0xff] }
 0x588   : > { %11771 = vmatmul.mubr.bf16.vlgmr.msra.gmra.mrb[128].mxu1 %v21278_v56  ;;  %v14076_v21 = vcombine.high %v2409_v18, %v2421_v9  ;;  %v14075_v63 = vcombine.low %v2409_v18, %v2421_v9  ;;  %v2504_v18 = vld [vmem:[#allocation10 + $0x1e40] sm:$0xff] }
 0x589   : > { %11432 = vmatmul.mubr.bf16.vlgmr.msra.gmra.mrb[128].mxu0 %v21278_v56  ;;  %11852 = vmatpush1.bf16.msra.mxu1 %v13979_v33  ;;  %v2444_v33 = vld [vmem:[#allocation10 + $0x1c60] sm:$0xff] }
 0x58a   : > { %11513 = vmatpush1.bf16.msra.mxu0 %v13977_v31  ;;  %11441 = vmatprep.mubr.bf16.mxu0 %v21279_v29  ;;  %v2432_v31 = vld [vmem:[#allocation10 + $0x1c00] sm:$0xff] }
 0x58b   : > { %11780 = vmatprep.mubr.bf16.mxu1 %v21279_v29  ;;  %11514 = vmatprep.subr.bf16.mxu0 %v14002_v53  ;;  %v2445_v53 = vld [vmem:[#allocation10 + $0x1c68] sm:$0xff]  ;;  %v14098_v30 = vcombine.high %v2432_v31, %v2444_v33  ;;  %v14097_v50 = vcombine.low %v2432_v31, %v2444_v33 }
 0x58c   : > { %11853 = vmatprep.subr.bf16.mxu1 %v14004_v8  ;;  %v14073_v8 = vcombine.low %v2408_v26, %v2420_v52  ;;  %v14099_v43 = vcombine.low %v2433_v60, %v2445_v53  ;;  %v2481_v26 = vld [vmem:[#allocation10 + $0x1d88] sm:$0xff] }
 0x58d   : > { %11854 = vmatpush1.bf16.msra.mxu1 %v14003_v51  ;;  %v2468_v51 = vld [vmem:[#allocation10 + $0x1d20] sm:$0xff] }
 0x58e   : > { %11515 = vmatpush1.bf16.msra.mxu0 %v14001_v42  ;;  %11855 = vmatprep.subr.bf16.mxu1 %v14028_v55  ;;  %v14100_v42 = vcombine.high %v2433_v60, %v2445_v53  ;;  %v2469_v55 = vld [vmem:[#allocation10 + $0x1d28] sm:$0xff]  ;;  %v14122_v40 = vcombine.high %v2456_v59, %v2468_v51 }
 0x58f   : > { %11516 = vmatprep.subr.bf16.mxu0 %v14026_v32  ;;  %v2457_v32 = vld [vmem:[#allocation10 + $0x1cc8] sm:$0xff] }
 0x590   : > { %11781 = vmatmul.mubr.bf16.gmra.mrb[132].mxu1 %v21280_v0  ;;  %v14124_v48 = vcombine.high %v2457_v32, %v2469_v55  ;;  %v14123_v52 = vcombine.low %v2457_v32, %v2469_v55  ;;  %v2552_v32 = vld [vmem:[#allocation10 + $0x1fc0] sm:$0xff] }
 0x591   : > { %11442 = vmatmul.mubr.bf16.gmra.mrb[132].mxu0 %v21280_v0  ;;  %11856 = vmatpush1.bf16.msra.mxu1 %v14027_v17  ;;  %v2492_v17 = vld [vmem:[#allocation10 + $0x1de0] sm:$0xff] }
 0x592   : > { %11517 = vmatpush1.bf16.msra.mxu0 %v14025_v37  ;;  %11451 = vmatprep.mubr.bf16.mxu0 %v21281_v16  ;;  %v2480_v37 = vld [vmem:[#allocation10 + $0x1d80] sm:$0xff] }
 0x593   : > { %11790 = vmatprep.mubr.bf16.mxu1 %v21281_v16  ;;  %11518 = vmatprep.subr.bf16.mxu0 %v14050_v25  ;;  %v2493_v25 = vld [vmem:[#allocation10 + $0x1de8] sm:$0xff]  ;;  %v14146_v9 = vcombine.high %v2480_v37, %v2492_v17  ;;  %v14145_v31 = vcombine.low %v2480_v37, %v2492_v17 }
 0x594   : > { %11857 = vmatprep.subr.bf16.mxu1 %v14052_v61  ;;  %v14121_v61 = vcombine.low %v2456_v59, %v2468_v51  ;;  %v14147_v33 = vcombine.low %v2481_v26, %v2493_v25  ;;  %v2529_v59 = vld [vmem:[#allocation10 + $0x1f08] sm:$0xff] }
 0x595   : > { %11858 = vmatpush1.bf16.msra.mxu1 %v14051_v11  ;;  %v2516_v11 = vld [vmem:[#allocation10 + $0x1ea0] sm:$0xff] }
 0x596   : > { %11519 = vmatpush1.bf16.msra.mxu0 %v14049_v12  ;;  %11859 = vmatprep.subr.bf16.mxu1 %v14076_v21  ;;  %v14148_v12 = vcombine.high %v2481_v26, %v2493_v25  ;;  %v2517_v21 = vld [vmem:[#allocation10 + $0x1ea8] sm:$0xff]  ;;  %v14170_v60 = vcombine.high %v2504_v18, %v2516_v11 }
 0x597   : > { %11520 = vmatprep.subr.bf16.mxu0 %v14074_v2  ;;  %v2505_v2 = vld [vmem:[#allocation10 + $0x1e48] sm:$0xff] }
 0x598   : > { %11791 = vmatmul.mubr.bf16.gmra.mrb[136].mxu1 %v21282_v62  ;;  %v14172_v53 = vcombine.high %v2505_v2, %v2517_v21  ;;  %v14171_v51 = vcombine.low %v2505_v2, %v2517_v21  ;;  %v2600_v2 = vld [vmem:[#allocation10 + $0x2140] sm:$0xff] }
 0x599   : > { %11452 = vmatmul.mubr.bf16.gmra.mrb[136].mxu0 %v21282_v62  ;;  %11860 = vmatpush1.bf16.msra.mxu1 %v14075_v63  ;;  %v2540_v63 = vld [vmem:[#allocation10 + $0x1f60] sm:$0xff] }
 0x59a   : > { %11521 = vmatpush1.bf16.msra.mxu0 %v14073_v8  ;;  %11461 = vmatprep.mubr.bf16.mxu0 %v21272_v24  ;;  %v2528_v8 = vld [vmem:[#allocation10 + $0x1f00] sm:$0xff] }
 0x59b   : > { %11800 = vmatprep.mubr.bf16.mxu1 %v21272_v24  ;;  %11522 = vmatprep.subr.bf16.mxu0 %v14098_v30  ;;  %v2541_v30 = vld [vmem:[#allocation10 + $0x1f68] sm:$0xff]  ;;  %v14194_v55 = vcombine.high %v2528_v8, %v2540_v63  ;;  %v14193_v37 = vcombine.low %v2528_v8, %v2540_v63  ;;  %v21310_v8 = vld [vmem:[#allocation121_spill] sm:$0xff] }
 0x59c   : > { %11861 = vmatprep.subr.bf16.mxu1 %v14100_v42  ;;  %v14169_v42 = vcombine.low %v2504_v18, %v2516_v11  ;;  %v14195_v17 = vcombine.low %v2529_v59, %v2541_v30  ;;  %v2577_v18 = vld [vmem:[#allocation10 + $0x2088] sm:$0xff] }
 0x59d   : > { %11862 = vmatpush1.bf16.msra.mxu1 %v14099_v43  ;;  %v2564_v43 = vld [vmem:[#allocation10 + $0x2020] sm:$0xff] }
 0x59e   : > { %11523 = vmatpush1.bf16.msra.mxu0 %v14097_v50  ;;  %11863 = vmatprep.subr.bf16.mxu1 %v14124_v48  ;;  %v14196_v50 = vcombine.high %v2529_v59, %v2541_v30  ;;  %v2565_v48 = vld [vmem:[#allocation10 + $0x2028] sm:$0xff]  ;;  %v14218_v26 = vcombine.high %v2552_v32, %v2564_v43  ;;  %v21311_v30 = vld [vmem:[#allocation131_spill] sm:$0xff] }
 0x59f   : > { %11524 = vmatprep.subr.bf16.mxu0 %v14122_v40  ;;  %v2553_v40 = vld [vmem:[#allocation10 + $0x1fc8] sm:$0xff] }
 0x5a0   : > { %11801 = vmatmul.mubr.bf16.gmra.mrb[140].mxu1 %v21215_v14  ;;  %v14220_v25 = vcombine.high %v2553_v40, %v2565_v48  ;;  %v14219_v11 = vcombine.low %v2553_v40, %v2565_v48 }
 0x5a1   : > { %11462 = vmatmul.mubr.bf16.gmra.mrb[140].mxu0 %v21215_v14  ;;  %11864 = vmatpush1.bf16.msra.mxu1 %v14123_v52  ;;  %v2588_v52 = vld [vmem:[#allocation10 + $0x20e0] sm:$0xff] }
 0x5a2   : > { %11525 = vmatpush1.bf16.msra.mxu0 %v14121_v61  ;;  %11471 = vmatprep.mubr.bf16.mxu0 %v18430_v44  ;;  %v2576_v61 = vld [vmem:[#allocation10 + $0x2080] sm:$0xff] }
 0x5a3   : > { %11810 = vmatprep.mubr.bf16.mxu1 %v18430_v44  ;;  %11526 = vmatprep.subr.bf16.mxu0 %v14146_v9  ;;  %v2589_v9 = vld [vmem:[#allocation10 + $0x20e8] sm:$0xff]  ;;  %v14242_v21 = vcombine.high %v2576_v61, %v2588_v52  ;;  %v14241_v63 = vcombine.low %v2576_v61, %v2588_v52 }
 0x5a4   : > { %11865 = vmatprep.subr.bf16.mxu1 %v14148_v12  ;;  %v14217_v12 = vcombine.low %v2552_v32, %v2564_v43  ;;  %v14243_v59 = vcombine.low %v2577_v18, %v2589_v9  ;;  %v2624_v32 = vld [vmem:[#allocation10 + $0x2200] sm:$0xff]  ;;  %v2637_v43 = vld [vmem:[#allocation10 + $0x2268] sm:$0xff] }
 0x5a5   : > { %11866 = vmatpush1.bf16.msra.mxu1 %v14147_v33  ;;  %v2612_v33 = vld [vmem:[#allocation10 + $0x21a0] sm:$0xff]  ;;  %v2649_v61 = vld [vmem:[#allocation10 + $0x22c8] sm:$0xff] }
 0x5a6   : > { %11527 = vmatpush1.bf16.msra.mxu0 %v14145_v31  ;;  %11867 = vmatprep.subr.bf16.mxu1 %v14172_v53  ;;  %v14244_v31 = vcombine.high %v2577_v18, %v2589_v9  ;;  %v2613_v53 = vld [vmem:[#allocation10 + $0x21a8] sm:$0xff]  ;;  %v14265_v40 = vcombine.low %v2600_v2, %v2612_v33  ;;  %v21312_v18 = vld [vmem:[#allocation124_spill] sm:$0xff] }
 0x5a7   : > { %11528 = vmatprep.subr.bf16.mxu0 %v14170_v60  ;;  %v2601_v60 = vld [vmem:[#allocation10 + $0x2148] sm:$0xff] }
 0x5a8   : > { %11811 = vmatmul.mubr.bf16.gmra.mrb[144].mxu1 %v21231_v15  ;;  %v14267_v48 = vcombine.low %v2601_v60, %v2613_v53  ;;  %v2661_v52 = vld [vmem:[#allocation10 + $0x2328] sm:$0xff] }
 0x5a9   : > { %11472 = vmatmul.mubr.bf16.gmra.mrb[144].mxu0 %v21231_v15  ;;  %11868 = vmatpush1.bf16.msra.mxu1 %v14171_v51  ;;  %v14268_v51 = vcombine.high %v2601_v60, %v2613_v53  ;;  %v2673_v60 = vld [vmem:[#allocation10 + $0x2388] sm:$0xff] }
 0x5aa   : > { %11529 = vmatpush1.bf16.msra.mxu0 %v14169_v42  ;;  %11481 = vmatprep.mubr.bf16.mxu0 %v18519_v35  ;;  %v14266_v42 = vcombine.high %v2600_v2, %v2612_v33  ;;  %v2684_v33 = vld [vmem:[#allocation10 + $0x23e0] sm:$0xff]  ;;  %v2685_v53 = vld [vmem:[#allocation10 + $0x23e8] sm:$0xff] }
 0x5ab   : > { %11820 = vmatprep.mubr.bf16.mxu1 %v18519_v35  ;;  %11530 = vmatprep.subr.bf16.mxu0 %v14194_v55  ;;  %v2636_v55 = vld [vmem:[#allocation10 + $0x2260] sm:$0xff] }
 0x5ac   : > { %11869 = vmatprep.subr.bf16.mxu1 %v14196_v50  ;;  %v2625_v50 = vld [vmem:[#allocation10 + $0x2208] sm:$0xff]  ;;  %v14289_v9 = vcombine.low %v2624_v32, %v2636_v55 }
 0x5ad   : > { %11870 = vmatpush1.bf16.msra.mxu1 %v14195_v17  ;;  %v14290_v17 = vcombine.high %v2624_v32, %v2636_v55  ;;  %v14340_v32 = vcombine.high %v2673_v60, %v2685_v53  ;;  %v1558_v55 = vld [vmem:[#allocation10 + $0xb0] sm:$0xff] }
 0x5ae   : > { %11531 = vmatpush1.bf16.msra.mxu0 %v14193_v37  ;;  %11871 = vmatprep.subr.bf16.mxu1 %v14220_v25  ;;  %v2648_v37 = vld [vmem:[#allocation10 + $0x22c0] sm:$0xff] }
 0x5af   : > { %11532 = vmatprep.subr.bf16.mxu0 %v14218_v26  ;;  %v14292_v26 = vcombine.high %v2625_v50, %v2637_v43  ;;  %v2660_v25 = vld [vmem:[#allocation10 + $0x2320] sm:$0xff] }
 0x5b0   : > { %11821 = vmatmul.mubr.bf16.gmra.mrb[148].mxu1 %v21310_v8  ;;  %v14314_v2 = vcombine.high %v2648_v37, %v2660_v25 }
 0x5b1   : > { %11482 = vmatmul.mubr.bf16.gmra.mrb[148].mxu0 %v21310_v8  ;;  %11872 = vmatpush1.bf16.msra.mxu1 %v14219_v11  ;;  %v21313_v11 = vld [vmem:[#allocation132_spill] sm:$0xff] }
 0x5b2   : > { %11533 = vmatpush1.bf16.msra.mxu0 %v14217_v12  ;;  %11491 = vmatprep.mubr.bf16.mxu0 %v21311_v30  ;;  %v14291_v12 = vcombine.low %v2625_v50, %v2637_v43  ;;  %v1547_v50 = vld [vmem:[#allocation10 + $0x58] sm:$0xff] }
 0x5b3   : > { %11830 = vmatprep.mubr.bf16.mxu1 %v21311_v30  ;;  %11534 = vmatprep.subr.bf16.mxu0 %v14242_v21  ;;  %v14316_v21 = vcombine.high %v2649_v61, %v2661_v52  ;;  %v1559_v43 = vld [vmem:[#allocation10 + $0xb8] sm:$0xff] }
 0x5b4   : > { %11873 = vmatprep.subr.bf16.mxu1 %v14244_v31  ;;  %v2672_v31 = vld [vmem:[#allocation10 + $0x2380] sm:$0xff] }
 0x5b5   : > { %11874 = vmatpush1.bf16.msra.mxu1 %v14243_v59  ;;  %v14315_v59 = vcombine.low %v2649_v61, %v2661_v52  ;;  %v1570_v61 = vld [vmem:[#allocation10 + $0x110] sm:$0xff] }
 0x5b6   : > { %11535 = vmatpush1.bf16.msra.mxu0 %v14241_v63  ;;  %11875 = vmatprep.subr.bf16.mxu1 %v14268_v51  ;;  %v14313_v63 = vcombine.low %v2648_v37, %v2660_v25  ;;  %v14338_v51 = vcombine.high %v2672_v31, %v2684_v33  ;;  %v13216_v25 = vcombine.high %v1547_v50, %v1559_v43  ;;  %v1582_v52 = vld [vmem:[#allocation10 + $0x170] sm:$0xff] }
 0x5b7   : > { %11536 = vmatprep.subr.bf16.mxu0 %v14266_v42  ;;  %v1546_v42 = vld [vmem:[#allocation10 + $0x50] sm:$0xff] }
 0x5b8   : > { %11831 = vmatmul.mubr.bf16.gmra.mrb[152].mxu1 %v21312_v18  ;;  %v13214_v37 = vcombine.high %v1546_v42, %v1558_v55 }
 0x5b9   : > { %11492 = vmatmul.mubr.bf16.gmra.mrb[152].mxu0 %v21312_v18  ;;  %11876 = vmatpush1.bf16.msra.mxu1 %v14267_v48  ;;  %v14337_v48 = vcombine.low %v2672_v31, %v2684_v33  ;;  %v1594_v31 = vld [vmem:[#allocation10 + $0x1d0] sm:$0xff]  ;;  %v13238_v33 = vcombine.high %v1570_v61, %v1582_v52 }
 0x5ba   : > { %11537 = vmatpush1.bf16.msra.mxu0 %v14265_v40  ;;  %11501 = vmatprep.mubr.bf16.mxu0 %v21313_v11  ;;  %v21314_v40 = vld [vmem:[#allocation39_spill] sm:$0xff] }
 0x5bb   : > { %11840 = vmatprep.mubr.bf16.mxu1 %v21313_v11  ;;  %11538 = vmatprep.subr.bf16.mxu0 %v14290_v17  ;;  %v14339_v17 = vcombine.low %v2673_v60, %v2685_v53  ;;  %v1606_v53 = vld [vmem:[#allocation10 + $0x230] sm:$0xff]  ;;  %v21325_v11 = vld [vmem:[#allocation130_spill] sm:$0xff] }
 0x5bc   : > { %11877 = vmatprep.subr.bf16.mxu1 %v14292_v26  ;;  %v21315_v26 = vld [vmem:[#allocation54_spill] sm:$0xff] }
 0x5bd   : > { %11878 = vmatpush1.bf16.msra.mxu1 %v14291_v12  ;;  %v1583_v12 = vld [vmem:[#allocation10 + $0x178] sm:$0xff] }
 0x5be   : > { %11539 = vmatpush1.bf16.msra.mxu0 %v14289_v9  ;;  %11879 = vmatprep.subr.bf16.mxu1 %v14316_v21  ;;  %v1571_v9 = vld [vmem:[#allocation10 + $0x118] sm:$0xff]  ;;  %v13215_v21 = vcombine.low %v1547_v50, %v1559_v43  ;;  %v1618_v50 = vld [vmem:[#allocation10 + $0x290] sm:$0xff] }
 0x5bf   : > { %11540 = vmatprep.subr.bf16.mxu0 %v14314_v2  ;;  %v13213_v2 = vcombine.low %v1546_v42, %v1558_v55  ;;  %v13240_v60 = vcombine.high %v1571_v9, %v1583_v12  ;;  %v13262_v42 = vcombine.high %v1594_v31, %v1606_v53  ;;  %v1630_v43 = vld [vmem:[#allocation10 + $0x2f0] sm:$0xff] }
 0x5c0   : > { %11841 = vmatmul.mubr.bf16.gmra.mrb[156].mxu1 %v21314_v40 }
 0x5c1   : > { %11502 = vmatmul.mubr.bf16.gmra.mrb[156].mxu0 %v21314_v40  ;;  %11880 = vmatpush1.bf16.msra.mxu1 %v14315_v59  ;;  %v1607_v59 = vld [vmem:[#allocation10 + $0x238] sm:$0xff] }
 0x5c2   : > { %11541 = vmatpush1.bf16.msra.mxu0 %v14313_v63  ;;  %11544 = vmatprep.mubr.bf16.mxu0 %v21315_v26  ;;  %v1595_v63 = vld [vmem:[#allocation10 + $0x1d8] sm:$0xff] }
 0x5c3   : > { %11883 = vmatprep.mubr.bf16.mxu1 %v21315_v26  ;;  %11542 = vmatprep.subr.bf16.mxu0 %v14338_v51  ;;  %v21316_v26 = vld [vmem:[#allocation126_spill] sm:$0xff]  ;;  %v13237_v51 = vcombine.low %v1570_v61, %v1582_v52  ;;  %v13264_v55 = vcombine.high %v1595_v63, %v1607_v59  ;;  %v1642_v61 = vld [vmem:[#allocation10 + $0x350] sm:$0xff]  ;;  %v13286_v52 = vcombine.high %v1618_v50, %v1630_v43 }
 0x5c4   : > { %11881 = vmatprep.subr.bf16.mxu1 %v14340_v32  ;;  %v13239_v32 = vcombine.low %v1571_v9, %v1583_v12  ;;  %v1654_v12 = vld [vmem:[#allocation10 + $0x3b0] sm:$0xff] }
 0x5c5   : > { %11882 = vmatpush1.bf16.msra.mxu1 %v14339_v17  ;;  %v1619_v17 = vld [vmem:[#allocation10 + $0x298] sm:$0xff] }
 0x5c6   : > { %11543 = vmatpush1.bf16.msra.mxu0 %v14337_v48  ;;  %12303 = vmatprep.subr.bf16.mxu1 %v13216_v25  ;;  %v21317_v48 = vld [vmem:[#allocation127_spill] sm:$0xff]  ;;  %v13261_v25 = vcombine.low %v1594_v31, %v1606_v53  ;;  %v13310_v31 = vcombine.high %v1642_v61, %v1654_v12 }
 0x5c7   : > { %11964 = vmatprep.subr.bf16.mxu0 %v13214_v37  ;;  %v1631_v37 = vld [vmem:[#allocation10 + $0x2f8] sm:$0xff] }
 0x5c8   : > { %11884 = vmatmul.mubr.bf16.vlgmr.msra.gmra.mrb[128].mxu1 %v21316_v26  ;;  %v13288_v9 = vcombine.high %v1619_v17, %v1631_v37 }
 0x5c9   : > { %11545 = vmatmul.mubr.bf16.vlgmr.msra.gmra.mrb[128].mxu0 %v21316_v26  ;;  %12304 = vmatpush1.bf16.msra.mxu1 %v13215_v21  ;;  %v13263_v26 = vcombine.low %v1595_v63, %v1607_v59  ;;  %v1655_v21 = vld [vmem:[#allocation10 + $0x3b8] sm:$0xff]  ;;  %v1666_v63 = vld [vmem:[#allocation10 + $0x410] sm:$0xff] }
 0x5ca   : > { %11965 = vmatpush1.bf16.msra.mxu0 %v13213_v2  ;;  %11554 = vmatprep.mubr.bf16.mxu0 %v21317_v48  ;;  %v1643_v2 = vld [vmem:[#allocation10 + $0x358] sm:$0xff]  ;;  %v1678_v59 = vld [vmem:[#allocation10 + $0x470] sm:$0xff] }
 0x5cb   : > { %11893 = vmatprep.mubr.bf16.mxu1 %v21317_v48  ;;  %11966 = vmatprep.subr.bf16.mxu0 %v13238_v33  ;;  %v21318_v48 = vld [vmem:[#allocation53_spill] sm:$0xff]  ;;  %v13285_v33 = vcombine.low %v1618_v50, %v1630_v43  ;;  %v13312_v53 = vcombine.high %v1643_v2, %v1655_v21  ;;  %v13334_v50 = vcombine.high %v1666_v63, %v1678_v59 }
 0x5cc   : > { %12305 = vmatprep.subr.bf16.mxu1 %v13240_v60  ;;  %v13287_v60 = vcombine.low %v1619_v17, %v1631_v37  ;;  %v1702_v17 = vld [vmem:[#allocation10 + $0x530] sm:$0xff]  ;;  %v1691_v37 = vld [vmem:[#allocation10 + $0x4d8] sm:$0xff] }
 0x5cd   : > { %12306 = vmatpush1.bf16.msra.mxu1 %v13239_v32  ;;  %v1667_v32 = vld [vmem:[#allocation10 + $0x418] sm:$0xff] }
 0x5ce   : > { %11967 = vmatpush1.bf16.msra.mxu0 %v13237_v51  ;;  %12307 = vmatprep.subr.bf16.mxu1 %v13264_v55  ;;  %v21319_v51 = vld [vmem:[#allocation60_spill] sm:$0xff]  ;;  %v13309_v55 = vcombine.low %v1642_v61, %v1654_v12  ;;  %v21323_v12 = vld [vmem:[#allocation141_spill] sm:$0xff] }
 0x5cf   : > { %11968 = vmatprep.subr.bf16.mxu0 %v13262_v42  ;;  %v1679_v42 = vld [vmem:[#allocation10 + $0x478] sm:$0xff] }
 0x5d0   : > { %11894 = vmatmul.mubr.bf16.gmra.mrb[132].mxu1 %v21318_v48  ;;  %v13336_v43 = vcombine.high %v1667_v32, %v1679_v42 }
 0x5d1   : > { %11555 = vmatmul.mubr.bf16.gmra.mrb[132].mxu0 %v21318_v48  ;;  %12308 = vmatpush1.bf16.msra.mxu1 %v13263_v26  ;;  %v13311_v48 = vcombine.low %v1643_v2, %v1655_v21  ;;  %v19629_v26 = vld [vmem:[#allocation10 + $0x4d0] sm:$0xff]  ;;  %v13333_v21 = vcombine.low %v1666_v63, %v1678_v59 }
 0x5d2   : > { %11969 = vmatpush1.bf16.msra.mxu0 %v13261_v25  ;;  %11564 = vmatprep.mubr.bf16.mxu0 %v21319_v51  ;;  %v1703_v25 = vld [vmem:[#allocation10 + $0x538] sm:$0xff] }
 0x5d3   : > { %11903 = vmatprep.mubr.bf16.mxu1 %v21319_v51  ;;  %11970 = vmatprep.subr.bf16.mxu0 %v13286_v52  ;;  %v21320_v51 = vld [vmem:[#allocation129_spill] sm:$0xff]  ;;  %v15640_v52 = vld [vmem:[#allocation11 + $0x8] sm:$0xff]  ;;  %v13359_v30 = vcombine.low %v1691_v37, %v1703_v25 }
 0x5d4   : > { %12309 = vmatprep.subr.bf16.mxu1 %v13288_v9  ;;  %v21321_v9 = vld [vmem:[#allocation152_spill] sm:$0xff]  ;;  %v19640_v2 = vrot.slane %v15640_v52, %v21323_v12  ;;  %v19648_v12 = vld [vmem:[#allocation10 + $0x590] sm:$0xff] }
 0x5d5   : > { %12310 = vmatpush1.bf16.msra.mxu1 %v13287_v60  ;;  %v19634_v40 = vrot.slane %v15640_v52, %v21321_v9  ;;  %v13335_v60 = vcombine.low %v1667_v32, %v1679_v42  ;;  %v13358_v9 = vcombine.high %v19629_v26, %v1702_v17  ;;  %v13357_v42 = vcombine.low %v19629_v26, %v1702_v17 }
 0x5d6   : > { %11971 = vmatpush1.bf16.msra.mxu0 %v13285_v33  ;;  %12311 = vmatprep.subr.bf16.mxu1 %v13312_v53  ;;  %v21322_v33 = vld [vmem:[#allocation45_spill] sm:$0xff] }
 0x5d7   : > { %11972 = vmatprep.subr.bf16.mxu0 %v13310_v31  ;;  %v19637_v61 = vrot.slane %v15640_v52, %v21322_v33  ;;  %v21324_v31 = vld [vmem:[#allocation51_spill] sm:$0xff] }
 0x5d8   : > { %11904 = vmatmul.mubr.bf16.gmra.mrb[136].mxu1 %v21320_v51  ;;  %v19643_v53 = vrot.slane %v15640_v52, %v21324_v31  ;;  %v1715_v52 = vld [vmem:[#allocation10 + $0x598] sm:$0xff] }
 0x5d9   : > { %11565 = vmatmul.mubr.bf16.gmra.mrb[136].mxu0 %v21320_v51  ;;  %12312 = vmatpush1.bf16.msra.mxu1 %v13311_v48  ;;  %v13360_v51 = vcombine.high %v1691_v37, %v1703_v25  ;;  %v1727_v31 = vld [vmem:[#allocation10 + $0x5f8] sm:$0xff] }
 0x5da   : > { %11973 = vmatpush1.bf16.msra.mxu0 %v13309_v55  ;;  %11574 = vmatprep.mubr.bf16.mxu0 %v21325_v11  ;;  %v1726_v55 = vld [vmem:[#allocation10 + $0x5f0] sm:$0xff] }
 0x5db   : > { %11913 = vmatprep.mubr.bf16.mxu1 %v21325_v11  ;;  %v11207_v33 = vpop.f32.mrb[96].mxu1  ;;  %11974 = vmatprep.subr.bf16.mxu0 %v13334_v50 }
 0x5dc   : > { %v10868_v18 = vpop.f32.mrb[96].mxu0  ;;  %12313 = vmatprep.subr.bf16.mxu1 %v13336_v43  ;;  %v14574_v63 = vadd.f32 %v11207_v33, %v19637_v61  ;;  %v11209_v32 = vpop.f32.mrb[97].mxu1 }
 0x5dd   : > { %v14542_v48 = vadd.f32 %v10868_v18, %v19634_v40  ;;  %v10870_v59 = vpop.f32.mrb[97].mxu0  ;;  %v14575_v50 = vadd.f32 %v11209_v32, %v19643_v53  ;;  %12314 = vmatpush1.bf16.msra.mxu1 %v13335_v60  ;;  %v11211_v18 = vpop.f32.mrb[98].mxu1  ;;  %v13384_v60 = vcombine.high %v1715_v52, %v1727_v31  ;;  %v1751_v32 = vld [vmem:[#allocation10 + $0x6b8] sm:$0xff] }
 0x5de   : > { %v14543_v11 = vadd.f32 %v10870_v59, %v19640_v2  ;;  %11975 = vmatpush1.bf16.msra.mxu0 %v13333_v21  ;;  %v10872_v43 = vpop.f32.mrb[98].mxu0  ;;  %12656 = vst [vmem:[%s18759_s11 + $0x70] sm:$0xff] %v14574_v63  ;;  %v14576_v26 = vadd.f32 %v11211_v18, %v19637_v61  ;;  %v11213_v8 = vpop.f32.mrb[99].mxu1  ;;  %12315 = vmatprep.subr.bf16.mxu1 %v13360_v51  ;;  %v19659_v59 = vld [vmem:[#allocation10 + $0x650] sm:$0xff]  ;;  %v1739_v63 = vld [vmem:[#allocation10 + $0x658] sm:$0xff] }
 0x5df   : > { %12654 = vst [vmem:[%s18759_s11 + $0x60] sm:$0xff] %v14542_v48  ;;  %v14544_v33 = vadd.f32 %v10872_v43, %v19634_v40  ;;  %v10874_v17 = vpop.f32.mrb[99].mxu0  ;;  %11976 = vmatprep.subr.bf16.mxu0 %v13358_v9  ;;  %12657 = vst [vmem:[%s18759_s11 + $0x78] sm:$0xff] %v14575_v50  ;;  %v14577_v25 = vadd.f32 %v11213_v8, %v19643_v53  ;;  %v13382_v21 = vcombine.high %v19648_v12, %v1726_v55  ;;  %v1750_v48 = vld [vmem:[#allocation10 + $0x6b0] sm:$0xff] }
 0x5e0   : > { %12655 = vst [vmem:[%s18759_s11 + $0x68] sm:$0xff] %v14543_v11  ;;  %v14545_v37 = vadd.f32 %v10874_v17, %v19640_v2  ;;  %12680 = vst [vmem:[%s18759_s11 + $0x130] sm:$0xff] %v14576_v26  ;;  %11914 = vmatmul.mubr.bf16.gmra.mrb[140].mxu1 %v18434_v57  ;;  %v13381_v11 = vcombine.low %v19648_v12, %v1726_v55  ;;  %v13383_v51 = vcombine.low %v1715_v52, %v1727_v31  ;;  %v19676_v18 = vld [vmem:[#allocation10 + $0x710] sm:$0xff]  ;;  %v1775_v26 = vld [vmem:[#allocation10 + $0x778] sm:$0xff] }
 0x5e1   : > { %12678 = vst [vmem:[%s18759_s11 + $0x120] sm:$0xff] %v14544_v33  ;;  %11575 = vmatmul.mubr.bf16.gmra.mrb[140].mxu0 %v18434_v57  ;;  %12681 = vst [vmem:[%s18759_s11 + $0x138] sm:$0xff] %v14577_v25  ;;  %12316 = vmatpush1.bf16.msra.mxu1 %v13359_v30  ;;  %v13406_v8 = vcombine.high %v19659_v59, %v1750_v48  ;;  %v13408_v9 = vcombine.high %v1739_v63, %v1751_v32  ;;  %v1774_v52 = vld [vmem:[#allocation10 + $0x770] sm:$0xff]  ;;  %v1763_v33 = vld [vmem:[#allocation10 + $0x718] sm:$0xff] }
 0x5e2   : > { %12679 = vst [vmem:[%s18759_s11 + $0x128] sm:$0xff] %v14545_v37  ;;  %11977 = vmatpush1.bf16.msra.mxu0 %v13357_v42  ;;  %11584 = vmatprep.mubr.bf16.mxu0 %v18436_v58  ;;  %v13405_v55 = vcombine.low %v19659_v59, %v1750_v48 }
 0x5e3   : > { %11923 = vmatprep.mubr.bf16.mxu1 %v18436_v58  ;;  %v11217_v43 = vpop.f32.mrb[100].mxu1  ;;  %11978 = vmatprep.subr.bf16.mxu0 %v13382_v21 }
 0x5e4   : > { %v10878_v50 = vpop.f32.mrb[100].mxu0  ;;  %12317 = vmatprep.subr.bf16.mxu1 %v13384_v60  ;;  %v14578_v30 = vadd.f32 %v11217_v43, %v19637_v61  ;;  %v11219_v31 = vpop.f32.mrb[101].mxu1  ;;  %v13407_v60 = vcombine.low %v1739_v63, %v1751_v32 }
 0x5e5   : > { %v14546_v42 = vadd.f32 %v10878_v50, %v19634_v40  ;;  %v10880_v12 = vpop.f32.mrb[101].mxu0  ;;  %v14579_v37 = vadd.f32 %v11219_v31, %v19643_v53  ;;  %12318 = vmatpush1.bf16.msra.mxu1 %v13383_v51  ;;  %v11221_v21 = vpop.f32.mrb[102].mxu1  ;;  %v13432_v51 = vcombine.high %v1763_v33, %v1775_v26  ;;  %v1799_v31 = vld [vmem:[#allocation10 + $0x838] sm:$0xff] }
 0x5e6   : > { %v14547_v17 = vadd.f32 %v10880_v12, %v19640_v2  ;;  %11979 = vmatpush1.bf16.msra.mxu0 %v13381_v11  ;;  %v10882_v25 = vpop.f32.mrb[102].mxu0  ;;  %12704 = vst [vmem:[%s18759_s11 + $0x1f0] sm:$0xff] %v14578_v30  ;;  %v14580_v59 = vadd.f32 %v11221_v21, %v19637_v61  ;;  %v11223_v43 = vpop.f32.mrb[103].mxu1  ;;  %12319 = vmatprep.subr.bf16.mxu1 %v13408_v9  ;;  %v19687_v12 = vld [vmem:[#allocation10 + $0x7d0] sm:$0xff]  ;;  %v1787_v30 = vld [vmem:[#allocation10 + $0x7d8] sm:$0xff] }
 0x5e7   : > { %12702 = vst [vmem:[%s18759_s11 + $0x1e0] sm:$0xff] %v14546_v42  ;;  %v14548_v50 = vadd.f32 %v10882_v25, %v19634_v40  ;;  %v10884_v48 = vpop.f32.mrb[103].mxu0  ;;  %11980 = vmatprep.subr.bf16.mxu0 %v13406_v8  ;;  %12705 = vst [vmem:[%s18759_s11 + $0x1f8] sm:$0xff] %v14579_v37  ;;  %v14581_v32 = vadd.f32 %v11223_v43, %v19643_v53  ;;  %v13430_v11 = vcombine.high %v19676_v18, %v1774_v52  ;;  %v1798_v42 = vld [vmem:[#allocation10 + $0x830] sm:$0xff] }
 0x5e8   : > { %12703 = vst [vmem:[%s18759_s11 + $0x1e8] sm:$0xff] %v14547_v17  ;;  %v14549_v63 = vadd.f32 %v10884_v48, %v19640_v2  ;;  %12728 = vst [vmem:[%s18759_s11 + $0x2b0] sm:$0xff] %v14580_v59  ;;  %11924 = vmatmul.mubr.bf16.gmra.mrb[144].mxu1 %v18492_v45  ;;  %v13429_v8 = vcombine.low %v19676_v18, %v1774_v52  ;;  %v13431_v9 = vcombine.low %v1763_v33, %v1775_v26  ;;  %v1811_v59 = vld [vmem:[#allocation10 + $0x898] sm:$0xff] }
 0x5e9   : > { %12726 = vst [vmem:[%s18759_s11 + $0x2a0] sm:$0xff] %v14548_v50  ;;  %11585 = vmatmul.mubr.bf16.gmra.mrb[144].mxu0 %v18492_v45  ;;  %12729 = vst [vmem:[%s18759_s11 + $0x2b8] sm:$0xff] %v14581_v32  ;;  %12320 = vmatpush1.bf16.msra.mxu1 %v13407_v60  ;;  %v13454_v17 = vcombine.high %v19687_v12, %v1798_v42  ;;  %v13456_v37 = vcombine.high %v1787_v30, %v1799_v31  ;;  %v19704_v50 = vld [vmem:[#allocation10 + $0x890] sm:$0xff]  ;;  %v1823_v48 = vld [vmem:[#allocation10 + $0x8f8] sm:$0xff] }
 0x5ea   : > { %12727 = vst [vmem:[%s18759_s11 + $0x2a8] sm:$0xff] %v14549_v63  ;;  %11981 = vmatpush1.bf16.msra.mxu0 %v13405_v55  ;;  %11594 = vmatprep.mubr.bf16.mxu0 %v18502_v36  ;;  %v13453_v26 = vcombine.low %v19687_v12, %v1798_v42  ;;  %v1822_v60 = vld [vmem:[#allocation10 + $0x8f0] sm:$0xff] }
 0x5eb   : > { %11933 = vmatprep.mubr.bf16.mxu1 %v18502_v36  ;;  %v11227_v21 = vpop.f32.mrb[104].mxu1  ;;  %11982 = vmatprep.subr.bf16.mxu0 %v13430_v11 }
 0x5ec   : > { %v10888_v25 = vpop.f32.mrb[104].mxu0  ;;  %12321 = vmatprep.subr.bf16.mxu1 %v13432_v51  ;;  %v14582_v18 = vadd.f32 %v11227_v21, %v19637_v61  ;;  %v11229_v33 = vpop.f32.mrb[105].mxu1  ;;  %v13455_v51 = vcombine.low %v1787_v30, %v1799_v31 }
 0x5ed   : > { %v14550_v55 = vadd.f32 %v10888_v25, %v19634_v40  ;;  %v10890_v52 = vpop.f32.mrb[105].mxu0  ;;  %v14583_v63 = vadd.f32 %v11229_v33, %v19643_v53  ;;  %12322 = vmatpush1.bf16.msra.mxu1 %v13431_v9  ;;  %v11231_v11 = vpop.f32.mrb[106].mxu1  ;;  %v13480_v9 = vcombine.high %v1811_v59, %v1823_v48  ;;  %v1847_v33 = vld [vmem:[#allocation10 + $0x9b8] sm:$0xff] }
 0x5ee   : > { %v14551_v43 = vadd.f32 %v10890_v52, %v19640_v2  ;;  %11983 = vmatpush1.bf16.msra.mxu0 %v13429_v8  ;;  %v10892_v32 = vpop.f32.mrb[106].mxu0  ;;  %12752 = vst [vmem:[%s18759_s11 + $0x370] sm:$0xff] %v14582_v18  ;;  %v14584_v12 = vadd.f32 %v11231_v11, %v19637_v61  ;;  %v11233_v21 = vpop.f32.mrb[107].mxu1  ;;  %12323 = vmatprep.subr.bf16.mxu1 %v13456_v37  ;;  %v19715_v52 = vld [vmem:[#allocation10 + $0x950] sm:$0xff]  ;;  %v1835_v18 = vld [vmem:[#allocation10 + $0x958] sm:$0xff] }
 0x5ef   : > { %12750 = vst [vmem:[%s18759_s11 + $0x360] sm:$0xff] %v14550_v55  ;;  %v14552_v25 = vadd.f32 %v10892_v32, %v19634_v40  ;;  %v10894_v42 = vpop.f32.mrb[107].mxu0  ;;  %11984 = vmatprep.subr.bf16.mxu0 %v13454_v17  ;;  %12753 = vst [vmem:[%s18759_s11 + $0x378] sm:$0xff] %v14583_v63  ;;  %v14585_v31 = vadd.f32 %v11233_v21, %v19643_v53  ;;  %v13478_v8 = vcombine.high %v19704_v50, %v1822_v60  ;;  %v1846_v55 = vld [vmem:[#allocation10 + $0x9b0] sm:$0xff] }
 0x5f0   : > { %12751 = vst [vmem:[%s18759_s11 + $0x368] sm:$0xff] %v14551_v43  ;;  %v14553_v30 = vadd.f32 %v10894_v42, %v19640_v2  ;;  %12776 = vst [vmem:[%s18759_s11 + $0x430] sm:$0xff] %v14584_v12  ;;  %11934 = vmatmul.mubr.bf16.gmra.mrb[148].mxu1 %v18550_v38  ;;  %v13477_v17 = vcombine.low %v19704_v50, %v1822_v60  ;;  %v13479_v37 = vcombine.low %v1811_v59, %v1823_v48  ;;  %v1859_v12 = vld [vmem:[#allocation10 + $0xa18] sm:$0xff] }
 0x5f1   : > { %12774 = vst [vmem:[%s18759_s11 + $0x420] sm:$0xff] %v14552_v25  ;;  %11595 = vmatmul.mubr.bf16.gmra.mrb[148].mxu0 %v18550_v38  ;;  %12777 = vst [vmem:[%s18759_s11 + $0x438] sm:$0xff] %v14585_v31  ;;  %12324 = vmatpush1.bf16.msra.mxu1 %v13455_v51  ;;  %v13502_v43 = vcombine.high %v19715_v52, %v1846_v55  ;;  %v13504_v63 = vcombine.high %v1835_v18, %v1847_v33  ;;  %v19732_v25 = vld [vmem:[#allocation10 + $0xa10] sm:$0xff]  ;;  %v1871_v42 = vld [vmem:[#allocation10 + $0xa78] sm:$0xff] }
 0x5f2   : > { %12775 = vst [vmem:[%s18759_s11 + $0x428] sm:$0xff] %v14553_v30  ;;  %11985 = vmatpush1.bf16.msra.mxu0 %v13453_v26  ;;  %11604 = vmatprep.mubr.bf16.mxu0 %v18562_v6  ;;  %v13501_v48 = vcombine.low %v19715_v52, %v1846_v55  ;;  %v1870_v51 = vld [vmem:[#allocation10 + $0xa70] sm:$0xff] }
 0x5f3   : > { %11943 = vmatprep.mubr.bf16.mxu1 %v18562_v6  ;;  %v11237_v11 = vpop.f32.mrb[108].mxu1  ;;  %11986 = vmatprep.subr.bf16.mxu0 %v13478_v8 }
 0x5f4   : > { %v10898_v32 = vpop.f32.mrb[108].mxu0  ;;  %12325 = vmatprep.subr.bf16.mxu1 %v13480_v9  ;;  %v14586_v50 = vadd.f32 %v11237_v11, %v19637_v61  ;;  %v11239_v59 = vpop.f32.mrb[109].mxu1  ;;  %v13503_v9 = vcombine.low %v1835_v18, %v1847_v33 }
 0x5f5   : > { %v14554_v26 = vadd.f32 %v10898_v32, %v19634_v40  ;;  %v10900_v60 = vpop.f32.mrb[109].mxu0  ;;  %v14587_v30 = vadd.f32 %v11239_v59, %v19643_v53  ;;  %12326 = vmatpush1.bf16.msra.mxu1 %v13479_v37  ;;  %v11241_v8 = vpop.f32.mrb[110].mxu1  ;;  %v13528_v37 = vcombine.high %v1859_v12, %v1871_v42  ;;  %v1895_v59 = vld [vmem:[#allocation10 + $0xb38] sm:$0xff] }
 0x5f6   : > { %v14555_v21 = vadd.f32 %v10900_v60, %v19640_v2  ;;  %11987 = vmatpush1.bf16.msra.mxu0 %v13477_v17  ;;  %v10902_v31 = vpop.f32.mrb[110].mxu0  ;;  %12800 = vst [vmem:[%s18759_s11 + $0x4f0] sm:$0xff] %v14586_v50  ;;  %v14588_v52 = vadd.f32 %v11241_v8, %v19637_v61  ;;  %v11243_v11 = vpop.f32.mrb[111].mxu1  ;;  %12327 = vmatprep.subr.bf16.mxu1 %v13504_v63  ;;  %v19743_v60 = vld [vmem:[#allocation10 + $0xad0] sm:$0xff]  ;;  %v1883_v50 = vld [vmem:[#allocation10 + $0xad8] sm:$0xff] }
 0x5f7   : > { %12798 = vst [vmem:[%s18759_s11 + $0x4e0] sm:$0xff] %v14554_v26  ;;  %v14556_v32 = vadd.f32 %v10902_v31, %v19634_v40  ;;  %v10904_v55 = vpop.f32.mrb[111].mxu0  ;;  %11988 = vmatprep.subr.bf16.mxu0 %v13502_v43  ;;  %12801 = vst [vmem:[%s18759_s11 + $0x4f8] sm:$0xff] %v14587_v30  ;;  %v14589_v33 = vadd.f32 %v11243_v11, %v19643_v53  ;;  %v13526_v17 = vcombine.high %v19732_v25, %v1870_v51  ;;  %v1894_v26 = vld [vmem:[#allocation10 + $0xb30] sm:$0xff] }
 0x5f8   : > { %12799 = vst [vmem:[%s18759_s11 + $0x4e8] sm:$0xff] %v14555_v21  ;;  %v14557_v18 = vadd.f32 %v10904_v55, %v19640_v2  ;;  %12824 = vst [vmem:[%s18759_s11 + $0x5b0] sm:$0xff] %v14588_v52  ;;  %11944 = vmatmul.mubr.bf16.gmra.mrb[152].mxu1 %v18597_v1  ;;  %v13525_v43 = vcombine.low %v19732_v25, %v1870_v51  ;;  %v13527_v63 = vcombine.low %v1859_v12, %v1871_v42  ;;  %v1907_v52 = vld [vmem:[#allocation10 + $0xb98] sm:$0xff] }
 0x5f9   : > { %12822 = vst [vmem:[%s18759_s11 + $0x5a0] sm:$0xff] %v14556_v32  ;;  %11605 = vmatmul.mubr.bf16.gmra.mrb[152].mxu0 %v18597_v1  ;;  %12825 = vst [vmem:[%s18759_s11 + $0x5b8] sm:$0xff] %v14589_v33  ;;  %12328 = vmatpush1.bf16.msra.mxu1 %v13503_v9  ;;  %v13550_v21 = vcombine.high %v19743_v60, %v1894_v26  ;;  %v13552_v30 = vcombine.high %v1883_v50, %v1895_v59  ;;  %v19760_v32 = vld [vmem:[#allocation10 + $0xb90] sm:$0xff]  ;;  %v1919_v55 = vld [vmem:[#allocation10 + $0xbf8] sm:$0xff] }
 0x5fa   : > { %12823 = vst [vmem:[%s18759_s11 + $0x5a8] sm:$0xff] %v14557_v18  ;;  %11989 = vmatpush1.bf16.msra.mxu0 %v13501_v48  ;;  %11614 = vmatprep.mubr.bf16.mxu0 %v18599_v5  ;;  %v13549_v42 = vcombine.low %v19743_v60, %v1894_v26  ;;  %v1918_v9 = vld [vmem:[#allocation10 + $0xbf0] sm:$0xff] }
 0x5fb   : > { %11953 = vmatprep.mubr.bf16.mxu1 %v18599_v5  ;;  %v11247_v8 = vpop.f32.mrb[112].mxu1  ;;  %11990 = vmatprep.subr.bf16.mxu0 %v13526_v17 }
 0x5fc   : > { %v10908_v31 = vpop.f32.mrb[112].mxu0  ;;  %12329 = vmatprep.subr.bf16.mxu1 %v13528_v37  ;;  %v14590_v25 = vadd.f32 %v11247_v8, %v19637_v61  ;;  %v11249_v12 = vpop.f32.mrb[113].mxu1  ;;  %v13551_v37 = vcombine.low %v1883_v50, %v1895_v59 }
 0x5fd   : > { %v14558_v48 = vadd.f32 %v10908_v31, %v19634_v40  ;;  %v10910_v51 = vpop.f32.mrb[113].mxu0  ;;  %v14591_v18 = vadd.f32 %v11249_v12, %v19643_v53  ;;  %12330 = vmatpush1.bf16.msra.mxu1 %v13527_v63  ;;  %v11251_v17 = vpop.f32.mrb[114].mxu1  ;;  %v13576_v63 = vcombine.high %v1907_v52, %v1919_v55  ;;  %v1943_v12 = vld [vmem:[#allocation10 + $0xcb8] sm:$0xff] }
 0x5fe   : > { %v14559_v11 = vadd.f32 %v10910_v51, %v19640_v2  ;;  %11991 = vmatpush1.bf16.msra.mxu0 %v13525_v43  ;;  %v10912_v33 = vpop.f32.mrb[114].mxu0  ;;  %12848 = vst [vmem:[%s18759_s11 + $0x670] sm:$0xff] %v14590_v25  ;;  %v14592_v60 = vadd.f32 %v11251_v17, %v19637_v61  ;;  %v11253_v8 = vpop.f32.mrb[115].mxu1  ;;  %12331 = vmatprep.subr.bf16.mxu1 %v13552_v30  ;;  %v19771_v51 = vld [vmem:[#allocation10 + $0xc50] sm:$0xff]  ;;  %v1931_v25 = vld [vmem:[#allocation10 + $0xc58] sm:$0xff] }
 0x5ff   : > { %12846 = vst [vmem:[%s18759_s11 + $0x660] sm:$0xff] %v14558_v48  ;;  %v14560_v31 = vadd.f32 %v10912_v33, %v19634_v40  ;;  %v10914_v26 = vpop.f32.mrb[115].mxu0  ;;  %11992 = vmatprep.subr.bf16.mxu0 %v13550_v21  ;;  %12849 = vst [vmem:[%s18759_s11 + $0x678] sm:$0xff] %v14591_v18  ;;  %v14593_v59 = vadd.f32 %v11253_v8, %v19643_v53  ;;  %v13574_v43 = vcombine.high %v19760_v32, %v1918_v9  ;;  %v1942_v48 = vld [vmem:[#allocation10 + $0xcb0] sm:$0xff] }
 0x600   : > { %12847 = vst [vmem:[%s18759_s11 + $0x668] sm:$0xff] %v14559_v11  ;;  %v14561_v50 = vadd.f32 %v10914_v26, %v19640_v2  ;;  %12872 = vst [vmem:[%s18759_s11 + $0x730] sm:$0xff] %v14592_v60  ;;  %11954 = vmatmul.mubr.bf16.gmra.mrb[156].mxu1 %v18620_v28  ;;  %v13573_v21 = vcombine.low %v19760_v32, %v1918_v9  ;;  %v13575_v30 = vcombine.low %v1907_v52, %v1919_v55  ;;  %v1967_v60 = vld [vmem:[#allocation10 + $0xd78] sm:$0xff] }
 0x601   : > { %12870 = vst [vmem:[%s18759_s11 + $0x720] sm:$0xff] %v14560_v31  ;;  %11615 = vmatmul.mubr.bf16.gmra.mrb[156].mxu0 %v18620_v28  ;;  %12873 = vst [vmem:[%s18759_s11 + $0x738] sm:$0xff] %v14593_v59  ;;  %12332 = vmatpush1.bf16.msra.mxu1 %v13551_v37  ;;  %v13598_v11 = vcombine.high %v19771_v51, %v1942_v48  ;;  %v13600_v18 = vcombine.high %v1931_v25, %v1943_v12  ;;  %v19788_v31 = vld [vmem:[#allocation10 + $0xd10] sm:$0xff]  ;;  %v1955_v37 = vld [vmem:[#allocation10 + $0xd18] sm:$0xff] }
 0x602   : > { %12871 = vst [vmem:[%s18759_s11 + $0x728] sm:$0xff] %v14561_v50  ;;  %11993 = vmatpush1.bf16.msra.mxu0 %v13549_v42  ;;  %11996 = vmatprep.mubr.bf16.mxu0 %v21251_v10  ;;  %v13597_v55 = vcombine.low %v19771_v51, %v1942_v48 }
 0x603   : > { %12335 = vmatprep.mubr.bf16.mxu1 %v21251_v10  ;;  %v11257_v17 = vpop.f32.mrb[116].mxu1  ;;  %11994 = vmatprep.subr.bf16.mxu0 %v13574_v43  ;;  %v1966_v10 = vld [vmem:[#allocation10 + $0xd70] sm:$0xff]  ;;  %v13599_v43 = vcombine.low %v1931_v25, %v1943_v12 }
 0x604   : > { %v10918_v33 = vpop.f32.mrb[116].mxu0  ;;  %12333 = vmatprep.subr.bf16.mxu1 %v13576_v63  ;;  %v14594_v32 = vadd.f32 %v11257_v17, %v19637_v61  ;;  %v11259_v52 = vpop.f32.mrb[117].mxu1  ;;  %v19799_v17 = vld [vmem:[#allocation10 + $0xdd0] sm:$0xff] }
 0x605   : > { %v14562_v42 = vadd.f32 %v10918_v33, %v19634_v40  ;;  %v10920_v9 = vpop.f32.mrb[117].mxu0  ;;  %v14595_v8 = vadd.f32 %v11259_v52, %v19643_v53  ;;  %12334 = vmatpush1.bf16.msra.mxu1 %v13575_v30  ;;  %v11261_v59 = vpop.f32.mrb[118].mxu1  ;;  %v13624_v30 = vcombine.high %v1955_v37, %v1967_v60 }
 0x606   : > { %v14563_v26 = vadd.f32 %v10920_v9, %v19640_v2  ;;  %11995 = vmatpush1.bf16.msra.mxu0 %v13573_v21  ;;  %v10922_v50 = vpop.f32.mrb[118].mxu0  ;;  %12896 = vst [vmem:[%s18759_s11 + $0x7f0] sm:$0xff] %v14594_v32  ;;  %v14596_v51 = vadd.f32 %v11261_v59, %v19637_v61  ;;  %v11263_v33 = vpop.f32.mrb[119].mxu1  ;;  %12416 = vmatprep.subr.bf16.mxu1 %v13600_v18  ;;  %v1979_v32 = vld [vmem:[#allocation10 + $0xdd8] sm:$0xff]  ;;  %v19816_v59 = vld [vmem:[#allocation10 + $0xe90] sm:$0xff] }
 0x607   : > { %12894 = vst [vmem:[%s18759_s11 + $0x7e0] sm:$0xff] %v14562_v42  ;;  %v14564_v63 = vadd.f32 %v10922_v50, %v19634_v40  ;;  %v10924_v48 = vpop.f32.mrb[119].mxu0  ;;  %12077 = vmatprep.subr.bf16.mxu0 %v13598_v11  ;;  %12897 = vst [vmem:[%s18759_s11 + $0x7f8] sm:$0xff] %v14595_v8  ;;  %v14597_v12 = vadd.f32 %v11263_v33, %v19643_v53  ;;  %v13622_v21 = vcombine.high %v19788_v31, %v1966_v10  ;;  %v1990_v42 = vld [vmem:[#allocation10 + $0xe30] sm:$0xff]  ;;  %v1991_v9 = vld [vmem:[#allocation10 + $0xe38] sm:$0xff] }
 0x608   : > { %12895 = vst [vmem:[%s18759_s11 + $0x7e8] sm:$0xff] %v14563_v26  ;;  %v14565_v25 = vadd.f32 %v10924_v48, %v19640_v2  ;;  %12920 = vst [vmem:[%s18759_s11 + $0x8b0] sm:$0xff] %v14596_v51  ;;  %12336 = vmatmul.mubr.bf16.vlgmr.msra.gmra.mrb[160].mxu1 %v21252_v20  ;;  %v13621_v11 = vcombine.low %v19788_v31, %v1966_v10  ;;  %v13623_v18 = vcombine.low %v1955_v37, %v1967_v60  ;;  %v2003_v60 = vld [vmem:[#allocation10 + $0xe98] sm:$0xff] }
 0x609   : > { %12918 = vst [vmem:[%s18759_s11 + $0x8a0] sm:$0xff] %v14564_v63  ;;  %11997 = vmatmul.mubr.bf16.vlgmr.msra.gmra.mrb[160].mxu0 %v21252_v20  ;;  %12921 = vst [vmem:[%s18759_s11 + $0x8b8] sm:$0xff] %v14597_v12  ;;  %12417 = vmatpush1.bf16.msra.mxu1 %v13599_v43  ;;  %v13646_v52 = vcombine.high %v19799_v17, %v1990_v42  ;;  %v13648_v26 = vcombine.high %v1979_v32, %v1991_v9  ;;  %v2015_v43 = vld [vmem:[#allocation10 + $0xef8] sm:$0xff] }
 0x60a   : > { %12919 = vst [vmem:[%s18759_s11 + $0x8a8] sm:$0xff] %v14565_v25  ;;  %12078 = vmatpush1.bf16.msra.mxu0 %v13597_v55  ;;  %12006 = vmatprep.mubr.bf16.mxu0 %v21253_v19  ;;  %v13645_v37 = vcombine.low %v19799_v17, %v1990_v42  ;;  %v13647_v25 = vcombine.low %v1979_v32, %v1991_v9  ;;  %v19827_v42 = vld [vmem:[#allocation10 + $0xf50] sm:$0xff] }
 0x60b   : > { %12345 = vmatprep.mubr.bf16.mxu1 %v21253_v19  ;;  %v11267_v50 = vpop.f32.mrb[120].mxu1  ;;  %12079 = vmatprep.subr.bf16.mxu0 %v13622_v21  ;;  %v2014_v19 = vld [vmem:[#allocation10 + $0xef0] sm:$0xff] }
 0x60c   : > { %v10928_v8 = vpop.f32.mrb[120].mxu0  ;;  %12418 = vmatprep.subr.bf16.mxu1 %v13624_v30  ;;  %v14598_v31 = vadd.f32 %v11267_v50, %v19637_v61  ;;  %v11269_v10 = vpop.f32.mrb[121].mxu1  ;;  %v2027_v50 = vld [vmem:[#allocation10 + $0xf58] sm:$0xff] }
 0x60d   : > { %v14566_v20 = vadd.f32 %v10928_v8, %v19634_v40  ;;  %v10930_v55 = vpop.f32.mrb[121].mxu0  ;;  %v14599_v51 = vadd.f32 %v11269_v10, %v19643_v53  ;;  %12419 = vmatpush1.bf16.msra.mxu1 %v13623_v18  ;;  %v11271_v33 = vpop.f32.mrb[122].mxu1  ;;  %v13672_v18 = vcombine.high %v2003_v60, %v2015_v43  ;;  %v2038_v8 = vld [vmem:[#allocation10 + $0xfb0] sm:$0xff] }
 0x60e   : > { %v14567_v63 = vadd.f32 %v10930_v55, %v19640_v2  ;;  %12080 = vmatpush1.bf16.msra.mxu0 %v13621_v11  ;;  %v10932_v48 = vpop.f32.mrb[122].mxu0  ;;  %12944 = vst [vmem:[%s18759_s11 + $0x970] sm:$0xff] %v14598_v31  ;;  %v14600_v17 = vadd.f32 %v11271_v33, %v19637_v61  ;;  %v11273_v30 = vpop.f32.mrb[123].mxu1  ;;  %12420 = vmatprep.subr.bf16.mxu1 %v13648_v26 }
 0x60f   : > { %12942 = vst [vmem:[%s18759_s11 + $0x960] sm:$0xff] %v14566_v20  ;;  %v14568_v12 = vadd.f32 %v10932_v48, %v19634_v40  ;;  %v10934_v21 = vpop.f32.mrb[123].mxu0  ;;  %12081 = vmatprep.subr.bf16.mxu0 %v13646_v52  ;;  %12945 = vst [vmem:[%s18759_s11 + $0x978] sm:$0xff] %v14599_v51  ;;  %v14601_v9 = vadd.f32 %v11273_v30, %v19643_v53  ;;  %v13670_v11 = vcombine.high %v19816_v59, %v2014_v19  ;;  %v2039_v20 = vld [vmem:[#allocation10 + $0xfb8] sm:$0xff]  ;;  %v2050_v51 = vld [vmem:[#allocation10 + $0x1010] sm:$0xff] }
 0x610   : > { %12943 = vst [vmem:[%s18759_s11 + $0x968] sm:$0xff] %v14567_v63  ;;  %v14569_v32 = vadd.f32 %v10934_v21, %v19640_v2  ;;  %12968 = vst [vmem:[%s18759_s11 + $0xa30] sm:$0xff] %v14600_v17  ;;  %12346 = vmatmul.mubr.bf16.gmra.mrb[164].mxu1 %v21254_v13  ;;  %v13669_v52 = vcombine.low %v19816_v59, %v2014_v19  ;;  %v13671_v26 = vcombine.low %v2003_v60, %v2015_v43  ;;  %v2062_v43 = vld [vmem:[#allocation10 + $0x1070] sm:$0xff]  ;;  %v2063_v48 = vld [vmem:[#allocation10 + $0x1078] sm:$0xff] }
 0x611   : > { %12966 = vst [vmem:[%s18759_s11 + $0xa20] sm:$0xff] %v14568_v12  ;;  %12007 = vmatmul.mubr.bf16.gmra.mrb[164].mxu0 %v21254_v13  ;;  %12969 = vst [vmem:[%s18759_s11 + $0xa38] sm:$0xff] %v14601_v9  ;;  %12421 = vmatpush1.bf16.msra.mxu1 %v13647_v25  ;;  %v13694_v31 = vcombine.high %v19827_v42, %v2038_v8  ;;  %v13696_v55 = vcombine.high %v2027_v50, %v2039_v20 }
 0x612   : > { %12967 = vst [vmem:[%s18759_s11 + $0xa28] sm:$0xff] %v14569_v32  ;;  %12082 = vmatpush1.bf16.msra.mxu0 %v13645_v37  ;;  %12016 = vmatprep.mubr.bf16.mxu0 %v21255_v49  ;;  %v13693_v60 = vcombine.low %v19827_v42, %v2038_v8  ;;  %v13695_v21 = vcombine.low %v2027_v50, %v2039_v20 }
 0x613   : > { %12355 = vmatprep.mubr.bf16.mxu1 %v21255_v49  ;;  %v11277_v63 = vpop.f32.mrb[124].mxu1  ;;  %12083 = vmatprep.subr.bf16.mxu0 %v13670_v11  ;;  %v2051_v49 = vld [vmem:[#allocation10 + $0x1018] sm:$0xff]  ;;  %v2074_v11 = vld [vmem:[#allocation10 + $0x10d0] sm:$0xff]  ;;  %v13718_v50 = vcombine.high %v2050_v51, %v2062_v43 }
 0x614   : > { %v10938_v10 = vpop.f32.mrb[124].mxu0  ;;  %12422 = vmatprep.subr.bf16.mxu1 %v13672_v18  ;;  %v14602_v37 = vadd.f32 %v11277_v63, %v19637_v61  ;;  %v11279_v19 = vpop.f32.mrb[125].mxu1  ;;  %v13720_v20 = vcombine.high %v2051_v49, %v2063_v48  ;;  %v2099_v63 = vld [vmem:[#allocation10 + $0x1198] sm:$0xff] }
 0x615   : > { %v14570_v13 = vadd.f32 %v10938_v10, %v19634_v40  ;;  %v10940_v59 = vpop.f32.mrb[125].mxu0  ;;  %v14603_v25 = vadd.f32 %v11279_v19, %v19643_v53  ;;  %12423 = vmatpush1.bf16.msra.mxu1 %v13671_v26  ;;  %v11281_v17 = vpop.f32.mrb[126].mxu1  ;;  %v2087_v26 = vld [vmem:[#allocation10 + $0x1138] sm:$0xff]  ;;  %v2110_v10 = vld [vmem:[#allocation10 + $0x11f0] sm:$0xff] }
 0x616   : > { %v14571_v33 = vadd.f32 %v10940_v59, %v19640_v2  ;;  %12084 = vmatpush1.bf16.msra.mxu0 %v13669_v52  ;;  %v10942_v12 = vpop.f32.mrb[126].mxu0  ;;  %12992 = vst [vmem:[%s18759_s11 + $0xaf0] sm:$0xff] %v14602_v37  ;;  %v14604_v42 = vadd.f32 %v11281_v17, %v19637_v61  ;;  %v11283_v9 = vpop.f32.mrb[127].mxu1  ;;  %12424 = vmatprep.subr.bf16.mxu1 %v13696_v55  ;;  %v2075_v52 = vld [vmem:[#allocation10 + $0x10d8] sm:$0xff]  ;;  %v2098_v55 = vld [vmem:[#allocation10 + $0x1190] sm:$0xff] }
 0x617   : > { %12990 = vst [vmem:[%s18759_s11 + $0xae0] sm:$0xff] %v14570_v13  ;;  %v14572_v30 = vadd.f32 %v10942_v12, %v19634_v40  ;;  %v10944_v32 = vpop.f32.mrb[127].mxu0  ;;  %12085 = vmatprep.subr.bf16.mxu0 %v13694_v31  ;;  %12993 = vst [vmem:[%s18759_s11 + $0xaf8] sm:$0xff] %v14603_v25  ;;  %v14605_v8 = vadd.f32 %v11283_v9, %v19643_v53  ;;  %v2086_v40 = vld [vmem:[#allocation10 + $0x1130] sm:$0xff]  ;;  %v13717_v61 = vcombine.low %v2050_v51, %v2062_v43  ;;  %v2111_v13 = vld [vmem:[#allocation10 + $0x11f8] sm:$0xff] }
 0x618   : > { %12991 = vst [vmem:[%s18759_s11 + $0xae8] sm:$0xff] %v14571_v33  ;;  %v14573_v18 = vadd.f32 %v10944_v32, %v19640_v2  ;;  %13016 = vst [vmem:[%s18759_s11 + $0xbb0] sm:$0xff] %v14604_v42  ;;  %12356 = vmatmul.mubr.bf16.gmra.mrb[168].mxu1 %v21256_v54  ;;  %v13719_v31 = vcombine.low %v2051_v49, %v2063_v48  ;;  %v13742_v2 = vcombine.high %v2074_v11, %v2086_v40  ;;  %v2122_v51 = vld [vmem:[#allocation10 + $0x1250] sm:$0xff]  ;;  %v2123_v43 = vld [vmem:[#allocation10 + $0x1258] sm:$0xff] }
 0x619   : > { %13014 = vst [vmem:[%s18759_s11 + $0xba0] sm:$0xff] %v14572_v30  ;;  %12017 = vmatmul.mubr.bf16.gmra.mrb[168].mxu0 %v21256_v54  ;;  %13017 = vst [vmem:[%s18759_s11 + $0xbb8] sm:$0xff] %v14605_v8  ;;  %12425 = vmatpush1.bf16.msra.mxu1 %v13695_v21  ;;  %v13744_v53 = vcombine.high %v2075_v52, %v2087_v26  ;;  %v13741_v54 = vcombine.low %v2074_v11, %v2086_v40  ;;  %v2146_v12 = vld [vmem:[#allocation10 + $0x1310] sm:$0xff]  ;;  %v2147_v21 = vld [vmem:[#allocation10 + $0x1318] sm:$0xff] }
 0x61a   : > { %13015 = vst [vmem:[%s18759_s11 + $0xba8] sm:$0xff] %v14573_v18  ;;  %12086 = vmatpush1.bf16.msra.mxu0 %v13693_v60  ;;  %12026 = vmatprep.mubr.bf16.mxu0 %v21257_v22  ;;  %v13743_v37 = vcombine.low %v2075_v52, %v2087_v26  ;;  %v13766_v59 = vcombine.high %v2098_v55, %v2110_v10  ;;  %v2134_v60 = vld [vmem:[#allocation10 + $0x12b0] sm:$0xff]  ;;  %v2159_v30 = vld [vmem:[#allocation10 + $0x1378] sm:$0xff] }
 0x61b   : > { %12365 = vmatprep.mubr.bf16.mxu1 %v21257_v22  ;;  %12087 = vmatprep.subr.bf16.mxu0 %v13718_v50  ;;  %v13768_v19 = vcombine.high %v2099_v63, %v2111_v13  ;;  %v2135_v22 = vld [vmem:[#allocation10 + $0x12b8] sm:$0xff]  ;;  %v13765_v49 = vcombine.low %v2098_v55, %v2110_v10  ;;  %v13767_v48 = vcombine.low %v2099_v63, %v2111_v13  ;;  %v2158_v17 = vld [vmem:[#allocation10 + $0x1370] sm:$0xff] }
 0x61c   : > { %12426 = vmatprep.subr.bf16.mxu1 %v13720_v20  ;;  %v13790_v33 = vcombine.high %v2122_v51, %v2134_v60  ;;  %v13792_v25 = vcombine.high %v2123_v43, %v2135_v22  ;;  %v13789_v42 = vcombine.low %v2122_v51, %v2134_v60  ;;  %v2170_v32 = vld [vmem:[#allocation10 + $0x13d0] sm:$0xff]  ;;  %v13814_v9 = vcombine.high %v2146_v12, %v2158_v17  ;;  %v2171_v8 = vld [vmem:[#allocation10 + $0x13d8] sm:$0xff] }
 0x61d   : > { %12427 = vmatpush1.bf16.msra.mxu1 %v13719_v31  ;;  %v13816_v11 = vcombine.high %v2147_v21, %v2159_v30  ;;  %v2182_v18 = vld [vmem:[#allocation10 + $0x1430] sm:$0xff]  ;;  %v13813_v50 = vcombine.low %v2146_v12, %v2158_v17  ;;  %v13815_v20 = vcombine.low %v2147_v21, %v2159_v30  ;;  %v2195_v31 = vld [vmem:[#allocation10 + $0x1498] sm:$0xff] }
 0x61e   : > { %12088 = vmatpush1.bf16.msra.mxu0 %v13717_v61  ;;  %12428 = vmatprep.subr.bf16.mxu1 %v13744_v53  ;;  %v13838_v40 = vcombine.high %v2170_v32, %v2182_v18  ;;  %v2194_v26 = vld [vmem:[#allocation10 + $0x1490] sm:$0xff]  ;;  %v13837_v53 = vcombine.low %v2170_v32, %v2182_v18  ;;  %v2267_v21 = vld [vmem:[#allocation10 + $0x16d8] sm:$0xff] }
 0x61f   : > { %12089 = vmatprep.subr.bf16.mxu0 %v13742_v2  ;;  %v2206_v61 = vld [vmem:[#allocation10 + $0x14f0] sm:$0xff]  ;;  %v2207_v2 = vld [vmem:[#allocation10 + $0x14f8] sm:$0xff] }
 0x620   : > { %12366 = vmatmul.mubr.bf16.gmra.mrb[172].mxu1 %v21258_v39  ;;  %v2218_v55 = vld [vmem:[#allocation10 + $0x1550] sm:$0xff]  ;;  %v13862_v10 = vcombine.high %v2194_v26, %v2206_v61  ;;  %v13864_v63 = vcombine.high %v2195_v31, %v2207_v2  ;;  %v13863_v51 = vcombine.low %v2195_v31, %v2207_v2  ;;  %v2291_v18 = vld [vmem:[#allocation10 + $0x1798] sm:$0xff] }
 0x621   : > { %12027 = vmatmul.mubr.bf16.gmra.mrb[172].mxu0 %v21258_v39  ;;  %12429 = vmatpush1.bf16.msra.mxu1 %v13743_v37  ;;  %v13791_v39 = vcombine.low %v2123_v43, %v2135_v22  ;;  %v2230_v13 = vld [vmem:[#allocation10 + $0x15b0] sm:$0xff]  ;;  %v13861_v37 = vcombine.low %v2194_v26, %v2206_v61  ;;  %v2243_v22 = vld [vmem:[#allocation10 + $0x1618] sm:$0xff] }
 0x622   : > { %12090 = vmatpush1.bf16.msra.mxu0 %v13741_v54  ;;  %12036 = vmatprep.mubr.bf16.mxu0 %v21259_v4  ;;  %v2219_v54 = vld [vmem:[#allocation10 + $0x1558] sm:$0xff]  ;;  %v2242_v60 = vld [vmem:[#allocation10 + $0x1610] sm:$0xff] }
 0x623   : > { %12375 = vmatprep.mubr.bf16.mxu1 %v21259_v4  ;;  %12091 = vmatprep.subr.bf16.mxu0 %v13766_v59  ;;  %v2183_v4 = vld [vmem:[#allocation10 + $0x1438] sm:$0xff]  ;;  %v13886_v59 = vcombine.high %v2218_v55, %v2230_v13  ;;  %v2254_v43 = vld [vmem:[#allocation10 + $0x1670] sm:$0xff] }
 0x624   : > { %12430 = vmatprep.subr.bf16.mxu1 %v13768_v19  ;;  %v13840_v52 = vcombine.high %v2171_v8, %v2183_v4  ;;  %v2278_v17 = vld [vmem:[#allocation10 + $0x1730] sm:$0xff]  ;;  %v13909_v30 = vcombine.low %v2242_v60, %v2254_v43  ;;  %v2315_v26 = vld [vmem:[#allocation10 + $0x1858] sm:$0xff] }
 0x625   : > { %12431 = vmatpush1.bf16.msra.mxu1 %v13767_v48  ;;  %v13885_v48 = vcombine.low %v2218_v55, %v2230_v13  ;;  %v2350_v55 = vld [vmem:[#allocation10 + $0x1970] sm:$0xff] }
 0x626   : > { %12092 = vmatpush1.bf16.msra.mxu0 %v13765_v49  ;;  %12432 = vmatprep.subr.bf16.mxu1 %v13792_v25  ;;  %v2255_v49 = vld [vmem:[#allocation10 + $0x1678] sm:$0xff]  ;;  %v13910_v25 = vcombine.high %v2242_v60, %v2254_v43 }
 0x627   : > { %12093 = vmatprep.subr.bf16.mxu0 %v13790_v33  ;;  %v2266_v33 = vld [vmem:[#allocation10 + $0x16d0] sm:$0xff]  ;;  %v13912_v12 = vcombine.high %v2243_v22, %v2255_v49 }
 0x628   : > { %12376 = vmatmul.mubr.bf16.gmra.mrb[176].mxu1 %v21260_v41 }
 0x629   : > { %12037 = vmatmul.mubr.bf16.gmra.mrb[176].mxu0 %v21260_v41  ;;  %12433 = vmatpush1.bf16.msra.mxu1 %v13791_v39  ;;  %v13839_v41 = vcombine.low %v2171_v8, %v2183_v4  ;;  %v13934_v39 = vcombine.high %v2266_v33, %v2278_v17  ;;  %v2303_v8 = vld [vmem:[#allocation10 + $0x17f8] sm:$0xff]  ;;  %v13933_v4 = vcombine.low %v2266_v33, %v2278_v17 }
 0x62a   : > { %12094 = vmatpush1.bf16.msra.mxu0 %v13789_v42  ;;  %12046 = vmatprep.mubr.bf16.mxu0 %v21261_v27  ;;  %v13911_v42 = vcombine.low %v2243_v22, %v2255_v49  ;;  %v13959_v31 = vcombine.low %v2291_v18, %v2303_v8  ;;  %v2386_v49 = vld [vmem:[#allocation10 + $0x1a90] sm:$0xff]  ;;  %v2399_v33 = vld [vmem:[#allocation10 + $0x1af8] sm:$0xff] }
 0x62b   : > { %12385 = vmatprep.mubr.bf16.mxu1 %v21261_v27  ;;  %12095 = vmatprep.subr.bf16.mxu0 %v13814_v9  ;;  %v2231_v27 = vld [vmem:[#allocation10 + $0x15b8] sm:$0xff]  ;;  %v2290_v9 = vld [vmem:[#allocation10 + $0x1790] sm:$0xff] }
 0x62c   : > { %12434 = vmatprep.subr.bf16.mxu1 %v13816_v11  ;;  %v13888_v19 = vcombine.high %v2219_v54, %v2231_v27  ;;  %v2302_v11 = vld [vmem:[#allocation10 + $0x17f0] sm:$0xff] }
 0x62d   : > { %12435 = vmatpush1.bf16.msra.mxu1 %v13815_v20  ;;  %v13958_v20 = vcombine.high %v2290_v9, %v2302_v11  ;;  %v13957_v61 = vcombine.low %v2290_v9, %v2302_v11  ;;  %v2434_v11 = vld [vmem:[#allocation10 + $0x1c10] sm:$0xff] }
 0x62e   : > { %12096 = vmatpush1.bf16.msra.mxu0 %v13813_v50  ;;  %12436 = vmatprep.subr.bf16.mxu1 %v13840_v52  ;;  %v2314_v50 = vld [vmem:[#allocation10 + $0x1850] sm:$0xff] }
 0x62f   : > { %12097 = vmatprep.subr.bf16.mxu0 %v13838_v40  ;;  %v13960_v40 = vcombine.high %v2291_v18, %v2303_v8  ;;  %v2326_v52 = vld [vmem:[#allocation10 + $0x18b0] sm:$0xff]  ;;  %v2435_v8 = vld [vmem:[#allocation10 + $0x1c18] sm:$0xff] }
 0x630   : > { %12386 = vmatmul.mubr.bf16.gmra.mrb[180].mxu1 %v21262_v46  ;;  %v13982_v2 = vcombine.high %v2314_v50, %v2326_v52  ;;  %v13981_v13 = vcombine.low %v2314_v50, %v2326_v52  ;;  %v2446_v18 = vld [vmem:[#allocation10 + $0x1c70] sm:$0xff] }
 0x631   : > { %12047 = vmatmul.mubr.bf16.gmra.mrb[180].mxu0 %v21262_v46  ;;  %12437 = vmatpush1.bf16.msra.mxu1 %v13839_v41  ;;  %v13887_v46 = vcombine.low %v2219_v54, %v2231_v27  ;;  %v2338_v41 = vld [vmem:[#allocation10 + $0x1910] sm:$0xff] }
 0x632   : > { %12098 = vmatpush1.bf16.msra.mxu0 %v13837_v53  ;;  %12056 = vmatprep.mubr.bf16.mxu0 %v21263_v34  ;;  %v2362_v54 = vld [vmem:[#allocation10 + $0x19d0] sm:$0xff]  ;;  %v14006_v27 = vcombine.high %v2338_v41, %v2350_v55 }
 0x633   : > { %12395 = vmatprep.mubr.bf16.mxu1 %v21263_v34  ;;  %12099 = vmatprep.subr.bf16.mxu0 %v13862_v10  ;;  %v2279_v34 = vld [vmem:[#allocation10 + $0x1738] sm:$0xff]  ;;  %v2458_v50 = vld [vmem:[#allocation10 + $0x1cd0] sm:$0xff] }
 0x634   : > { %12438 = vmatprep.subr.bf16.mxu1 %v13864_v63  ;;  %v13936_v32 = vcombine.high %v2267_v21, %v2279_v34  ;;  %v2339_v10 = vld [vmem:[#allocation10 + $0x1918] sm:$0xff]  ;;  %v2470_v52 = vld [vmem:[#allocation10 + $0x1d30] sm:$0xff] }
 0x635   : > { %12439 = vmatpush1.bf16.msra.mxu1 %v13863_v51  ;;  %v2351_v63 = vld [vmem:[#allocation10 + $0x1978] sm:$0xff]  ;;  %v2374_v51 = vld [vmem:[#allocation10 + $0x1a30] sm:$0xff] }
 0x636   : > { %12100 = vmatpush1.bf16.msra.mxu0 %v13861_v37  ;;  %12440 = vmatprep.subr.bf16.mxu1 %v13888_v19  ;;  %v14008_v37 = vcombine.high %v2339_v10, %v2351_v63  ;;  %v14005_v19 = vcombine.low %v2338_v41, %v2350_v55  ;;  %v14007_v60 = vcombine.low %v2339_v10, %v2351_v63  ;;  %v2494_v41 = vld [vmem:[#allocation10 + $0x1df0] sm:$0xff]  ;;  %v2483_v55 = vld [vmem:[#allocation10 + $0x1d98] sm:$0xff] }
 0x637   : > { %12101 = vmatprep.subr.bf16.mxu0 %v13886_v59  ;;  %v2363_v59 = vld [vmem:[#allocation10 + $0x19d8] sm:$0xff]  ;;  %v14030_v43 = vcombine.high %v2362_v54, %v2374_v51  ;;  %v14125_v63 = vcombine.low %v2458_v50, %v2470_v52 }
 0x638   : > { %12396 = vmatmul.mubr.bf16.gmra.mrb[184].mxu1 %v21264_v23  ;;  %v2495_v10 = vld [vmem:[#allocation10 + $0x1df8] sm:$0xff] }
 0x639   : > { %12057 = vmatmul.mubr.bf16.gmra.mrb[184].mxu0 %v21264_v23  ;;  %12441 = vmatpush1.bf16.msra.mxu1 %v13887_v46  ;;  %v13935_v23 = vcombine.low %v2267_v21, %v2279_v34  ;;  %v2387_v46 = vld [vmem:[#allocation10 + $0x1a98] sm:$0xff]  ;;  %v2422_v34 = vld [vmem:[#allocation10 + $0x1bb0] sm:$0xff] }
 0x63a   : > { %12102 = vmatpush1.bf16.msra.mxu0 %v13885_v48  ;;  %12066 = vmatprep.mubr.bf16.mxu0 %v21265_v47  ;;  %v2398_v48 = vld [vmem:[#allocation10 + $0x1af0] sm:$0xff]  ;;  %v14056_v21 = vcombine.high %v2387_v46, %v2399_v33 }
 0x63b   : > { %12405 = vmatprep.mubr.bf16.mxu1 %v21265_v47  ;;  %12103 = vmatprep.subr.bf16.mxu0 %v13910_v25  ;;  %v2327_v47 = vld [vmem:[#allocation10 + $0x18b8] sm:$0xff]  ;;  %v14029_v25 = vcombine.low %v2362_v54, %v2374_v51  ;;  %v14054_v17 = vcombine.high %v2386_v49, %v2398_v48  ;;  %v14152_v54 = vcombine.high %v2483_v55, %v2495_v10 }
 0x63c   : > { %12442 = vmatprep.subr.bf16.mxu1 %v13912_v12  ;;  %v13984_v53 = vcombine.high %v2315_v26, %v2327_v47  ;;  %v2410_v12 = vld [vmem:[#allocation10 + $0x1b50] sm:$0xff] }
 0x63d   : > { %12443 = vmatpush1.bf16.msra.mxu1 %v13911_v42  ;;  %v14053_v42 = vcombine.low %v2386_v49, %v2398_v48  ;;  %v2543_v49 = vld [vmem:[#allocation10 + $0x1f78] sm:$0xff] }
 0x63e   : > { %12104 = vmatpush1.bf16.msra.mxu0 %v13909_v30  ;;  %12444 = vmatprep.subr.bf16.mxu1 %v13936_v32  ;;  %v2411_v30 = vld [vmem:[#allocation10 + $0x1b58] sm:$0xff]  ;;  %v14078_v32 = vcombine.high %v2410_v12, %v2422_v34 }
 0x63f   : > { %12105 = vmatprep.subr.bf16.mxu0 %v13934_v39  ;;  %v14055_v39 = vcombine.low %v2387_v46, %v2399_v33  ;;  %v2554_v46 = vld [vmem:[#allocation10 + $0x1fd0] sm:$0xff] }
 0x640   : > { %12406 = vmatmul.mubr.bf16.gmra.mrb[188].mxu1 %v21277_v3 }
 0x641   : > { %12067 = vmatmul.mubr.bf16.gmra.mrb[188].mxu0 %v21277_v3  ;;  %12445 = vmatpush1.bf16.msra.mxu1 %v13935_v23  ;;  %v13983_v3 = vcombine.low %v2315_v26, %v2327_v47  ;;  %v14077_v23 = vcombine.low %v2410_v12, %v2422_v34  ;;  %v2459_v26 = vld [vmem:[#allocation10 + $0x1cd8] sm:$0xff]  ;;  %v14101_v47 = vcombine.low %v2434_v11, %v2446_v18 }
 0x642   : > { %12106 = vmatpush1.bf16.msra.mxu0 %v13933_v4  ;;  %12109 = vmatprep.mubr.bf16.mxu0 %v21267_v7  ;;  %v2447_v4 = vld [vmem:[#allocation10 + $0x1c78] sm:$0xff] }
 0x643   : > { %12448 = vmatprep.mubr.bf16.mxu1 %v21267_v7  ;;  %12107 = vmatprep.subr.bf16.mxu0 %v13958_v20  ;;  %v2375_v7 = vld [vmem:[#allocation10 + $0x1a38] sm:$0xff]  ;;  %v14102_v20 = vcombine.high %v2434_v11, %v2446_v18  ;;  %v2602_v11 = vld [vmem:[#allocation10 + $0x2150] sm:$0xff] }
 0x644   : > { %12446 = vmatprep.subr.bf16.mxu1 %v13960_v40  ;;  %v14032_v22 = vcombine.high %v2363_v59, %v2375_v7  ;;  %v14104_v40 = vcombine.high %v2435_v8, %v2447_v4  ;;  %v2555_v12 = vld [vmem:[#allocation10 + $0x1fd8] sm:$0xff] }
 0x645   : > { %12447 = vmatpush1.bf16.msra.mxu1 %v13959_v31  ;;  %v14126_v31 = vcombine.high %v2458_v50, %v2470_v52 }
 0x646   : > { %12108 = vmatpush1.bf16.msra.mxu0 %v13957_v61  ;;  %12529 = vmatprep.subr.bf16.mxu1 %v13984_v53  ;;  %v14103_v61 = vcombine.low %v2435_v8, %v2447_v4  ;;  %v2482_v53 = vld [vmem:[#allocation10 + $0x1d90] sm:$0xff] }
 0x647   : > { %12190 = vmatprep.subr.bf16.mxu0 %v13982_v2  ;;  %v14149_v51 = vcombine.low %v2482_v53, %v2494_v41  ;;  %v2614_v4 = vld [vmem:[#allocation10 + $0x21b0] sm:$0xff] }
 0x648   : > { %12449 = vmatmul.mubr.bf16.vlgmr.msra.gmra.mrb[160].mxu1 %v21278_v56  ;;  %v14270_v52 = vcombine.high %v2602_v11, %v2614_v4 }
 0x649   : > { %12110 = vmatmul.mubr.bf16.vlgmr.msra.gmra.mrb[160].mxu0 %v21278_v56  ;;  %12530 = vmatpush1.bf16.msra.mxu1 %v13983_v3  ;;  %v14031_v56 = vcombine.low %v2363_v59, %v2375_v7  ;;  %v14150_v3 = vcombine.high %v2482_v53, %v2494_v41  ;;  %v14151_v59 = vcombine.low %v2483_v55, %v2495_v10  ;;  %v2650_v41 = vld [vmem:[#allocation10 + $0x22d0] sm:$0xff] }
 0x64a   : > { %12191 = vmatpush1.bf16.msra.mxu0 %v13981_v13  ;;  %12119 = vmatprep.mubr.bf16.mxu0 %v21279_v29  ;;  %v2506_v13 = vld [vmem:[#allocation10 + $0x1e50] sm:$0xff] }
 0x64b   : > { %12458 = vmatprep.mubr.bf16.mxu1 %v21279_v29  ;;  %12192 = vmatprep.subr.bf16.mxu0 %v14006_v27  ;;  %v2423_v29 = vld [vmem:[#allocation10 + $0x1bb8] sm:$0xff]  ;;  %v2518_v27 = vld [vmem:[#allocation10 + $0x1eb0] sm:$0xff] }
 0x64c   : > { %12531 = vmatprep.subr.bf16.mxu1 %v14008_v37  ;;  %v14080_v9 = vcombine.high %v2411_v30, %v2423_v29  ;;  %v2507_v37 = vld [vmem:[#allocation10 + $0x1e58] sm:$0xff]  ;;  %v14174_v7 = vcombine.high %v2506_v13, %v2518_v27  ;;  %v14173_v48 = vcombine.low %v2506_v13, %v2518_v27 }
 0x64d   : > { %12532 = vmatpush1.bf16.msra.mxu1 %v14007_v60  ;;  %v2530_v60 = vld [vmem:[#allocation10 + $0x1f10] sm:$0xff]  ;;  %v2663_v13 = vld [vmem:[#allocation10 + $0x2338] sm:$0xff] }
 0x64e   : > { %12193 = vmatpush1.bf16.msra.mxu0 %v14005_v19  ;;  %12533 = vmatprep.subr.bf16.mxu1 %v14032_v22  ;;  %v2531_v22 = vld [vmem:[#allocation10 + $0x1f18] sm:$0xff] }
 0x64f   : > { %12194 = vmatprep.subr.bf16.mxu0 %v14030_v43  ;;  %v2542_v43 = vld [vmem:[#allocation10 + $0x1f70] sm:$0xff] }
 0x650   : > { %12459 = vmatmul.mubr.bf16.gmra.mrb[164].mxu1 %v21280_v0  ;;  %v14198_v33 = vcombine.high %v2530_v60, %v2542_v43 }
 0x651   : > { %12120 = vmatmul.mubr.bf16.gmra.mrb[164].mxu0 %v21280_v0  ;;  %12534 = vmatpush1.bf16.msra.mxu1 %v14031_v56  ;;  %v14079_v0 = vcombine.low %v2411_v30, %v2423_v29  ;;  %v2566_v56 = vld [vmem:[#allocation10 + $0x2030] sm:$0xff] }
 0x652   : > { %12195 = vmatpush1.bf16.msra.mxu0 %v14029_v25  ;;  %12129 = vmatprep.mubr.bf16.mxu0 %v21281_v16  ;;  %v14200_v25 = vcombine.high %v2531_v22, %v2543_v49  ;;  %v14222_v34 = vcombine.high %v2554_v46, %v2566_v56  ;;  %v2578_v29 = vld [vmem:[#allocation10 + $0x2090] sm:$0xff] }
 0x653   : > { %12468 = vmatprep.mubr.bf16.mxu1 %v21281_v16  ;;  %12196 = vmatprep.subr.bf16.mxu0 %v14054_v17  ;;  %v2471_v16 = vld [vmem:[#allocation10 + $0x1d38] sm:$0xff]  ;;  %v14197_v17 = vcombine.low %v2530_v60, %v2542_v43 }
 0x654   : > { %12535 = vmatprep.subr.bf16.mxu1 %v14056_v21  ;;  %v14128_v2 = vcombine.high %v2459_v26, %v2471_v16  ;;  %v14199_v21 = vcombine.low %v2531_v22, %v2543_v49  ;;  %v2687_v60 = vld [vmem:[#allocation10 + $0x23f8] sm:$0xff] }
 0x655   : > { %12536 = vmatpush1.bf16.msra.mxu1 %v14055_v39  ;;  %v2579_v39 = vld [vmem:[#allocation10 + $0x2098] sm:$0xff] }
 0x656   : > { %12197 = vmatpush1.bf16.msra.mxu0 %v14053_v42  ;;  %12537 = vmatprep.subr.bf16.mxu1 %v14080_v9  ;;  %v2590_v42 = vld [vmem:[#allocation10 + $0x20f0] sm:$0xff]  ;;  %v14221_v9 = vcombine.low %v2554_v46, %v2566_v56  ;;  %v21332_v56 = vld [vmem:[#allocation126_spill] sm:$0xff] }
 0x657   : > { %12198 = vmatprep.subr.bf16.mxu0 %v14078_v32  ;;  %v2591_v32 = vld [vmem:[#allocation10 + $0x20f8] sm:$0xff]  ;;  %v14246_v18 = vcombine.high %v2578_v29, %v2590_v42  ;;  %v14245_v50 = vcombine.low %v2578_v29, %v2590_v42 }
 0x658   : > { %12469 = vmatmul.mubr.bf16.gmra.mrb[168].mxu1 %v21282_v62  ;;  %v14248_v8 = vcombine.high %v2579_v39, %v2591_v32  ;;  %v21338_v42 = vld [vmem:[#allocation100_spill] sm:$0xff] }
 0x659   : > { %12130 = vmatmul.mubr.bf16.gmra.mrb[168].mxu0 %v21282_v62  ;;  %12538 = vmatpush1.bf16.msra.mxu1 %v14079_v0  ;;  %v14127_v62 = vcombine.low %v2459_v26, %v2471_v16  ;;  %v21326_v0 = vld [vmem:[#allocation121_spill] sm:$0xff]  ;;  %v2626_v16 = vld [vmem:[#allocation10 + $0x2210] sm:$0xff] }
 0x65a   : > { %12199 = vmatpush1.bf16.msra.mxu0 %v14077_v23  ;;  %12139 = vmatprep.mubr.bf16.mxu0 %v21272_v24  ;;  %v2603_v23 = vld [vmem:[#allocation10 + $0x2158] sm:$0xff] }
 0x65b   : > { %12478 = vmatprep.mubr.bf16.mxu1 %v21272_v24  ;;  %12200 = vmatprep.subr.bf16.mxu0 %v14102_v20  ;;  %v2519_v24 = vld [vmem:[#allocation10 + $0x1eb8] sm:$0xff]  ;;  %v14247_v20 = vcombine.low %v2579_v39, %v2591_v32  ;;  %v21339_v32 = vld [vmem:[#allocation130_spill] sm:$0xff] }
 0x65c   : > { %12539 = vmatprep.subr.bf16.mxu1 %v14104_v40  ;;  %v14176_v19 = vcombine.high %v2507_v37, %v2519_v24  ;;  %v21327_v40 = vld [vmem:[#allocation131_spill] sm:$0xff] }
 0x65d   : > { %12540 = vmatpush1.bf16.msra.mxu1 %v14103_v61  ;;  %v2627_v61 = vld [vmem:[#allocation10 + $0x2218] sm:$0xff] }
 0x65e   : > { %12201 = vmatpush1.bf16.msra.mxu0 %v14101_v47  ;;  %12541 = vmatprep.subr.bf16.mxu1 %v14128_v2  ;;  %v2638_v47 = vld [vmem:[#allocation10 + $0x2270] sm:$0xff]  ;;  %v14269_v2 = vcombine.low %v2602_v11, %v2614_v4 }
 0x65f   : > { %12202 = vmatprep.subr.bf16.mxu0 %v14126_v31  ;;  %v2639_v31 = vld [vmem:[#allocation10 + $0x2278] sm:$0xff]  ;;  %v14294_v55 = vcombine.high %v2626_v16, %v2638_v47  ;;  %v21341_v11 = vld [vmem:[#allocation99_spill] sm:$0xff] }
 0x660   : > { %12479 = vmatmul.mubr.bf16.gmra.mrb[172].mxu1 %v21215_v14  ;;  %v14296_v10 = vcombine.high %v2627_v61, %v2639_v31  ;;  %v14295_v27 = vcombine.low %v2627_v61, %v2639_v31 }
 0x661   : > { %12140 = vmatmul.mubr.bf16.gmra.mrb[172].mxu0 %v21215_v14  ;;  %12542 = vmatpush1.bf16.msra.mxu1 %v14127_v62  ;;  %v14175_v14 = vcombine.low %v2507_v37, %v2519_v24  ;;  %v2651_v62 = vld [vmem:[#allocation10 + $0x22d8] sm:$0xff] }
 0x662   : > { %12203 = vmatpush1.bf16.msra.mxu0 %v14125_v63  ;;  %12149 = vmatprep.mubr.bf16.mxu0 %v18430_v44  ;;  %v2662_v63 = vld [vmem:[#allocation10 + $0x2330] sm:$0xff]  ;;  %v21329_v37 = vld [vmem:[#allocation132_spill] sm:$0xff]  ;;  %v14319_v22 = vcombine.low %v2651_v62, %v2663_v13 }
 0x663   : > { %12488 = vmatprep.mubr.bf16.mxu1 %v18430_v44  ;;  %12204 = vmatprep.subr.bf16.mxu0 %v14150_v3  ;;  %v2567_v44 = vld [vmem:[#allocation10 + $0x2038] sm:$0xff]  ;;  %v14318_v24 = vcombine.high %v2650_v41, %v2662_v63  ;;  %v14317_v43 = vcombine.low %v2650_v41, %v2662_v63 }
 0x664   : > { %12543 = vmatprep.subr.bf16.mxu1 %v14152_v54  ;;  %v14224_v30 = vcombine.high %v2555_v12, %v2567_v44  ;;  %v21328_v3 = vld [vmem:[#allocation124_spill] sm:$0xff]  ;;  %v14293_v54 = vcombine.low %v2626_v16, %v2638_v47 }
 0x665   : > { %12544 = vmatpush1.bf16.msra.mxu1 %v14151_v59  ;;  %v2674_v59 = vld [vmem:[#allocation10 + $0x2390] sm:$0xff] }
 0x666   : > { %12205 = vmatpush1.bf16.msra.mxu0 %v14149_v51  ;;  %12545 = vmatprep.subr.bf16.mxu1 %v14176_v19  ;;  %v14320_v51 = vcombine.high %v2651_v62, %v2663_v13  ;;  %v2675_v19 = vld [vmem:[#allocation10 + $0x2398] sm:$0xff] }
 0x667   : > { %12206 = vmatprep.subr.bf16.mxu0 %v14174_v7  ;;  %v2686_v7 = vld [vmem:[#allocation10 + $0x23f0] sm:$0xff] }
 0x668   : > { %12489 = vmatmul.mubr.bf16.gmra.mrb[176].mxu1 %v21231_v15  ;;  %v14342_v49 = vcombine.high %v2674_v59, %v2686_v7  ;;  %v14341_v46 = vcombine.low %v2674_v59, %v2686_v7 }
 0x669   : > { %12150 = vmatmul.mubr.bf16.gmra.mrb[176].mxu0 %v21231_v15  ;;  %12546 = vmatpush1.bf16.msra.mxu1 %v14175_v14  ;;  %v14223_v15 = vcombine.low %v2555_v12, %v2567_v44  ;;  %v21330_v14 = vld [vmem:[#allocation39_spill] sm:$0xff]  ;;  %v21334_v44 = vld [vmem:[#allocation53_spill] sm:$0xff] }
 0x66a   : > { %12207 = vmatpush1.bf16.msra.mxu0 %v14173_v48  ;;  %12159 = vmatprep.mubr.bf16.mxu0 %v18519_v35  ;;  %v14344_v48 = vcombine.high %v2675_v19, %v2687_v60  ;;  %v21333_v12 = vld [vmem:[#allocation127_spill] sm:$0xff] }
 0x66b   : > { %12498 = vmatprep.mubr.bf16.mxu1 %v18519_v35  ;;  %12208 = vmatprep.subr.bf16.mxu0 %v14198_v33  ;;  %v2615_v35 = vld [vmem:[#allocation10 + $0x21b8] sm:$0xff]  ;;  %v14343_v33 = vcombine.low %v2675_v19, %v2687_v60 }
 0x66c   : > { %12547 = vmatprep.subr.bf16.mxu1 %v14200_v25  ;;  %v14272_v26 = vcombine.high %v2603_v23, %v2615_v35  ;;  %v14271_v53 = vcombine.low %v2603_v23, %v2615_v35  ;;  %v21331_v25 = vld [vmem:[#allocation54_spill] sm:$0xff] }
 0x66d   : > { %12548 = vmatpush1.bf16.msra.mxu1 %v14199_v21  ;;  %v19925_v21 = vld [vmem:[#allocation11 + $0x10] sm:$0xff] }
 0x66e   : > { %12209 = vmatpush1.bf16.msra.mxu0 %v14197_v17  ;;  %12549 = vmatprep.subr.bf16.mxu1 %v14224_v30  ;;  %v21335_v17 = vld [vmem:[#allocation60_spill] sm:$0xff]  ;;  %v21337_v30 = vld [vmem:[#allocation98_spill] sm:$0xff]  ;;  %v19935_v39 = vrot.slane %v19925_v21, %v21338_v42 }
 0x66f   : > { %12210 = vmatprep.subr.bf16.mxu0 %v14222_v34  ;;  %v21336_v34 = vld [vmem:[#allocation129_spill] sm:$0xff]  ;;  %v19931_v29 = vrot.slane %v19925_v21, %v21337_v30 }
 0x670   : > { %12499 = vmatmul.mubr.bf16.gmra.mrb[180].mxu1 %v21326_v0 }
 0x671   : > { %12160 = vmatmul.mubr.bf16.gmra.mrb[180].mxu0 %v21326_v0  ;;  %12550 = vmatpush1.bf16.msra.mxu1 %v14223_v15 }
 0x672   : > { %12211 = vmatpush1.bf16.msra.mxu0 %v14221_v9  ;;  %12169 = vmatprep.mubr.bf16.mxu0 %v21327_v40  ;;  %v21340_v9 = vld [vmem:[#allocation97_spill] sm:$0xff] }
 0x673   : > { %12508 = vmatprep.mubr.bf16.mxu1 %v21327_v40  ;;  %12212 = vmatprep.subr.bf16.mxu0 %v14246_v18  ;;  %v19941_v15 = vrot.slane %v19925_v21, %v21340_v9  ;;  %v19945_v18 = vrot.slane %v19925_v21, %v21341_v11 }
 0x674   : > { %12551 = vmatprep.subr.bf16.mxu1 %v14248_v8 }
 0x675   : > { %12552 = vmatpush1.bf16.msra.mxu1 %v14247_v20 }
 0x676   : > { %12213 = vmatpush1.bf16.msra.mxu0 %v14245_v50  ;;  %12553 = vmatprep.subr.bf16.mxu1 %v14272_v26 }
 0x677   : > { %12214 = vmatprep.subr.bf16.mxu0 %v14270_v52 }
 0x678   : > { %12509 = vmatmul.mubr.bf16.gmra.mrb[184].mxu1 %v21328_v3 }
 0x679   : > { %12170 = vmatmul.mubr.bf16.gmra.mrb[184].mxu0 %v21328_v3  ;;  %12554 = vmatpush1.bf16.msra.mxu1 %v14271_v53 }
 0x67a   : > { %12215 = vmatpush1.bf16.msra.mxu0 %v14269_v2  ;;  %12179 = vmatprep.mubr.bf16.mxu0 %v21329_v37 }
 0x67b   : > { %12518 = vmatprep.mubr.bf16.mxu1 %v21329_v37  ;;  %12216 = vmatprep.subr.bf16.mxu0 %v14294_v55 }
 0x67c   : > { %12555 = vmatprep.subr.bf16.mxu1 %v14296_v10 }
 0x67d   : > { %12556 = vmatpush1.bf16.msra.mxu1 %v14295_v27 }
 0x67e   : > { %12217 = vmatpush1.bf16.msra.mxu0 %v14293_v54  ;;  %12557 = vmatprep.subr.bf16.mxu1 %v14320_v51 }
 0x67f   : > { %12218 = vmatprep.subr.bf16.mxu0 %v14318_v24 }
 0x680   : > { %12519 = vmatmul.mubr.bf16.gmra.mrb[188].mxu1 %v21330_v14 }
 0x681   : > { %12180 = vmatmul.mubr.bf16.gmra.mrb[188].mxu0 %v21330_v14  ;;  %12558 = vmatpush1.bf16.msra.mxu1 %v14319_v22 }
 0x682   : > { %12219 = vmatpush1.bf16.msra.mxu0 %v14317_v43  ;;  %12222 = vmatprep.mubr.bf16.mxu0 %v21331_v25 }
 0x683   : > { %12561 = vmatprep.mubr.bf16.mxu1 %v21331_v25  ;;  %12220 = vmatprep.subr.bf16.mxu0 %v14342_v49 }
 0x684   : > { %12559 = vmatprep.subr.bf16.mxu1 %v14344_v48 }
 0x685   : > { %12560 = vmatpush1.bf16.msra.mxu1 %v14343_v33 }
 0x686   : > { %12221 = vmatpush1.bf16.msra.mxu0 %v14341_v46 }
 0x688   : > { %12562 = vmatmul.mubr.bf16.vlgmr.msra.gmra.mrb[160].mxu1 %v21332_v56 }
 0x689   : > { %12223 = vmatmul.mubr.bf16.vlgmr.msra.gmra.mrb[160].mxu0 %v21332_v56  ;;  %12571 = vmatprep.mubr.bf16.mxu1 %v21333_v12 }
 0x68a   : > { %12232 = vmatprep.mubr.bf16.mxu0 %v21333_v12 }
 0x690   : > { %12572 = vmatmul.mubr.bf16.gmra.mrb[164].mxu1 %v21334_v44 }
 0x691   : > { %12233 = vmatmul.mubr.bf16.gmra.mrb[164].mxu0 %v21334_v44  ;;  %12581 = vmatprep.mubr.bf16.mxu1 %v21335_v17 }
 0x692   : > { %12242 = vmatprep.mubr.bf16.mxu0 %v21335_v17 }
 0x698   : > { %12582 = vmatmul.mubr.bf16.gmra.mrb[168].mxu1 %v21336_v34 }
 0x699   : > { %12243 = vmatmul.mubr.bf16.gmra.mrb[168].mxu0 %v21336_v34  ;;  %12591 = vmatprep.mubr.bf16.mxu1 %v21339_v32 }
 0x69a   : > { %12252 = vmatprep.mubr.bf16.mxu0 %v21339_v32 }
 0x69b   : > { %v11885_v4 = vpop.f32.mrb[128].mxu1 }
 0x69c   : > { %v11546_v8 = vpop.f32.mrb[128].mxu0  ;;  %v14638_v35 = vadd.f32 %v11885_v4, %v19935_v39  ;;  %v11887_v50 = vpop.f32.mrb[129].mxu1 }
 0x69d   : > { %v14606_v23 = vadd.f32 %v11546_v8, %v19931_v29  ;;  %v11548_v0 = vpop.f32.mrb[129].mxu0  ;;  %v14639_v40 = vadd.f32 %v11887_v50, %v19945_v18  ;;  %v11889_v26 = vpop.f32.mrb[130].mxu1 }
 0x69e   : > { %v14607_v20 = vadd.f32 %v11548_v0, %v19941_v15  ;;  %v11550_v52 = vpop.f32.mrb[130].mxu0  ;;  %12660 = vst [vmem:[%s18759_s11 + $0x90] sm:$0xff] %v14638_v35  ;;  %v14640_v47 = vadd.f32 %v11889_v26, %v19935_v39  ;;  %v11891_v31 = vpop.f32.mrb[131].mxu1 }
 0x69f   : > { %12658 = vst [vmem:[%s18759_s11 + $0x80] sm:$0xff] %v14606_v23  ;;  %v14608_v16 = vadd.f32 %v11550_v52, %v19931_v29  ;;  %v11552_v61 = vpop.f32.mrb[131].mxu0  ;;  %12661 = vst [vmem:[%s18759_s11 + $0x98] sm:$0xff] %v14639_v40  ;;  %v14641_v53 = vadd.f32 %v11891_v31, %v19945_v18 }
 0x6a0   : > { %12659 = vst [vmem:[%s18759_s11 + $0x88] sm:$0xff] %v14607_v20  ;;  %v14609_v2 = vadd.f32 %v11552_v61, %v19941_v15  ;;  %12684 = vst [vmem:[%s18759_s11 + $0x150] sm:$0xff] %v14640_v47  ;;  %12592 = vmatmul.mubr.bf16.gmra.mrb[172].mxu1 %v18434_v57 }
 0x6a1   : > { %12682 = vst [vmem:[%s18759_s11 + $0x140] sm:$0xff] %v14608_v16  ;;  %12253 = vmatmul.mubr.bf16.gmra.mrb[172].mxu0 %v18434_v57  ;;  %12685 = vst [vmem:[%s18759_s11 + $0x158] sm:$0xff] %v14641_v53  ;;  %12601 = vmatprep.mubr.bf16.mxu1 %v18436_v58 }
 0x6a2   : > { %12683 = vst [vmem:[%s18759_s11 + $0x148] sm:$0xff] %v14609_v2  ;;  %12262 = vmatprep.mubr.bf16.mxu0 %v18436_v58 }
 0x6a3   : > { %v11895_v55 = vpop.f32.mrb[132].mxu1 }
 0x6a4   : > { %v11556_v41 = vpop.f32.mrb[132].mxu0  ;;  %v14642_v63 = vadd.f32 %v11895_v55, %v19935_v39  ;;  %v11897_v13 = vpop.f32.mrb[133].mxu1 }
 0x6a5   : > { %v14610_v10 = vadd.f32 %v11556_v41, %v19931_v29  ;;  %v11558_v62 = vpop.f32.mrb[133].mxu0  ;;  %v14643_v3 = vadd.f32 %v11897_v13, %v19945_v18  ;;  %v11899_v27 = vpop.f32.mrb[134].mxu1 }
 0x6a6   : > { %v14611_v57 = vadd.f32 %v11558_v62, %v19941_v15  ;;  %v11560_v54 = vpop.f32.mrb[134].mxu0  ;;  %12708 = vst [vmem:[%s18759_s11 + $0x210] sm:$0xff] %v14642_v63  ;;  %v14644_v37 = vadd.f32 %v11899_v27, %v19935_v39  ;;  %v11901_v51 = vpop.f32.mrb[135].mxu1 }
 0x6a7   : > { %12706 = vst [vmem:[%s18759_s11 + $0x200] sm:$0xff] %v14610_v10  ;;  %v14612_v58 = vadd.f32 %v11560_v54, %v19931_v29  ;;  %v11562_v24 = vpop.f32.mrb[135].mxu0  ;;  %12709 = vst [vmem:[%s18759_s11 + $0x218] sm:$0xff] %v14643_v3  ;;  %v14645_v7 = vadd.f32 %v11901_v51, %v19945_v18 }
 0x6a8   : > { %12707 = vst [vmem:[%s18759_s11 + $0x208] sm:$0xff] %v14611_v57  ;;  %v14613_v59 = vadd.f32 %v11562_v24, %v19941_v15  ;;  %12732 = vst [vmem:[%s18759_s11 + $0x2d0] sm:$0xff] %v14644_v37  ;;  %12602 = vmatmul.mubr.bf16.gmra.mrb[176].mxu1 %v18492_v45 }
 0x6a9   : > { %12730 = vst [vmem:[%s18759_s11 + $0x2c0] sm:$0xff] %v14612_v58  ;;  %12263 = vmatmul.mubr.bf16.gmra.mrb[176].mxu0 %v18492_v45  ;;  %12733 = vst [vmem:[%s18759_s11 + $0x2d8] sm:$0xff] %v14645_v7  ;;  %12611 = vmatprep.mubr.bf16.mxu1 %v18502_v36 }
 0x6aa   : > { %12731 = vst [vmem:[%s18759_s11 + $0x2c8] sm:$0xff] %v14613_v59  ;;  %12272 = vmatprep.mubr.bf16.mxu0 %v18502_v36 }
 0x6ab   : > { %v11905_v60 = vpop.f32.mrb[136].mxu1 }
 0x6ac   : > { %v11566_v19 = vpop.f32.mrb[136].mxu0  ;;  %v14646_v22 = vadd.f32 %v11905_v60, %v19935_v39  ;;  %v11907_v48 = vpop.f32.mrb[137].mxu1 }
 0x6ad   : > { %v14614_v43 = vadd.f32 %v11566_v19, %v19931_v29  ;;  %v11568_v49 = vpop.f32.mrb[137].mxu0  ;;  %v14647_v14 = vadd.f32 %v11907_v48, %v19945_v18  ;;  %v11909_v33 = vpop.f32.mrb[138].mxu1 }
 0x6ae   : > { %v14615_v45 = vadd.f32 %v11568_v49, %v19941_v15  ;;  %v11570_v46 = vpop.f32.mrb[138].mxu0  ;;  %12756 = vst [vmem:[%s18759_s11 + $0x390] sm:$0xff] %v14646_v22  ;;  %v14648_v25 = vadd.f32 %v11909_v33, %v19935_v39  ;;  %v11911_v12 = vpop.f32.mrb[139].mxu1 }
 0x6af   : > { %12754 = vst [vmem:[%s18759_s11 + $0x380] sm:$0xff] %v14614_v43  ;;  %v14616_v36 = vadd.f32 %v11570_v46, %v19931_v29  ;;  %v11572_v56 = vpop.f32.mrb[139].mxu0  ;;  %12757 = vst [vmem:[%s18759_s11 + $0x398] sm:$0xff] %v14647_v14  ;;  %v14649_v17 = vadd.f32 %v11911_v12, %v19945_v18 }
 0x6b0   : > { %12755 = vst [vmem:[%s18759_s11 + $0x388] sm:$0xff] %v14615_v45  ;;  %v14617_v44 = vadd.f32 %v11572_v56, %v19941_v15  ;;  %12780 = vst [vmem:[%s18759_s11 + $0x450] sm:$0xff] %v14648_v25  ;;  %12612 = vmatmul.mubr.bf16.gmra.mrb[180].mxu1 %v18550_v38 }
 0x6b1   : > { %12778 = vst [vmem:[%s18759_s11 + $0x440] sm:$0xff] %v14616_v36  ;;  %12273 = vmatmul.mubr.bf16.gmra.mrb[180].mxu0 %v18550_v38  ;;  %12781 = vst [vmem:[%s18759_s11 + $0x458] sm:$0xff] %v14649_v17  ;;  %12621 = vmatprep.mubr.bf16.mxu1 %v18562_v6 }
 0x6b2   : > { %12779 = vst [vmem:[%s18759_s11 + $0x448] sm:$0xff] %v14617_v44  ;;  %12282 = vmatprep.mubr.bf16.mxu0 %v18562_v6 }
 0x6b3   : > { %v11915_v30 = vpop.f32.mrb[140].mxu1 }
 0x6b4   : > { %v11576_v34 = vpop.f32.mrb[140].mxu0  ;;  %v14650_v32 = vadd.f32 %v11915_v30, %v19935_v39  ;;  %v11917_v11 = vpop.f32.mrb[141].mxu1 }
 0x6b5   : > { %v14618_v42 = vadd.f32 %v11576_v34, %v19931_v29  ;;  %v11578_v9 = vpop.f32.mrb[141].mxu0  ;;  %v14651_v8 = vadd.f32 %v11917_v11, %v19945_v18  ;;  %v11919_v23 = vpop.f32.mrb[142].mxu1 }
 0x6b6   : > { %v14619_v38 = vadd.f32 %v11578_v9, %v19941_v15  ;;  %v11580_v4 = vpop.f32.mrb[142].mxu0  ;;  %12804 = vst [vmem:[%s18759_s11 + $0x510] sm:$0xff] %v14650_v32  ;;  %v14652_v35 = vadd.f32 %v11919_v23, %v19935_v39  ;;  %v11921_v50 = vpop.f32.mrb[143].mxu1 }
 0x6b7   : > { %12802 = vst [vmem:[%s18759_s11 + $0x500] sm:$0xff] %v14618_v42  ;;  %v14620_v6 = vadd.f32 %v11580_v4, %v19931_v29  ;;  %v11582_v0 = vpop.f32.mrb[143].mxu0  ;;  %12805 = vst [vmem:[%s18759_s11 + $0x518] sm:$0xff] %v14651_v8  ;;  %v14653_v40 = vadd.f32 %v11921_v50, %v19945_v18 }
 0x6b8   : > { %12803 = vst [vmem:[%s18759_s11 + $0x508] sm:$0xff] %v14619_v38  ;;  %v14621_v20 = vadd.f32 %v11582_v0, %v19941_v15  ;;  %12828 = vst [vmem:[%s18759_s11 + $0x5d0] sm:$0xff] %v14652_v35  ;;  %12622 = vmatmul.mubr.bf16.gmra.mrb[184].mxu1 %v18597_v1 }
 0x6b9   : > { %12826 = vst [vmem:[%s18759_s11 + $0x5c0] sm:$0xff] %v14620_v6  ;;  %12283 = vmatmul.mubr.bf16.gmra.mrb[184].mxu0 %v18597_v1  ;;  %12829 = vst [vmem:[%s18759_s11 + $0x5d8] sm:$0xff] %v14653_v40  ;;  %12631 = vmatprep.mubr.bf16.mxu1 %v18599_v5 }
 0x6ba   : > { %12827 = vst [vmem:[%s18759_s11 + $0x5c8] sm:$0xff] %v14621_v20  ;;  %12292 = vmatprep.mubr.bf16.mxu0 %v18599_v5 }
 0x6bb   : > { %v11925_v26 = vpop.f32.mrb[144].mxu1 }
 0x6bc   : > { %v11586_v52 = vpop.f32.mrb[144].mxu0  ;;  %v14654_v47 = vadd.f32 %v11925_v26, %v19935_v39  ;;  %v11927_v31 = vpop.f32.mrb[145].mxu1 }
 0x6bd   : > { %v14622_v16 = vadd.f32 %v11586_v52, %v19931_v29  ;;  %v11588_v61 = vpop.f32.mrb[145].mxu0  ;;  %v14655_v2 = vadd.f32 %v11927_v31, %v19945_v18  ;;  %v11929_v41 = vpop.f32.mrb[146].mxu1  ;;  %v21342_v31 = vld [vmem:[#allocation152_spill] sm:$0xff] }
 0x6be   : > { %v14623_v1 = vadd.f32 %v11588_v61, %v19941_v15  ;;  %v11590_v53 = vpop.f32.mrb[146].mxu0  ;;  %12852 = vst [vmem:[%s18759_s11 + $0x690] sm:$0xff] %v14654_v47  ;;  %v14656_v55 = vadd.f32 %v11929_v41, %v19935_v39  ;;  %v11931_v63 = vpop.f32.mrb[147].mxu1 }
 0x6bf   : > { %12850 = vst [vmem:[%s18759_s11 + $0x680] sm:$0xff] %v14622_v16  ;;  %v14624_v5 = vadd.f32 %v11590_v53, %v19931_v29  ;;  %v11592_v10 = vpop.f32.mrb[147].mxu0  ;;  %12853 = vst [vmem:[%s18759_s11 + $0x698] sm:$0xff] %v14655_v2  ;;  %v14657_v13 = vadd.f32 %v11931_v63, %v19945_v18  ;;  %v21344_v2 = vld [vmem:[#allocation141_spill] sm:$0xff] }
 0x6c0   : > { %12851 = vst [vmem:[%s18759_s11 + $0x688] sm:$0xff] %v14623_v1  ;;  %v14625_v62 = vadd.f32 %v11592_v10, %v19941_v15  ;;  %12876 = vst [vmem:[%s18759_s11 + $0x750] sm:$0xff] %v14656_v55  ;;  %12632 = vmatmul.mubr.bf16.gmra.mrb[188].mxu1 %v18620_v28  ;;  %v20095_v1 = vrot.slane %v19925_v21, %v21342_v31  ;;  %v20103_v53 = vrot.slane %v19925_v21, %v21344_v2 }
 0x6c1   : > { %12874 = vst [vmem:[%s18759_s11 + $0x740] sm:$0xff] %v14624_v5  ;;  %12293 = vmatmul.mubr.bf16.gmra.mrb[188].mxu0 %v18620_v28  ;;  %12877 = vst [vmem:[%s18759_s11 + $0x758] sm:$0xff] %v14657_v13 }
 0x6c2   : > { %12875 = vst [vmem:[%s18759_s11 + $0x748] sm:$0xff] %v14625_v62 }
 0x6c3   : > { %v11935_v3 = vpop.f32.mrb[148].mxu1 }
 0x6c4   : > { %v11596_v57 = vpop.f32.mrb[148].mxu0  ;;  %v14658_v27 = vadd.f32 %v11935_v3, %v19935_v39  ;;  %v11937_v37 = vpop.f32.mrb[149].mxu1 }
 0x6c5   : > { %v14626_v54 = vadd.f32 %v11596_v57, %v19931_v29  ;;  %v11598_v58 = vpop.f32.mrb[149].mxu0  ;;  %v14659_v51 = vadd.f32 %v11937_v37, %v19945_v18  ;;  %v11939_v59 = vpop.f32.mrb[150].mxu1 }
 0x6c6   : > { %v14627_v24 = vadd.f32 %v11598_v58, %v19941_v15  ;;  %v11600_v28 = vpop.f32.mrb[150].mxu0  ;;  %12900 = vst [vmem:[%s18759_s11 + $0x810] sm:$0xff] %v14658_v27  ;;  %v14660_v19 = vadd.f32 %v11939_v59, %v19935_v39  ;;  %v11941_v43 = vpop.f32.mrb[151].mxu1 }
 0x6c7   : > { %12898 = vst [vmem:[%s18759_s11 + $0x800] sm:$0xff] %v14626_v54  ;;  %v14628_v7 = vadd.f32 %v11600_v28, %v19931_v29  ;;  %v11602_v60 = vpop.f32.mrb[151].mxu0  ;;  %12901 = vst [vmem:[%s18759_s11 + $0x818] sm:$0xff] %v14659_v51  ;;  %v14661_v49 = vadd.f32 %v11941_v43, %v19945_v18 }
 0x6c8   : > { %12899 = vst [vmem:[%s18759_s11 + $0x808] sm:$0xff] %v14627_v24  ;;  %v14629_v22 = vadd.f32 %v11602_v60, %v19941_v15  ;;  %12924 = vst [vmem:[%s18759_s11 + $0x8d0] sm:$0xff] %v14660_v19 }
 0x6c9   : > { %12922 = vst [vmem:[%s18759_s11 + $0x8c0] sm:$0xff] %v14628_v7  ;;  %12925 = vst [vmem:[%s18759_s11 + $0x8d8] sm:$0xff] %v14661_v49 }
 0x6ca   : > { %12923 = vst [vmem:[%s18759_s11 + $0x8c8] sm:$0xff] %v14629_v22 }
 0x6cb   : > { %v11945_v45 = vpop.f32.mrb[152].mxu1 }
 0x6cc   : > { %v11606_v48 = vpop.f32.mrb[152].mxu0  ;;  %v14662_v46 = vadd.f32 %v11945_v45, %v19935_v39  ;;  %v11947_v36 = vpop.f32.mrb[153].mxu1 }
 0x6cd   : > { %v14630_v14 = vadd.f32 %v11606_v48, %v19931_v29  ;;  %v11608_v33 = vpop.f32.mrb[153].mxu0  ;;  %v14663_v56 = vadd.f32 %v11947_v36, %v19945_v18  ;;  %v11949_v44 = vpop.f32.mrb[154].mxu1 }
 0x6ce   : > { %v14631_v25 = vadd.f32 %v11608_v33, %v19941_v15  ;;  %v11610_v12 = vpop.f32.mrb[154].mxu0  ;;  %12948 = vst [vmem:[%s18759_s11 + $0x990] sm:$0xff] %v14662_v46  ;;  %v14664_v34 = vadd.f32 %v11949_v44, %v19935_v39  ;;  %v11951_v42 = vpop.f32.mrb[155].mxu1 }
 0x6cf   : > { %12946 = vst [vmem:[%s18759_s11 + $0x980] sm:$0xff] %v14630_v14  ;;  %v14632_v17 = vadd.f32 %v11610_v12, %v19931_v29  ;;  %v11612_v30 = vpop.f32.mrb[155].mxu0  ;;  %12949 = vst [vmem:[%s18759_s11 + $0x998] sm:$0xff] %v14663_v56  ;;  %v14665_v9 = vadd.f32 %v11951_v42, %v19945_v18 }
 0x6d0   : > { %12947 = vst [vmem:[%s18759_s11 + $0x988] sm:$0xff] %v14631_v25  ;;  %v14633_v32 = vadd.f32 %v11612_v30, %v19941_v15  ;;  %12972 = vst [vmem:[%s18759_s11 + $0xa50] sm:$0xff] %v14664_v34 }
 0x6d1   : > { %12970 = vst [vmem:[%s18759_s11 + $0xa40] sm:$0xff] %v14632_v17  ;;  %12973 = vst [vmem:[%s18759_s11 + $0xa58] sm:$0xff] %v14665_v9 }
 0x6d2   : > { %12971 = vst [vmem:[%s18759_s11 + $0xa48] sm:$0xff] %v14633_v32 }
 0x6d3   : > { %v11955_v38 = vpop.f32.mrb[156].mxu1 }
 0x6d4   : > { %v11616_v11 = vpop.f32.mrb[156].mxu0  ;;  %v14666_v4 = vadd.f32 %v11955_v38, %v19935_v39  ;;  %v11957_v6 = vpop.f32.mrb[157].mxu1 }
 0x6d5   : > { %v14634_v8 = vadd.f32 %v11616_v11, %v19931_v29  ;;  %v11618_v23 = vpop.f32.mrb[157].mxu0  ;;  %v14667_v0 = vadd.f32 %v11957_v6, %v19945_v18  ;;  %v11959_v20 = vpop.f32.mrb[158].mxu1 }
 0x6d6   : > { %v14635_v35 = vadd.f32 %v11618_v23, %v19941_v15  ;;  %v11620_v50 = vpop.f32.mrb[158].mxu0  ;;  %12996 = vst [vmem:[%s18759_s11 + $0xb10] sm:$0xff] %v14666_v4  ;;  %v14668_v52 = vadd.f32 %v11959_v20, %v19935_v39  ;;  %v11961_v16 = vpop.f32.mrb[159].mxu1 }
 0x6d7   : > { %12994 = vst [vmem:[%s18759_s11 + $0xb00] sm:$0xff] %v14634_v8  ;;  %v14636_v40 = vadd.f32 %v11620_v50, %v19931_v29  ;;  %v11622_v26 = vpop.f32.mrb[159].mxu0  ;;  %12997 = vst [vmem:[%s18759_s11 + $0xb18] sm:$0xff] %v14667_v0  ;;  %v14669_v61 = vadd.f32 %v11961_v16, %v19945_v18  ;;  %v21343_v29 = vld [vmem:[#allocation45_spill] sm:$0xff] }
 0x6d8   : > { %12995 = vst [vmem:[%s18759_s11 + $0xb08] sm:$0xff] %v14635_v35  ;;  %v14637_v47 = vadd.f32 %v11622_v26, %v19941_v15  ;;  %13020 = vst [vmem:[%s18759_s11 + $0xbd0] sm:$0xff] %v14668_v52  ;;  %v20099_v39 = vrot.slane %v19925_v21, %v21343_v29  ;;  %v21345_v15 = vld [vmem:[#allocation51_spill] sm:$0xff] }
 0x6d9   : > { %13018 = vst [vmem:[%s18759_s11 + $0xbc0] sm:$0xff] %v14636_v40  ;;  %13021 = vst [vmem:[%s18759_s11 + $0xbd8] sm:$0xff] %v14669_v61  ;;  %v20107_v18 = vrot.slane %v19925_v21, %v21345_v15 }
 0x6da   : > { %13019 = vst [vmem:[%s18759_s11 + $0xbc8] sm:$0xff] %v14637_v47 }
 0x75b   : > { %v12563_v5 = vpop.f32.mrb[160].mxu1 }
 0x75c   : > { %v12224_v41 = vpop.f32.mrb[160].mxu0  ;;  %v14702_v10 = vadd.f32 %v12563_v5, %v20099_v39  ;;  %v12565_v62 = vpop.f32.mrb[161].mxu1 }
 0x75d   : > { %v14670_v55 = vadd.f32 %v12224_v41, %v20095_v1  ;;  %v12226_v63 = vpop.f32.mrb[161].mxu0  ;;  %v14703_v57 = vadd.f32 %v12565_v62, %v20107_v18  ;;  %v12567_v3 = vpop.f32.mrb[162].mxu1 }
 0x75e   : > { %v14671_v13 = vadd.f32 %v12226_v63, %v20103_v53  ;;  %v12228_v21 = vpop.f32.mrb[162].mxu0  ;;  %12664 = vst [vmem:[%s18759_s11 + $0xb0] sm:$0xff] %v14702_v10  ;;  %v14704_v27 = vadd.f32 %v12567_v3, %v20099_v39  ;;  %v12569_v37 = vpop.f32.mrb[163].mxu1 }
 0x75f   : > { %12662 = vst [vmem:[%s18759_s11 + $0xa0] sm:$0xff] %v14670_v55  ;;  %v14672_v54 = vadd.f32 %v12228_v21, %v20095_v1  ;;  %v12230_v58 = vpop.f32.mrb[163].mxu0  ;;  %12665 = vst [vmem:[%s18759_s11 + $0xb8] sm:$0xff] %v14703_v57  ;;  %v14705_v51 = vadd.f32 %v12569_v37, %v20107_v18 }
 0x760   : > { %12663 = vst [vmem:[%s18759_s11 + $0xa8] sm:$0xff] %v14671_v13  ;;  %v14673_v24 = vadd.f32 %v12230_v58, %v20103_v53  ;;  %12688 = vst [vmem:[%s18759_s11 + $0x170] sm:$0xff] %v14704_v27 }
 0x761   : > { %12686 = vst [vmem:[%s18759_s11 + $0x160] sm:$0xff] %v14672_v54  ;;  %12689 = vst [vmem:[%s18759_s11 + $0x178] sm:$0xff] %v14705_v51 }
 0x762   : > { %12687 = vst [vmem:[%s18759_s11 + $0x168] sm:$0xff] %v14673_v24 }
 0x763   : > { %v12573_v59 = vpop.f32.mrb[164].mxu1 }
 0x764   : > { %v12234_v28 = vpop.f32.mrb[164].mxu0  ;;  %v14706_v19 = vadd.f32 %v12573_v59, %v20099_v39  ;;  %v12575_v43 = vpop.f32.mrb[165].mxu1 }
 0x765   : > { %v14674_v7 = vadd.f32 %v12234_v28, %v20095_v1  ;;  %v12236_v60 = vpop.f32.mrb[165].mxu0  ;;  %v14707_v49 = vadd.f32 %v12575_v43, %v20107_v18  ;;  %v12577_v45 = vpop.f32.mrb[166].mxu1 }
 0x766   : > { %v14675_v22 = vadd.f32 %v12236_v60, %v20103_v53  ;;  %v12238_v48 = vpop.f32.mrb[166].mxu0  ;;  %12712 = vst [vmem:[%s18759_s11 + $0x230] sm:$0xff] %v14706_v19  ;;  %v14708_v46 = vadd.f32 %v12577_v45, %v20099_v39  ;;  %v12579_v36 = vpop.f32.mrb[167].mxu1 }
 0x767   : > { %12710 = vst [vmem:[%s18759_s11 + $0x220] sm:$0xff] %v14674_v7  ;;  %v14676_v14 = vadd.f32 %v12238_v48, %v20095_v1  ;;  %v12240_v33 = vpop.f32.mrb[167].mxu0  ;;  %12713 = vst [vmem:[%s18759_s11 + $0x238] sm:$0xff] %v14707_v49  ;;  %v14709_v56 = vadd.f32 %v12579_v36, %v20107_v18 }
 0x768   : > { %12711 = vst [vmem:[%s18759_s11 + $0x228] sm:$0xff] %v14675_v22  ;;  %v14677_v25 = vadd.f32 %v12240_v33, %v20103_v53  ;;  %12736 = vst [vmem:[%s18759_s11 + $0x2f0] sm:$0xff] %v14708_v46 }
 0x769   : > { %12734 = vst [vmem:[%s18759_s11 + $0x2e0] sm:$0xff] %v14676_v14  ;;  %12737 = vst [vmem:[%s18759_s11 + $0x2f8] sm:$0xff] %v14709_v56 }
 0x76a   : > { %12735 = vst [vmem:[%s18759_s11 + $0x2e8] sm:$0xff] %v14677_v25 }
 0x76b   : > { %v12583_v44 = vpop.f32.mrb[168].mxu1 }
 0x76c   : > { %v12244_v12 = vpop.f32.mrb[168].mxu0  ;;  %v14710_v34 = vadd.f32 %v12583_v44, %v20099_v39  ;;  %v12585_v42 = vpop.f32.mrb[169].mxu1 }
 0x76d   : > { %v14678_v17 = vadd.f32 %v12244_v12, %v20095_v1  ;;  %v12246_v30 = vpop.f32.mrb[169].mxu0  ;;  %v14711_v9 = vadd.f32 %v12585_v42, %v20107_v18  ;;  %v12587_v38 = vpop.f32.mrb[170].mxu1 }
 0x76e   : > { %v14679_v32 = vadd.f32 %v12246_v30, %v20103_v53  ;;  %v12248_v11 = vpop.f32.mrb[170].mxu0  ;;  %12760 = vst [vmem:[%s18759_s11 + $0x3b0] sm:$0xff] %v14710_v34  ;;  %v14712_v4 = vadd.f32 %v12587_v38, %v20099_v39  ;;  %v12589_v6 = vpop.f32.mrb[171].mxu1 }
 0x76f   : > { %12758 = vst [vmem:[%s18759_s11 + $0x3a0] sm:$0xff] %v14678_v17  ;;  %v14680_v8 = vadd.f32 %v12248_v11, %v20095_v1  ;;  %v12250_v23 = vpop.f32.mrb[171].mxu0  ;;  %12761 = vst [vmem:[%s18759_s11 + $0x3b8] sm:$0xff] %v14711_v9  ;;  %v14713_v0 = vadd.f32 %v12589_v6, %v20107_v18 }
 0x770   : > { %12759 = vst [vmem:[%s18759_s11 + $0x3a8] sm:$0xff] %v14679_v32  ;;  %v14681_v35 = vadd.f32 %v12250_v23, %v20103_v53  ;;  %12784 = vst [vmem:[%s18759_s11 + $0x470] sm:$0xff] %v14712_v4 }
 0x771   : > { %12782 = vst [vmem:[%s18759_s11 + $0x460] sm:$0xff] %v14680_v8  ;;  %12785 = vst [vmem:[%s18759_s11 + $0x478] sm:$0xff] %v14713_v0 }
 0x772   : > { %12783 = vst [vmem:[%s18759_s11 + $0x468] sm:$0xff] %v14681_v35 }
 0x773   : > { %v12593_v20 = vpop.f32.mrb[172].mxu1 }
 0x774   : > { %v12254_v50 = vpop.f32.mrb[172].mxu0  ;;  %v14714_v52 = vadd.f32 %v12593_v20, %v20099_v39  ;;  %v12595_v16 = vpop.f32.mrb[173].mxu1 }
 0x775   : > { %v14682_v40 = vadd.f32 %v12254_v50, %v20095_v1  ;;  %v12256_v26 = vpop.f32.mrb[173].mxu0  ;;  %v14715_v61 = vadd.f32 %v12595_v16, %v20107_v18  ;;  %v12597_v29 = vpop.f32.mrb[174].mxu1 }
 0x776   : > { %v14683_v47 = vadd.f32 %v12256_v26, %v20103_v53  ;;  %v12258_v31 = vpop.f32.mrb[174].mxu0  ;;  %12808 = vst [vmem:[%s18759_s11 + $0x530] sm:$0xff] %v14714_v52  ;;  %v14716_v15 = vadd.f32 %v12597_v29, %v20099_v39  ;;  %v12599_v5 = vpop.f32.mrb[175].mxu1 }
 0x777   : > { %12806 = vst [vmem:[%s18759_s11 + $0x520] sm:$0xff] %v14682_v40  ;;  %v14684_v2 = vadd.f32 %v12258_v31, %v20095_v1  ;;  %v12260_v41 = vpop.f32.mrb[175].mxu0  ;;  %12809 = vst [vmem:[%s18759_s11 + $0x538] sm:$0xff] %v14715_v61  ;;  %v14717_v10 = vadd.f32 %v12599_v5, %v20107_v18 }
 0x778   : > { %12807 = vst [vmem:[%s18759_s11 + $0x528] sm:$0xff] %v14683_v47  ;;  %v14685_v55 = vadd.f32 %v12260_v41, %v20103_v53  ;;  %12832 = vst [vmem:[%s18759_s11 + $0x5f0] sm:$0xff] %v14716_v15 }
 0x779   : > { %12830 = vst [vmem:[%s18759_s11 + $0x5e0] sm:$0xff] %v14684_v2  ;;  %12833 = vst [vmem:[%s18759_s11 + $0x5f8] sm:$0xff] %v14717_v10 }
 0x77a   : > { %12831 = vst [vmem:[%s18759_s11 + $0x5e8] sm:$0xff] %v14685_v55 }
 0x77b   : > { %v12603_v62 = vpop.f32.mrb[176].mxu1 }
 0x77c   : > { %v12264_v63 = vpop.f32.mrb[176].mxu0  ;;  %v14718_v57 = vadd.f32 %v12603_v62, %v20099_v39  ;;  %v12605_v3 = vpop.f32.mrb[177].mxu1 }
 0x77d   : > { %v14686_v13 = vadd.f32 %v12264_v63, %v20095_v1  ;;  %v12266_v21 = vpop.f32.mrb[177].mxu0  ;;  %v14719_v27 = vadd.f32 %v12605_v3, %v20107_v18  ;;  %v12607_v37 = vpop.f32.mrb[178].mxu1 }
 0x77e   : > { %v14687_v54 = vadd.f32 %v12266_v21, %v20103_v53  ;;  %v12268_v58 = vpop.f32.mrb[178].mxu0  ;;  %12856 = vst [vmem:[%s18759_s11 + $0x6b0] sm:$0xff] %v14718_v57  ;;  %v14720_v51 = vadd.f32 %v12607_v37, %v20099_v39  ;;  %v12609_v59 = vpop.f32.mrb[179].mxu1 }
 0x77f   : > { %12854 = vst [vmem:[%s18759_s11 + $0x6a0] sm:$0xff] %v14686_v13  ;;  %v14688_v24 = vadd.f32 %v12268_v58, %v20095_v1  ;;  %v12270_v28 = vpop.f32.mrb[179].mxu0  ;;  %12857 = vst [vmem:[%s18759_s11 + $0x6b8] sm:$0xff] %v14719_v27  ;;  %v14721_v19 = vadd.f32 %v12609_v59, %v20107_v18 }
 0x780   : > { %12855 = vst [vmem:[%s18759_s11 + $0x6a8] sm:$0xff] %v14687_v54  ;;  %v14689_v7 = vadd.f32 %v12270_v28, %v20103_v53  ;;  %12880 = vst [vmem:[%s18759_s11 + $0x770] sm:$0xff] %v14720_v51 }
 0x781   : > { %12878 = vst [vmem:[%s18759_s11 + $0x760] sm:$0xff] %v14688_v24  ;;  %12881 = vst [vmem:[%s18759_s11 + $0x778] sm:$0xff] %v14721_v19 }
 0x782   : > { %12879 = vst [vmem:[%s18759_s11 + $0x768] sm:$0xff] %v14689_v7 }
 0x783   : > { %v12613_v43 = vpop.f32.mrb[180].mxu1 }
 0x784   : > { %v12274_v60 = vpop.f32.mrb[180].mxu0  ;;  %v14722_v49 = vadd.f32 %v12613_v43, %v20099_v39  ;;  %v12615_v45 = vpop.f32.mrb[181].mxu1 }
 0x785   : > { %v14690_v22 = vadd.f32 %v12274_v60, %v20095_v1  ;;  %v12276_v48 = vpop.f32.mrb[181].mxu0  ;;  %v14723_v46 = vadd.f32 %v12615_v45, %v20107_v18  ;;  %v12617_v36 = vpop.f32.mrb[182].mxu1 }
 0x786   : > { %v14691_v14 = vadd.f32 %v12276_v48, %v20103_v53  ;;  %v12278_v33 = vpop.f32.mrb[182].mxu0  ;;  %12904 = vst [vmem:[%s18759_s11 + $0x830] sm:$0xff] %v14722_v49  ;;  %v14724_v56 = vadd.f32 %v12617_v36, %v20099_v39  ;;  %v12619_v44 = vpop.f32.mrb[183].mxu1 }
 0x787   : > { %12902 = vst [vmem:[%s18759_s11 + $0x820] sm:$0xff] %v14690_v22  ;;  %v14692_v25 = vadd.f32 %v12278_v33, %v20095_v1  ;;  %v12280_v12 = vpop.f32.mrb[183].mxu0  ;;  %12905 = vst [vmem:[%s18759_s11 + $0x838] sm:$0xff] %v14723_v46  ;;  %v14725_v34 = vadd.f32 %v12619_v44, %v20107_v18 }
 0x788   : > { %12903 = vst [vmem:[%s18759_s11 + $0x828] sm:$0xff] %v14691_v14  ;;  %v14693_v17 = vadd.f32 %v12280_v12, %v20103_v53  ;;  %12928 = vst [vmem:[%s18759_s11 + $0x8f0] sm:$0xff] %v14724_v56 }
 0x789   : > { %12926 = vst [vmem:[%s18759_s11 + $0x8e0] sm:$0xff] %v14692_v25  ;;  %12929 = vst [vmem:[%s18759_s11 + $0x8f8] sm:$0xff] %v14725_v34 }
 0x78a   : > { %12927 = vst [vmem:[%s18759_s11 + $0x8e8] sm:$0xff] %v14693_v17 }
 0x78b   : > { %v12623_v42 = vpop.f32.mrb[184].mxu1 }
 0x78c   : > { %v12284_v30 = vpop.f32.mrb[184].mxu0  ;;  %v14726_v9 = vadd.f32 %v12623_v42, %v20099_v39  ;;  %v12625_v38 = vpop.f32.mrb[185].mxu1 }
 0x78d   : > { %v14694_v32 = vadd.f32 %v12284_v30, %v20095_v1  ;;  %v12286_v11 = vpop.f32.mrb[185].mxu0  ;;  %v14727_v4 = vadd.f32 %v12625_v38, %v20107_v18  ;;  %v12627_v6 = vpop.f32.mrb[186].mxu1 }
 0x78e   : > { %v14695_v8 = vadd.f32 %v12286_v11, %v20103_v53  ;;  %v12288_v23 = vpop.f32.mrb[186].mxu0  ;;  %12952 = vst [vmem:[%s18759_s11 + $0x9b0] sm:$0xff] %v14726_v9  ;;  %v14728_v0 = vadd.f32 %v12627_v6, %v20099_v39  ;;  %v12629_v20 = vpop.f32.mrb[187].mxu1 }
 0x78f   : > { %12950 = vst [vmem:[%s18759_s11 + $0x9a0] sm:$0xff] %v14694_v32  ;;  %v14696_v35 = vadd.f32 %v12288_v23, %v20095_v1  ;;  %v12290_v50 = vpop.f32.mrb[187].mxu0  ;;  %12953 = vst [vmem:[%s18759_s11 + $0x9b8] sm:$0xff] %v14727_v4  ;;  %v14729_v52 = vadd.f32 %v12629_v20, %v20107_v18 }
 0x790   : > { %12951 = vst [vmem:[%s18759_s11 + $0x9a8] sm:$0xff] %v14695_v8  ;;  %v14697_v40 = vadd.f32 %v12290_v50, %v20103_v53  ;;  %12976 = vst [vmem:[%s18759_s11 + $0xa70] sm:$0xff] %v14728_v0 }
 0x791   : > { %12974 = vst [vmem:[%s18759_s11 + $0xa60] sm:$0xff] %v14696_v35  ;;  %12977 = vst [vmem:[%s18759_s11 + $0xa78] sm:$0xff] %v14729_v52 }
 0x792   : > { %12975 = vst [vmem:[%s18759_s11 + $0xa68] sm:$0xff] %v14697_v40 }
 0x793   : > { %v12633_v16 = vpop.f32.mrb[188].mxu1 }
 0x794   : > { %v12294_v26 = vpop.f32.mrb[188].mxu0  ;;  %v14730_v61 = vadd.f32 %v12633_v16, %v20099_v39  ;;  %v12635_v29 = vpop.f32.mrb[189].mxu1 }
 0x795   : > { %v14698_v47 = vadd.f32 %v12294_v26, %v20095_v1  ;;  %v12296_v31 = vpop.f32.mrb[189].mxu0  ;;  %v14731_v15 = vadd.f32 %v12635_v29, %v20107_v18  ;;  %v12637_v5 = vpop.f32.mrb[190].mxu1 }
 0x796   : > { %v14699_v2 = vadd.f32 %v12296_v31, %v20103_v53  ;;  %v12298_v41 = vpop.f32.mrb[190].mxu0  ;;  %13000 = vst [vmem:[%s18759_s11 + $0xb30] sm:$0xff] %v14730_v61  ;;  %v14732_v10 = vadd.f32 %v12637_v5, %v20099_v39  ;;  %v12639_v62 = vpop.f32.mrb[191].mxu1 }
 0x797   : > { %12998 = vst [vmem:[%s18759_s11 + $0xb20] sm:$0xff] %v14698_v47  ;;  %v14700_v55 = vadd.f32 %v12298_v41, %v20095_v1  ;;  %v12300_v63 = vpop.f32.mrb[191].mxu0  ;;  %13001 = vst [vmem:[%s18759_s11 + $0xb38] sm:$0xff] %v14731_v15  ;;  %v14733_v57 = vadd.f32 %v12639_v62, %v20107_v18 }
 0x798   : > { %12999 = vst [vmem:[%s18759_s11 + $0xb28] sm:$0xff] %v14699_v2  ;;  %v14701_v13 = vadd.f32 %v12300_v63, %v20103_v53  ;;  %13024 = vst [vmem:[%s18759_s11 + $0xbf0] sm:$0xff] %v14732_v10 }
 0x799   : > { %13022 = vst [vmem:[%s18759_s11 + $0xbe0] sm:$0xff] %v14700_v55  ;;  %13025 = vst [vmem:[%s18759_s11 + $0xbf8] sm:$0xff] %v14733_v57 }
 0x79a   : > { %13023 = vst [vmem:[%s18759_s11 + $0xbe8] sm:$0xff] %v14701_v13 }
 0x79b   : > { %15826 = shalt.err (!%p15823_p13)
}
 0x79c   : > { %s15827_s16 = scalar_lea.hbm %s20234_s14, 49152  ;;  %s15831_s0 = scalar_lea.hbm %s20293_s6, 147456 }
 0x79d   : > { %p15828_p10 = scmp.ne.s32.totalorder %s20234_s14, %s15827_s16  ;;  %p15832_p7 = scmp.lt.u32.totalorder %s20234_s14, %s20293_s6 }
 0x79e   : > { %p15833_p9 = scmp.lt.u32.totalorder %s15831_s0, %s15827_s16  ;;  %p15835_p5 = scmp.lt.u32.totalorder %s15827_s16, %s20234_s14 }
 0x79f   : > { %p15829_p8 = pnand %p15828_p10, %p16100_p1 }
 0x7a0   : > { %p15834_p12 = por %p15833_p9, %p15832_p7 }
 0x7a1   : > { %p15830_p3 = pneg %p15829_p8 }
 0x7a2   : > { %p15836_p11 = por %p15835_p5, %p15834_p12 }
 0x7a4   : > { %p15837_p2 = pnand %p15836_p11, %p15830_p3 }
 0x7a6   : > { %15840 = shalt.err (!%p15837_p2)
}
 0x7a7   : > { %s15908_s27 = smov 3072   ;;  %s15909_s11 = smov 192  }
 0x7a8   : > { %15529 = dma.vmem_to_hbm [thread:$0]  (%p16100_p1), %s20240_s9, 49152, %s20234_s14, %s13027_s15, %s15908_s27, %s15908_s27, %s15909_s11  }
 0x7a9 PF: > { %p15564_p4 = scmp.ge.s32.totalorder %s15895_s24, 2  ;;  %s13056_s10 = sand.u32 1, %s15883_s21  }
 0x7aa   : > { %p21346_p6 = scmp.ne.s32.totalorder %s20685_s28, 0  ;;  %s13057_s25 = scalar_lea.sflag [#allocation4], %s13056_s10 }
 0x7ac   : > { %p15552_p0 = pnand %p15564_p4, %p21346_p6 }
 0x7ae   : > { %15878 = dma.done.wait (!%p15552_p0), %s13057_s25, 49152  }
 0x7af   : > { %15880 = vsyncadd (!%p15552_p0), %s13057_s25, 4294918144  ;;  %p24_p13 = scmp.ge.s32.totalorder %s16090_s18, 5   ;;  %s21347_s21 = smov %s15887_s22 }
 0x7b0   : > { %s21348_s22 = smov %s15891_s23  ;;  %s21349_s23 = smov %s16106_s26 }
 0x7b1   : > { %s21350_s24 = smov %s16090_s18  ;;  %26 = sbr.rel (!%p24_p13) target bundleno = 13 (0xd), region = 118 }
 0x7b8   :  { %13062 = vsyncpa [#allocation3], 1 }
 0x7b9   :  { %13064 = vsyncpa [#allocation3 + $0x1], 1 }
 0x7ba   :  { %13065 = vsyncpa [#allocation6], 1 }
 0x7bb   :  { %13067 = vsyncpa [#allocation6 + $0x1], 1 }
 0x7bc   :  { %13068 = vsyncpa [#allocation9], 1 }
 0x7bd   :  { %13069 = vsyncpa [#allocation12], 1 }
 0x7be   :  { %13070 = vsyncpa [#allocation4], 1 }
 0x7bf   :  { %13072 = vsyncpa [#allocation4 + $0x1], 1 }

</bundles_post_ra>
